<compile_context>
chip_gen: v7x
topology: tpu7x:2x2x1
jax: 0.10.0
libtpu: 0.0.40
codegen_flags: <defaults>
</compile_context>

<pallas_src>
import jax
import jax.numpy as jnp
from jax.experimental import pallas as pl
from jax.experimental.pallas import tpu as pltpu

_VMEM_LIMIT = 64 * 1024 * 1024  # <= physical VMEM on v5e/v6e/v7x, 2-4x default scoped limit


# ---------------------------------------------------------------------------
# In-kernel helpers (traced inline inside the kernels)
# ---------------------------------------------------------------------------
def _zero_pad_hw(a):
    """Zero-pad an (H, W, C) value by 1 on each side of H and W (in VMEM)."""
    H, W, C = a.shape
    zc = jnp.zeros((H, 1, C), a.dtype)
    zr = jnp.zeros((1, W + 2, C), a.dtype)
    return jnp.concatenate([zr, jnp.concatenate([zc, a, zc], axis=1), zr], axis=0)


def _conv3x3_one_matmul(a, w2d):
    """3x3 / stride-1 / pad-1 conv of an (H, W, Cin) activation as ONE MXU matmul.

    a   : (H, W, Cin) f32 post-BN-ReLU activation
    w2d : (9*Cin, Cout) bf16, row index = (kh*3 + kw)*Cin + cin  (HWIO reshaped)
    returns (H*W, Cout) f32 accumulator.
    """
    H, W, Cin = a.shape
    ap = _zero_pad_hw(a)
    # im2col slab (H, W, 9*Cin): lane-concat of the 9 shifted windows so the MXU
    # sees one K = 9*Cin contraction instead of 9 tiny K = Cin matmuls.
    taps = [ap[kh:kh + H, kw:kw + W, :] for kh in range(3) for kw in range(3)]
    slab = jnp.concatenate(taps, axis=-1).astype(jnp.bfloat16)
    return jnp.dot(slab.reshape(H * W, 9 * Cin), w2d,
                   preferred_element_type=jnp.float32)


# ---------------------------------------------------------------------------
# Kernels
# ---------------------------------------------------------------------------
def _bnrelu_conv3x3_stats_kernel(x_ref, scale_ref, bias_ref, w_ref,
                                 o_ref, sum_ref, sq_ref):
    """out = conv3x3(relu(x*scale + bias)); also emits per-channel sum / sumsq of
    the f32 conv output (for the next stage's BatchNorm), so the activation is not
    re-read from HBM just for statistics."""
    _, H, W, _ = x_ref.shape
    Cout = o_ref.shape[3]
    a = jnp.maximum(x_ref[0].astype(jnp.float32) * scale_ref[...] + bias_ref[...], 0.0)
    acc = _conv3x3_one_matmul(a, w_ref[...])                    # (H*W, Cout) f32
    o_ref[0] = acc.reshape(H, W, Cout).astype(o_ref.dtype)
    sum_ref[0] = jnp.sum(acc, axis=0, keepdims=True)
    sq_ref[0] = jnp.sum(acc * acc, axis=0, keepdims=True)


def _conv3_cat_downsample_kernel(x2_ref, x1_ref, x0_ref,
                                 s3_ref, b3_ref, w3_ref,
                                 sd_ref, bd_ref, wd_ref, o_ref):
    """Fused tail of the block (downsample residual):
         out3 = conv3x3(relu(bn3(out2)))
         res  = conv1x1(relu(bn_d(x)))
         out  = concat(out1, out2, out3) + res     (single lane-dense store)."""
    _, H, W, C2 = x2_ref.shape
    C1 = x1_ref.shape[3]
    Cin = x0_ref.shape[3]
    Cout = o_ref.shape[3]
    f32 = jnp.float32

    # conv3 branch (one K = 9*C2 matmul)
    a3 = jnp.maximum(x2_ref[0].astype(f32) * s3_ref[...] + b3_ref[...], 0.0)
    out3 = _conv3x3_one_matmul(a3, w3_ref[...])                 # (H*W, C3) f32

    # 1x1 downsample residual (one matmul)
    ad = jnp.maximum(x0_ref[0].astype(f32) * sd_ref[...] + bd_ref[...], 0.0)
    res = jnp.dot(ad.reshape(H * W, Cin).astype(jnp.bfloat16), wd_ref[...],
                  preferred_element_type=jnp.float32)           # (H*W, Cout) f32

    cat = jnp.concatenate([x1_ref[0].reshape(H * W, C1).astype(f32),
                           x2_ref[0].reshape(H * W, C2).astype(f32),
                           out3], axis=-1)
    o_ref[0] = (cat + res).reshape(H, W, Cout).astype(o_ref.dtype)


def _conv3_cat_identity_kernel(x2_ref, x1_ref, x0_ref,
                               s3_ref, b3_ref, w3_ref, o_ref):
    """Fused tail of the block (identity residual, in_planes == out_planes):
         out3 = conv3x3(relu(bn3(out2)))
         out  = concat(out1, out2, out3) + x       (single lane-dense store)."""
    _, H, W, C2 = x2_ref.shape
    C1 = x1_ref.shape[3]
    Cout = o_ref.shape[3]
    f32 = jnp.float32

    a3 = jnp.maximum(x2_ref[0].astype(f32) * s3_ref[...] + b3_ref[...], 0.0)
    out3 = _conv3x3_one_matmul(a3, w3_ref[...])                 # (H*W, C3) f32

    cat = jnp.concatenate([x1_ref[0].reshape(H * W, C1).astype(f32),
                           x2_ref[0].reshape(H * W, C2).astype(f32),
                           out3], axis=-1)
    res = x0_ref[0].astype(f32).reshape(H * W, Cout)
    o_ref[0] = (cat + res).reshape(H, W, Cout).astype(o_ref.dtype)


# ---------------------------------------------------------------------------
# Wrappers
# ---------------------------------------------------------------------------
def bnrelu_conv3x3_stats(x_nhwc, scale, bias, w_hwio):
    N, H, W, Cin = x_nhwc.shape
    Cout = w_hwio.shape[-1]
    w2d = w_hwio.reshape(9 * Cin, Cout).astype(jnp.bfloat16)
    scale3 = scale.reshape(1, 1, Cin).astype(jnp.float32)
    bias3 = bias.reshape(1, 1, Cin).astype(jnp.float32)
    return pl.pallas_call(
        _bnrelu_conv3x3_stats_kernel,
        out_shape=(jax.ShapeDtypeStruct((N, H, W, Cout), jnp.bfloat16),
                   jax.ShapeDtypeStruct((N, 1, Cout), jnp.float32),
                   jax.ShapeDtypeStruct((N, 1, Cout), jnp.float32)),
        grid=(N,),
        in_specs=[
            pl.BlockSpec((1, H, W, Cin), lambda n: (n, 0, 0, 0)),
            pl.BlockSpec((1, 1, Cin), lambda n: (0, 0, 0)),
            pl.BlockSpec((1, 1, Cin), lambda n: (0, 0, 0)),
            pl.BlockSpec((9 * Cin, Cout), lambda n: (0, 0)),
        ],
        out_specs=[
            pl.BlockSpec((1, H, W, Cout), lambda n: (n, 0, 0, 0)),
            pl.BlockSpec((1, 1, Cout), lambda n: (n, 0, 0)),
            pl.BlockSpec((1, 1, Cout), lambda n: (n, 0, 0)),
        ],
        compiler_params=pltpu.CompilerParams(
            dimension_semantics=("parallel",),
            vmem_limit_bytes=_VMEM_LIMIT),
    )(x_nhwc, scale3, bias3, w2d)


def conv3_cat_downsample(out2, out1, x, scale3, bias3, w3_hwio, scaled, biasd, wd):
    N, H, W, C2 = out2.shape
    C1 = out1.shape[-1]
    Cin = x.shape[-1]
    C3 = w3_hwio.shape[-1]
    Cout = C1 + C2 + C3
    w3_2d = w3_hwio.reshape(9 * C2, C3).astype(jnp.bfloat16)
    wd_bf = wd.astype(jnp.bfloat16)
    s3 = scale3.reshape(1, 1, C2).astype(jnp.float32)
    b3 = bias3.reshape(1, 1, C2).astype(jnp.float32)
    sd = scaled.reshape(1, 1, Cin).astype(jnp.float32)
    bd = biasd.reshape(1, 1, Cin).astype(jnp.float32)
    return pl.pallas_call(
        _conv3_cat_downsample_kernel,
        out_shape=jax.ShapeDtypeStruct((N, H, W, Cout), jnp.float32),
        grid=(N,),
        in_specs=[
            pl.BlockSpec((1, H, W, C2), lambda n: (n, 0, 0, 0)),
            pl.BlockSpec((1, H, W, C1), lambda n: (n, 0, 0, 0)),
            pl.BlockSpec((1, H, W, Cin), lambda n: (n, 0, 0, 0)),
            pl.BlockSpec((1, 1, C2), lambda n: (0, 0, 0)),
            pl.BlockSpec((1, 1, C2), lambda n: (0, 0, 0)),
            pl.BlockSpec((9 * C2, C3), lambda n: (0, 0)),
            pl.BlockSpec((1, 1, Cin), lambda n: (0, 0, 0)),
            pl.BlockSpec((1, 1, Cin), lambda n: (0, 0, 0)),
            pl.BlockSpec((Cin, Cout), lambda n: (0, 0)),
        ],
        out_specs=pl.BlockSpec((1, H, W, Cout), lambda n: (n, 0, 0, 0)),
        compiler_params=pltpu.CompilerParams(
            dimension_semantics=("parallel",),
            vmem_limit_bytes=_VMEM_LIMIT),
    )(out2, out1, x, s3, b3, w3_2d, sd, bd, wd_bf)


def conv3_cat_identity(out2, out1, x, scale3, bias3, w3_hwio):
    N, H, W, C2 = out2.shape
    C1 = out1.shape[-1]
    Cout = x.shape[-1]
    C3 = w3_hwio.shape[-1]
    assert C1 + C2 + C3 == Cout
    w3_2d = w3_hwio.reshape(9 * C2, C3).astype(jnp.bfloat16)
    s3 = scale3.reshape(1, 1, C2).astype(jnp.float32)
    b3 = bias3.reshape(1, 1, C2).astype(jnp.float32)
    return pl.pallas_call(
        _conv3_cat_identity_kernel,
        out_shape=jax.ShapeDtypeStruct((N, H, W, Cout), jnp.float32),
        grid=(N,),
        in_specs=[
            pl.BlockSpec((1, H, W, C2), lambda n: (n, 0, 0, 0)),
            pl.BlockSpec((1, H, W, C1), lambda n: (n, 0, 0, 0)),
            pl.BlockSpec((1, H, W, Cout), lambda n: (n, 0, 0, 0)),
            pl.BlockSpec((1, 1, C2), lambda n: (0, 0, 0)),
            pl.BlockSpec((1, 1, C2), lambda n: (0, 0, 0)),
            pl.BlockSpec((9 * C2, C3), lambda n: (0, 0)),
        ],
        out_specs=pl.BlockSpec((1, H, W, Cout), lambda n: (n, 0, 0, 0)),
        compiler_params=pltpu.CompilerParams(
            dimension_semantics=("parallel",),
            vmem_limit_bytes=_VMEM_LIMIT),
    )(out2, out1, x, s3, b3, w3_2d)


# ---------------------------------------------------------------------------
# BatchNorm folding glue (tiny per-channel scalar math, plain JAX)
# ---------------------------------------------------------------------------
def _bn_fold_moments(s, sq, count, gamma, beta, eps=1e-5):
    """Fold training-mode BN (batch mean, biased var) into per-channel scale/bias
    from one-pass moments (sum, sum of squares)."""
    mean = s / count
    var = jnp.maximum(sq / count - mean * mean, 0.0)
    scale = gamma / jnp.sqrt(var + eps)
    bias = beta - mean * scale
    return scale, bias


# ---------------------------------------------------------------------------
# ConvBlock: params + forward
# ---------------------------------------------------------------------------
def init_params(key, in_planes, out_planes):
    c1 = out_planes // 2
    c2 = out_planes // 4
    ks = jax.random.split(key, 12)
    p = {
        "bn1_g": 1.0 + 0.1 * jax.random.normal(ks[0], (in_planes,), jnp.float32),
        "bn1_b": 0.1 * jax.random.normal(ks[1], (in_planes,), jnp.float32),
        "w1": 0.2 * jax.random.normal(ks[2], (3, 3, in_planes, c1), jnp.float32),
        "bn2_g": 1.0 + 0.1 * jax.random.normal(ks[3], (c1,), jnp.float32),
        "bn2_b": 0.1 * jax.random.normal(ks[4], (c1,), jnp.float32),
        "w2": 0.2 * jax.random.normal(ks[5], (3, 3, c1, c2), jnp.float32),
        "bn3_g": 1.0 + 0.1 * jax.random.normal(ks[6], (c2,), jnp.float32),
        "bn3_b": 0.1 * jax.random.normal(ks[7], (c2,), jnp.float32),
        "w3": 0.2 * jax.random.normal(ks[8], (3, 3, c2, c2), jnp.float32),
    }
    if in_planes != out_planes:
        p["bnd_g"] = 1.0 + 0.1 * jax.random.normal(ks[9], (in_planes,), jnp.float32)
        p["bnd_b"] = 0.1 * jax.random.normal(ks[10], (in_planes,), jnp.float32)
        p["wd"] = 0.2 * jax.random.normal(ks[11], (in_planes, out_planes), jnp.float32)
    return p


def conv_block_forward(params, x_nchw, in_planes, out_planes):
    x = jnp.transpose(x_nchw, (0, 2, 3, 1)).astype(jnp.float32)  # NCHW -> NHWC
    N, H, W, _ = x.shape
    count = N * H * W

    # one-pass moments of x (shared by bn1 and the downsample's BN)
    sx = jnp.sum(x, axis=(0, 1, 2))
    sqx = jnp.sum(jnp.square(x), axis=(0, 1, 2))

    s1, b1 = _bn_fold_moments(sx, sqx, count, params["bn1_g"], params["bn1_b"])
    out1, sum1, sq1 = bnrelu_conv3x3_stats(x, s1, b1, params["w1"])

    s2, b2 = _bn_fold_moments(jnp.sum(sum1, axis=(0, 1)), jnp.sum(sq1, axis=(0, 1)),
                              count, params["bn2_g"], params["bn2_b"])
    out2, sum2, sq2 = bnrelu_conv3x3_stats(out1, s2, b2, params["w2"])

    s3, b3 = _bn_fold_moments(jnp.sum(sum2, axis=(0, 1)), jnp.sum(sq2, axis=(0, 1)),
                              count, params["bn3_g"], params["bn3_b"])

    if in_planes != out_planes:
        sd, bd = _bn_fold_moments(sx, sqx, count, params["bnd_g"], params["bnd_b"])
        out = conv3_cat_downsample(out2, out1, x, s3, b3, params["w3"],
                                   sd, bd, params["wd"])
    else:
        out = conv3_cat_identity(out2, out1, x, s3, b3, params["w3"])

    return jnp.transpose(out, (0, 3, 1, 2))  # NHWC -> NCHW


# ---------------------------------------------------------------------------
# Pure-JAX f32 reference (for correctness check)
# ---------------------------------------------------------------------------
def conv_block_ref(params, x_nchw, in_planes, out_planes):
    x = jnp.transpose(x_nchw, (0, 2, 3, 1)).astype(jnp.float32)

    def conv(a, w, pad):
        return jax.lax.conv_general_dilated(
            a, w, (1, 1), [(pad, pad), (pad, pad)],
            dimension_numbers=("NHWC", "HWIO", "NHWC"))

    def bnrelu(a, g, b, eps=1e-5):
        mean = jnp.mean(a, axis=(0, 1, 2))
        var = jnp.mean(jnp.square(a - mean), axis=(0, 1, 2))
        s = g / jnp.sqrt(var + eps)
        bb = b - mean * s
        return jnp.maximum(a * s + bb, 0.0)

    o1 = conv(bnrelu(x, params["bn1_g"], params["bn1_b"]), params["w1"], 1)
    o2 = conv(bnrelu(o1, params["bn2_g"], params["bn2_b"]), params["w2"], 1)
    o3 = conv(bnrelu(o2, params["bn3_g"], params["bn3_b"]), params["w3"], 1)
    cat = jnp.concatenate([o1, o2, o3], axis=-1)
    if in_planes != out_planes:
        wd = params["wd"].reshape(1, 1, in_planes, out_planes)
        res = conv(bnrelu(x, params["bnd_g"], params["bnd_b"]), wd, 0)
    else:
        res = x
    return jnp.transpose(cat + res, (0, 3, 1, 2))


# ---------------------------------------------------------------------------
if __name__ == "__main__":
    key = jax.random.PRNGKey(0)
    fwd = jax.jit(conv_block_forward, static_argnums=(2, 3))

    def check(in_planes, out_planes, N, H, W, seed_idx):
        kx, kp = jax.random.split(jax.random.fold_in(key, seed_idx))
        x = jax.random.normal(kx, (N, in_planes, H, W), jnp.float32)
        params = init_params(kp, in_planes, out_planes)
        out = jax.block_until_ready(fwd(params, x, in_planes, out_planes))
        assert out.shape == (N, out_planes, H, W)
        ref = conv_block_ref(params, x, in_planes, out_planes)
        max_err = float(jnp.max(jnp.abs(out - ref)))
        # bf16 MXU operands + bf16 intermediate activations -> widened tolerance vs f32 ref.
        tol = 5e-2 * float(jnp.max(jnp.abs(ref))) + 5e-2
        assert max_err < tol, (
            f"mismatch vs reference (in={in_planes}, out={out_planes}): "
            f"{max_err} (tol {tol})")

    # Downsample-residual path (in_planes != out_planes) -- primary test case.
    check(in_planes=4, out_planes=8, N=2, H=16, W=16, seed_idx=0)
    # Identity-residual path (in_planes == out_planes) -- fused tail variant.
    check(in_planes=8, out_planes=8, N=2, H=16, W=16, seed_idx=1)

    print("KERNEL_OK")
</pallas_src>

<mosaic_0001>
module attributes {stable_mosaic.version = 11 : i64} {
  func.func @_bnrelu_conv3x3_stats_kernel(%arg0: i32, %arg1: memref<1x16x16x4xf32, #tpu.memory_space<vmem>>, %arg2: memref<1x1x4xf32, #tpu.memory_space<vmem>>, %arg3: memref<1x1x4xf32, #tpu.memory_space<vmem>>, %arg4: memref<36x4xbf16, #tpu.memory_space<vmem>>, %arg5: memref<1x16x16x4xbf16, #tpu.memory_space<vmem>>, %arg6: memref<1x1x4xf32, #tpu.memory_space<vmem>>, %arg7: memref<1x1x4xf32, #tpu.memory_space<vmem>>) attributes {dimension_semantics = [#tpu.dimension_semantics<parallel>], iteration_bounds = array<i64: 2>, scalar_prefetch = 0 : i64, scratch_operands = 0 : i64, tpu.core_type = #tpu.core_type<tc>, window_params = [{transform_indices = @transform_0, window_bounds = array<i64: 1, 16, 16, 4>}, {pipeline_mode = #tpu.pipeline_mode<synchronous>, transform_indices = @transform_1, window_bounds = array<i64: 1, 1, 4>}, {pipeline_mode = #tpu.pipeline_mode<synchronous>, transform_indices = @transform_2, window_bounds = array<i64: 1, 1, 4>}, {pipeline_mode = #tpu.pipeline_mode<synchronous>, transform_indices = @transform_3, window_bounds = array<i64: 36, 4>}, {transform_indices = @transform_4, window_bounds = array<i64: 1, 16, 16, 4>}, {transform_indices = @transform_5, window_bounds = array<i64: 1, 1, 4>}, {transform_indices = @transform_6, window_bounds = array<i64: 1, 1, 4>}]} {
    %c0 = arith.constant 0 : index
    %c0_0 = arith.constant 0 : index
    %c0_1 = arith.constant 0 : index
    %c0_2 = arith.constant 0 : index
    %0 = vector.load %arg1[%c0, %c0_0, %c0_1, %c0_2] : memref<1x16x16x4xf32, #tpu.memory_space<vmem>>, vector<1x16x16x4xf32>
    %1 = vector.shape_cast %0 : vector<1x16x16x4xf32> to vector<16x16x4xf32>
    %c0_3 = arith.constant 0 : index
    %c0_4 = arith.constant 0 : index
    %c0_5 = arith.constant 0 : index
    %2 = vector.load %arg2[%c0_3, %c0_4, %c0_5] : memref<1x1x4xf32, #tpu.memory_space<vmem>>, vector<1x1x4xf32>
    %3 = vector.broadcast %2 : vector<1x1x4xf32> to vector<16x16x4xf32>
    %4 = arith.mulf %1, %3 : vector<16x16x4xf32>
    %c0_6 = arith.constant 0 : index
    %c0_7 = arith.constant 0 : index
    %c0_8 = arith.constant 0 : index
    %5 = vector.load %arg3[%c0_6, %c0_7, %c0_8] : memref<1x1x4xf32, #tpu.memory_space<vmem>>, vector<1x1x4xf32>
    %6 = vector.broadcast %5 : vector<1x1x4xf32> to vector<16x16x4xf32>
    %7 = arith.addf %4, %6 : vector<16x16x4xf32>
    %cst = arith.constant 0.000000e+00 : f32
    %8 = vector.broadcast %cst : f32 to vector<16x16x4xf32>
    %9 = arith.maximumf %7, %8 : vector<16x16x4xf32>
    %c0_9 = arith.constant 0 : index
    %c0_10 = arith.constant 0 : index
    %10 = vector.load %arg4[%c0_9, %c0_10] : memref<36x4xbf16, #tpu.memory_space<vmem>>, vector<36x4xbf16>
    %cst_11 = arith.constant 0.000000e+00 : f32
    %11 = vector.broadcast %cst_11 : f32 to vector<16x1x4xf32>
    %cst_12 = arith.constant 0.000000e+00 : f32
    %12 = vector.broadcast %cst_12 : f32 to vector<1x18x4xf32>
    %13 = tpu.concatenate %11, %9, %11 in 1 : vector<16x1x4xf32>, vector<16x16x4xf32>, vector<16x1x4xf32> -> vector<16x18x4xf32>
    %14 = tpu.concatenate %12, %13, %12 in 0 : vector<1x18x4xf32>, vector<16x18x4xf32>, vector<1x18x4xf32> -> vector<18x18x4xf32>
    %15 = vector.extract_strided_slice %14 {offsets = [0, 0, 0], sizes = [16, 16, 4], strides = [1, 1, 1]} : vector<18x18x4xf32> to vector<16x16x4xf32>
    %16 = vector.extract_strided_slice %14 {offsets = [0, 1, 0], sizes = [16, 16, 4], strides = [1, 1, 1]} : vector<18x18x4xf32> to vector<16x16x4xf32>
    %17 = vector.extract_strided_slice %14 {offsets = [0, 2, 0], sizes = [16, 16, 4], strides = [1, 1, 1]} : vector<18x18x4xf32> to vector<16x16x4xf32>
    %18 = vector.extract_strided_slice %14 {offsets = [1, 0, 0], sizes = [16, 16, 4], strides = [1, 1, 1]} : vector<18x18x4xf32> to vector<16x16x4xf32>
    %19 = vector.extract_strided_slice %14 {offsets = [1, 1, 0], sizes = [16, 16, 4], strides = [1, 1, 1]} : vector<18x18x4xf32> to vector<16x16x4xf32>
    %20 = vector.extract_strided_slice %14 {offsets = [1, 2, 0], sizes = [16, 16, 4], strides = [1, 1, 1]} : vector<18x18x4xf32> to vector<16x16x4xf32>
    %21 = vector.extract_strided_slice %14 {offsets = [2, 0, 0], sizes = [16, 16, 4], strides = [1, 1, 1]} : vector<18x18x4xf32> to vector<16x16x4xf32>
    %22 = vector.extract_strided_slice %14 {offsets = [2, 1, 0], sizes = [16, 16, 4], strides = [1, 1, 1]} : vector<18x18x4xf32> to vector<16x16x4xf32>
    %23 = vector.extract_strided_slice %14 {offsets = [2, 2, 0], sizes = [16, 16, 4], strides = [1, 1, 1]} : vector<18x18x4xf32> to vector<16x16x4xf32>
    %24 = tpu.concatenate %15, %16, %17, %18, %19, %20, %21, %22, %23 in 2 : vector<16x16x4xf32>, vector<16x16x4xf32>, vector<16x16x4xf32>, vector<16x16x4xf32>, vector<16x16x4xf32>, vector<16x16x4xf32>, vector<16x16x4xf32>, vector<16x16x4xf32>, vector<16x16x4xf32> -> vector<16x16x36xf32>
    %25 = arith.truncf %24 : vector<16x16x36xf32> to vector<16x16x36xbf16>
    %26 = vector.shape_cast %25 : vector<16x16x36xbf16> to vector<256x36xbf16>
    %cst_13 = arith.constant dense<0.000000e+00> : vector<256x4xf32>
    %27 = tpu.matmul %26, %10, %cst_13 {dimension_numbers = #tpu.dot_dimension_numbers<[1], [0], [0], [1], [0, 0, 1, 1], [], []>} : vector<256x36xbf16>, vector<36x4xbf16>, vector<256x4xf32> -> vector<256x4xf32>
    %28 = vector.shape_cast %27 : vector<256x4xf32> to vector<16x16x4xf32>
    %29 = arith.truncf %28 : vector<16x16x4xf32> to vector<16x16x4xbf16>
    %c0_14 = arith.constant 0 : index
    %c0_15 = arith.constant 0 : index
    %c0_16 = arith.constant 0 : index
    %c0_17 = arith.constant 0 : index
    %30 = vector.load %arg5[%c0_14, %c0_15, %c0_16, %c0_17] : memref<1x16x16x4xbf16, #tpu.memory_space<vmem>>, vector<1x16x16x4xbf16>
    %31 = vector.shape_cast %30 : vector<1x16x16x4xbf16> to vector<16x16x4xbf16>
    %32 = vector.shape_cast %29 : vector<16x16x4xbf16> to vector<1x16x16x4xbf16>
    tpu.vector_store %arg5[%c0_14, %c0_15, %c0_16, %c0_17], %32 {strides = array<i32>} : memref<1x16x16x4xbf16, #tpu.memory_space<vmem>>, vector<1x16x16x4xbf16>,
    %cst_18 = arith.constant dense<0.000000e+00> : vector<4xf32>
    %33 = vector.multi_reduction <add>, %27, %cst_18 [0] : vector<256x4xf32> to vector<4xf32>
    %34 = vector.shape_cast %33 : vector<4xf32> to vector<1x4xf32>
    %c0_19 = arith.constant 0 : index
    %c0_20 = arith.constant 0 : index
    %c0_21 = arith.constant 0 : index
    %35 = vector.load %arg6[%c0_19, %c0_20, %c0_21] : memref<1x1x4xf32, #tpu.memory_space<vmem>>, vector<1x1x4xf32>
    %36 = vector.shape_cast %35 : vector<1x1x4xf32> to vector<1x4xf32>
    %37 = vector.shape_cast %34 : vector<1x4xf32> to vector<1x1x4xf32>
    tpu.vector_store %arg6[%c0_19, %c0_20, %c0_21], %37 {strides = array<i32>} : memref<1x1x4xf32, #tpu.memory_space<vmem>>, vector<1x1x4xf32>,
    %38 = arith.mulf %27, %27 : vector<256x4xf32>
    %cst_22 = arith.constant dense<0.000000e+00> : vector<4xf32>
    %39 = vector.multi_reduction <add>, %38, %cst_22 [0] : vector<256x4xf32> to vector<4xf32>
    %40 = vector.shape_cast %39 : vector<4xf32> to vector<1x4xf32>
    %c0_23 = arith.constant 0 : index
    %c0_24 = arith.constant 0 : index
    %c0_25 = arith.constant 0 : index
    %41 = vector.load %arg7[%c0_23, %c0_24, %c0_25] : memref<1x1x4xf32, #tpu.memory_space<vmem>>, vector<1x1x4xf32>
    %42 = vector.shape_cast %41 : vector<1x1x4xf32> to vector<1x4xf32>
    %43 = vector.shape_cast %40 : vector<1x4xf32> to vector<1x1x4xf32>
    tpu.vector_store %arg7[%c0_23, %c0_24, %c0_25], %43 {strides = array<i32>} : memref<1x1x4xf32, #tpu.memory_space<vmem>>, vector<1x1x4xf32>,
    return
  }
  func.func @transform_0(%arg0: i32) -> (i32, i32, i32, i32) {
    %c0_i32 = arith.constant 0 : i32
    %c0_i32_0 = arith.constant 0 : i32
    %c0_i32_1 = arith.constant 0 : i32
    %c0_i32_2 = arith.constant 0 : i32
    return %arg0, %c0_i32, %c0_i32_0, %c0_i32_1 : i32, i32, i32, i32
  }
  func.func @transform_1(%arg0: i32) -> (i32, i32, i32) {
    %c0_i32 = arith.constant 0 : i32
    %c0_i32_0 = arith.constant 0 : i32
    %c0_i32_1 = arith.constant 0 : i32
    %c0_i32_2 = arith.constant 0 : i32
    return %c0_i32, %c0_i32_0, %c0_i32_1 : i32, i32, i32
  }
  func.func @transform_2(%arg0: i32) -> (i32, i32, i32) {
    %c0_i32 = arith.constant 0 : i32
    %c0_i32_0 = arith.constant 0 : i32
    %c0_i32_1 = arith.constant 0 : i32
    %c0_i32_2 = arith.constant 0 : i32
    return %c0_i32, %c0_i32_0, %c0_i32_1 : i32, i32, i32
  }
  func.func @transform_3(%arg0: i32) -> (i32, i32) {
    %c0_i32 = arith.constant 0 : i32
    %c0_i32_0 = arith.constant 0 : i32
    %c0_i32_1 = arith.constant 0 : i32
    return %c0_i32, %c0_i32_0 : i32, i32
  }
  func.func @transform_4(%arg0: i32) -> (i32, i32, i32, i32) {
    %c0_i32 = arith.constant 0 : i32
    %c0_i32_0 = arith.constant 0 : i32
    %c0_i32_1 = arith.constant 0 : i32
    %c0_i32_2 = arith.constant 0 : i32
    return %arg0, %c0_i32, %c0_i32_0, %c0_i32_1 : i32, i32, i32, i32
  }
  func.func @transform_5(%arg0: i32) -> (i32, i32, i32) {
    %c0_i32 = arith.constant 0 : i32
    %c0_i32_0 = arith.constant 0 : i32
    %c0_i32_1 = arith.constant 0 : i32
    return %arg0, %c0_i32, %c0_i32_0 : i32, i32, i32
  }
  func.func @transform_6(%arg0: i32) -> (i32, i32, i32) {
    %c0_i32 = arith.constant 0 : i32
    %c0_i32_0 = arith.constant 0 : i32
    %c0_i32_1 = arith.constant 0 : i32
    return %arg0, %c0_i32, %c0_i32_0 : i32, i32, i32
  }
}

module attributes {stable_mosaic.version = 11 : i64} {
  func.func @_conv3_cat_downsample_kernel(%arg0: i32, %arg1: memref<1x16x16x2xbf16, #tpu.memory_space<vmem>>, %arg2: memref<1x16x16x4xbf16, #tpu.memory_space<vmem>>, %arg3: memref<1x16x16x4xf32, #tpu.memory_space<vmem>>, %arg4: memref<1x1x2xf32, #tpu.memory_space<vmem>>, %arg5: memref<1x1x2xf32, #tpu.memory_space<vmem>>, %arg6: memref<18x2xbf16, #tpu.memory_space<vmem>>, %arg7: memref<1x1x4xf32, #tpu.memory_space<vmem>>, %arg8: memref<1x1x4xf32, #tpu.memory_space<vmem>>, %arg9: memref<4x8xbf16, #tpu.memory_space<vmem>>, %arg10: memref<1x16x16x8xf32, #tpu.memory_space<vmem>>) attributes {dimension_semantics = [#tpu.dimension_semantics<parallel>], iteration_bounds = array<i64: 2>, scalar_prefetch = 0 : i64, scratch_operands = 0 : i64, tpu.core_type = #tpu.core_type<tc>, window_params = [{transform_indices = @transform_0, window_bounds = array<i64: 1, 16, 16, 2>}, {transform_indices = @transform_1, window_bounds = array<i64: 1, 16, 16, 4>}, {transform_indices = @transform_2, window_bounds = array<i64: 1, 16, 16, 4>}, {pipeline_mode = #tpu.pipeline_mode<synchronous>, transform_indices = @transform_3, window_bounds = array<i64: 1, 1, 2>}, {pipeline_mode = #tpu.pipeline_mode<synchronous>, transform_indices = @transform_4, window_bounds = array<i64: 1, 1, 2>}, {pipeline_mode = #tpu.pipeline_mode<synchronous>, transform_indices = @transform_5, window_bounds = array<i64: 18, 2>}, {pipeline_mode = #tpu.pipeline_mode<synchronous>, transform_indices = @transform_6, window_bounds = array<i64: 1, 1, 4>}, {pipeline_mode = #tpu.pipeline_mode<synchronous>, transform_indices = @transform_7, window_bounds = array<i64: 1, 1, 4>}, {pipeline_mode = #tpu.pipeline_mode<synchronous>, transform_indices = @transform_8, window_bounds = array<i64: 4, 8>}, {transform_indices = @transform_9, window_bounds = array<i64: 1, 16, 16, 8>}]} {
    %c0 = arith.constant 0 : index
    %c0_0 = arith.constant 0 : index
    %c0_1 = arith.constant 0 : index
    %c0_2 = arith.constant 0 : index
    %0 = vector.load %arg1[%c0, %c0_0, %c0_1, %c0_2] : memref<1x16x16x2xbf16, #tpu.memory_space<vmem>>, vector<1x16x16x2xbf16>
    %1 = vector.shape_cast %0 : vector<1x16x16x2xbf16> to vector<16x16x2xbf16>
    %2 = arith.extf %1 : vector<16x16x2xbf16> to vector<16x16x2xf32>
    %c0_3 = arith.constant 0 : index
    %c0_4 = arith.constant 0 : index
    %c0_5 = arith.constant 0 : index
    %3 = vector.load %arg4[%c0_3, %c0_4, %c0_5] : memref<1x1x2xf32, #tpu.memory_space<vmem>>, vector<1x1x2xf32>
    %4 = vector.broadcast %3 : vector<1x1x2xf32> to vector<16x16x2xf32>
    %5 = arith.mulf %2, %4 : vector<16x16x2xf32>
    %c0_6 = arith.constant 0 : index
    %c0_7 = arith.constant 0 : index
    %c0_8 = arith.constant 0 : index
    %6 = vector.load %arg5[%c0_6, %c0_7, %c0_8] : memref<1x1x2xf32, #tpu.memory_space<vmem>>, vector<1x1x2xf32>
    %7 = vector.broadcast %6 : vector<1x1x2xf32> to vector<16x16x2xf32>
    %8 = arith.addf %5, %7 : vector<16x16x2xf32>
    %cst = arith.constant 0.000000e+00 : f32
    %9 = vector.broadcast %cst : f32 to vector<16x16x2xf32>
    %10 = arith.maximumf %8, %9 : vector<16x16x2xf32>
    %c0_9 = arith.constant 0 : index
    %c0_10 = arith.constant 0 : index
    %11 = vector.load %arg6[%c0_9, %c0_10] : memref<18x2xbf16, #tpu.memory_space<vmem>>, vector<18x2xbf16>
    %cst_11 = arith.constant 0.000000e+00 : f32
    %12 = vector.broadcast %cst_11 : f32 to vector<16x1x2xf32>
    %cst_12 = arith.constant 0.000000e+00 : f32
    %13 = vector.broadcast %cst_12 : f32 to vector<1x18x2xf32>
    %14 = tpu.concatenate %12, %10, %12 in 1 : vector<16x1x2xf32>, vector<16x16x2xf32>, vector<16x1x2xf32> -> vector<16x18x2xf32>
    %15 = tpu.concatenate %13, %14, %13 in 0 : vector<1x18x2xf32>, vector<16x18x2xf32>, vector<1x18x2xf32> -> vector<18x18x2xf32>
    %16 = vector.extract_strided_slice %15 {offsets = [0, 0, 0], sizes = [16, 16, 2], strides = [1, 1, 1]} : vector<18x18x2xf32> to vector<16x16x2xf32>
    %17 = vector.extract_strided_slice %15 {offsets = [0, 1, 0], sizes = [16, 16, 2], strides = [1, 1, 1]} : vector<18x18x2xf32> to vector<16x16x2xf32>
    %18 = vector.extract_strided_slice %15 {offsets = [0, 2, 0], sizes = [16, 16, 2], strides = [1, 1, 1]} : vector<18x18x2xf32> to vector<16x16x2xf32>
    %19 = vector.extract_strided_slice %15 {offsets = [1, 0, 0], sizes = [16, 16, 2], strides = [1, 1, 1]} : vector<18x18x2xf32> to vector<16x16x2xf32>
    %20 = vector.extract_strided_slice %15 {offsets = [1, 1, 0], sizes = [16, 16, 2], strides = [1, 1, 1]} : vector<18x18x2xf32> to vector<16x16x2xf32>
    %21 = vector.extract_strided_slice %15 {offsets = [1, 2, 0], sizes = [16, 16, 2], strides = [1, 1, 1]} : vector<18x18x2xf32> to vector<16x16x2xf32>
    %22 = vector.extract_strided_slice %15 {offsets = [2, 0, 0], sizes = [16, 16, 2], strides = [1, 1, 1]} : vector<18x18x2xf32> to vector<16x16x2xf32>
    %23 = vector.extract_strided_slice %15 {offsets = [2, 1, 0], sizes = [16, 16, 2], strides = [1, 1, 1]} : vector<18x18x2xf32> to vector<16x16x2xf32>
    %24 = vector.extract_strided_slice %15 {offsets = [2, 2, 0], sizes = [16, 16, 2], strides = [1, 1, 1]} : vector<18x18x2xf32> to vector<16x16x2xf32>
    %25 = tpu.concatenate %16, %17, %18, %19, %20, %21, %22, %23, %24 in 2 : vector<16x16x2xf32>, vector<16x16x2xf32>, vector<16x16x2xf32>, vector<16x16x2xf32>, vector<16x16x2xf32>, vector<16x16x2xf32>, vector<16x16x2xf32>, vector<16x16x2xf32>, vector<16x16x2xf32> -> vector<16x16x18xf32>
    %26 = arith.truncf %25 : vector<16x16x18xf32> to vector<16x16x18xbf16>
    %27 = vector.shape_cast %26 : vector<16x16x18xbf16> to vector<256x18xbf16>
    %cst_13 = arith.constant dense<0.000000e+00> : vector<256x2xf32>
    %28 = tpu.matmul %27, %11, %cst_13 {dimension_numbers = #tpu.dot_dimension_numbers<[1], [0], [0], [1], [0, 0, 1, 1], [], []>} : vector<256x18xbf16>, vector<18x2xbf16>, vector<256x2xf32> -> vector<256x2xf32>
    %c0_14 = arith.constant 0 : index
    %c0_15 = arith.constant 0 : index
    %c0_16 = arith.constant 0 : index
    %c0_17 = arith.constant 0 : index
    %29 = vector.load %arg3[%c0_14, %c0_15, %c0_16, %c0_17] : memref<1x16x16x4xf32, #tpu.memory_space<vmem>>, vector<1x16x16x4xf32>
    %30 = vector.shape_cast %29 : vector<1x16x16x4xf32> to vector<16x16x4xf32>
    %c0_18 = arith.constant 0 : index
    %c0_19 = arith.constant 0 : index
    %c0_20 = arith.constant 0 : index
    %31 = vector.load %arg7[%c0_18, %c0_19, %c0_20] : memref<1x1x4xf32, #tpu.memory_space<vmem>>, vector<1x1x4xf32>
    %32 = vector.broadcast %31 : vector<1x1x4xf32> to vector<16x16x4xf32>
    %33 = arith.mulf %30, %32 : vector<16x16x4xf32>
    %c0_21 = arith.constant 0 : index
    %c0_22 = arith.constant 0 : index
    %c0_23 = arith.constant 0 : index
    %34 = vector.load %arg8[%c0_21, %c0_22, %c0_23] : memref<1x1x4xf32, #tpu.memory_space<vmem>>, vector<1x1x4xf32>
    %35 = vector.broadcast %34 : vector<1x1x4xf32> to vector<16x16x4xf32>
    %36 = arith.addf %33, %35 : vector<16x16x4xf32>
    %cst_24 = arith.constant 0.000000e+00 : f32
    %37 = vector.broadcast %cst_24 : f32 to vector<16x16x4xf32>
    %38 = arith.maximumf %36, %37 : vector<16x16x4xf32>
    %39 = vector.shape_cast %38 : vector<16x16x4xf32> to vector<256x4xf32>
    %40 = arith.truncf %39 : vector<256x4xf32> to vector<256x4xbf16>
    %c0_25 = arith.constant 0 : index
    %c0_26 = arith.constant 0 : index
    %41 = vector.load %arg9[%c0_25, %c0_26] : memref<4x8xbf16, #tpu.memory_space<vmem>>, vector<4x8xbf16>
    %cst_27 = arith.constant dense<0.000000e+00> : vector<256x8xf32>
    %42 = tpu.matmul %40, %41, %cst_27 {dimension_numbers = #tpu.dot_dimension_numbers<[1], [0], [0], [1], [0, 0, 1, 1], [], []>} : vector<256x4xbf16>, vector<4x8xbf16>, vector<256x8xf32> -> vector<256x8xf32>
    %c0_28 = arith.constant 0 : index
    %c0_29 = arith.constant 0 : index
    %c0_30 = arith.constant 0 : index
    %c0_31 = arith.constant 0 : index
    %43 = vector.load %arg2[%c0_28, %c0_29, %c0_30, %c0_31] : memref<1x16x16x4xbf16, #tpu.memory_space<vmem>>, vector<1x16x16x4xbf16>
    %44 = vector.shape_cast %43 : vector<1x16x16x4xbf16> to vector<16x16x4xbf16>
    %45 = vector.shape_cast %44 : vector<16x16x4xbf16> to vector<256x4xbf16>
    %46 = arith.extf %45 : vector<256x4xbf16> to vector<256x4xf32>
    %c0_32 = arith.constant 0 : index
    %c0_33 = arith.constant 0 : index
    %c0_34 = arith.constant 0 : index
    %c0_35 = arith.constant 0 : index
    %47 = vector.load %arg1[%c0_32, %c0_33, %c0_34, %c0_35] : memref<1x16x16x2xbf16, #tpu.memory_space<vmem>>, vector<1x16x16x2xbf16>
    %48 = vector.shape_cast %47 : vector<1x16x16x2xbf16> to vector<16x16x2xbf16>
    %49 = vector.shape_cast %48 : vector<16x16x2xbf16> to vector<256x2xbf16>
    %50 = arith.extf %49 : vector<256x2xbf16> to vector<256x2xf32>
    %51 = tpu.concatenate %46, %50, %28 in 1 : vector<256x4xf32>, vector<256x2xf32>, vector<256x2xf32> -> vector<256x8xf32>
    %52 = arith.addf %51, %42 : vector<256x8xf32>
    %53 = vector.shape_cast %52 : vector<256x8xf32> to vector<16x16x8xf32>
    %c0_36 = arith.constant 0 : index
    %c0_37 = arith.constant 0 : index
    %c0_38 = arith.constant 0 : index
    %c0_39 = arith.constant 0 : index
    %54 = vector.load %arg10[%c0_36, %c0_37, %c0_38, %c0_39] : memref<1x16x16x8xf32, #tpu.memory_space<vmem>>, vector<1x16x16x8xf32>
    %55 = vector.shape_cast %54 : vector<1x16x16x8xf32> to vector<16x16x8xf32>
    %56 = vector.shape_cast %53 : vector<16x16x8xf32> to vector<1x16x16x8xf32>
    tpu.vector_store %arg10[%c0_36, %c0_37, %c0_38, %c0_39], %56 {strides = array<i32>} : memref<1x16x16x8xf32, #tpu.memory_space<vmem>>, vector<1x16x16x8xf32>,
    return
  }
  func.func @transform_0(%arg0: i32) -> (i32, i32, i32, i32) {
    %c0_i32 = arith.constant 0 : i32
    %c0_i32_0 = arith.constant 0 : i32
    %c0_i32_1 = arith.constant 0 : i32
    %c0_i32_2 = arith.constant 0 : i32
    return %arg0, %c0_i32, %c0_i32_0, %c0_i32_1 : i32, i32, i32, i32
  }
  func.func @transform_1(%arg0: i32) -> (i32, i32, i32, i32) {
    %c0_i32 = arith.constant 0 : i32
    %c0_i32_0 = arith.constant 0 : i32
    %c0_i32_1 = arith.constant 0 : i32
    %c0_i32_2 = arith.constant 0 : i32
    return %arg0, %c0_i32, %c0_i32_0, %c0_i32_1 : i32, i32, i32, i32
  }
  func.func @transform_2(%arg0: i32) -> (i32, i32, i32, i32) {
    %c0_i32 = arith.constant 0 : i32
    %c0_i32_0 = arith.constant 0 : i32
    %c0_i32_1 = arith.constant 0 : i32
    %c0_i32_2 = arith.constant 0 : i32
    return %arg0, %c0_i32, %c0_i32_0, %c0_i32_1 : i32, i32, i32, i32
  }
  func.func @transform_3(%arg0: i32) -> (i32, i32, i32) {
    %c0_i32 = arith.constant 0 : i32
    %c0_i32_0 = arith.constant 0 : i32
    %c0_i32_1 = arith.constant 0 : i32
    %c0_i32_2 = arith.constant 0 : i32
    return %c0_i32, %c0_i32_0, %c0_i32_1 : i32, i32, i32
  }
  func.func @transform_4(%arg0: i32) -> (i32, i32, i32) {
    %c0_i32 = arith.constant 0 : i32
    %c0_i32_0 = arith.constant 0 : i32
    %c0_i32_1 = arith.constant 0 : i32
    %c0_i32_2 = arith.constant 0 : i32
    return %c0_i32, %c0_i32_0, %c0_i32_1 : i32, i32, i32
  }
  func.func @transform_5(%arg0: i32) -> (i32, i32) {
    %c0_i32 = arith.constant 0 : i32
    %c0_i32_0 = arith.constant 0 : i32
    %c0_i32_1 = arith.constant 0 : i32
    return %c0_i32, %c0_i32_0 : i32, i32
  }
  func.func @transform_6(%arg0: i32) -> (i32, i32, i32) {
    %c0_i32 = arith.constant 0 : i32
    %c0_i32_0 = arith.constant 0 : i32
    %c0_i32_1 = arith.constant 0 : i32
    %c0_i32_2 = arith.constant 0 : i32
    return %c0_i32, %c0_i32_0, %c0_i32_1 : i32, i32, i32
  }
  func.func @transform_7(%arg0: i32) -> (i32, i32, i32) {
    %c0_i32 = arith.constant 0 : i32
    %c0_i32_0 = arith.constant 0 : i32
    %c0_i32_1 = arith.constant 0 : i32
    %c0_i32_2 = arith.constant 0 : i32
    return %c0_i32, %c0_i32_0, %c0_i32_1 : i32, i32, i32
  }
  func.func @transform_8(%arg0: i32) -> (i32, i32) {
    %c0_i32 = arith.constant 0 : i32
    %c0_i32_0 = arith.constant 0 : i32
    %c0_i32_1 = arith.constant 0 : i32
    return %c0_i32, %c0_i32_0 : i32, i32
  }
  func.func @transform_9(%arg0: i32) -> (i32, i32, i32, i32) {
    %c0_i32 = arith.constant 0 : i32
    %c0_i32_0 = arith.constant 0 : i32
    %c0_i32_1 = arith.constant 0 : i32
    %c0_i32_2 = arith.constant 0 : i32
    return %arg0, %c0_i32, %c0_i32_0, %c0_i32_1 : i32, i32, i32, i32
  }
}

module attributes {stable_mosaic.version = 11 : i64} {
  func.func @_bnrelu_conv3x3_stats_kernel(%arg0: i32, %arg1: memref<1x16x16x4xbf16, #tpu.memory_space<vmem>>, %arg2: memref<1x1x4xf32, #tpu.memory_space<vmem>>, %arg3: memref<1x1x4xf32, #tpu.memory_space<vmem>>, %arg4: memref<36x2xbf16, #tpu.memory_space<vmem>>, %arg5: memref<1x16x16x2xbf16, #tpu.memory_space<vmem>>, %arg6: memref<1x1x2xf32, #tpu.memory_space<vmem>>, %arg7: memref<1x1x2xf32, #tpu.memory_space<vmem>>) attributes {dimension_semantics = [#tpu.dimension_semantics<parallel>], iteration_bounds = array<i64: 2>, scalar_prefetch = 0 : i64, scratch_operands = 0 : i64, tpu.core_type = #tpu.core_type<tc>, window_params = [{transform_indices = @transform_0, window_bounds = array<i64: 1, 16, 16, 4>}, {pipeline_mode = #tpu.pipeline_mode<synchronous>, transform_indices = @transform_1, window_bounds = array<i64: 1, 1, 4>}, {pipeline_mode = #tpu.pipeline_mode<synchronous>, transform_indices = @transform_2, window_bounds = array<i64: 1, 1, 4>}, {pipeline_mode = #tpu.pipeline_mode<synchronous>, transform_indices = @transform_3, window_bounds = array<i64: 36, 2>}, {transform_indices = @transform_4, window_bounds = array<i64: 1, 16, 16, 2>}, {transform_indices = @transform_5, window_bounds = array<i64: 1, 1, 2>}, {transform_indices = @transform_6, window_bounds = array<i64: 1, 1, 2>}]} {
    %c0 = arith.constant 0 : index
    %c0_0 = arith.constant 0 : index
    %c0_1 = arith.constant 0 : index
    %c0_2 = arith.constant 0 : index
    %0 = vector.load %arg1[%c0, %c0_0, %c0_1, %c0_2] : memref<1x16x16x4xbf16, #tpu.memory_space<vmem>>, vector<1x16x16x4xbf16>
    %1 = vector.shape_cast %0 : vector<1x16x16x4xbf16> to vector<16x16x4xbf16>
    %2 = arith.extf %1 : vector<16x16x4xbf16> to vector<16x16x4xf32>
    %c0_3 = arith.constant 0 : index
    %c0_4 = arith.constant 0 : index
    %c0_5 = arith.constant 0 : index
    %3 = vector.load %arg2[%c0_3, %c0_4, %c0_5] : memref<1x1x4xf32, #tpu.memory_space<vmem>>, vector<1x1x4xf32>
    %4 = vector.broadcast %3 : vector<1x1x4xf32> to vector<16x16x4xf32>
    %5 = arith.mulf %2, %4 : vector<16x16x4xf32>
    %c0_6 = arith.constant 0 : index
    %c0_7 = arith.constant 0 : index
    %c0_8 = arith.constant 0 : index
    %6 = vector.load %arg3[%c0_6, %c0_7, %c0_8] : memref<1x1x4xf32, #tpu.memory_space<vmem>>, vector<1x1x4xf32>
    %7 = vector.broadcast %6 : vector<1x1x4xf32> to vector<16x16x4xf32>
    %8 = arith.addf %5, %7 : vector<16x16x4xf32>
    %cst = arith.constant 0.000000e+00 : f32
    %9 = vector.broadcast %cst : f32 to vector<16x16x4xf32>
    %10 = arith.maximumf %8, %9 : vector<16x16x4xf32>
    %c0_9 = arith.constant 0 : index
    %c0_10 = arith.constant 0 : index
    %11 = vector.load %arg4[%c0_9, %c0_10] : memref<36x2xbf16, #tpu.memory_space<vmem>>, vector<36x2xbf16>
    %cst_11 = arith.constant 0.000000e+00 : f32
    %12 = vector.broadcast %cst_11 : f32 to vector<16x1x4xf32>
    %cst_12 = arith.constant 0.000000e+00 : f32
    %13 = vector.broadcast %cst_12 : f32 to vector<1x18x4xf32>
    %14 = tpu.concatenate %12, %10, %12 in 1 : vector<16x1x4xf32>, vector<16x16x4xf32>, vector<16x1x4xf32> -> vector<16x18x4xf32>
    %15 = tpu.concatenate %13, %14, %13 in 0 : vector<1x18x4xf32>, vector<16x18x4xf32>, vector<1x18x4xf32> -> vector<18x18x4xf32>
    %16 = vector.extract_strided_slice %15 {offsets = [0, 0, 0], sizes = [16, 16, 4], strides = [1, 1, 1]} : vector<18x18x4xf32> to vector<16x16x4xf32>
    %17 = vector.extract_strided_slice %15 {offsets = [0, 1, 0], sizes = [16, 16, 4], strides = [1, 1, 1]} : vector<18x18x4xf32> to vector<16x16x4xf32>
    %18 = vector.extract_strided_slice %15 {offsets = [0, 2, 0], sizes = [16, 16, 4], strides = [1, 1, 1]} : vector<18x18x4xf32> to vector<16x16x4xf32>
    %19 = vector.extract_strided_slice %15 {offsets = [1, 0, 0], sizes = [16, 16, 4], strides = [1, 1, 1]} : vector<18x18x4xf32> to vector<16x16x4xf32>
    %20 = vector.extract_strided_slice %15 {offsets = [1, 1, 0], sizes = [16, 16, 4], strides = [1, 1, 1]} : vector<18x18x4xf32> to vector<16x16x4xf32>
    %21 = vector.extract_strided_slice %15 {offsets = [1, 2, 0], sizes = [16, 16, 4], strides = [1, 1, 1]} : vector<18x18x4xf32> to vector<16x16x4xf32>
    %22 = vector.extract_strided_slice %15 {offsets = [2, 0, 0], sizes = [16, 16, 4], strides = [1, 1, 1]} : vector<18x18x4xf32> to vector<16x16x4xf32>
    %23 = vector.extract_strided_slice %15 {offsets = [2, 1, 0], sizes = [16, 16, 4], strides = [1, 1, 1]} : vector<18x18x4xf32> to vector<16x16x4xf32>
    %24 = vector.extract_strided_slice %15 {offsets = [2, 2, 0], sizes = [16, 16, 4], strides = [1, 1, 1]} : vector<18x18x4xf32> to vector<16x16x4xf32>
    %25 = tpu.concatenate %16, %17, %18, %19, %20, %21, %22, %23, %24 in 2 : vector<16x16x4xf32>, vector<16x16x4xf32>, vector<16x16x4xf32>, vector<16x16x4xf32>, vector<16x16x4xf32>, vector<16x16x4xf32>, vector<16x16x4xf32>, vector<16x16x4xf32>, vector<16x16x4xf32> -> vector<16x16x36xf32>
    %26 = arith.truncf %25 : vector<16x16x36xf32> to vector<16x16x36xbf16>
    %27 = vector.shape_cast %26 : vector<16x16x36xbf16> to vector<256x36xbf16>
    %cst_13 = arith.constant dense<0.000000e+00> : vector<256x2xf32>
    %28 = tpu.matmul %27, %11, %cst_13 {dimension_numbers = #tpu.dot_dimension_numbers<[1], [0], [0], [1], [0, 0, 1, 1], [], []>} : vector<256x36xbf16>, vector<36x2xbf16>, vector<256x2xf32> -> vector<256x2xf32>
    %29 = vector.shape_cast %28 : vector<256x2xf32> to vector<16x16x2xf32>
    %30 = arith.truncf %29 : vector<16x16x2xf32> to vector<16x16x2xbf16>
    %c0_14 = arith.constant 0 : index
    %c0_15 = arith.constant 0 : index
    %c0_16 = arith.constant 0 : index
    %c0_17 = arith.constant 0 : index
    %31 = vector.load %arg5[%c0_14, %c0_15, %c0_16, %c0_17] : memref<1x16x16x2xbf16, #tpu.memory_space<vmem>>, vector<1x16x16x2xbf16>
    %32 = vector.shape_cast %31 : vector<1x16x16x2xbf16> to vector<16x16x2xbf16>
    %33 = vector.shape_cast %30 : vector<16x16x2xbf16> to vector<1x16x16x2xbf16>
    tpu.vector_store %arg5[%c0_14, %c0_15, %c0_16, %c0_17], %33 {strides = array<i32>} : memref<1x16x16x2xbf16, #tpu.memory_space<vmem>>, vector<1x16x16x2xbf16>,
    %cst_18 = arith.constant dense<0.000000e+00> : vector<2xf32>
    %34 = vector.multi_reduction <add>, %28, %cst_18 [0] : vector<256x2xf32> to vector<2xf32>
    %35 = vector.shape_cast %34 : vector<2xf32> to vector<1x2xf32>
    %c0_19 = arith.constant 0 : index
    %c0_20 = arith.constant 0 : index
    %c0_21 = arith.constant 0 : index
    %36 = vector.load %arg6[%c0_19, %c0_20, %c0_21] : memref<1x1x2xf32, #tpu.memory_space<vmem>>, vector<1x1x2xf32>
    %37 = vector.shape_cast %36 : vector<1x1x2xf32> to vector<1x2xf32>
    %38 = vector.shape_cast %35 : vector<1x2xf32> to vector<1x1x2xf32>
    tpu.vector_store %arg6[%c0_19, %c0_20, %c0_21], %38 {strides = array<i32>} : memref<1x1x2xf32, #tpu.memory_space<vmem>>, vector<1x1x2xf32>,
    %39 = arith.mulf %28, %28 : vector<256x2xf32>
    %cst_22 = arith.constant dense<0.000000e+00> : vector<2xf32>
    %40 = vector.multi_reduction <add>, %39, %cst_22 [0] : vector<256x2xf32> to vector<2xf32>
    %41 = vector.shape_cast %40 : vector<2xf32> to vector<1x2xf32>
    %c0_23 = arith.constant 0 : index
    %c0_24 = arith.constant 0 : index
    %c0_25 = arith.constant 0 : index
    %42 = vector.load %arg7[%c0_23, %c0_24, %c0_25] : memref<1x1x2xf32, #tpu.memory_space<vmem>>, vector<1x1x2xf32>
    %43 = vector.shape_cast %42 : vector<1x1x2xf32> to vector<1x2xf32>
    %44 = vector.shape_cast %41 : vector<1x2xf32> to vector<1x1x2xf32>
    tpu.vector_store %arg7[%c0_23, %c0_24, %c0_25], %44 {strides = array<i32>} : memref<1x1x2xf32, #tpu.memory_space<vmem>>, vector<1x1x2xf32>,
    return
  }
  func.func @transform_0(%arg0: i32) -> (i32, i32, i32, i32) {
    %c0_i32 = arith.constant 0 : i32
    %c0_i32_0 = arith.constant 0 : i32
    %c0_i32_1 = arith.constant 0 : i32
    %c0_i32_2 = arith.constant 0 : i32
    return %arg0, %c0_i32, %c0_i32_0, %c0_i32_1 : i32, i32, i32, i32
  }
  func.func @transform_1(%arg0: i32) -> (i32, i32, i32) {
    %c0_i32 = arith.constant 0 : i32
    %c0_i32_0 = arith.constant 0 : i32
    %c0_i32_1 = arith.constant 0 : i32
    %c0_i32_2 = arith.constant 0 : i32
    return %c0_i32, %c0_i32_0, %c0_i32_1 : i32, i32, i32
  }
  func.func @transform_2(%arg0: i32) -> (i32, i32, i32) {
    %c0_i32 = arith.constant 0 : i32
    %c0_i32_0 = arith.constant 0 : i32
    %c0_i32_1 = arith.constant 0 : i32
    %c0_i32_2 = arith.constant 0 : i32
    return %c0_i32, %c0_i32_0, %c0_i32_1 : i32, i32, i32
  }
  func.func @transform_3(%arg0: i32) -> (i32, i32) {
    %c0_i32 = arith.constant 0 : i32
    %c0_i32_0 = arith.constant 0 : i32
    %c0_i32_1 = arith.constant 0 : i32
    return %c0_i32, %c0_i32_0 : i32, i32
  }
  func.func @transform_4(%arg0: i32) -> (i32, i32, i32, i32) {
    %c0_i32 = arith.constant 0 : i32
    %c0_i32_0 = arith.constant 0 : i32
    %c0_i32_1 = arith.constant 0 : i32
    %c0_i32_2 = arith.constant 0 : i32
    return %arg0, %c0_i32, %c0_i32_0, %c0_i32_1 : i32, i32, i32, i32
  }
  func.func @transform_5(%arg0: i32) -> (i32, i32, i32) {
    %c0_i32 = arith.constant 0 : i32
    %c0_i32_0 = arith.constant 0 : i32
    %c0_i32_1 = arith.constant 0 : i32
    return %arg0, %c0_i32, %c0_i32_0 : i32, i32, i32
  }
  func.func @transform_6(%arg0: i32) -> (i32, i32, i32) {
    %c0_i32 = arith.constant 0 : i32
    %c0_i32_0 = arith.constant 0 : i32
    %c0_i32_1 = arith.constant 0 : i32
    return %arg0, %c0_i32, %c0_i32_0 : i32, i32, i32
  }
}

</mosaic_0001>

<bundles_post_ra>
// kernel: conv_block_forward.3
= control target key start
LH: loop header
LB: loop body
LE: loop exit
PB: predicated region body
PF: predicated region fallthrough
CT: control target
= control target key end

     0   :  { %12 = vsyncpa [#allocation3], 0  ;;  %s5618_s0 = inlined_call_operand.hbm [shape: f32[2,16,16,4], index: 0, kind: input, shape index: {}]   ;;  %s5619_s1 = inlined_call_operand.hbm [shape: f32[1,1,4], index: 1, kind: input, shape index: {}]   ;;  %s5620_s2 = inlined_call_operand.hbm [shape: f32[1,1,4], index: 2, kind: input, shape index: {}]   ;;  %s5621_s3 = inlined_call_operand.hbm [shape: bf16[36,4], index: 3, kind: input, shape index: {}]   ;;  %s5622_s4 = inlined_call_operand.hbm [shape: bf16[2,16,16,4], index: 4, kind: output, shape index: {0}]   ;;  %s5623_s5 = inlined_call_operand.hbm [shape: f32[2,1,4], index: 5, kind: output, shape index: {1}]   ;;  %s5624_s6 = inlined_call_operand.hbm [shape: f32[2,1,4], index: 6, kind: output, shape index: {2}]  }
   0x1   :  { %14 = vsyncpa [#allocation3 + $0x1], 0 }
   0x2   :  { %15 = vsyncpa [#allocation6], 0 }
   0x3   :  { %16 = vsyncpa [#allocation9], 0 }
   0x4   :  { %17 = vsyncpa [#allocation4], 0 }
   0x5   :  { %19 = vsyncpa [#allocation4 + $0x1], 0 }
   0x6   :  { %20 = vsyncpa [#allocation12], 0 }
   0x7   :  { %22 = vsyncpa [#allocation12 + $0x1], 0  ;;  %s3831_s21 = smov 0   ;;  %s3833_s22 = smov 0  }
   0x8   :  { %s3835_s23 = smov 0   ;;  %s3837_s24 = smov 0  }
   0x9 LB: > { %s3852_s25 = sadd.s32 4294967295, %s3773_s24   ;;  %s5710_s26 = sadd.s32 4294967294, %s3773_s24   ;;  %s3773_s24 = sphi %s3837_s24, %s5881_s24   ;;  %s3769_s23 = sphi %s3835_s23, %s5880_s23   ;;  %s3765_s22 = sphi %s3833_s22, %s5879_s22   ;;  %s3761_s21 = sphi %s3831_s21, %s5878_s21  }
   0xa   : > { %p48_p0 = scmp.ne.s32.totalorder %s3765_s22, %s3761_s21  ;;  %p5625_p1 = scmp.eq.s32.totalorder %s3852_s25, 0 }
   0xb   : > { %p141_p3 = scmp.eq.s32.totalorder %s5710_s26, 1  ;;  %p2631_p5 = scmp.ge.s32.totalorder %s3773_s24, 1 }
   0xc   : > { %p3863_p4 = por %p5625_p1, %p48_p0  ;;  %p200_p7 = scmp.lt.s32.totalorder %s3773_s24, 3 }
   0xd   : > { %p3868_p6 = por %p141_p3, %p48_p0  ;;  %s3775_s30 = smov [#allocation5]  }
   0xe   : > { %s5711_s27 = scalar_select %p3863_p4, 1, 0 }
   0xf   : > { %s5712_s28 = scalar_select %p3868_p6, 1, 0 }
  0x10   : > { %p3873_p8 = pnand %p2631_p5, %p200_p7  ;;  %s213_s7 = sshll.u32 %s3775_s30, 4  ;;  %s214_s7 = int_to_ptr.vmem [resolvable:$true] %s213_s7 }
  0x11   : > { %s3776_s8 = smov [#allocation7]   ;;  %s3777_s11 = smov [#allocation8]  }
  0x12   : > { %s5713_s29 = scalar_select %p3873_p8, 1, 0 }
  0x13   : > { %p2824_p10 = pneg %p3873_p8  ;;  %s224_s9 = sshll.u32 %s3776_s8, 4  ;;  %s3886_s9 = int_to_ptr.vmem [resolvable:$true] %s224_s9 }
  0x14   : > { %s234_s12 = sshll.u32 %s3777_s11, 4  ;;  %s3525_s15 = scalar_lea.hbm %s5619_s1, 16  ;;  %s3888_s12 = int_to_ptr.vmem [resolvable:$true] %s234_s12 }
  0x15   : > { %p3882_p11 = pnand %p2824_p10, %p5625_p1  ;;  %p3526_p12 = scmp.ne.s32.totalorder %s5619_s1, %s3525_s15 }
  0x16   : > { %p3532_p5 = scmp.lt.u32.totalorder %s3525_s15, %s5619_s1 }
  0x17   : > { %p3898_p13 = pneg %p3882_p11 }
  0x19   : > { %p3528_p0 = pnand %p3898_p13, %p3526_p12 }
  0x1b   : > { %p3529_p3 = pneg %p3528_p0 }
  0x1d   : > { %p3534_p7 = pnand %p3532_p5, %p3529_p3 }
  0x1f   : > { %3537 = shalt.err (!%p3534_p7)
}
  0x20   : > { %s3538_s30 = scalar_lea.vmem %s214_s7, 16  ;;  %s3545_s8 = scalar_lea.vmem %s214_s7, 32 }
  0x21   : > { %p3539_p10 = scmp.ne.s32.totalorder %s214_s7, %s3538_s30  ;;  %p3546_p2 = scmp.lt.s32.totalorder %s214_s7, %s214_s7 }
  0x22   : > { %p3547_p6 = scmp.lt.s32.totalorder %s3545_s8, %s3538_s30 }
  0x23   : > { %p3541_p9 = pnand %p3539_p10, %p3898_p13 }
  0x24   : > { %p3548_p4 = por %p3547_p6, %p3546_p2 }
  0x25   : > { %p3542_p1 = pneg %p3541_p9 }
  0x27   : > { %p3549_p8 = pnand %p3548_p4, %p3542_p1 }
  0x29   : > { %3552 = shalt.err (!%p3549_p8)
}
  0x2a   : > { %2827 = dma.hbm_to_vmem [thread:$0]  (!%p3882_p11), %s5619_s1, 16, %s214_s7, [#allocation6]  }
  0x2b   : > { %s3553_s16 = scalar_lea.hbm %s5620_s2, 16 }
  0x2c   : > { %p3554_p9 = scmp.ne.s32.totalorder %s5620_s2, %s3553_s16  ;;  %p3560_p1 = scmp.lt.u32.totalorder %s3553_s16, %s5620_s2 }
  0x2e   : > { %p3556_p12 = pnand %p3554_p9, %p3898_p13 }
  0x30   : > { %p3557_p2 = pneg %p3556_p12 }
  0x32   : > { %p3562_p4 = pnand %p3560_p1, %p3557_p2 }
  0x34   : > { %3565 = shalt.err (!%p3562_p4)
}
  0x35   : > { %s3566_s7 = scalar_lea.vmem %s3886_s9, 16  ;;  %s3573_s8 = scalar_lea.vmem %s3886_s9, 32 }
  0x36   : > { %p3567_p6 = scmp.ne.s32.totalorder %s3886_s9, %s3566_s7  ;;  %p3574_p3 = scmp.lt.s32.totalorder %s3886_s9, %s3886_s9 }
  0x37   : > { %p3575_p5 = scmp.lt.s32.totalorder %s3573_s8, %s3566_s7 }
  0x38   : > { %p3569_p8 = pnand %p3567_p6, %p3898_p13 }
  0x39   : > { %p3576_p7 = por %p3575_p5, %p3574_p3 }
  0x3a   : > { %p3570_p0 = pneg %p3569_p8 }
  0x3c   : > { %p3577_p10 = pnand %p3576_p7, %p3570_p0 }
  0x3e   : > { %3580 = shalt.err (!%p3577_p10)
}
  0x3f   : > { %2830 = dma.hbm_to_vmem [thread:$0]  (!%p3882_p11), %s5620_s2, 16, %s3886_s9, [#allocation6]  }
  0x40   : > { %s3581_s16 = scalar_lea.hbm %s5621_s3, 320 }
  0x41   : > { %p3582_p9 = scmp.ne.s32.totalorder %s5621_s3, %s3581_s16  ;;  %p3588_p1 = scmp.lt.u32.totalorder %s3581_s16, %s5621_s3 }
  0x43   : > { %p3584_p12 = pnand %p3582_p9, %p3898_p13 }
  0x45   : > { %p3585_p2 = pneg %p3584_p12 }
  0x47   : > { %p3590_p4 = pnand %p3588_p1, %p3585_p2 }
  0x49   : > { %3593 = shalt.err (!%p3590_p4)
}
  0x4a   : > { %s3594_s9 = scalar_lea.vmem %s3888_s12, 320  ;;  %p3602_p3 = scmp.lt.s32.totalorder %s3888_s12, %s3888_s12 }
  0x4b   : > { %p3595_p6 = scmp.ne.s32.totalorder %s3888_s12, %s3594_s9  ;;  %p3603_p5 = scmp.lt.s32.totalorder %s3594_s9, %s3594_s9 }
  0x4d   : > { %p3597_p8 = pnand %p3595_p6, %p3898_p13  ;;  %p3604_p7 = por %p3603_p5, %p3602_p3 }
  0x4f   : > { %p3598_p0 = pneg %p3597_p8 }
  0x51   : > { %p3605_p10 = pnand %p3604_p7, %p3598_p0 }
  0x53   : > { %3608 = shalt.err (!%p3605_p10)
}
  0x54   : > { %s3778_s7 = smov 64   ;;  %s3779_s18 = smov 4  }
  0x55   : > { %2833 = dma.hbm_to_vmem [thread:$0]  (!%p3882_p11), %s5621_s3, 320, %s3888_s12, [#allocation9], %s3778_s7, %s3778_s7, %s3779_s18  }
  0x56   : > { %s3962_s13 = sadd.s32 1, %s3773_s24   ;;  %s35_s15 = sadd.s32 1, %s3769_s23 }
  0x57   : > { %s32_s14 = ssub.s32 %s3773_s24, %s3962_s13  ;;  %p42_p9 = scmp.ne.s32.totalorder %s3769_s23, %s3765_s22 }
  0x58   : > { %p33_p13 = scmp.eq.s32.totalorder %s32_s14, 0  ;;  %p43_p12 = scmp.eq.s32.totalorder %s3773_s24, 0 }
  0x59   : > { %p2851_p2 = scmp.lt.s32.totalorder %s3773_s24, 2  ;;  %p5716_p4 = scmp.eq.s32.totalorder %s3852_s25, 1 }
  0x5a   : > { %s3972_s16 = scalar_select %p33_p13, %s3769_s23, %s35_s15  }
  0x5b   : > { %p44_p1 = por %p43_p12, %p42_p9  ;;  %p3976_p6 = por %p5716_p4, %p42_p9 }
  0x5c   : > { %s248_s10 = sand.u32 1, %s3769_s23   ;;  %s2705_s19 = sshll.u32 %s3773_s24, 12 }
  0x5d   : > { %s2636_s12 = sshll.u32 %s248_s10, 8  ;;  %s3985_s9 = scalar_lea.hbm %s5618_s0, %s2705_s19 }
  0x5e   : > { %s252_s7 = scalar_lea.vmem [#allocation2], %s2636_s12  ;;  %p3987_p11 = pnand %p2851_p2, %p44_p1 }
  0x5f   : > { %s259_s18 = sshll.u32 %s252_s7, 4  ;;  %s3993_s11 = scalar_lea.sflag [#allocation3], %s248_s10  ;;  %s3991_s18 = int_to_ptr.vmem [resolvable:$true] %s259_s18 }
  0x60   : > { %s3609_s14 = scalar_lea.hbm %s3985_s9, 4096  ;;  %p3611_p0 = pneg %p3987_p11 }
  0x61   : > { %p3610_p8 = scmp.ne.s32.totalorder %s3985_s9, %s3609_s14  ;;  %s3614_s12 = scalar_lea.hbm %s5618_s0, 8192 }
  0x62   : > { %p3615_p7 = scmp.lt.u32.totalorder %s3985_s9, %s5618_s0  ;;  %p3616_p10 = scmp.lt.u32.totalorder %s3614_s12, %s3609_s14 }
  0x63   : > { %p3612_p3 = pnand %p3611_p0, %p3610_p8  ;;  %p3618_p9 = scmp.lt.u32.totalorder %s3609_s14, %s3985_s9 }
  0x64   : > { %p3617_p13 = por %p3616_p10, %p3615_p7 }
  0x65   : > { %p3613_p5 = pneg %p3612_p3 }
  0x66   : > { %p3619_p12 = por %p3618_p9, %p3617_p13 }
  0x68   : > { %p3620_p2 = pnand %p3619_p12, %p3613_p5 }
  0x6a   : > { %3623 = shalt.err (!%p3620_p2)
}
  0x6b   : > { %s3624_s10 = scalar_lea.vmem %s3991_s18, 4096  ;;  %s3780_s7 = smov [#allocation2]  }
  0x6c   : > { %p3625_p1 = scmp.ne.s32.totalorder %s3991_s18, %s3624_s10  ;;  %s3629_s15 = sshll.u32 %s3780_s7, 4  ;;  %s3630_s15 = int_to_ptr.vmem [resolvable:$false] %s3629_s15 }
  0x6d   : > { %s3631_s19 = scalar_lea.vmem %s3630_s15, 8192  ;;  %p3632_p3 = scmp.lt.s32.totalorder %s3991_s18, %s3630_s15 }
  0x6e   : > { %p3627_p4 = pnand %p3625_p1, %p3611_p0  ;;  %p3633_p7 = scmp.lt.s32.totalorder %s3631_s19, %s3624_s10 }
  0x70   : > { %p3628_p8 = pneg %p3627_p4  ;;  %p3634_p10 = por %p3633_p7, %p3632_p3 }
  0x72   : > { %p3635_p13 = pnand %p3634_p10, %p3628_p8 }
  0x74   : > { %3638 = shalt.err (!%p3635_p13)
}
  0x75   : > { %s3781_s14 = smov 128   ;;  %s3782_s12 = smov 8  }
  0x76   : > { %2837 = dma.hbm_to_vmem [thread:$0]  (!%p3987_p11), %s3985_s9, 4096, %s3991_s18, %s3993_s11, %s3781_s14, %s3781_s14, %s3782_s12  }
  0x77   : > { %p5719_p0 = scmp.ne.s32.totalorder %s5713_s29, 0 }
  0x79   : > { %271 = sbr.rel (%p5719_p0) target bundleno = 840 (0x348), region = 36 }
  0x80   : > { %s4024_s20 = sand.u32 1, %s3765_s22   ;;  %p5720_p5 = scmp.ne.s32.totalorder %s5711_s27, 0 }
  0x81   : > { %s2640_s30 = sshll.u32 %s4024_s20, 8  ;;  %s274_s10 = scalar_lea.sflag [#allocation3], %s4024_s20 }
  0x82   : > { %s4028_s7 = scalar_lea.vmem [#allocation2], %s2640_s30 }
  0x83   : > { %3740 = dma.done.wait (%p5720_p5), %s274_s10, 4096  }
  0x84   : > { %3742 = vsyncadd (%p5720_p5), %s274_s10, 4294963200  ;;  %p5721_p11 = scmp.eq.s32.totalorder %s3852_s25, 0 }
  0x86   : > { %3744 = dma.done.wait (%p5721_p11), [#allocation6], 32   ;;  %p5722_p9 = pmov %p5721_p11 }
  0x88   : > { %3746 = vsyncadd (%p5722_p9), [#allocation6], 4294967264  ;;  %p5723_p12 = pmov %p5722_p9 }
  0x89   : > { %p5724_p2 = pmov %p5722_p9 }
  0x8a   : > { %3748 = dma.done.wait (%p5723_p12), [#allocation9], 320  }
  0x8b   : > { %3750 = vsyncadd (%p5724_p2), [#allocation9], 4294966976  ;;  %v329_v0 = vld [vmem:[%s4028_s7 + $0x10] sm:$0xff]  ;;  %v330_v1 = vld [vmem:[%s4028_s7 + $0x18] sm:$0xff]  ;;  %vm506_vm0 = vcmask 1040384   ;;  %v5628_v6 = vmov 0.0  }
  0x8c   : > { %v331_v2 = vld [vmem:[%s4028_s7 + $0x20] sm:$0xff]  ;;  %v332_v3 = vld [vmem:[%s4028_s7 + $0x28] sm:$0xff]  ;;  %v4051_v7 = vrot.slane %v5628_v6, 1  ;;  %vm665_vm1 = vcmask 1046528   ;;  %v333_v14 = vld [vmem:[%s4028_s7 + $0x30] sm:$0xff]  ;;  %v4065_v19 = vrot.slane %v5628_v6, 2 }
  0x8d   : > { %v4046_v4 = vld [vmem:[#allocation5] ss:$0 sm:$0xff]  ;;  %v4048_v5 = vld [vmem:[#allocation7] ss:$0 sm:$0xff]  ;;  %v328_v13 = vld [vmem:[%s4028_s7 + $0x8] sm:$0xff]  ;;  %s3784_s27 = smov 4  }
  0x8e   : > { %5725 = vst [vmem:[#allocation19_spill] sm:$0xff] %v4051_v7  ;;  %v368_v8 = vmul.f32 %v4046_v4, %v329_v0  ;;  %v369_v9 = vmul.f32 %v4046_v4, %v330_v1  ;;  %v370_v10 = vmul.f32 %v4046_v4, %v331_v2  ;;  %v371_v11 = vmul.f32 %v4046_v4, %v332_v3  ;;  %v327_v12 = vld [vmem:[%s4028_s7] sm:$0xff]  ;;  %v334_v17 = vld [vmem:[%s4028_s7 + $0x38] sm:$0xff]  ;;  %v336_v61 = vld [vmem:[%s4028_s7 + $0x48] sm:$0xff]  ;;  %s3785_s29 = smov 8   ;;  %s3786_s9 = smov 12  }
  0x8f   : > { %v366_v15 = vmul.f32 %v4046_v4, %v327_v12  ;;  %v367_v16 = vmul.f32 %v4046_v4, %v328_v13  ;;  %v372_v18 = vmul.f32 %v4046_v4, %v333_v14  ;;  %5726 = vst [vmem:[#allocation20_spill] sm:$0xff] %v4065_v19  ;;  %v373_v26 = vmul.f32 %v4046_v4, %v334_v17  ;;  %v335_v56 = vld [vmem:[%s4028_s7 + $0x40] sm:$0xff]  ;;  %v337_v2 = vld [vmem:[%s4028_s7 + $0x50] sm:$0xff]  ;;  %s3787_s18 = smov 16   ;;  %s3788_s8 = smov 20  }
  0x90   : > { %v407_v20 = vadd.f32 %v4048_v5, %v368_v8  ;;  %v408_v21 = vadd.f32 %v4048_v5, %v369_v9  ;;  %v409_v22 = vadd.f32 %v4048_v5, %v370_v10  ;;  %v410_v23 = vadd.f32 %v4048_v5, %v371_v11  ;;  %v338_v11 = vld [vmem:[%s4028_s7 + $0x58] sm:$0xff]  ;;  %s3789_s11 = smov 24   ;;  %s3790_s15 = smov 28  }
  0x91   : > { %v405_v24 = vadd.f32 %v4048_v5, %v366_v15  ;;  %v406_v25 = vadd.f32 %v4048_v5, %v367_v16  ;;  %v411_v27 = vadd.f32 %v4048_v5, %v372_v18  ;;  %v412_v34 = vadd.f32 %v4048_v5, %v373_v26  ;;  %s3791_s19 = smov 32   ;;  %s2644_s14 = sshll.u32 %s4024_s20, 7 }
  0x92   : > { %v439_v28 = vmax.f32 %v407_v20, 0.0  ;;  %v440_v29 = vmax.f32 %v408_v21, 0.0  ;;  %v441_v30 = vmax.f32 %v409_v22, 0.0  ;;  %v442_v31 = vmax.f32 %v410_v23, 0.0  ;;  %s5364_s12 = scalar_lea.vmem [#allocation10], %s2644_s14  ;;  %s2738_s30 = sshll.u32 %s3852_s25, 11 }
  0x93   : > { %v437_v32 = vmax.f32 %v405_v24, 0.0  ;;  %v438_v33 = vmax.f32 %v406_v25, 0.0  ;;  %v443_v35 = vmax.f32 %v411_v27, 0.0  ;;  %v444_v42 = vmax.f32 %v412_v34, 0.0  ;;  %v339_v25 = vld [vmem:[%s4028_s7 + $0x60] sm:$0xff]  ;;  %s2449_s10 = sshll.u32 %s5364_s12, 4  ;;  %s5492_s10 = int_to_ptr.vmem [resolvable:$true] %s2449_s10 }
  0x94   : > { %v510_v36 = vrot.slane %v439_v28, 7  ;;  %v511_v37 = vrot.slane %v440_v29, 7  ;;  %v513_v38 = vrot.slane %v441_v30, 7  ;;  %v514_v39 = vrot.slane %v442_v31, 7  ;;  %v340_v30 = vld [vmem:[%s4028_s7 + $0x68] sm:$0xff]  ;;  %v341_v31 = vld [vmem:[%s4028_s7 + $0x70] sm:$0xff] }
  0x95   : > { %v507_v40 = vrot.slane %v437_v32, 7  ;;  %v508_v41 = vrot.slane %v438_v33, 7  ;;  %v516_v43 = vrot.slane %v443_v35, 7  ;;  %v517_v0 = vrot.slane %v444_v42, 7 }
  0x96   : > { %v4077_v44 = vsel %vm506_vm0, %v510_v36, %v511_v37  ;;  %v4080_v45 = vsel %vm506_vm0, %v513_v38, %v514_v39  ;;  %v4083_v46 = vsel %vm506_vm0, 0.0, %v513_v38  ;;  %v4086_v47 = vsel %vm506_vm0, %v511_v37, 0.0 }
  0x97   : > { %5727 = vst [vmem:[#allocation21_spill] sm:$0xff] %v4077_v44  ;;  %5728 = vst [vmem:[#allocation22_spill] sm:$0xff] %v4080_v45  ;;  %v674_v48 = vrot.slane %v4077_v44, 1  ;;  %v676_v49 = vrot.slane %v4086_v47, 1  ;;  %v678_v50 = vrot.slane %v4083_v46, 1  ;;  %v679_v51 = vrot.slane %v4080_v45, 1 }
  0x98   : > { %v4094_v53 = vsel %vm506_vm0, %v507_v40, %v508_v41  ;;  %v4097_v54 = vsel %vm506_vm0, 0.0, %v507_v40  ;;  %v4100_v55 = vsel %vm506_vm0, %v508_v41, 0.0  ;;  %v4116_v1 = vsel %vm506_vm0, 0.0, %v516_v43 }
  0x99   : > { %5729 = vst [vmem:[#allocation23_spill] sm:$0xff] %v4094_v53  ;;  %5730 = vst [vmem:[#allocation24_spill] sm:$0xff] %v4097_v54  ;;  %v4104_v57 = vsel %vm665_vm1, %v674_v48, %v676_v49  ;;  %v4107_v58 = vsel %vm665_vm1, %v678_v50, %v679_v51  ;;  %v668_v59 = vrot.slane %v4097_v54, 1  ;;  %v669_v60 = vrot.slane %v4094_v53, 1 }
  0x9a   : > { %5731 = vst [vmem:[#allocation25_spill] sm:$0xff] %v4104_v57  ;;  %5732 = vst [vmem:[#allocation26_spill] sm:$0xff] %v4107_v58  ;;  %v2915_v62 = vpack.i.bf16 %v4107_v58, %v4104_v57  ;;  %v671_v63 = vrot.slane %v4100_v55, 1  ;;  %v4123_v8 = vsel %vm506_vm0, %v514_v39, 0.0  ;;  %v683_v9 = vrot.slane %v4116_v1, 1 }
  0x9b   : > { %v4120_v3 = vsel %vm665_vm1, %v668_v59, %v669_v60  ;;  %v4127_v10 = vsel %vm506_vm0, 0.0, %v510_v36  ;;  %v4137_v14 = vsel %vm506_vm0, %v516_v43, %v517_v0  ;;  %v681_v15 = vrot.slane %v4123_v8, 1  ;;  %v342_v36 = vld [vmem:[%s4028_s7 + $0x78] sm:$0xff] }
  0x9c   : > { %5733 = vst [vmem:[#allocation27_spill] sm:$0xff] %v4120_v3  ;;  %2916 = vrot.lane.b32.xlu1 %v2915_v62, %s3784_s27  ;;  %v4132_v12 = vsel %vm665_vm1, %v669_v60, %v671_v63  ;;  %v2905_v13 = vpack.i.bf16 %v4120_v3, %v4051_v7  ;;  %v684_v17 = vrot.slane %v4137_v14, 1  ;;  %v673_v18 = vrot.slane %v4127_v10, 1  ;;  %v355_v3 = vld [vmem:[%s4028_s7 + $0xe0] sm:$0xff] }
  0x9d   : > { %5734 = vst [vmem:[#allocation28_spill] sm:$0xff] %v4132_v12  ;;  %v374_v20 = vmul.f32 %v4046_v4, %v335_v56  ;;  %v4147_v21 = vsel %vm665_vm1, %v679_v51, %v681_v15  ;;  %v375_v22 = vmul.f32 %v4046_v4, %v336_v61  ;;  %v376_v23 = vmul.f32 %v4046_v4, %v337_v2 }
  0x9e   : > { %2906 = vrot.lane.b32.xlu0 %v2905_v13, %s3784_s27  ;;  %5735 = vst [vmem:[#allocation29_spill] sm:$0xff] %v4147_v21  ;;  %v377_v24 = vmul.f32 %v4046_v4, %v338_v11  ;;  %v4154_v26 = vsel %vm665_vm1, %v683_v9, %v684_v17  ;;  %v4157_v27 = vsel %vm665_vm1, %v673_v18, %v674_v48  ;;  %v4161_v29 = vsel %vm506_vm0, %v517_v0, 0.0 }
  0x9f   : > { %5736 = vst [vmem:[#allocation30_spill] sm:$0xff] %v4154_v26  ;;  %5737 = vst [vmem:[#allocation31_spill] sm:$0xff] %v4157_v27  ;;  %v413_v28 = vadd.f32 %v4048_v5, %v374_v20  ;;  %v2920_v32 = vpack.i.bf16 %v4154_v26, %v4147_v21  ;;  %v2910_v33 = vpack.i.bf16 %v4157_v27, %v4132_v12  ;;  %v686_v39 = vrot.slane %v4161_v29, 1 }
  0xa0   : > { %v414_v34 = vadd.f32 %v4048_v5, %v375_v22  ;;  %v415_v35 = vadd.f32 %v4048_v5, %v376_v23  ;;  %v416_v37 = vadd.f32 %v4048_v5, %v377_v24  ;;  %v378_v40 = vmul.f32 %v4046_v4, %v339_v25 }
  0xa1   : > { %v445_v38 = vmax.f32 %v413_v28, 0.0  ;;  %2921 = vrot.lane.b32.xlu1 %v2920_v32, %s3784_s27  ;;  %v379_v43 = vmul.f32 %v4046_v4, %v340_v30  ;;  %v380_v48 = vmul.f32 %v4046_v4, %v341_v31  ;;  %v4180_v51 = vsel %vm665_vm1, %v684_v17, %v686_v39 }
  0xa2   : > { %2911 = vrot.lane.b32.xlu0 %v2910_v33, %s3784_s27  ;;  %v446_v41 = vmax.f32 %v414_v34, 0.0  ;;  %v447_v42 = vmax.f32 %v415_v35, 0.0  ;;  %v448_v49 = vmax.f32 %v416_v37, 0.0  ;;  %5738 = vst [vmem:[#allocation32_spill] sm:$0xff] %v4180_v51  ;;  %v381_v56 = vmul.f32 %v4046_v4, %v342_v36  ;;  %v343_v35 = vld [vmem:[%s4028_s7 + $0x80] sm:$0xff] }
  0xa3   : > { %v519_v50 = vrot.slane %v445_v38, 7  ;;  %v417_v61 = vadd.f32 %v4048_v5, %v378_v40  ;;  %v418_v62 = vadd.f32 %v4048_v5, %v379_v43  ;;  %v419_v2 = vadd.f32 %v4048_v5, %v380_v48 }
  0xa4   : > { %v520_v59 = vrot.slane %v446_v41, 7  ;;  %v522_v60 = vrot.slane %v447_v42, 7  ;;  %v523_v63 = vrot.slane %v448_v49, 7  ;;  %v420_v9 = vadd.f32 %v4048_v5, %v381_v56  ;;  %v344_v56 = vld [vmem:[%s4028_s7 + $0x88] sm:$0xff] }
  0xa5   : > { %v4186_v0 = vsel %vm506_vm0, 0.0, %v519_v50  ;;  %v449_v25 = vmax.f32 %v417_v61, 0.0  ;;  %v450_v28 = vmax.f32 %v418_v62, 0.0  ;;  %v451_v30 = vmax.f32 %v419_v2, 0.0 }
  0xa6   : > { %v4191_v11 = vsel %vm506_vm0, %v519_v50, %v520_v59  ;;  %v4194_v13 = vsel %vm506_vm0, 0.0, %v522_v60  ;;  %v4197_v15 = vsel %vm506_vm0, %v520_v59, 0.0  ;;  %v688_v17 = vrot.slane %v4186_v0, 1  ;;  %v345_v59 = vld [vmem:[%s4028_s7 + $0x90] sm:$0xff] }
  0xa7   : > { %5739 = vst [vmem:[#allocation33_spill] sm:$0xff] %v4194_v13  ;;  %v4201_v18 = vsel %vm506_vm0, %v522_v60, %v523_v63  ;;  %v689_v20 = vrot.slane %v4191_v11, 1  ;;  %v691_v22 = vrot.slane %v4197_v15, 1  ;;  %v693_v23 = vrot.slane %v4194_v13, 1  ;;  %v346_v60 = vld [vmem:[%s4028_s7 + $0x98] sm:$0xff] }
  0xa8   : > { %5740 = vst [vmem:[#allocation34_spill] sm:$0xff] %v4201_v18  ;;  %v694_v24 = vrot.slane %v4201_v18, 1  ;;  %v452_v33 = vmax.f32 %v420_v9, 0.0  ;;  %v4214_v34 = vsel %vm506_vm0, %v523_v63, 0.0  ;;  %v525_v38 = vrot.slane %v449_v25, 7 }
  0xa9   : > { %v4208_v31 = vsel %vm665_vm1, %v689_v20, %v691_v22  ;;  %v4211_v32 = vsel %vm665_vm1, %v688_v17, %v689_v20  ;;  %v526_v39 = vrot.slane %v450_v28, 7  ;;  %v528_v41 = vrot.slane %v451_v30, 7 }
  0xaa   : > { %5741 = vst [vmem:[#allocation35_spill] sm:$0xff] %v4208_v31  ;;  %5742 = vst [vmem:[#allocation36_spill] sm:$0xff] %v4211_v32  ;;  %v4218_v36 = vsel %vm665_vm1, %v693_v23, %v694_v24  ;;  %v2925_v37 = vpack.i.bf16 %v4211_v32, %v4180_v51  ;;  %v529_v42 = vrot.slane %v452_v33, 7  ;;  %v696_v43 = vrot.slane %v4214_v34, 1  ;;  %v354_v51 = vld [vmem:[%s4028_s7 + $0xd8] sm:$0xff] }
  0xab   : > { %5743 = vst [vmem:[#allocation37_spill] sm:$0xff] %v4218_v36  ;;  %v2930_v40 = vpack.i.bf16 %v4218_v36, %v4208_v31  ;;  %v4227_v48 = vsel %vm506_vm0, %v525_v38, %v526_v39  ;;  %v4230_v49 = vsel %vm506_vm0, %v526_v39, 0.0  ;;  %v4233_v50 = vsel %vm506_vm0, 0.0, %v525_v38  ;;  %v351_v36 = vld [vmem:[%s4028_s7 + $0xc0] sm:$0xff] }
  0xac   : > { %2926 = vrot.lane.b32.xlu0 %v2925_v37, %s3784_s27  ;;  %5744 = vst [vmem:[#allocation38_spill] sm:$0xff] %v4227_v48  ;;  %5745 = vst [vmem:[#allocation39_spill] sm:$0xff] %v4233_v50  ;;  %v382_v61 = vmul.f32 %v4046_v4, %v343_v35  ;;  %v4241_v62 = vsel %vm506_vm0, %v528_v41, %v529_v42  ;;  %v4244_v63 = vsel %vm506_vm0, 0.0, %v528_v41  ;;  %v699_v2 = vrot.slane %v4227_v48, 1  ;;  %v347_v35 = vld [vmem:[%s4028_s7 + $0xa0] sm:$0xff]  ;;  %v349_v41 = vld [vmem:[%s4028_s7 + $0xb0] sm:$0xff] }
  0xad   : > { %2931 = vrot.lane.b32.xlu1 %v2930_v40, %s3784_s27  ;;  %5746 = vst [vmem:[#allocation40_spill] sm:$0xff] %v4241_v62  ;;  %5747 = vst [vmem:[#allocation41_spill] sm:$0xff] %v4244_v63  ;;  %v701_v9 = vrot.slane %v4230_v49, 1  ;;  %v703_v17 = vrot.slane %v4244_v63, 1  ;;  %v704_v20 = vrot.slane %v4241_v62, 1  ;;  %v4251_v22 = vsel %vm665_vm1, %v694_v24, %v696_v43  ;;  %v348_v40 = vld [vmem:[%s4028_s7 + $0xa8] sm:$0xff] }
  0xae   : > { %5748 = vst [vmem:[#allocation42_spill] sm:$0xff] %v4251_v22  ;;  %v698_v23 = vrot.slane %v4233_v50, 1  ;;  %v383_v28 = vmul.f32 %v4046_v4, %v344_v56  ;;  %v384_v30 = vmul.f32 %v4046_v4, %v345_v59  ;;  %v385_v33 = vmul.f32 %v4046_v4, %v346_v60 }
  0xaf   : > { %v4255_v25 = vsel %vm665_vm1, %v699_v2, %v701_v9  ;;  %v4262_v37 = vsel %vm665_vm1, %v703_v17, %v704_v20  ;;  %v421_v24 = vadd.f32 %v4048_v5, %v382_v61  ;;  %v4269_v39 = vsel %vm506_vm0, %v529_v42, 0.0  ;;  %v350_v9 = vld [vmem:[%s4028_s7 + $0xb8] sm:$0xff] }
  0xb0   : > { %v4265_v38 = vsel %vm665_vm1, %v698_v23, %v699_v2  ;;  %v2940_v43 = vpack.i.bf16 %v4262_v37, %v4255_v25  ;;  %v422_v59 = vadd.f32 %v4048_v5, %v383_v28  ;;  %v423_v60 = vadd.f32 %v4048_v5, %v384_v30 }
  0xb1   : > { %v2935_v56 = vpack.i.bf16 %v4265_v38, %v4251_v22  ;;  %v424_v2 = vadd.f32 %v4048_v5, %v385_v33  ;;  %v453_v17 = vmax.f32 %v421_v24, 0.0  ;;  %v706_v61 = vrot.slane %v4269_v39, 1 }
  0xb2   : > { %v386_v42 = vmul.f32 %v4046_v4, %v347_v35  ;;  %2941 = vrot.lane.b32.xlu1 %v2940_v43, %s3784_s27  ;;  %v454_v23 = vmax.f32 %v422_v59, 0.0  ;;  %v455_v6 = vmax.f32 %v423_v60, 0.0  ;;  %v387_v16 = vmul.f32 %v4046_v4, %v348_v40 }
  0xb3   : > { %2936 = vrot.lane.b32.xlu0 %v2935_v56, %s3784_s27  ;;  %v388_v28 = vmul.f32 %v4046_v4, %v349_v41  ;;  %v456_v52 = vmax.f32 %v424_v2, 0.0  ;;  %v531_v30 = vrot.slane %v453_v17, 7  ;;  %v4288_v7 = vsel %vm665_vm1, %v704_v20, %v706_v61 }
  0xb4   : > { %v389_v33 = vmul.f32 %v4046_v4, %v350_v9  ;;  %v532_v24 = vrot.slane %v454_v23, 7  ;;  %v534_v22 = vrot.slane %v455_v6, 7  ;;  %v425_v35 = vadd.f32 %v4048_v5, %v386_v42 }
  0xb5   : > { %v426_v43 = vadd.f32 %v4048_v5, %v387_v16  ;;  %v535_v56 = vrot.slane %v456_v52, 7  ;;  %v4294_v59 = vsel %vm506_vm0, 0.0, %v531_v30  ;;  %v427_v40 = vadd.f32 %v4048_v5, %v388_v28 }
  0xb6   : > { %5749 = vst [vmem:[#allocation43_spill] sm:$0xff] %v4294_v59  ;;  %v428_v41 = vadd.f32 %v4048_v5, %v389_v33  ;;  %v4299_v60 = vsel %vm506_vm0, %v531_v30, %v532_v24  ;;  %v4302_v20 = vsel %vm506_vm0, 0.0, %v534_v22  ;;  %v4305_v6 = vsel %vm506_vm0, %v532_v24, 0.0 }
  0xb7   : > { %5750 = vst [vmem:[#allocation44_spill] sm:$0xff] %v4299_v60  ;;  %5751 = vst [vmem:[#allocation45_spill] sm:$0xff] %v4302_v20  ;;  %v708_v16 = vrot.slane %v4294_v59, 1  ;;  %v4309_v52 = vsel %vm506_vm0, %v534_v22, %v535_v56  ;;  %v709_v9 = vrot.slane %v4299_v60, 1  ;;  %v711_v2 = vrot.slane %v4305_v6, 1 }
  0xb8   : > { %5752 = vst [vmem:[#allocation46_spill] sm:$0xff] %v4309_v52  ;;  %v713_v17 = vrot.slane %v4302_v20, 1  ;;  %v714_v61 = vrot.slane %v4309_v52, 1  ;;  %v457_v42 = vmax.f32 %v425_v35, 0.0  ;;  %v458_v23 = vmax.f32 %v426_v43, 0.0 }
  0xb9   : > { %v459_v28 = vmax.f32 %v427_v40, 0.0  ;;  %v4316_v30 = vsel %vm665_vm1, %v709_v9, %v711_v2  ;;  %v4319_v33 = vsel %vm665_vm1, %v708_v16, %v709_v9  ;;  %v460_v22 = vmax.f32 %v428_v41, 0.0 }
  0xba   : > { %5753 = vst [vmem:[#allocation47_spill] sm:$0xff] %v4316_v30  ;;  %5754 = vst [vmem:[#allocation48_spill] sm:$0xff] %v4319_v33  ;;  %v4322_v24 = vsel %vm506_vm0, %v535_v56, 0.0  ;;  %v4326_v31 = vsel %vm665_vm1, %v713_v17, %v714_v61  ;;  %v2945_v35 = vpack.i.bf16 %v4319_v33, %v4288_v7  ;;  %v537_v43 = vrot.slane %v457_v42, 7  ;;  %v352_v42 = vld [vmem:[%s4028_s7 + $0xc8] sm:$0xff] }
  0xbb   : > { %5755 = vst [vmem:[#allocation49_spill] sm:$0xff] %v4326_v31  ;;  %v538_v40 = vrot.slane %v458_v23, 7  ;;  %v2950_v16 = vpack.i.bf16 %v4326_v31, %v4316_v30  ;;  %v540_v9 = vrot.slane %v459_v28, 7  ;;  %v541_v2 = vrot.slane %v460_v22, 7  ;;  %v353_v23 = vld [vmem:[%s4028_s7 + $0xd0] sm:$0xff] }
  0xbc   : > { %v716_v41 = vrot.slane %v4322_v24, 1  ;;  %2946 = vrot.lane.b32.xlu0 %v2945_v35, %s3784_s27  ;;  %v4341_v32 = vsel %vm506_vm0, 0.0, %v537_v43  ;;  %v390_v28 = vmul.f32 %v4046_v4, %v351_v36  ;;  %v392_v57 = vmul.f32 %v4046_v4, %v353_v23 }
  0xbd   : > { %v4335_v56 = vsel %vm506_vm0, %v537_v43, %v538_v40  ;;  %v4338_v17 = vsel %vm506_vm0, %v538_v40, 0.0  ;;  %5757 = vst [vmem:[#allocation51_spill] sm:$0xff] %v4341_v32  ;;  %2951 = vrot.lane.b32.xlu1 %v2950_v16, %s3784_s27  ;;  %v4349_v22 = vsel %vm506_vm0, %v540_v9, %v541_v2  ;;  %v4352_v35 = vsel %vm506_vm0, 0.0, %v540_v9 }
  0xbe   : > { %5756 = vst [vmem:[#allocation50_spill] sm:$0xff] %v4335_v56  ;;  %5758 = vst [vmem:[#allocation52_spill] sm:$0xff] %v4349_v22  ;;  %v719_v40 = vrot.slane %v4335_v56, 1  ;;  %v721_v43 = vrot.slane %v4338_v17, 1  ;;  %v723_v26 = vrot.slane %v4352_v35, 1  ;;  %v724_v21 = vrot.slane %v4349_v22, 1 }
  0xbf   : > { %5759 = vst [vmem:[#allocation53_spill] sm:$0xff] %v4352_v35  ;;  %v4359_v58 = vsel %vm665_vm1, %v714_v61, %v716_v41  ;;  %v718_v36 = vrot.slane %v4341_v32, 1  ;;  %v391_v9 = vmul.f32 %v4046_v4, %v352_v42  ;;  %v393_v27 = vmul.f32 %v4046_v4, %v354_v51 }
  0xc0   : > { %5760 = vst [vmem:[#allocation54_spill] sm:$0xff] %v4359_v58  ;;  %v4363_v16 = vsel %vm665_vm1, %v719_v40, %v721_v43  ;;  %vm836_vm2 = vcmask 1045504   ;;  %v4370_v12 = vsel %vm665_vm1, %v723_v26, %v724_v21  ;;  %v429_v61 = vadd.f32 %v4048_v5, %v390_v28  ;;  %v356_v43 = vld [vmem:[%s4028_s7 + $0xe8] sm:$0xff] }
  0xc1   : > { %5761 = vst [vmem:[#allocation55_spill] sm:$0xff] %v4363_v16  ;;  %5762 = vst [vmem:[#allocation56_spill] sm:$0xff] %v4370_v12  ;;  %v4373_v31 = vsel %vm665_vm1, %v718_v36, %v719_v40  ;;  %v4377_v41 = vsel %vm506_vm0, %v541_v2, 0.0  ;;  %v2960_v42 = vpack.i.bf16 %v4370_v12, %v4363_v16  ;;  %v430_v23 = vadd.f32 %v4048_v5, %v391_v9 }
  0xc2   : > { %5763 = vst [vmem:[#allocation57_spill] sm:$0xff] %v4373_v31  ;;  %v2955_v51 = vpack.i.bf16 %v4373_v31, %v4359_v58  ;;  %v431_v26 = vadd.f32 %v4048_v5, %v392_v57  ;;  %v432_v30 = vadd.f32 %v4048_v5, %v393_v27  ;;  %v461_v40 = vmax.f32 %v429_v61, 0.0 }
  0xc3   : > { %v726_v36 = vrot.slane %v4377_v41, 1  ;;  %v394_v28 = vmul.f32 %v4046_v4, %v355_v3  ;;  %2961 = vrot.lane.b32.xlu1 %v2960_v42, %s3784_s27  ;;  %v462_v2 = vmax.f32 %v430_v23, 0.0  ;;  %v395_v16 = vmul.f32 %v4046_v4, %v356_v43 }
  0xc4   : > { %2956 = vrot.lane.b32.xlu0 %v2955_v51, %s3784_s27  ;;  %v463_v12 = vmax.f32 %v431_v26, 0.0  ;;  %v840_v31 = vrot.slane %v4094_v53, 2  ;;  %v464_v9 = vmax.f32 %v432_v30, 0.0  ;;  %v543_v58 = vrot.slane %v461_v40, 7 }
  0xc5   : > { %v4394_v57 = vsel %vm665_vm1, %v724_v21, %v726_v36  ;;  %v433_v27 = vadd.f32 %v4048_v5, %v394_v28  ;;  %v544_v61 = vrot.slane %v462_v2, 7  ;;  %v434_v3 = vadd.f32 %v4048_v5, %v395_v16 }
  0xc6   : > { %5764 = vst [vmem:[#allocation58_spill] sm:$0xff] %v4394_v57  ;;  %v546_v33 = vrot.slane %v463_v12, 7  ;;  %v842_v42 = vrot.slane %v4100_v55, 2  ;;  %v547_v51 = vrot.slane %v464_v9, 7  ;;  %v4400_v23 = vsel %vm506_vm0, 0.0, %v543_v58 }
  0xc7   : > { %5765 = vst [vmem:[#allocation59_spill] sm:$0xff] %v4400_v23  ;;  %v465_v4 = vmax.f32 %v433_v27, 0.0  ;;  %v844_v43 = vrot.slane %v4127_v10, 2  ;;  %v4404_v30 = vsel %vm506_vm0, %v543_v58, %v544_v61  ;;  %v4410_v26 = vsel %vm506_vm0, %v544_v61, 0.0 }
  0xc8   : > { %5766 = vst [vmem:[#allocation60_spill] sm:$0xff] %v4404_v30  ;;  %v4407_v21 = vsel %vm506_vm0, 0.0, %v546_v33  ;;  %v728_v5 = vrot.slane %v4400_v23, 1  ;;  %v4414_v55 = vsel %vm506_vm0, %v546_v33, %v547_v51  ;;  %v729_v12 = vrot.slane %v4404_v30, 1 }
  0xc9   : > { %5767 = vst [vmem:[#allocation61_spill] sm:$0xff] %v4407_v21  ;;  %v731_v16 = vrot.slane %v4410_v26, 1  ;;  %v733_v40 = vrot.slane %v4407_v21, 1  ;;  %v734_v58 = vrot.slane %v4414_v55, 1  ;;  %v466_v36 = vmax.f32 %v434_v3, 0.0 }
  0xca   : > { %v549_v28 = vrot.slane %v465_v4, 7  ;;  %v4421_v2 = vsel %vm506_vm0, %v547_v51, 0.0  ;;  %v4427_v27 = vsel %vm665_vm1, %v728_v5, %v729_v12  ;;  %v4431_v61 = vsel %vm836_vm2, %v840_v31, %v842_v42 }
  0xcb   : > { %v4424_v9 = vsel %vm665_vm1, %v729_v12, %v731_v16  ;;  %5769 = vst [vmem:[#allocation63_spill] sm:$0xff] %v4427_v27  ;;  %v736_v33 = vrot.slane %v4421_v2, 1  ;;  %v4434_v53 = vsel %vm665_vm1, %v733_v40, %v734_v58  ;;  %v2965_v3 = vpack.i.bf16 %v4427_v27, %v4394_v57 }
  0xcc   : > { %5768 = vst [vmem:[#allocation62_spill] sm:$0xff] %v4424_v9  ;;  %5770 = vst [vmem:[#allocation64_spill] sm:$0xff] %v4434_v53  ;;  %v550_v4 = vrot.slane %v466_v36, 7  ;;  %v4439_v51 = vsel %vm506_vm0, 0.0, %v549_v28  ;;  %v2970_v16 = vpack.i.bf16 %v4434_v53, %v4424_v9  ;;  %v845_v42 = vrot.slane %v4077_v44, 2 }
  0xcd   : > { %5771 = vst [vmem:[#allocation65_spill] sm:$0xff] %v4439_v51  ;;  %v738_v5 = vrot.slane %v4439_v51, 1  ;;  %v4445_v12 = vsel %vm665_vm1, %v734_v58, %v736_v33  ;;  %2966 = vrot.lane.b32.xlu0 %v2965_v3, %s3784_s27  ;;  %v839_v27 = vrot.slane %v4097_v54, 2  ;;  %v850_v57 = vrot.slane %v4080_v45, 2 }
  0xce   : > { %5772 = vst [vmem:[#allocation66_spill] sm:$0xff] %v4445_v12  ;;  %v4450_v40 = vsel %vm506_vm0, %v549_v28, %v550_v4  ;;  %v4453_v36 = vsel %vm506_vm0, %v550_v4, 0.0  ;;  %2971 = vrot.lane.b32.xlu1 %v2970_v16, %s3784_s27  ;;  %v4461_v33 = vsel %vm836_vm2, %v844_v43, %v845_v42  ;;  %v852_v3 = vrot.slane %v4123_v8, 2 }
  0xcf   : > { %5773 = vst [vmem:[#allocation67_spill] sm:$0xff] %v4450_v40  ;;  %v739_v53 = vrot.slane %v4450_v40, 1  ;;  %v741_v58 = vrot.slane %v4453_v36, 1  ;;  %v4465_v28 = vsel %vm836_vm2, %v839_v27, %v840_v31  ;;  %v854_v4 = vrot.slane %v4116_v1, 2 }
  0xd0   : > { %v855_v9 = vrot.slane %v4137_v14, 2  ;;  %v2985_v54 = vpack.i.bf16 %v4461_v33, %v4431_v61  ;;  %v2980_v43 = vpack.i.bf16 %v4465_v28, %v4065_v19  ;;  %v4479_v31 = vsel %vm836_vm2, %v850_v57, %v852_v3 }
  0xd1   : > { %v740_v45 = vsel %vm665_vm1, %v738_v5, %v739_v53  ;;  %v742_v16 = vsel %vm665_vm1, %v739_v53, %v741_v58  ;;  %v5775_v53 = vrot.slane %v4086_v47, 2  ;;  %v849_v58 = vrot.slane %v4083_v46, 2 }
  0xd2   : > { %v4475_v44 = vpack.i.bf16 %v742_v16, %v740_v45  ;;  %v2975_v8 = vpack.i.bf16 %v740_v45, %v4445_v12  ;;  %803 = vrot.lane.b32.xlu1 %v742_v16, %s3784_s27  ;;  %v4483_v27 = vsel %vm836_vm2, %v854_v4, %v855_v9  ;;  %v860_v19 = vrot.slane %v4191_v11, 2 }
  0xd3   : > { %v4488_v5 = vsel %vm836_vm2, %v845_v42, %v5775_v53  ;;  %v862_v45 = vrot.slane %v4197_v15, 2  ;;  %v864_v3 = vrot.slane %v4194_v13, 2  ;;  %v865_v16 = vrot.slane %v4201_v18, 2 }
  0xd4   : > { %5774 = vst [vmem:[#allocation68_spill] sm:$0xff] %v4475_v44  ;;  %2976 = vrot.lane.b32.xlu0 %v2975_v8, %s3784_s27  ;;  %v857_v4 = vrot.slane %v4161_v29, 2  ;;  %v4498_v44 = vsel %vm836_vm2, %v849_v58, %v850_v57  ;;  %v859_v47 = vrot.slane %v4186_v0, 2  ;;  %v2995_v42 = vpack.i.bf16 %v4483_v27, %v4479_v31 }
  0xd5   : > { %v2990_v53 = vpack.i.bf16 %v4498_v44, %v4488_v5  ;;  %v870_v8 = vrot.slane %v4227_v48, 2  ;;  %v872_v15 = vrot.slane %v4230_v49, 2  ;;  %v4509_v29 = vsel %vm836_vm2, %v860_v19, %v862_v45 }
  0xd6   : > { %2986 = vrot.lane.b32.xlu1 %v2985_v54, %s3785_s29  ;;  %v4512_v57 = vsel %vm836_vm2, %v864_v3, %v865_v16  ;;  %v4515_v58 = vsel %vm836_vm2, %v855_v9, %v857_v4  ;;  %v874_v12 = vrot.slane %v4244_v63, 2  ;;  %v4520_v48 = vsel %vm836_vm2, %v859_v47, %v860_v19 }
  0xd7   : > { %v875_v49 = vrot.slane %v4241_v62, 2  ;;  %v867_v54 = vrot.slane %v4214_v34, 2  ;;  %v869_v45 = vrot.slane %v4233_v50, 2  ;;  %v880_v18 = vrot.slane %v4299_v60, 2 }
  0xd8   : > { %2981 = vrot.lane.b32.xlu0 %v2980_v43, %s3785_s29  ;;  %v882_v3 = vrot.slane %v4305_v6, 2  ;;  %v884_v9 = vrot.slane %v4302_v20, 2  ;;  %v885_v4 = vrot.slane %v4309_v52, 2  ;;  %v873_v63 = vsel %vm836_vm2, %v870_v8, %v872_v15 }
  0xd9   : > { %v4531_v43 = vsel %vm836_vm2, %v874_v12, %v875_v49  ;;  %v877_v19 = vrot.slane %v4269_v39, 2  ;;  %v3005_v34 = vpack.i.bf16 %v4512_v57, %v4509_v29  ;;  %v3000_v6 = vpack.i.bf16 %v4520_v48, %v4515_v58 }
  0xda   : > { %2996 = vrot.lane.b32.xlu1 %v2995_v42, %s3785_s29  ;;  %v868_v47 = vsel %vm836_vm2, %v865_v16, %v867_v54  ;;  %v879_v52 = vrot.slane %v4294_v59, 2  ;;  %v3015_v15 = vpack.i.bf16 %v4531_v43, %v873_v63  ;;  %v871_v12 = vsel %vm836_vm2, %v869_v45, %v870_v8 }
  0xdb   : > { %v883_v39 = vsel %vm836_vm2, %v880_v18, %v882_v3  ;;  %v886_v42 = vsel %vm836_vm2, %v884_v9, %v885_v4  ;;  %v878_v20 = vsel %vm836_vm2, %v875_v49, %v877_v19  ;;  %v890_v60 = vrot.slane %v4335_v56, 2 }
  0xdc   : > { %2991 = vrot.lane.b32.xlu0 %v2990_v53, %s3785_s29  ;;  %v892_v53 = vrot.slane %v4338_v17, 2  ;;  %v894_v62 = vrot.slane %v4352_v35, 2  ;;  %v881_v16 = vsel %vm836_vm2, %v879_v52, %v880_v18  ;;  %v895_v54 = vrot.slane %v4349_v22, 2 }
  0xdd   : > { %v887_v8 = vrot.slane %v4322_v24, 2  ;;  %v889_v45 = vrot.slane %v4341_v32, 2  ;;  %v3010_v3 = vpack.i.bf16 %v871_v12, %v868_v47  ;;  %v3025_v49 = vpack.i.bf16 %v886_v42, %v883_v39 }
  0xde   : > { %3006 = vrot.lane.b32.xlu1 %v3005_v34, %s3785_s29  ;;  %v900_v9 = vrot.slane %v4404_v30, 2  ;;  %v902_v17 = vrot.slane %v4410_v26, 2  ;;  %v3020_v19 = vpack.i.bf16 %v881_v16, %v878_v20  ;;  %v909_v35 = vrot.slane %v4439_v51, 2 }
  0xdf   : > { %v910_v34 = vrot.slane %v4450_v40, 2  ;;  %v912_v18 = vrot.slane %v4453_v36, 2  ;;  %v893_v52 = vsel %vm836_vm2, %v890_v60, %v892_v53  ;;  %v896_v24 = vsel %vm836_vm2, %v894_v62, %v895_v54 }
  0xe0   : > { %3001 = vrot.lane.b32.xlu0 %v3000_v6, %s3785_s29  ;;  %v888_v6 = vsel %vm836_vm2, %v885_v4, %v887_v8  ;;  %v891_v22 = vsel %vm836_vm2, %v889_v45, %v890_v60  ;;  %v904_v26 = vrot.slane %v4407_v21, 2  ;;  %v905_v30 = vrot.slane %v4414_v55, 2 }
  0xe1   : > { %v911_v51 = vsel %vm836_vm2, %v909_v35, %v910_v34  ;;  %v913_v36 = vsel %vm836_vm2, %v910_v34, %v912_v18  ;;  %v899_v53 = vrot.slane %v4400_v23, 2  ;;  %v3035_v62 = vpack.i.bf16 %v896_v24, %v893_v52  ;;  %v5783_v18 = vld [vmem:[#allocation57_spill] sm:$0xff] }
  0xe2   : > { %3016 = vrot.lane.b32.xlu1 %v3015_v15, %s3785_s29  ;;  %v897_v15 = vrot.slane %v4377_v41, 2  ;;  %v4573_v40 = vpack.i.bf16 %v913_v36, %v911_v51  ;;  %v3030_v60 = vpack.i.bf16 %v891_v22, %v888_v6  ;;  %v903_v4 = vsel %vm836_vm2, %v900_v9, %v902_v17 }
  0xe3   : > { %v4579_v8 = vsel %vm836_vm2, %v904_v26, %v905_v30  ;;  %v901_v45 = vsel %vm836_vm2, %v899_v53, %v900_v9  ;;  %v907_v41 = vrot.slane %v4421_v2, 2  ;;  %v4592_v17 = vpack.i.bf16 %v4509_v29, %v4520_v48  ;;  %v5776_v29 = vld [vmem:[#allocation48_spill] sm:$0xff]  ;;  %v5784_v26 = vld [vmem:[#allocation55_spill] sm:$0xff]  ;;  %v5786_v53 = vld [vmem:[#allocation58_spill] sm:$0xff] }
  0xe4   : > { %3011 = vrot.lane.b32.xlu0 %v3010_v3, %s3785_s29  ;;  %v898_v35 = vsel %vm836_vm2, %v895_v54, %v897_v15  ;;  %v3045_v3 = vpack.i.bf16 %v4579_v8, %v903_v4  ;;  %v4596_v54 = vpack.i.bf16 %v868_v47, %v4512_v57  ;;  %v4603_v9 = vpack.i.bf16 %v4255_v25, %v4265_v38  ;;  %v5777_v57 = vld [vmem:[#allocation47_spill] sm:$0xff]  ;;  %v5779_v38 = vld [vmem:[#allocation54_spill] sm:$0xff]  ;;  %v5785_v15 = vld [vmem:[#allocation56_spill] sm:$0xff] }
  0xe5   : > { %v4599_v2 = vsel %vm836_vm2, %v905_v30, %v907_v41  ;;  %v4605_v34 = vpack.i.bf16 %v873_v63, %v871_v12  ;;  %v4610_v48 = vpack.i.bf16 %v4288_v7, %v4262_v37  ;;  %v4621_v25 = vpack.i.bf16 %v883_v39, %v881_v16  ;;  %v5778_v63 = vld [vmem:[#allocation49_spill] sm:$0xff] }
  0xe6   : > { %3026 = vrot.lane.b32.xlu1 %v3025_v49, %s3785_s29  ;;  %v4588_v49 = vpack.i.bf16 %v4515_v58, %v4483_v27  ;;  %v4613_v27 = vpack.i.bf16 %v878_v20, %v4531_v43  ;;  %v3050_v30 = vpack.i.bf16 %v911_v51, %v4599_v2  ;;  %v4619_v58 = vpack.i.bf16 %v5777_v57, %v5776_v29  ;;  %v5780_v7 = vld [vmem:[#allocation21_spill] sm:$0xff]  ;;  %v5781_v51 = vld [vmem:[#allocation24_spill] sm:$0xff]  ;;  %v5782_v43 = vld [vmem:[#allocation23_spill] sm:$0xff] }
  0xe7   : > { %v4625_v47 = vpack.i.bf16 %v5779_v38, %v5778_v63  ;;  %v3060_v37 = vpack.i.bf16 %v5780_v7, %v4127_v10  ;;  %v4630_v20 = vpack.i.bf16 %v888_v6, %v886_v42  ;;  %v3055_v12 = vpack.i.bf16 %v5782_v43, %v5781_v51  ;;  %v5787_v6 = vld [vmem:[#allocation22_spill] sm:$0xff]  ;;  %v5793_v57 = vld [vmem:[#allocation31_spill] sm:$0xff]  ;;  %v5794_v63 = vld [vmem:[#allocation25_spill] sm:$0xff] }
  0xe8   : > { %3021 = vrot.lane.b32.xlu0 %v3020_v19, %s3785_s29  ;;  %v3040_v19 = vpack.i.bf16 %v901_v45, %v898_v35  ;;  %v4637_v39 = vpack.i.bf16 %v5784_v26, %v5783_v18  ;;  %v4639_v16 = vpack.i.bf16 %v893_v52, %v891_v22  ;;  %v3070_v42 = vpack.i.bf16 %v4137_v14, %v4116_v1  ;;  %v3520_v52 = vld [vmem:[#allocation8] sm:$0xff]  }
  0xe9   : > { %v3075_v22 = vpack.i.bf16 %v4191_v11, %v4186_v0  ;;  %v3090_v29 = vpack.i.bf16 %v4431_v61, %v4465_v28  ;;  %v3085_v38 = vpack.i.bf16 %v5794_v63, %v5793_v57  ;;  %2758 = vmatprep.subr.bf16.mxu0 %v3520_v52  ;;  %2796 = vmatprep.subr.bf16.mxu1 %v3520_v52  ;;  %v3522_v28 = vld [vmem:[#allocation8 + $0x10] ss:$0 sps:$4 sm:$0x33]   ;;  %vm1928_vm3 = vcmask 1041408  }
  0xea   : > { %3036 = vrot.lane.b32.xlu1 %v3035_v62, %s3785_s29  ;;  %v4643_v62 = vpack.i.bf16 %v5786_v53, %v5785_v15  ;;  %2759 = vmatpush3.bf16.msra.mxu0 %v3520_v52  ;;  %v4670_v18 = vpack.i.bf16 %v903_v4, %v901_v45  ;;  %v3095_v61 = vpack.i.bf16 %v4488_v5, %v4461_v33  ;;  %v1930_v4 = vsel %vm1928_vm3, %v3522_v28, 0  ;;  %v5795_v33 = vld [vmem:[#allocation26_spill] sm:$0xff]  ;;  %v5796_v5 = vld [vmem:[#allocation29_spill] sm:$0xff]  ;;  %v5798_v53 = vld [vmem:[#allocation32_spill] sm:$0xff] }
  0xeb   : > { %2799 = vmatpush3.bf16.msra.mxu1 %v3520_v52  ;;  %v3115_v45 = vpack.i.bf16 %v5796_v5, %v5795_v33  ;;  %v4684_v26 = vpack.i.bf16 %v4599_v2, %v4579_v8  ;;  %v5797_v15 = vld [vmem:[#allocation30_spill] sm:$0xff]  ;;  %v5811_v5 = vld [vmem:[#allocation40_spill] sm:$0xff]  ;;  %vm1586_vm4 = vcmask 31744   ;;  %vm1618_vm5 = vcmask 64512  }
  0xec   : > { %3031 = vrot.lane.b32.xlu0 %v3030_v60, %s3785_s29  ;;  %v3065_v60 = vpack.i.bf16 %v5787_v6, %v4083_v46  ;;  %v5805_v63 = vld [vmem:[#allocation38_spill] sm:$0xff]  ;;  %vm1650_vm6 = vcmask 97280   ;;  %vm1683_vm7 = vcmask 130048   ;;  %vm1716_vm8 = vcmask 162816  }
  0xed   : > { %vm1749_vm9 = vcmask 195584   ;;  %vm1782_vm10 = vcmask 228352   ;;  %vm1815_vm11 = vcmask 261120   ;;  %vm1879_vm12 = vcmask 293888  }
  0xee   : > { %3046 = vrot.lane.b32.xlu1 %v3045_v3, %s3785_s29  ;;  %v5790_v3 = vld [vmem:[#allocation28_spill] sm:$0xff]  ;;  %vm2221_vm13 = vcmask 27648  }
  0xf0   : > { %3041 = vrot.lane.b32.xlu0 %v3040_v19, %s3785_s29  ;;  %v5791_v19 = vld [vmem:[#allocation27_spill] sm:$0xff] }
  0xf2   : > { %974 = vrot.lane.b32.xlu1 %v913_v36, %s3785_s29  ;;  %v4645_v36 = vpack.i.bf16 %v898_v35, %v896_v24  ;;  %v5788_v24 = vld [vmem:[#allocation63_spill] sm:$0xff]  ;;  %v5789_v35 = vld [vmem:[#allocation62_spill] sm:$0xff] }
  0xf3   : > { %v4659_v41 = vpack.i.bf16 %v5789_v35, %v5788_v24 }
  0xf4   : > { %3051 = vrot.lane.b32.xlu0 %v3050_v30, %s3785_s29  ;;  %v5792_v30 = vpack.i.bf16 %v5790_v3, %v5791_v19  ;;  %v5802_v19 = vld [vmem:[#allocation37_spill] sm:$0xff] }
  0xf6   : > { %3061 = vrot.lane.b32.xlu1 %v3060_v37, %s3786_s9 }
  0xf8   : > { %3056 = vrot.lane.b32.xlu0 %v3055_v12, %s3786_s9  ;;  %v3521_v12 = vld [vmem:[#allocation8 + $0x8] sm:$0xff]  }
  0xf9   : > { %2760 = vmatprep.subr.bf16.mxu0 %v3521_v12  ;;  %2797 = vmatprep.subr.bf16.mxu1 %v3521_v12 }
  0xfa   : > { %3071 = vrot.lane.b32.xlu1 %v3070_v42, %s3786_s9  ;;  %2761 = vmatpush3.bf16.msra.mxu0 %v3521_v12 }
  0xfb   : > { %2800 = vmatpush3.bf16.msra.mxu1 %v3521_v12  ;;  %2802 = vmatprep.subr.msk.bf16.mxu0 %vm1928_vm3, %v3522_v28 }
  0xfc   : > { %3066 = vrot.lane.b32.xlu0 %v3065_v60, %s3786_s9  ;;  %2803 = vmatprep.subr.msk.bf16.mxu1 %vm1928_vm3, %v3522_v28 }
  0xfe   : > { %3081 = vrot.lane.b32.xlu1 %v5792_v30, %s3787_s18  ;;  %2763 = vmatpush3.bf16.msra.mxu0 %v1930_v4  ;;  %v5803_v30 = vld [vmem:[#allocation42_spill] sm:$0xff] }
  0xff   : > { %2801 = vmatpush3.bf16.msra.mxu1 %v1930_v4 }
 0x100   : > { %3076 = vrot.lane.b32.xlu0 %v3075_v22, %s3786_s9 }
 0x102   : > { %3091 = vrot.lane.b32.xlu1 %v3090_v29, %s3788_s8 }
 0x104   : > { %3086 = vrot.lane.b32.xlu0 %v3085_v38, %s3787_s18 }
 0x106   : > { %3101 = vrot.lane.b32.xlu1 %v3060_v37, %s3789_s11  ;;  %v3125_v37 = vpack.i.bf16 %v4479_v31, %v4498_v44  ;;  %v5799_v44 = vld [vmem:[#allocation36_spill] sm:$0xff]  ;;  %v5800_v31 = vld [vmem:[#allocation35_spill] sm:$0xff] }
 0x107   : > { %v3165_v52 = vpack.i.bf16 %v5800_v31, %v5799_v44 }
 0x108   : > { %3096 = vrot.lane.b32.xlu0 %v3095_v61, %s3788_s8 }
 0x10a   : > { %3111 = vrot.lane.b32.xlu1 %v3085_v38, %s3790_s15  ;;  %v3210_v38 = vpack.i.bf16 %v5805_v63, %v4233_v50 }
 0x10c   : > { %3106 = vrot.lane.b32.xlu0 %v3065_v60, %s3789_s11  ;;  %v3135_v60 = vpack.i.bf16 %v5798_v53, %v5797_v15 }
 0x10e   : > { %3121 = vrot.lane.b32.xlu1 %v3095_v61, %s3791_s19  ;;  %v4701_v2 = vpop.permute.xlu1 %2916 }
 0x110   : > { %3116 = vrot.lane.b32.xlu0 %v3115_v45, %s3790_s15  ;;  %v4699_v8 = vpop.permute.xlu0 %2906 }
 0x112   : > { %3131 = vrot.lane.b32.xlu1 %v3115_v45, %s3787_s18 }
 0x113   : > { %v4713_v3 = vpop.permute.xlu1 %2921 }
 0x114   : > { %3126 = vrot.lane.b32.xlu0 %v3125_v37, %s3791_s19  ;;  %v4707_v24 = vpop.permute.xlu0 %2911 }
 0x116   : > { %3141 = vrot.lane.b32.xlu1 %v3125_v37, %s3788_s8 }
 0x118   : > { %3136 = vrot.lane.b32.xlu0 %v3135_v60, %s3787_s18 }
 0x11a   : > { %3151 = vrot.lane.b32.xlu1 %v3070_v42, %s3789_s11  ;;  %v5801_v42 = vld [vmem:[#allocation34_spill] sm:$0xff] }
 0x11b   : > { %v3180_v35 = vpack.i.bf16 %v5801_v42, %v4194_v13  ;;  %v5834_v42 = vld [vmem:[#allocation66_spill] sm:$0xff] }
 0x11c   : > { %3146 = vrot.lane.b32.xlu0 %v4588_v49, %s3788_s8 }
 0x11e   : > { %3161 = vrot.lane.b32.xlu1 %v3135_v60, %s3790_s15  ;;  %v4721_v29 = vpop.permute.xlu0 %2926 }
 0x11f   : > { %v4723_v57 = vpop.permute.xlu1 %2931 }
 0x120   : > { %3156 = vrot.lane.b32.xlu0 %v3075_v22, %s3789_s11  ;;  %v3190_v22 = vpack.i.bf16 %v5803_v30, %v5802_v19  ;;  %v5815_v30 = vld [vmem:[#allocation45_spill] sm:$0xff] }
 0x122   : > { %3171 = vrot.lane.b32.xlu1 %v4588_v49, %s3791_s19 }
 0x124   : > { %3166 = vrot.lane.b32.xlu0 %v3165_v52, %s3790_s15  ;;  %v4733_v12 = vpop.permute.xlu1 %2941 }
 0x125   : > { %v4727_v49 = vpop.permute.xlu0 %2936 }
 0x126   : > { %3181 = vrot.lane.b32.xlu1 %v3180_v35, %s3786_s9  ;;  %5804 = vst [vmem:[#allocation48_spill] sm:$0xff] %v4727_v49 }
 0x128   : > { %3176 = vrot.lane.b32.xlu0 %v4592_v17, %s3791_s19 }
 0x12a   : > { %3191 = vrot.lane.b32.xlu1 %v3190_v22, %s3787_s18 }
 0x12c   : > { %3186 = vrot.lane.b32.xlu0 %v3165_v52, %s3787_s18 }
 0x12e   : > { %3201 = vrot.lane.b32.xlu1 %v4596_v54, %s3788_s8  ;;  %v4739_v61 = vpop.permute.xlu0 %2946 }
 0x12f   : > { %5806 = vst [vmem:[#allocation47_spill] sm:$0xff] %v4739_v61  ;;  %v4741_v28 = vpop.permute.xlu1 %2951 }
 0x130   : > { %3196 = vrot.lane.b32.xlu0 %v4592_v17, %s3788_s8  ;;  %5807 = vst [vmem:[#allocation49_spill] sm:$0xff] %v4741_v28  ;;  %v5810_v17 = vld [vmem:[#allocation41_spill] sm:$0xff]  ;;  %v5833_v28 = vld [vmem:[#allocation64_spill] sm:$0xff] }
 0x131   : > { %v3240_v45 = vpack.i.bf16 %v5811_v5, %v5810_v17  ;;  %v2913_v17 = vunpack.i.l.bf16 %v4707_v24  ;;  %v4898_v50 = vpack.i.bf16 %v5834_v42, %v5833_v28 }
 0x132   : > { %3211 = vrot.lane.b32.xlu1 %v3210_v38, %s3789_s11 }
 0x134   : > { %3206 = vrot.lane.b32.xlu0 %v3180_v35, %s3789_s11 }
 0x135   : > { %v4750_v33 = vpop.permute.xlu1 %2961 }
 0x136   : > { %3221 = vrot.lane.b32.xlu1 %v4603_v9, %s3790_s15  ;;  %v4746_v4 = vpop.permute.xlu0 %2956  ;;  %5809 = vst [vmem:[#allocation21_spill] sm:$0xff] %v4750_v33 }
 0x137   : > { %5808 = vst [vmem:[#allocation54_spill] sm:$0xff] %v4746_v4 }
 0x138   : > { %3216 = vrot.lane.b32.xlu0 %v3190_v22, %s3790_s15  ;;  %v5816_v22 = vld [vmem:[#allocation46_spill] sm:$0xff] }
 0x13a   : > { %3231 = vrot.lane.b32.xlu1 %v4605_v34, %s3791_s19 }
 0x13c   : > { %3226 = vrot.lane.b32.xlu0 %v4596_v54, %s3791_s19  ;;  %v5814_v54 = vld [vmem:[#allocation44_spill] sm:$0xff] }
 0x13d   : > { %v3270_v44 = vpack.i.bf16 %v5814_v54, %v4294_v59 }
 0x13e   : > { %3241 = vrot.lane.b32.xlu1 %v3240_v45, %s3786_s9 }
 0x13f   : > { %v4758_v37 = vpop.permute.xlu0 %2966 }
 0x140   : > { %3236 = vrot.lane.b32.xlu0 %v3210_v38, %s3786_s9  ;;  %5812 = vst [vmem:[#allocation24_spill] sm:$0xff] %v4758_v37  ;;  %v4760_v15 = vpop.permute.xlu1 %2971  ;;  %v3300_v38 = vpack.i.bf16 %v5816_v22, %v5815_v30 }
 0x141   : > { %5813 = vst [vmem:[#allocation23_spill] sm:$0xff] %v4760_v15 }
 0x142   : > { %3251 = vrot.lane.b32.xlu1 %v4610_v48, %s3787_s18 }
 0x144   : > { %3246 = vrot.lane.b32.xlu0 %v4603_v9, %s3787_s18  ;;  %v804_v53 = vpop.permute.xlu1 %803 }
 0x146   : > { %v2977_v60 = vpop.permute.xlu0 %2976  ;;  %3261 = vrot.lane.b32.xlu1 %v4613_v27, %s3788_s8 }
 0x148   : > { %3256 = vrot.lane.b32.xlu0 %v4605_v34, %s3788_s8  ;;  %v4772_v31 = vpop.permute.xlu1 %2986 }
 0x14a   : > { %v4774_v52 = vpop.permute.xlu0 %2981  ;;  %3271 = vrot.lane.b32.xlu1 %v3270_v44, %s3789_s11 }
 0x14c   : > { %3266 = vrot.lane.b32.xlu0 %v3240_v45, %s3789_s11  ;;  %v4778_v9 = vpop.permute.xlu1 %2996 }
 0x14e   : > { %v4780_v35 = vpop.permute.xlu0 %2991  ;;  %3281 = vrot.lane.b32.xlu1 %v4619_v58, %s3790_s15 }
 0x150   : > { %3276 = vrot.lane.b32.xlu0 %v4610_v48, %s3790_s15  ;;  %v4786_v19 = vpop.permute.xlu1 %3006 }
 0x152   : > { %v4788_v34 = vpop.permute.xlu0 %3001  ;;  %3291 = vrot.lane.b32.xlu1 %v4621_v25, %s3791_s19 }
 0x154   : > { %3286 = vrot.lane.b32.xlu0 %v4613_v27, %s3791_s19  ;;  %v4796_v45 = vpop.permute.xlu1 %3016 }
 0x155   : > { %5817 = vst [vmem:[#allocation57_spill] sm:$0xff] %v4796_v45 }
 0x156   : > { %v4798_v37 = vpop.permute.xlu0 %3011  ;;  %3301 = vrot.lane.b32.xlu1 %v3300_v38, %s3786_s9 }
 0x157   : > { %5818 = vst [vmem:[#allocation55_spill] sm:$0xff] %v4798_v37 }
 0x158   : > { %3296 = vrot.lane.b32.xlu0 %v3270_v44, %s3786_s9  ;;  %v4802_v48 = vpop.permute.xlu1 %3026  ;;  %v3330_v44 = vpack.i.bf16 %v4335_v56, %v4341_v32 }
 0x159   : > { %5819 = vst [vmem:[#allocation56_spill] sm:$0xff] %v4802_v48 }
 0x15a   : > { %v4804_v15 = vpop.permute.xlu0 %3021  ;;  %3311 = vrot.lane.b32.xlu1 %v4625_v47, %s3787_s18 }
 0x15b   : > { %5820 = vst [vmem:[#allocation58_spill] sm:$0xff] %v4804_v15  ;;  %v2988_v15 = vunpack.i.l.bf16 %v4772_v31 }
 0x15c   : > { %3306 = vrot.lane.b32.xlu0 %v4619_v58, %s3787_s18  ;;  %v4810_v22 = vpop.permute.xlu1 %3036  ;;  %v2979_v58 = vunpack.i.h.bf16 %v2977_v60 }
 0x15d   : > { %5821 = vst [vmem:[#allocation22_spill] sm:$0xff] %v4810_v22  ;;  %v2978_v22 = vunpack.i.l.bf16 %v2977_v60 }
 0x15e   : > { %v4812_v27 = vpop.permute.xlu0 %3031  ;;  %3321 = vrot.lane.b32.xlu1 %v4630_v20, %s3788_s8 }
 0x15f   : > { %5822 = vst [vmem:[#allocation63_spill] sm:$0xff] %v4812_v27  ;;  %v5825_v27 = vld [vmem:[#allocation67_spill] sm:$0xff] }
 0x160   : > { %3316 = vrot.lane.b32.xlu0 %v4621_v25, %s3788_s8  ;;  %v4820_v30 = vpop.permute.xlu1 %3046  ;;  %v1617_v33 = vsel %vm1586_vm4, %v5825_v27, %v804_v53 }
 0x161   : > { %5823 = vst [vmem:[#allocation62_spill] sm:$0xff] %v4820_v30 }
 0x162   : > { %v4822_v4 = vpop.permute.xlu0 %3041  ;;  %3331 = vrot.lane.b32.xlu1 %v3330_v44, %s3789_s11 }
 0x163   : > { %5824 = vst [vmem:[#allocation28_spill] sm:$0xff] %v4822_v4  ;;  %v5827_v4 = vld [vmem:[#allocation65_spill] sm:$0xff] }
 0x164   : > { %3326 = vrot.lane.b32.xlu0 %v3300_v38, %s3789_s11  ;;  %v975_v5 = vpop.permute.xlu1 %974  ;;  %v1616_v60 = vsel %vm1586_vm4, %v5827_v4, %v2979_v58  ;;  %v1615_v38 = vsel %vm1586_vm4, %v4414_v55, %v2978_v22  ;;  %v5830_v58 = vld [vmem:[#allocation53_spill] sm:$0xff] }
 0x165   : > { %v4829_v32 = vsel %vm1618_vm5, %v1617_v33, %v975_v5 }
 0x166   : > { %5826 = vst [vmem:[#allocation27_spill] sm:$0xff] %v4829_v32  ;;  %v3052_v25 = vpop.permute.xlu0 %3051  ;;  %3341 = vrot.lane.b32.xlu1 %v4637_v39, %s3790_s15  ;;  %v5831_v32 = vld [vmem:[#allocation52_spill] sm:$0xff] }
 0x167   : > { %v3054_v56 = vunpack.i.h.bf16 %v3052_v25  ;;  %v3053_v30 = vunpack.i.l.bf16 %v3052_v25  ;;  %v3360_v59 = vpack.i.bf16 %v5831_v32, %v5830_v58  ;;  %v2909_v58 = vunpack.i.h.bf16 %v4699_v8 }
 0x168   : > { %3336 = vrot.lane.b32.xlu0 %v4625_v47, %s3790_s15  ;;  %v4845_v53 = vpop.permute.xlu1 %3061 }
 0x169   : > { %v4840_v33 = vsel %vm1618_vm5, %v1615_v38, %v3053_v30  ;;  %v4843_v5 = vsel %vm1618_vm5, %v1616_v60, %v3054_v56  ;;  %v357_v56 = vld [vmem:[%s4028_s7 + $0xf0] sm:$0xff]  ;;  %v358_v60 = vld [vmem:[%s4028_s7 + $0xf8] sm:$0xff] }
 0x16a   : > { %5828 = vst [vmem:[#allocation31_spill] sm:$0xff] %v4840_v33  ;;  %5829 = vst [vmem:[#allocation25_spill] sm:$0xff] %v4843_v5  ;;  %v4847_v25 = vpop.permute.xlu0 %3056  ;;  %3351 = vrot.lane.b32.xlu1 %v4639_v16, %s3791_s19  ;;  %v3523_v33 = vld [vmem:[#allocation5] ss:$0 sm:$0xff] }
 0x16b   : > { %v396_v5 = vmul.f32 %v3523_v33, %v357_v56  ;;  %v5832_v56 = vld [vmem:[#allocation60_spill] sm:$0xff]  ;;  %v3058_v63 = vunpack.i.l.bf16 %v4847_v25 }
 0x16c   : > { %3346 = vrot.lane.b32.xlu0 %v4630_v20, %s3791_s19  ;;  %v4855_v47 = vpop.permute.xlu1 %3071  ;;  %v397_v20 = vmul.f32 %v3523_v33, %v358_v60  ;;  %v3524_v33 = vld [vmem:[#allocation7] ss:$0 sm:$0xff] }
 0x16d   : > { %v4882_v60 = vadd.f32 %v3524_v33, %v396_v5 }
 0x16e   : > { %v4857_v30 = vpop.permute.xlu0 %3066  ;;  %3361 = vrot.lane.b32.xlu1 %v3360_v59, %s3786_s9  ;;  %v4891_v48 = vadd.f32 %v3524_v33, %v397_v20  ;;  %v3064_v20 = vunpack.i.h.bf16 %v4845_v53  ;;  %v3063_v33 = vunpack.i.l.bf16 %v4845_v53 }
 0x16f   : > { %v467_v42 = vmax.f32 %v4882_v60, 0.0 }
 0x170   : > { %3356 = vrot.lane.b32.xlu0 %v3330_v44, %s3786_s9  ;;  %v4862_v22 = vpop.permute.xlu1 %3081  ;;  %v2908_v44 = vunpack.i.l.bf16 %v4699_v8  ;;  %v4889_v8 = vpack.i.bf16 %v4414_v55, %v4407_v21  ;;  %v1589_v21 = vsel %vm1586_vm4, %v5782_v43, %v2913_v17  ;;  %v468_v43 = vmax.f32 %v4891_v48, 0.0 }
 0x171   : > { %v3084_v28 = vunpack.i.h.bf16 %v4862_v22 }
 0x172   : > { %v4865_v38 = vpop.permute.xlu0 %3076  ;;  %3371 = vrot.lane.b32.xlu1 %v4643_v62, %s3787_s18  ;;  %v1587_v55 = vsel %vm1586_vm4, 0.0, %v2908_v44 }
 0x174   : > { %3366 = vrot.lane.b32.xlu0 %v4637_v39, %s3787_s18  ;;  %v3092_v32 = vpop.permute.xlu1 %3091  ;;  %v4880_v39 = vpack.i.bf16 %v5832_v56, %v4400_v23  ;;  %v2984_v23 = vunpack.i.h.bf16 %v4774_v52  ;;  %v2983_v56 = vunpack.i.l.bf16 %v4774_v52  ;;  %v3059_v52 = vunpack.i.h.bf16 %v4847_v25 }
 0x175   : > { %v3094_v25 = vunpack.i.h.bf16 %v3092_v32  ;;  %v3093_v44 = vunpack.i.l.bf16 %v3092_v32 }
 0x176   : > { %v4873_v54 = vpop.permute.xlu0 %3086  ;;  %3381 = vrot.lane.b32.xlu1 %v4645_v36, %s3788_s8  ;;  %v1619_v17 = vsel %vm1618_vm5, %v1587_v55, %v2983_v56 }
 0x177   : > { %v3089_v56 = vunpack.i.h.bf16 %v4873_v54 }
 0x178   : > { %3376 = vrot.lane.b32.xlu0 %v4639_v16, %s3788_s8  ;;  %v3102_v5 = vpop.permute.xlu1 %3101  ;;  %v1588_v16 = vsel %vm1586_vm4, %v5781_v51, %v2909_v58  ;;  %v1621_v51 = vsel %vm1618_vm5, %v1589_v21, %v2988_v15  ;;  %v3083_v58 = vunpack.i.l.bf16 %v4862_v22  ;;  %v1651_v22 = vsel %vm1650_vm6, %v1619_v17, %v3058_v63 }
 0x179   : > { %v1620_v53 = vsel %vm1618_vm5, %v1588_v16, %v2984_v23  ;;  %v1654_v21 = vsel %vm1650_vm6, %v1621_v51, %v3064_v20  ;;  %v3104_v15 = vunpack.i.h.bf16 %v3102_v5  ;;  %v3103_v37 = vunpack.i.l.bf16 %v3102_v5 }
 0x17a   : > { %v3097_v61 = vpop.permute.xlu0 %3096  ;;  %3391 = vrot.lane.b32.xlu1 %v4880_v39, %s3789_s11  ;;  %v1653_v60 = vsel %vm1650_vm6, %v1620_v53, %v3063_v33  ;;  %v1684_v23 = vsel %vm1683_vm7, %v1651_v22, %v3083_v58  ;;  %v3088_v16 = vunpack.i.l.bf16 %v4873_v54  ;;  %v1687_v22 = vsel %vm1683_vm7, %v1654_v21, %v3089_v56 }
 0x17b   : > { %v1717_v63 = vsel %vm1716_vm8, %v1684_v23, %v3093_v44  ;;  %v3099_v55 = vunpack.i.h.bf16 %v3097_v61 }
 0x17c   : > { %3386 = vrot.lane.b32.xlu0 %v3360_v59, %s3789_s11  ;;  %v3112_v13 = vpop.permute.xlu1 %3111  ;;  %v1652_v59 = vsel %vm1650_vm6, %v1619_v17, %v3059_v52  ;;  %v1750_v33 = vsel %vm1749_vm9, %v1717_v63, %v3103_v37  ;;  %v552_v63 = vrot.slane %v467_v42, 7  ;;  %v2914_v42 = vunpack.i.h.bf16 %v4707_v24 }
 0x17d   : > { %v3114_v49 = vunpack.i.h.bf16 %v3112_v13  ;;  %v3113_v48 = vunpack.i.l.bf16 %v3112_v13  ;;  %v1685_v32 = vsel %vm1683_vm7, %v1652_v59, %v3084_v28  ;;  %v3098_v13 = vunpack.i.l.bf16 %v3097_v61 }
 0x17e   : > { %v3107_v45 = vpop.permute.xlu0 %3106  ;;  %3401 = vrot.lane.b32.xlu1 %v4659_v41, %s3790_s15  ;;  %v1718_v5 = vsel %vm1716_vm8, %v1685_v32, %v3094_v25  ;;  %v1720_v23 = vsel %vm1716_vm8, %v1687_v22, %v3099_v55 }
 0x17f   : > { %v1751_v52 = vsel %vm1749_vm9, %v1718_v5, %v3104_v15  ;;  %v3109_v17 = vunpack.i.h.bf16 %v3107_v45  ;;  %v3108_v53 = vunpack.i.l.bf16 %v3107_v45  ;;  %v2918_v15 = vunpack.i.l.bf16 %v4701_v2 }
 0x180   : > { %3396 = vrot.lane.b32.xlu0 %v4643_v62, %s3790_s15  ;;  %v3122_v20 = vpop.permute.xlu1 %3121  ;;  %v1783_v62 = vsel %vm1782_vm10, %v1750_v33, %v3113_v48  ;;  %v1784_v54 = vsel %vm1782_vm10, %v1751_v52, %v3114_v49  ;;  %v1686_v45 = vsel %vm1683_vm7, %v1653_v60, %v3088_v16  ;;  %v2923_v60 = vunpack.i.l.bf16 %v4713_v3 }
 0x181   : > { %v3124_v51 = vunpack.i.h.bf16 %v3122_v20  ;;  %v3123_v28 = vunpack.i.l.bf16 %v3122_v20  ;;  %v1719_v49 = vsel %vm1716_vm8, %v1686_v45, %v3098_v13  ;;  %v1753_v20 = vsel %vm1749_vm9, %v1720_v23, %v3109_v17 }
 0x182   : > { %v3117_v58 = vpop.permute.xlu0 %3116  ;;  %3411 = vrot.lane.b32.xlu1 %v4670_v18, %s3791_s19  ;;  %v1752_v5 = vsel %vm1749_vm9, %v1719_v49, %v3108_v53  ;;  %v5835_v13 = vunpack.i.h.bf16 %v4701_v2  ;;  %v4981_v2 = vsel %vm506_vm0, 0.0, %v552_v63  ;;  %v2998_v53 = vunpack.i.l.bf16 %v4778_v9 }
 0x183   : > { %v3119_v25 = vunpack.i.h.bf16 %v3117_v58  ;;  %v3118_v44 = vunpack.i.l.bf16 %v3117_v58  ;;  %v1816_v61 = vsel %vm1815_vm11, %v1783_v62, %v3123_v28  ;;  %v1817_v37 = vsel %vm1815_vm11, %v1784_v54, %v3124_v51 }
 0x184   : > { %3406 = vrot.lane.b32.xlu0 %v4645_v36, %s3791_s19  ;;  %v4946_v59 = vpop.permute.xlu1 %3131  ;;  %v1848_v48 = vpack.c.bf16 %v1817_v37, %v1816_v61  ;;  %v553_v36 = vrot.slane %v468_v43, 7  ;;  %v1592_v51 = vsel %vm1586_vm4, %v4083_v46, %v5835_v13  ;;  %v1591_v28 = vsel %vm1586_vm4, %v5780_v7, %v2918_v15 }
 0x185   : > { %v1785_v21 = vsel %vm1782_vm10, %v1752_v5, %v3118_v44  ;;  %v1786_v56 = vsel %vm1782_vm10, %v1753_v20, %v3119_v25  ;;  %v1593_v46 = vsel %vm1586_vm4, %v5787_v6, %v2923_v60  ;;  %v2989_v7 = vunpack.i.h.bf16 %v4772_v31 }
 0x186   : > { %v3127_v32 = vpop.permute.xlu0 %3126  ;;  %3421 = vrot.lane.b32.xlu1 %v4889_v8, %s3786_s9  ;;  %2764 = vmatprep.mubr.msk.bf16.mxu0 %vm1879_vm12, %v1848_v48  ;;  %v4978_v24 = vsel %vm506_vm0, %v552_v63, %v553_v36  ;;  %v2994_v62 = vunpack.i.h.bf16 %v4780_v35  ;;  %v2993_v54 = vunpack.i.l.bf16 %v4780_v35  ;;  %v3074_v31 = vunpack.i.h.bf16 %v4855_v47 }
 0x187   : > { %v3129_v33 = vunpack.i.h.bf16 %v3127_v32  ;;  %v3128_v52 = vunpack.i.l.bf16 %v3127_v32  ;;  %v3073_v25 = vunpack.i.l.bf16 %v4855_v47  ;;  %v1105_v61 = vrot.slane %v4981_v2, 1 }
 0x188   : > { %3416 = vrot.lane.b32.xlu0 %v4880_v39, %s3786_s9  ;;  %v3142_v55 = vpop.permute.xlu1 %3141  ;;  %v4973_v39 = vpack.i.bf16 %v5825_v27, %v5827_v4  ;;  %v4991_v4 = vsel %vm506_vm0, %v553_v36, 0.0  ;;  %v1590_v27 = vsel %vm1586_vm4, %v4127_v10, %v2914_v42  ;;  %v3069_v37 = vunpack.i.h.bf16 %v4857_v30 }
 0x189   : > { %v1818_v43 = vsel %vm1815_vm11, %v1785_v21, %v3128_v52  ;;  %v1819_v16 = vsel %vm1815_vm11, %v1786_v56, %v3129_v33  ;;  %v3068_v10 = vunpack.i.l.bf16 %v4857_v30  ;;  %v1106_v35 = vrot.slane %v4978_v24, 1 }
 0x18a   : > { %v1849_v58 = vpack.c.bf16 %v1819_v16, %v1818_v43  ;;  %v4969_v17 = vpop.permute.xlu0 %3136  ;;  %3431 = vrot.lane.b32.xlu1 %v4898_v50, %s3787_s18  ;;  %v1108_v15 = vrot.slane %v4991_v4, 1  ;;  %v1622_v47 = vsel %vm1618_vm5, %v1590_v27, %v2989_v7  ;;  %v1625_v45 = vsel %vm1618_vm5, %v1593_v46, %v2998_v53 }
 0x18b   : > { %v3134_v22 = vunpack.i.h.bf16 %v4946_v59  ;;  %v3133_v48 = vunpack.i.l.bf16 %v4946_v59  ;;  %v1624_v30 = vsel %vm1618_vm5, %v1592_v51, %v2994_v62  ;;  %v1623_v49 = vsel %vm1618_vm5, %v1591_v28, %v2993_v54 }
 0x18c   : > { %3426 = vrot.lane.b32.xlu0 %v4659_v41, %s3787_s18  ;;  %2765 = vmatmul.mubr.msk.bf16.vlgmr.msra.gmra.mrb[0].mxu0 %vm1879_vm12, %v1849_v58  ;;  %v3152_v6 = vpop.permute.xlu1 %3151  ;;  %v5001_v41 = vpack.i.bf16 %v4978_v24, %v4981_v2  ;;  %v3144_v23 = vunpack.i.h.bf16 %v3142_v55  ;;  %v3143_v32 = vunpack.i.l.bf16 %v3142_v55  ;;  %v1657_v36 = vsel %vm1650_vm6, %v1624_v30, %v3073_v25 }
 0x18d   : > { %v1658_v5 = vsel %vm1650_vm6, %v1625_v45, %v3074_v31  ;;  %v3154_v20 = vunpack.i.h.bf16 %v3152_v6  ;;  %v3153_v33 = vunpack.i.l.bf16 %v3152_v6  ;;  %v1655_v60 = vsel %vm1650_vm6, %v1622_v47, %v3068_v10  ;;  %v5836_v31 = vld [vmem:[#allocation68_spill] sm:$0xff] }
 0x18e   : > { %v3147_v44 = vpop.permute.xlu0 %3146  ;;  %3441 = vrot.lane.b32.xlu1 %v4684_v26, %s3788_s8  ;;  %v1656_v59 = vsel %vm1650_vm6, %v1623_v49, %v3069_v37  ;;  %v1688_v56 = vsel %vm1683_vm7, %v1655_v60, %v3133_v48  ;;  %v3139_v43 = vunpack.i.h.bf16 %v4969_v17  ;;  %v3138_v16 = vunpack.i.l.bf16 %v4969_v17 }
 0x18f   : > { %v1689_v42 = vsel %vm1683_vm7, %v1656_v59, %v3134_v22  ;;  %v1721_v55 = vsel %vm1716_vm8, %v1688_v56, %v3143_v32  ;;  %v3149_v51 = vunpack.i.h.bf16 %v3147_v44  ;;  %v3148_v28 = vunpack.i.l.bf16 %v3147_v44 }
 0x190   : > { %3436 = vrot.lane.b32.xlu0 %v4670_v18, %s3788_s8  ;;  %v3162_v63 = vpop.permute.xlu1 %3161  ;;  %v1722_v13 = vsel %vm1716_vm8, %v1689_v42, %v3144_v23  ;;  %v1754_v46 = vsel %vm1749_vm9, %v1721_v55, %v3153_v33  ;;  %v1691_v47 = vsel %vm1683_vm7, %v1658_v5, %v3139_v43  ;;  %v1690_v45 = vsel %vm1683_vm7, %v1657_v36, %v3138_v16 }
 0x191   : > { %v3164_v21 = vunpack.i.h.bf16 %v3162_v63  ;;  %v3163_v18 = vunpack.i.l.bf16 %v3162_v63  ;;  %v1755_v7 = vsel %vm1749_vm9, %v1722_v13, %v3154_v20  ;;  %v1107_v30 = vsel %vm665_vm1, %v1105_v61, %v1106_v35 }
 0x192   : > { %v3157_v52 = vpop.permute.xlu0 %3156  ;;  %3451 = vrot.lane.b32.xlu1 %v4973_v39, %s3789_s11  ;;  %v1723_v49 = vsel %vm1716_vm8, %v1690_v45, %v3148_v28  ;;  %v1724_v23 = vsel %vm1716_vm8, %v1691_v47, %v3149_v51  ;;  %v1109_v63 = vsel %vm665_vm1, %v1106_v35, %v1108_v15  ;;  %v1206_v20 = vrot.slane %v4981_v2, 2 }
 0x193   : > { %v1787_v54 = vsel %vm1782_vm10, %v1754_v46, %v3163_v18  ;;  %v1788_v17 = vsel %vm1782_vm10, %v1755_v7, %v3164_v21  ;;  %v3159_v6 = vunpack.i.h.bf16 %v3157_v52  ;;  %v1207_v2 = vrot.slane %v4978_v24, 2 }
 0x194   : > { %3446 = vrot.lane.b32.xlu0 %v4889_v8, %s3789_s11  ;;  %v3172_v58 = vpop.permute.xlu1 %3171  ;;  %v3158_v8 = vunpack.i.l.bf16 %v3157_v52  ;;  %v1209_v35 = vrot.slane %v4991_v4, 2  ;;  %v2924_v21 = vunpack.i.h.bf16 %v4713_v3  ;;  %v2929_v18 = vunpack.i.h.bf16 %v4721_v29 }
 0x195   : > { %v3174_v53 = vunpack.i.h.bf16 %v3172_v58  ;;  %v3173_v27 = vunpack.i.l.bf16 %v3172_v58  ;;  %v1757_v5 = vsel %vm1749_vm9, %v1724_v23, %v3159_v6  ;;  %v2928_v43 = vunpack.i.l.bf16 %v4721_v29 }
 0x196   : > { %v3167_v62 = vpop.permute.xlu0 %3166  ;;  %3461 = vrot.lane.b32.xlu1 %v5836_v31, %s3790_s15  ;;  %v2933_v24 = vunpack.i.l.bf16 %v4723_v57  ;;  %v1208_v3 = vsel %vm836_vm2, %v1206_v20, %v1207_v2  ;;  %v1210_v4 = vsel %vm836_vm2, %v1207_v2, %v1209_v35  ;;  %v2999_v16 = vunpack.i.h.bf16 %v4778_v9 }
 0x197   : > { %v1820_v25 = vsel %vm1815_vm11, %v1787_v54, %v3173_v27  ;;  %v1821_v44 = vsel %vm1815_vm11, %v1788_v17, %v3174_v53  ;;  %v3169_v37 = vunpack.i.h.bf16 %v3167_v62  ;;  %v3168_v10 = vunpack.i.l.bf16 %v3167_v62 }
 0x198   : > { %3456 = vrot.lane.b32.xlu0 %v4898_v50, %s3790_s15  ;;  %v1850_v22 = vpack.c.bf16 %v1821_v44, %v1820_v25  ;;  %v5044_v48 = vpop.permute.xlu1 %3181  ;;  %v1756_v50 = vsel %vm1749_vm9, %v1723_v49, %v3158_v8  ;;  %v3008_v29 = vunpack.i.l.bf16 %v4786_v19  ;;  %v1594_v13 = vsel %vm1586_vm4, %v4116_v1, %v2924_v21 }
 0x199   : > { %v1789_v61 = vsel %vm1782_vm10, %v1756_v50, %v3168_v10  ;;  %v1790_v52 = vsel %vm1782_vm10, %v1757_v5, %v3169_v37  ;;  %v1596_v51 = vsel %vm1586_vm4, %v4186_v0, %v2929_v18  ;;  %v3004_v28 = vunpack.i.h.bf16 %v4788_v34 }
 0x19a   : > { %v3177_v32 = vpop.permute.xlu0 %3176  ;;  %3471 = vrot.lane.b32.xlu1 %v4573_v40, %s3791_s19  ;;  %2768 = vmatprep.mubr.msk.bf16.mxu0 %vm1879_vm12, %v1850_v22  ;;  %v1595_v46 = vsel %vm1586_vm4, %v4137_v14, %v2928_v43  ;;  %v3079_v7 = vunpack.i.h.bf16 %v4865_v38  ;;  %v3078_v9 = vunpack.i.l.bf16 %v4865_v38  ;;  %v5091_v53 = vpack.i.bf16 %v1210_v4, %v1208_v3 }
 0x19b   : > { %v3179_v33 = vunpack.i.h.bf16 %v3177_v32  ;;  %v3178_v36 = vunpack.i.l.bf16 %v3177_v32  ;;  %v1597_v1 = vsel %vm1586_vm4, %v4191_v11, %v2933_v24  ;;  %v3184_v0 = vunpack.i.h.bf16 %v5044_v48 }
 0x19c   : > { %3466 = vrot.lane.b32.xlu0 %v4684_v26, %s3791_s19  ;;  %v3192_v59 = vpop.permute.xlu1 %3191  ;;  %v5069_v26 = vpack.i.bf16 %v1109_v63, %v1107_v30  ;;  %v1626_v14 = vsel %vm1618_vm5, %v1594_v13, %v2999_v16  ;;  %v1629_v27 = vsel %vm1618_vm5, %v1597_v1, %v3008_v29  ;;  %v1628_v54 = vsel %vm1618_vm5, %v1596_v51, %v3004_v28  ;;  %v5838_v51 = vld [vmem:[#allocation19_spill] sm:$0xff] }
 0x19d   : > { %v1822_v15 = vsel %vm1815_vm11, %v1789_v61, %v3178_v36  ;;  %v1823_v60 = vsel %vm1815_vm11, %v1790_v52, %v3179_v33  ;;  %v3194_v17 = vunpack.i.h.bf16 %v3192_v59  ;;  %v3193_v6 = vunpack.i.l.bf16 %v3192_v59 }
 0x19e   : > { %v1851_v56 = vpack.c.bf16 %v1823_v60, %v1822_v15  ;;  %v3187_v42 = vpop.permute.xlu0 %3186  ;;  %3481 = vrot.lane.b32.xlu1 %v5001_v41, %s3786_s9  ;;  %v1659_v11 = vsel %vm1650_vm6, %v1626_v14, %v3078_v9 }
 0x19f   : > { %v3189_v44 = vunpack.i.h.bf16 %v3187_v42  ;;  %v3188_v37 = vunpack.i.l.bf16 %v3187_v42 }
 0x1a0   : > { %3476 = vrot.lane.b32.xlu0 %v4973_v39, %s3786_s9  ;;  %2769 = vmatmul.mubr.msk.bf16.gmra.mrb[4].mxu0 %vm1879_vm12, %v1851_v56  ;;  %v3202_v55 = vpop.permute.xlu1 %3201  ;;  %v3003_v39 = vunpack.i.l.bf16 %v4788_v34  ;;  %v3183_v34 = vunpack.i.l.bf16 %v5044_v48  ;;  %s5486_s9 = scalar_lea.hbm %s5622_s4, %s2738_s30 }
 0x1a1   : > { %v3204_v47 = vunpack.i.h.bf16 %v3202_v55  ;;  %v3203_v45 = vunpack.i.l.bf16 %v3202_v55  ;;  %v1692_v33 = vsel %vm1683_vm7, %v1659_v11, %v3188_v37  ;;  %v3009_v11 = vunpack.i.h.bf16 %v4786_v19 }
 0x1a2   : > { %v3197_v58 = vpop.permute.xlu0 %3196  ;;  %3491 = vrot.lane.b32.xlu1 %v5069_v26, %s3787_s18  ;;  %v1627_v62 = vsel %vm1618_vm5, %v1595_v46, %v3003_v39  ;;  %v1661_v10 = vsel %vm1650_vm6, %v1628_v54, %v3183_v34  ;;  %v2943_v54 = vunpack.i.l.bf16 %v4733_v12 }
 0x1a3   : > { %v1660_v25 = vsel %vm1650_vm6, %v1627_v62, %v3079_v7  ;;  %v3199_v22 = vunpack.i.h.bf16 %v3197_v58  ;;  %v3198_v48 = vunpack.i.l.bf16 %v3197_v58  ;;  %v1694_v32 = vsel %vm1683_vm7, %v1661_v10, %v3193_v6 }
 0x1a4   : > { %3486 = vrot.lane.b32.xlu0 %v5836_v31, %s3787_s18  ;;  %v3212_v38 = vpop.permute.xlu1 %3211  ;;  %v1662_v31 = vsel %vm1650_vm6, %v1629_v27, %v3184_v0  ;;  %v1693_v36 = vsel %vm1683_vm7, %v1660_v25, %v3189_v44  ;;  %v1727_v2 = vsel %vm1716_vm8, %v1694_v32, %v3203_v45  ;;  %v5839_v27 = vld [vmem:[#allocation20_spill] sm:$0xff]  ;;  %v2934_v62 = vunpack.i.h.bf16 %v4723_v57  ;;  %v5841_v25 = vld [vmem:[#allocation57_spill] sm:$0xff]  ;;  %s2428_s18 = scalar_lea.sflag [#allocation4], %s4024_s20 }
 0x1a5   : > { %v3214_v30 = vunpack.i.h.bf16 %v3212_v38  ;;  %v3213_v49 = vunpack.i.l.bf16 %v3212_v38  ;;  %v1695_v63 = vsel %vm1683_vm7, %v1662_v31, %v3194_v17  ;;  %v1725_v59 = vsel %vm1716_vm8, %v1692_v33, %v3198_v48  ;;  %v5840_v17 = vld [vmem:[#allocation48_spill] sm:$0xff]  ;;  %v5843_v48 = vld [vmem:[#allocation33_spill] sm:$0xff] }
 0x1a6   : > { %v3207_v8 = vpop.permute.xlu0 %3206  ;;  %3501 = vrot.lane.b32.xlu1 %v5091_v53, %s3788_s8  ;;  %v1728_v35 = vsel %vm1716_vm8, %v1695_v63, %v3204_v47  ;;  %v1726_v21 = vsel %vm1716_vm8, %v1693_v36, %v3199_v22  ;;  %v2939_v6 = vunpack.i.h.bf16 %v5840_v17  ;;  %v3018_v44 = vunpack.i.l.bf16 %v5841_v25  ;;  %v5845_v63 = vld [vmem:[#allocation39_spill] sm:$0xff] }
 0x1a7   : > { %v3209_v20 = vunpack.i.h.bf16 %v3207_v8  ;;  %v3208_v50 = vunpack.i.l.bf16 %v3207_v8  ;;  %v1760_v18 = vsel %vm1749_vm9, %v1727_v2, %v3213_v49  ;;  %v1761_v56 = vsel %vm1749_vm9, %v1728_v35, %v3214_v30  ;;  %v5844_v30 = vld [vmem:[#allocation38_spill] sm:$0xff] }
 0x1a8   : > { %3496 = vrot.lane.b32.xlu0 %v4573_v40, %s3788_s8  ;;  %v3222_v23 = vpop.permute.xlu1 %3221  ;;  %v5837_v40 = vmov 0.0   ;;  %v2938_v8 = vunpack.i.l.bf16 %v5840_v17  ;;  %v1598_v57 = vsel %vm1586_vm4, %v5843_v48, %v2934_v62  ;;  %v1601_v49 = vsel %vm1586_vm4, %v5844_v30, %v2943_v54  ;;  %s3639_s8 = scalar_lea.vmem %s5492_s10, 2048 }
 0x1a9   : > { %v3224_v61 = vunpack.i.h.bf16 %v3222_v23  ;;  %v3223_v52 = vunpack.i.l.bf16 %v3222_v23  ;;  %v1758_v43 = vsel %vm1749_vm9, %v1725_v59, %v3208_v50  ;;  %v1759_v24 = vsel %vm1749_vm9, %v1726_v21, %v3209_v20  ;;  %v5846_v20 = vld [vmem:[#allocation34_spill] sm:$0xff]  ;;  %p3640_p1 = scmp.ne.s32.totalorder %s5492_s10, %s3639_s8 }
 0x1aa   : > { %v3217_v5 = vpop.permute.xlu0 %3216  ;;  %1367 = vrot.lane.b32.xlu1 %v5837_v40, %s3789_s11  ;;  %v1600_v19 = vsel %vm1586_vm4, %v5845_v63, %v2939_v6  ;;  %v1599_v50 = vsel %vm1586_vm4, %v5846_v20, %v2938_v8  ;;  %v1633_v33 = vsel %vm1618_vm5, %v1601_v49, %v3018_v44  ;;  %v2944_v20 = vunpack.i.h.bf16 %v4733_v12 }
 0x1ab   : > { %v3219_v15 = vunpack.i.h.bf16 %v3217_v5  ;;  %v3218_v60 = vunpack.i.l.bf16 %v3217_v5  ;;  %v1793_v29 = vsel %vm1782_vm10, %v1760_v18, %v3223_v52  ;;  %v1630_v5 = vsel %vm1618_vm5, %v1598_v57, %v3009_v11  ;;  %p3641_p4 = pnand %p3640_p1, %p3976_p6 }
 0x1ac   : > { %3506 = vrot.lane.b32.xlu0 %v5001_v41, %s3789_s11  ;;  %v3232_v42 = vpop.permute.xlu1 %3231  ;;  %v1794_v41 = vsel %vm1782_vm10, %v1761_v56, %v3224_v61  ;;  %s3792_s11 = smov [#allocation10]  }
 0x1ad   : > { %v3234_v3 = vunpack.i.h.bf16 %v3232_v42  ;;  %v3233_v4 = vunpack.i.l.bf16 %v3232_v42  ;;  %v1791_v28 = vsel %vm1782_vm10, %v1758_v43, %v3218_v60  ;;  %v1792_v39 = vsel %vm1782_vm10, %v1759_v24, %v3219_v15  ;;  %p3642_p8 = pneg %p3641_p4 }
 0x1ae   : > { %v3227_v16 = vpop.permute.xlu0 %3226  ;;  %1460 = vrot.lane.b32.xlu1 %v5838_v51, %s3790_s15 }
 0x1af   : > { %v3229_v55 = vunpack.i.h.bf16 %v3227_v16  ;;  %v3228_v13 = vunpack.i.l.bf16 %v3227_v16  ;;  %v1826_v58 = vsel %vm1815_vm11, %v1793_v29, %v3233_v4  ;;  %v1827_v46 = vsel %vm1815_vm11, %v1794_v41, %v3234_v3 }
 0x1b0   : > { %3511 = vrot.lane.b32.xlu0 %v5069_v26, %s3790_s15  ;;  %v1853_v7 = vpack.c.bf16 %v1827_v46, %v1826_v58  ;;  %v3242_v0 = vpop.permute.xlu1 %3241  ;;  %s3643_s15 = sshll.u32 %s3792_s11, 4  ;;  %s3644_s15 = int_to_ptr.vmem [resolvable:$false] %s3643_s15 }
 0x1b1   : > { %v1824_v9 = vsel %vm1815_vm11, %v1791_v28, %v3228_v13  ;;  %v1825_v1 = vsel %vm1815_vm11, %v1792_v39, %v3229_v55  ;;  %v3244_v45 = vunpack.i.h.bf16 %v3242_v0  ;;  %v3243_v22 = vunpack.i.l.bf16 %v3242_v0  ;;  %p3646_p3 = scmp.lt.s32.totalorder %s5492_s10, %s3644_s15 }
 0x1b2   : > { %v1852_v34 = vpack.c.bf16 %v1825_v1, %v1824_v9  ;;  %v3237_v14 = vpop.permute.xlu0 %3236  ;;  %1553 = vrot.lane.b32.xlu1 %v5839_v27, %s3791_s19 }
 0x1b3   : > { %v3239_v23 = vunpack.i.h.bf16 %v3237_v14  ;;  %v3238_v32 = vunpack.i.l.bf16 %v3237_v14  ;;  %v1666_v15 = vsel %vm1650_vm6, %v1633_v33, %v3244_v45  ;;  %v5848_v33 = vld [vmem:[#allocation47_spill] sm:$0xff] }
 0x1b4   : > { %3516 = vrot.lane.b32.xlu0 %v5091_v53, %s3791_s19  ;;  %2772 = vmatprep.mubr.msk.bf16.mxu0 %vm1879_vm12, %v1852_v34  ;;  %v3252_v38 = vpop.permute.xlu1 %3251  ;;  %v5842_v53 = vld [vmem:[#allocation55_spill] sm:$0xff]  ;;  %s3645_s19 = scalar_lea.vmem %s3644_s15, 4096 }
 0x1b5   : > { %2773 = vmatmul.mubr.msk.bf16.gmra.mrb[8].mxu0 %vm1879_vm12, %v1853_v7  ;;  %v3014_v31 = vunpack.i.h.bf16 %v5842_v53  ;;  %v3013_v10 = vunpack.i.l.bf16 %v5842_v53  ;;  %v3254_v40 = vunpack.i.h.bf16 %v3252_v38  ;;  %v3253_v2 = vunpack.i.l.bf16 %v3252_v38  ;;  %p3647_p7 = scmp.lt.s32.totalorder %s3645_s19, %s3639_s8 }
 0x1b6   : > { %v3247_v26 = vpop.permute.xlu0 %3246  ;;  %v1663_v18 = vsel %vm1650_vm6, %v1630_v5, %v3238_v32 }
 0x1b7   : > { %v1631_v61 = vsel %vm1618_vm5, %v1599_v50, %v3013_v10  ;;  %v1632_v52 = vsel %vm1618_vm5, %v1600_v19, %v3014_v31  ;;  %v3249_v59 = vunpack.i.h.bf16 %v3247_v26  ;;  %v3248_v21 = vunpack.i.l.bf16 %v3247_v26  ;;  %v5847_v50 = vld [vmem:[#allocation49_spill] sm:$0xff]  ;;  %p3648_p10 = por %p3647_p7, %p3646_p3 }
 0x1b8   : > { %v3262_v37 = vpop.permute.xlu1 %3261  ;;  %v1665_v60 = vsel %vm1650_vm6, %v1632_v52, %v3243_v22  ;;  %v1664_v56 = vsel %vm1650_vm6, %v1631_v61, %v3239_v23  ;;  %v1699_v55 = vsel %vm1683_vm7, %v1666_v15, %v3254_v40  ;;  %v2953_v5 = vunpack.i.l.bf16 %v5847_v50  ;;  %v5849_v40 = vld [vmem:[#allocation56_spill] sm:$0xff]  ;;  %v5850_v15 = vld [vmem:[#allocation58_spill] sm:$0xff] }
 0x1b9   : > { %v3264_v42 = vunpack.i.h.bf16 %v3262_v37  ;;  %v3263_v43 = vunpack.i.l.bf16 %v3262_v37  ;;  %v1698_v41 = vsel %vm1683_vm7, %v1665_v60, %v3253_v2  ;;  %v1696_v39 = vsel %vm1683_vm7, %v1663_v18, %v3248_v21  ;;  %p3649_p13 = pnand %p3648_p10, %p3642_p8 }
 0x1ba   : > { %v3257_v47 = vpop.permute.xlu0 %3256  ;;  %v1697_v58 = vsel %vm1683_vm7, %v1664_v56, %v3249_v59  ;;  %v2948_v61 = vunpack.i.l.bf16 %v5848_v33  ;;  %v3019_v52 = vunpack.i.h.bf16 %v5841_v25  ;;  %v3028_v2 = vunpack.i.l.bf16 %v5849_v40 }
 0x1bb   : > { %v3259_v24 = vunpack.i.h.bf16 %v3257_v47  ;;  %v3258_v3 = vunpack.i.l.bf16 %v3257_v47  ;;  %v1731_v9 = vsel %vm1716_vm8, %v1698_v41, %v3263_v43  ;;  %v1732_v1 = vsel %vm1716_vm8, %v1699_v55, %v3264_v42  ;;  %v5851_v42 = vld [vmem:[#allocation41_spill] sm:$0xff]  ;;  %v5852_v43 = vld [vmem:[#allocation44_spill] sm:$0xff] }
 0x1bc   : > { %v3272_v36 = vpop.permute.xlu1 %3271  ;;  %v3024_v60 = vunpack.i.h.bf16 %v5850_v15  ;;  %v3023_v59 = vunpack.i.l.bf16 %v5850_v15  ;;  %v1602_v12 = vsel %vm1586_vm4, %v5851_v42, %v2944_v20 }
 0x1bd   : > { %v3274_v4 = vunpack.i.h.bf16 %v3272_v36  ;;  %v3273_v16 = vunpack.i.l.bf16 %v3272_v36  ;;  %v1729_v14 = vsel %vm1716_vm8, %v1696_v39, %v3258_v3  ;;  %v1730_v27 = vsel %vm1716_vm8, %v1697_v58, %v3259_v24 }
 0x1be   : > { %v3267_v35 = vpop.permute.xlu0 %3266  ;;  %v2949_v36 = vunpack.i.h.bf16 %v5848_v33  ;;  %v1605_v24 = vsel %vm1586_vm4, %v5852_v43, %v2953_v5  ;;  %v1634_v55 = vsel %vm1618_vm5, %v1602_v12, %v3019_v52 }
 0x1bf   : > { %v3269_v13 = vunpack.i.h.bf16 %v3267_v35  ;;  %v3268_v51 = vunpack.i.l.bf16 %v3267_v35  ;;  %v1764_v38 = vsel %vm1749_vm9, %v1731_v9, %v3273_v16  ;;  %v1765_v26 = vsel %vm1749_vm9, %v1732_v1, %v3274_v4  ;;  %v5853_v16 = vld [vmem:[#allocation43_spill] sm:$0xff] }
 0x1c0   : > { %v3282_v29 = vpop.permute.xlu1 %3281  ;;  %v1604_v25 = vsel %vm1586_vm4, %v5853_v16, %v2949_v36 }
 0x1c1   : > { %v3284_v46 = vunpack.i.h.bf16 %v3282_v29  ;;  %v3283_v7 = vunpack.i.l.bf16 %v3282_v29  ;;  %v1762_v54 = vsel %vm1749_vm9, %v1729_v14, %v3268_v51  ;;  %v1763_v17 = vsel %vm1749_vm9, %v1730_v27, %v3269_v13  ;;  %v5854_v29 = vld [vmem:[#allocation40_spill] sm:$0xff] }
 0x1c2   : > { %v3277_v28 = vpop.permute.xlu0 %3276  ;;  %v1603_v41 = vsel %vm1586_vm4, %v5854_v29, %v2948_v61  ;;  %v1637_v13 = vsel %vm1618_vm5, %v1605_v24, %v3028_v2  ;;  %v1636_v39 = vsel %vm1618_vm5, %v1604_v25, %v3024_v60  ;;  %v2954_v29 = vunpack.i.h.bf16 %v5847_v50 }
 0x1c3   : > { %v3279_v0 = vunpack.i.h.bf16 %v3277_v28  ;;  %v3278_v34 = vunpack.i.l.bf16 %v3277_v28  ;;  %v1797_v44 = vsel %vm1782_vm10, %v1764_v38, %v3283_v7  ;;  %v1798_v37 = vsel %vm1782_vm10, %v1765_v26, %v3284_v46 }
 0x1c4   : > { %v3292_v62 = vpop.permute.xlu1 %3291  ;;  %v1635_v28 = vsel %vm1618_vm5, %v1603_v41, %v3023_v59  ;;  %v5855_v41 = vld [vmem:[#allocation21_spill] sm:$0xff] }
 0x1c5   : > { %v3294_v6 = vunpack.i.h.bf16 %v3292_v62  ;;  %v3293_v8 = vunpack.i.l.bf16 %v3292_v62  ;;  %v1795_v10 = vsel %vm1782_vm10, %v1762_v54, %v3278_v34  ;;  %v1796_v47 = vsel %vm1782_vm10, %v1763_v17, %v3279_v0 }
 0x1c6   : > { %v3287_v11 = vpop.permute.xlu0 %3286 }
 0x1c7   : > { %v3289_v53 = vunpack.i.h.bf16 %v3287_v11  ;;  %v3288_v31 = vunpack.i.l.bf16 %v3287_v11  ;;  %v1830_v45 = vsel %vm1815_vm11, %v1797_v44, %v3293_v8  ;;  %v1831_v22 = vsel %vm1815_vm11, %v1798_v37, %v3294_v6 }
 0x1c8   : > { %v1855_v48 = vpack.c.bf16 %v1831_v22, %v1830_v45  ;;  %v3302_v49 = vpop.permute.xlu1 %3301 }
 0x1c9   : > { %v1828_v57 = vsel %vm1815_vm11, %v1795_v10, %v3288_v31  ;;  %v1829_v30 = vsel %vm1815_vm11, %v1796_v47, %v3289_v53  ;;  %v3304_v18 = vunpack.i.h.bf16 %v3302_v49  ;;  %v3303_v56 = vunpack.i.l.bf16 %v3302_v49 }
 0x1ca   : > { %v1854_v23 = vpack.c.bf16 %v1829_v30, %v1828_v57  ;;  %v3297_v32 = vpop.permute.xlu0 %3296 }
 0x1cb   : > { %v3299_v3 = vunpack.i.h.bf16 %v3297_v32  ;;  %v3298_v4 = vunpack.i.l.bf16 %v3297_v32  ;;  %v1670_v9 = vsel %vm1650_vm6, %v1637_v13, %v3304_v18  ;;  %v1669_v1 = vsel %vm1650_vm6, %v1636_v39, %v3303_v56  ;;  %v5856_v13 = vld [vmem:[#allocation54_spill] sm:$0xff] }
 0x1cc   : > { %2776 = vmatprep.mubr.msk.bf16.mxu0 %vm1879_vm12, %v1854_v23  ;;  %v3312_v63 = vpop.permute.xlu1 %3311  ;;  %v3029_v39 = vunpack.i.h.bf16 %v5849_v40 }
 0x1cd   : > { %2777 = vmatmul.mubr.msk.bf16.gmra.mrb[12].mxu0 %vm1879_vm12, %v1855_v48  ;;  %v3314_v58 = vunpack.i.h.bf16 %v3312_v63  ;;  %v3313_v46 = vunpack.i.l.bf16 %v3312_v63  ;;  %v1667_v14 = vsel %vm1650_vm6, %v1634_v55, %v3298_v4  ;;  %v1668_v27 = vsel %vm1650_vm6, %v1635_v28, %v3299_v3 }
 0x1ce   : > { %v3307_v19 = vpop.permute.xlu0 %3306  ;;  %v2963_v55 = vunpack.i.l.bf16 %v5855_v41  ;;  %v2958_v28 = vunpack.i.l.bf16 %v5856_v13 }
 0x1cf   : > { %v3309_v0 = vunpack.i.h.bf16 %v3307_v19  ;;  %v3308_v34 = vunpack.i.l.bf16 %v3307_v19  ;;  %v1702_v11 = vsel %vm1683_vm7, %v1669_v1, %v3313_v46  ;;  %v1703_v44 = vsel %vm1683_vm7, %v1670_v9, %v3314_v58  ;;  %v5857_v58 = vld [vmem:[#allocation22_spill] sm:$0xff]  ;;  %v5858_v9 = vld [vmem:[#allocation63_spill] sm:$0xff] }
 0x1d0   : > { %v3322_v35 = vpop.permute.xlu1 %3321  ;;  %v3038_v46 = vunpack.i.l.bf16 %v5857_v58  ;;  %v3034_v1 = vunpack.i.h.bf16 %v5858_v9 }
 0x1d1   : > { %v3324_v38 = vunpack.i.h.bf16 %v3322_v35  ;;  %v3323_v26 = vunpack.i.l.bf16 %v3322_v35  ;;  %v1700_v10 = vsel %vm1683_vm7, %v1667_v14, %v3308_v34  ;;  %v1701_v47 = vsel %vm1683_vm7, %v1668_v27, %v3309_v0 }
 0x1d2   : > { %v3317_v21 = vpop.permute.xlu0 %3316  ;;  %v3033_v0 = vunpack.i.l.bf16 %v5858_v9 }
 0x1d3   : > { %v3319_v62 = vunpack.i.h.bf16 %v3317_v21  ;;  %v3318_v54 = vunpack.i.l.bf16 %v3317_v21  ;;  %v1735_v48 = vsel %vm1716_vm8, %v1702_v11, %v3323_v26  ;;  %v1736_v57 = vsel %vm1716_vm8, %v1703_v44, %v3324_v38  ;;  %v5859_v38 = vld [vmem:[#allocation45_spill] sm:$0xff]  ;;  %v5860_v26 = vld [vmem:[#allocation50_spill] sm:$0xff] }
 0x1d4   : > { %v3332_v51 = vpop.permute.xlu1 %3331  ;;  %v1606_v50 = vsel %vm1586_vm4, %v5859_v38, %v2954_v29 }
 0x1d5   : > { %v3334_v17 = vunpack.i.h.bf16 %v3332_v51  ;;  %v3333_v6 = vunpack.i.l.bf16 %v3332_v51  ;;  %v1733_v23 = vsel %vm1716_vm8, %v1700_v10, %v3318_v54  ;;  %v1734_v32 = vsel %vm1716_vm8, %v1701_v47, %v3319_v62 }
 0x1d6   : > { %v3327_v7 = vpop.permute.xlu0 %3326  ;;  %v2959_v51 = vunpack.i.h.bf16 %v5856_v13  ;;  %v1609_v62 = vsel %vm1586_vm4, %v5860_v26, %v2963_v55  ;;  %v1638_v44 = vsel %vm1618_vm5, %v1606_v50, %v3029_v39 }
 0x1d7   : > { %v3329_v37 = vunpack.i.h.bf16 %v3327_v7  ;;  %v3328_v53 = vunpack.i.l.bf16 %v3327_v7  ;;  %v1768_v63 = vsel %vm1749_vm9, %v1735_v48, %v3333_v6  ;;  %v1769_v19 = vsel %vm1749_vm9, %v1736_v57, %v3334_v17  ;;  %v5861_v6 = vld [vmem:[#allocation51_spill] sm:$0xff] }
 0x1d8   : > { %v3342_v8 = vpop.permute.xlu1 %3341  ;;  %v1608_v40 = vsel %vm1586_vm4, %v5861_v6, %v2959_v51 }
 0x1d9   : > { %v3344_v45 = vunpack.i.h.bf16 %v3342_v8  ;;  %v3343_v22 = vunpack.i.l.bf16 %v3342_v8  ;;  %v1766_v5 = vsel %vm1749_vm9, %v1733_v23, %v3328_v53  ;;  %v1767_v33 = vsel %vm1749_vm9, %v1734_v32, %v3329_v37  ;;  %v5862_v8 = vld [vmem:[#allocation46_spill] sm:$0xff] }
 0x1da   : > { %v3337_v31 = vpop.permute.xlu0 %3336  ;;  %v1607_v11 = vsel %vm1586_vm4, %v5862_v8, %v2958_v28  ;;  %v1641_v37 = vsel %vm1618_vm5, %v1609_v62, %v3038_v46  ;;  %v1640_v10 = vsel %vm1618_vm5, %v1608_v40, %v3034_v1  ;;  %v2964_v8 = vunpack.i.h.bf16 %v5855_v41 }
 0x1db   : > { %v3339_v30 = vunpack.i.h.bf16 %v3337_v31  ;;  %v3338_v49 = vunpack.i.l.bf16 %v3337_v31  ;;  %v1801_v2 = vsel %vm1782_vm10, %v1768_v63, %v3343_v22  ;;  %v1802_v35 = vsel %vm1782_vm10, %v1769_v19, %v3344_v45 }
 0x1dc   : > { %v3352_v20 = vpop.permute.xlu1 %3351  ;;  %v1639_v31 = vsel %vm1618_vm5, %v1607_v11, %v3033_v0  ;;  %v5863_v11 = vld [vmem:[#allocation23_spill] sm:$0xff] }
 0x1dd   : > { %v3354_v36 = vunpack.i.h.bf16 %v3352_v20  ;;  %v3353_v61 = vunpack.i.l.bf16 %v3352_v20  ;;  %v1799_v18 = vsel %vm1782_vm10, %v1766_v5, %v3338_v49  ;;  %v1800_v56 = vsel %vm1782_vm10, %v1767_v33, %v3339_v30 }
 0x1de   : > { %v3347_v52 = vpop.permute.xlu0 %3346 }
 0x1df   : > { %v3349_v15 = vunpack.i.h.bf16 %v3347_v52  ;;  %v3348_v60 = vunpack.i.l.bf16 %v3347_v52  ;;  %v1834_v59 = vsel %vm1815_vm11, %v1801_v2, %v3353_v61  ;;  %v1835_v21 = vsel %vm1815_vm11, %v1802_v35, %v3354_v36 }
 0x1e0   : > { %v1857_v42 = vpack.c.bf16 %v1835_v21, %v1834_v59  ;;  %v3362_v12 = vpop.permute.xlu1 %3361 }
 0x1e1   : > { %v1832_v43 = vsel %vm1815_vm11, %v1799_v18, %v3348_v60  ;;  %v1833_v24 = vsel %vm1815_vm11, %v1800_v56, %v3349_v15  ;;  %v3364_v14 = vunpack.i.h.bf16 %v3362_v12  ;;  %v3363_v27 = vunpack.i.l.bf16 %v3362_v12 }
 0x1e2   : > { %v3357_v3 = vpop.permute.xlu0 %3356  ;;  %v1856_v4 = vpack.c.bf16 %v1833_v24, %v1832_v43 }
 0x1e3   : > { %v3359_v54 = vunpack.i.h.bf16 %v3357_v3  ;;  %v3358_v17 = vunpack.i.l.bf16 %v3357_v3  ;;  %v1674_v48 = vsel %vm1650_vm6, %v1641_v37, %v3364_v14  ;;  %v1673_v57 = vsel %vm1650_vm6, %v1640_v10, %v3363_v27  ;;  %v5864_v37 = vld [vmem:[#allocation24_spill] sm:$0xff] }
 0x1e4   : > { %2780 = vmatprep.mubr.msk.bf16.mxu1 %vm1879_vm12, %v1856_v4  ;;  %v3372_v16 = vpop.permute.xlu1 %3371  ;;  %v3039_v10 = vunpack.i.h.bf16 %v5857_v58 }
 0x1e5   : > { %2781 = vmatmul.mubr.msk.bf16.vlgmr.msra.gmra.mrb[0].mxu1 %vm1879_vm12, %v1857_v42  ;;  %v3374_v47 = vunpack.i.h.bf16 %v3372_v16  ;;  %v3373_v45 = vunpack.i.l.bf16 %v3372_v16  ;;  %v1671_v23 = vsel %vm1650_vm6, %v1638_v44, %v3358_v17  ;;  %v1672_v32 = vsel %vm1650_vm6, %v1639_v31, %v3359_v54 }
 0x1e6   : > { %v3367_v25 = vpop.permute.xlu0 %3366  ;;  %v2973_v44 = vunpack.i.l.bf16 %v5863_v11  ;;  %v2968_v31 = vunpack.i.l.bf16 %v5864_v37 }
 0x1e7   : > { %v3369_v30 = vunpack.i.h.bf16 %v3367_v25  ;;  %v3368_v49 = vunpack.i.l.bf16 %v3367_v25  ;;  %v1706_v52 = vsel %vm1683_vm7, %v1673_v57, %v3373_v45  ;;  %v1707_v2 = vsel %vm1683_vm7, %v1674_v48, %v3374_v47  ;;  %v5865_v47 = vld [vmem:[#allocation62_spill] sm:$0xff]  ;;  %v5866_v48 = vld [vmem:[#allocation28_spill] sm:$0xff] }
 0x1e8   : > { %v3382_v7 = vpop.permute.xlu1 %3381  ;;  %v3048_v45 = vunpack.i.l.bf16 %v5865_v47  ;;  %v3044_v57 = vunpack.i.h.bf16 %v5866_v48 }
 0x1e9   : > { %v3384_v63 = vunpack.i.h.bf16 %v3382_v7  ;;  %v3383_v19 = vunpack.i.l.bf16 %v3382_v7  ;;  %v1704_v59 = vsel %vm1683_vm7, %v1671_v23, %v3368_v49  ;;  %v1705_v21 = vsel %vm1683_vm7, %v1672_v32, %v3369_v30 }
 0x1ea   : > { %v3377_v34 = vpop.permute.xlu0 %3376  ;;  %v3043_v30 = vunpack.i.l.bf16 %v5866_v48 }
 0x1eb   : > { %v3379_v20 = vunpack.i.h.bf16 %v3377_v34  ;;  %v3378_v5 = vunpack.i.l.bf16 %v3377_v34  ;;  %v1739_v42 = vsel %vm1716_vm8, %v1706_v52, %v3383_v19  ;;  %v1740_v12 = vsel %vm1716_vm8, %v1707_v2, %v3384_v63  ;;  %v5867_v63 = vld [vmem:[#allocation53_spill] sm:$0xff]  ;;  %v5868_v19 = vld [vmem:[#allocation60_spill] sm:$0xff] }
 0x1ec   : > { %v3392_v53 = vpop.permute.xlu1 %3391  ;;  %v1610_v41 = vsel %vm1586_vm4, %v5867_v63, %v2964_v8 }
 0x1ed   : > { %v3394_v33 = vunpack.i.h.bf16 %v3392_v53  ;;  %v3393_v36 = vunpack.i.l.bf16 %v3392_v53  ;;  %v1737_v3 = vsel %vm1716_vm8, %v1704_v59, %v3378_v5  ;;  %v1738_v4 = vsel %vm1716_vm8, %v1705_v21, %v3379_v20 }
 0x1ee   : > { %v3387_v22 = vpop.permute.xlu0 %3386  ;;  %v2969_v53 = vunpack.i.h.bf16 %v5864_v37  ;;  %v1613_v20 = vsel %vm1586_vm4, %v5868_v19, %v2973_v44  ;;  %v1642_v2 = vsel %vm1618_vm5, %v1610_v41, %v3039_v10 }
 0x1ef   : > { %v3389_v35 = vunpack.i.h.bf16 %v3387_v22  ;;  %v3388_v15 = vunpack.i.l.bf16 %v3387_v22  ;;  %v1772_v16 = vsel %vm1749_vm9, %v1739_v42, %v3393_v36  ;;  %v1773_v25 = vsel %vm1749_vm9, %v1740_v12, %v3394_v33  ;;  %v5869_v36 = vld [vmem:[#allocation59_spill] sm:$0xff] }
 0x1f0   : > { %v3402_v61 = vpop.permute.xlu1 %3401  ;;  %v1612_v58 = vsel %vm1586_vm4, %v5869_v36, %v2969_v53 }
 0x1f1   : > { %v3404_v18 = vunpack.i.h.bf16 %v3402_v61  ;;  %v3403_v56 = vunpack.i.l.bf16 %v3402_v61  ;;  %v1770_v55 = vsel %vm1749_vm9, %v1737_v3, %v3388_v15  ;;  %v1771_v13 = vsel %vm1749_vm9, %v1738_v4, %v3389_v35  ;;  %v5870_v61 = vld [vmem:[#allocation52_spill] sm:$0xff] }
 0x1f2   : > { %v3397_v60 = vpop.permute.xlu0 %3396  ;;  %v1611_v52 = vsel %vm1586_vm4, %v5870_v61, %v2968_v31  ;;  %v1645_v35 = vsel %vm1618_vm5, %v1613_v20, %v3048_v45  ;;  %v1644_v59 = vsel %vm1618_vm5, %v1612_v58, %v3044_v57 }
 0x1f3   : > { %v3399_v43 = vunpack.i.h.bf16 %v3397_v60  ;;  %v3398_v24 = vunpack.i.l.bf16 %v3397_v60  ;;  %v1805_v46 = vsel %vm1782_vm10, %v1772_v16, %v3403_v56  ;;  %v1806_v7 = vsel %vm1782_vm10, %v1773_v25, %v3404_v18 }
 0x1f4   : > { %v3412_v29 = vpop.permute.xlu1 %3411  ;;  %v1643_v60 = vsel %vm1618_vm5, %v1611_v52, %v3043_v30  ;;  %v2974_v52 = vunpack.i.h.bf16 %v5863_v11 }
 0x1f5   : > { %v3414_v51 = vunpack.i.h.bf16 %v3412_v29  ;;  %v3413_v28 = vunpack.i.l.bf16 %v3412_v29  ;;  %v1803_v0 = vsel %vm1782_vm10, %v1770_v55, %v3398_v24  ;;  %v1804_v34 = vsel %vm1782_vm10, %v1771_v13, %v3399_v43 }
 0x1f6   : > { %v3407_v39 = vpop.permute.xlu0 %3406 }
 0x1f7   : > { %v3409_v9 = vunpack.i.h.bf16 %v3407_v39  ;;  %v3408_v1 = vunpack.i.l.bf16 %v3407_v39  ;;  %v1838_v14 = vsel %vm1815_vm11, %v1805_v46, %v3413_v28  ;;  %v1839_v27 = vsel %vm1815_vm11, %v1806_v7, %v3414_v51 }
 0x1f8   : > { %v1859_v38 = vpack.c.bf16 %v1839_v27, %v1838_v14  ;;  %v3422_v62 = vpop.permute.xlu1 %3421 }
 0x1f9   : > { %v1836_v50 = vsel %vm1815_vm11, %v1803_v0, %v3408_v1  ;;  %v1837_v26 = vsel %vm1815_vm11, %v1804_v34, %v3409_v9  ;;  %v3424_v23 = vunpack.i.h.bf16 %v3422_v62  ;;  %v3423_v32 = vunpack.i.l.bf16 %v3422_v62 }
 0x1fa   : > { %v1858_v54 = vpack.c.bf16 %v1837_v26, %v1836_v50  ;;  %v3417_v17 = vpop.permute.xlu0 %3416 }
 0x1fb   : > { %v3419_v5 = vunpack.i.h.bf16 %v3417_v17  ;;  %v3418_v33 = vunpack.i.l.bf16 %v3417_v17  ;;  %v1678_v42 = vsel %vm1650_vm6, %v1645_v35, %v3424_v23  ;;  %v1677_v12 = vsel %vm1650_vm6, %v1644_v59, %v3423_v32 }
 0x1fc   : > { %2784 = vmatprep.mubr.msk.bf16.mxu1 %vm1879_vm12, %v1858_v54  ;;  %v3432_v6 = vpop.permute.xlu1 %3431 }
 0x1fd   : > { %2785 = vmatmul.mubr.msk.bf16.gmra.mrb[4].mxu1 %vm1879_vm12, %v1859_v38  ;;  %v3434_v21 = vunpack.i.h.bf16 %v3432_v6  ;;  %v3433_v18 = vunpack.i.l.bf16 %v3432_v6  ;;  %v1675_v3 = vsel %vm1650_vm6, %v1642_v2, %v3418_v33  ;;  %v1676_v4 = vsel %vm1650_vm6, %v1643_v60, %v3419_v5 }
 0x1fe   : > { %v3427_v40 = vpop.permute.xlu0 %3426  ;;  %v3049_v60 = vunpack.i.h.bf16 %v5865_v47 }
 0x1ff   : > { %v3429_v43 = vunpack.i.h.bf16 %v3427_v40  ;;  %v3428_v24 = vunpack.i.l.bf16 %v3427_v40  ;;  %v1710_v39 = vsel %vm1683_vm7, %v1677_v12, %v3433_v18  ;;  %v1711_v46 = vsel %vm1683_vm7, %v1678_v42, %v3434_v21  ;;  %v5871_v12 = vld [vmem:[#allocation61_spill] sm:$0xff] }
 0x200   : > { %v3442_v22 = vpop.permute.xlu1 %3441 }
 0x201   : > { %v3444_v16 = vunpack.i.h.bf16 %v3442_v22  ;;  %v3443_v25 = vunpack.i.l.bf16 %v3442_v22  ;;  %v1708_v0 = vsel %vm1683_vm7, %v1675_v3, %v3428_v24  ;;  %v1709_v34 = vsel %vm1683_vm7, %v1676_v4, %v3429_v43  ;;  %v5872_v4 = vld [vmem:[#allocation27_spill] sm:$0xff] }
 0x202   : > { %v3437_v49 = vpop.permute.xlu0 %3436  ;;  %v1614_v43 = vsel %vm1586_vm4, %v5871_v12, %v2974_v52 }
 0x203   : > { %v3439_v29 = vunpack.i.h.bf16 %v3437_v49  ;;  %v3438_v55 = vunpack.i.l.bf16 %v3437_v49  ;;  %v1743_v38 = vsel %vm1716_vm8, %v1710_v39, %v3443_v25  ;;  %v1744_v50 = vsel %vm1716_vm8, %v1711_v46, %v3444_v16  ;;  %v5873_v25 = vld [vmem:[#allocation25_spill] sm:$0xff] }
 0x204   : > { %v3452_v15 = vpop.permute.xlu1 %3451  ;;  %v1646_v47 = vsel %vm1618_vm5, %v1614_v43, %v3049_v60 }
 0x205   : > { %v3454_v13 = vunpack.i.h.bf16 %v3452_v15  ;;  %v3453_v51 = vunpack.i.l.bf16 %v3452_v15  ;;  %v1741_v54 = vsel %vm1716_vm8, %v1708_v0, %v3438_v55  ;;  %v1742_v17 = vsel %vm1716_vm8, %v1709_v34, %v3439_v29 }
 0x206   : > { %v3447_v56 = vpop.permute.xlu0 %3446 }
 0x207   : > { %v3449_v7 = vunpack.i.h.bf16 %v3447_v56  ;;  %v3448_v9 = vunpack.i.l.bf16 %v3447_v56  ;;  %v1776_v6 = vsel %vm1749_vm9, %v1743_v38, %v3453_v51  ;;  %v1777_v40 = vsel %vm1749_vm9, %v1744_v50, %v3454_v13 }
 0x208   : > { %v3462_v28 = vpop.permute.xlu1 %3461 }
 0x209   : > { %v3464_v14 = vunpack.i.h.bf16 %v3462_v28  ;;  %v3463_v27 = vunpack.i.l.bf16 %v3462_v28  ;;  %v1774_v44 = vsel %vm1749_vm9, %v1741_v54, %v3448_v9  ;;  %v1775_v37 = vsel %vm1749_vm9, %v1742_v17, %v3449_v7 }
 0x20a   : > { %v3457_v1 = vpop.permute.xlu0 %3456 }
 0x20b   : > { %v3459_v26 = vunpack.i.h.bf16 %v3457_v1  ;;  %v3458_v62 = vunpack.i.l.bf16 %v3457_v1  ;;  %v1809_v45 = vsel %vm1782_vm10, %v1776_v6, %v3463_v27  ;;  %v1810_v22 = vsel %vm1782_vm10, %v1777_v40, %v3464_v14  ;;  %v5874_v27 = vld [vmem:[#allocation31_spill] sm:$0xff] }
 0x20c   : > { %v3472_v8 = vpop.permute.xlu1 %3471 }
 0x20d   : > { %v3474_v53 = vunpack.i.h.bf16 %v3472_v8  ;;  %v3473_v31 = vunpack.i.l.bf16 %v3472_v8  ;;  %v1807_v30 = vsel %vm1782_vm10, %v1774_v44, %v3458_v62  ;;  %v1808_v49 = vsel %vm1782_vm10, %v1775_v37, %v3459_v26 }
 0x20e   : > { %v3467_v10 = vpop.permute.xlu0 %3466 }
 0x20f   : > { %v3469_v48 = vunpack.i.h.bf16 %v3467_v10  ;;  %v3468_v57 = vunpack.i.l.bf16 %v3467_v10  ;;  %v1842_v23 = vsel %vm1815_vm11, %v1809_v45, %v3473_v31  ;;  %v1843_v32 = vsel %vm1815_vm11, %v1810_v22, %v3474_v53 }
 0x210   : > { %v1861_v63 = vpack.c.bf16 %v1843_v32, %v1842_v23  ;;  %v3482_v20 = vpop.permute.xlu1 %3481 }
 0x211   : > { %v1840_v41 = vsel %vm1815_vm11, %v1807_v30, %v3468_v57  ;;  %v1841_v19 = vsel %vm1815_vm11, %v1808_v49, %v3469_v48  ;;  %v3484_v35 = vunpack.i.h.bf16 %v3482_v20  ;;  %v3483_v15 = vunpack.i.l.bf16 %v3482_v20 }
 0x212   : > { %v1860_v5 = vpack.c.bf16 %v1841_v19, %v1840_v41  ;;  %v3477_v33 = vpop.permute.xlu0 %3476 }
 0x213   : > { %v3478_v24 = vunpack.i.l.bf16 %v3477_v33  ;;  %v1682_v16 = vsel %vm1650_vm6, %v5872_v4, %v3484_v35  ;;  %v1681_v11 = vsel %vm1650_vm6, %v5873_v25, %v3483_v15  ;;  %v3479_v29 = vunpack.i.h.bf16 %v3477_v33 }
 0x214   : > { %2788 = vmatprep.mubr.msk.bf16.mxu1 %vm1879_vm12, %v1860_v5  ;;  %v3492_v36 = vpop.permute.xlu1 %3491 }
 0x215   : > { %2789 = vmatmul.mubr.msk.bf16.gmra.mrb[8].mxu1 %vm1879_vm12, %v1861_v63  ;;  %v3494_v59 = vunpack.i.h.bf16 %v3492_v36  ;;  %v3493_v21 = vunpack.i.l.bf16 %v3492_v36  ;;  %v1679_v1 = vsel %vm1650_vm6, %v1646_v47, %v3478_v24  ;;  %v1680_v38 = vsel %vm1650_vm6, %v5874_v27, %v3479_v29 }
 0x216   : > { %v3487_v58 = vpop.permute.xlu0 %3486 }
 0x217   : > { %v3488_v55 = vunpack.i.l.bf16 %v3487_v58  ;;  %v1714_v13 = vsel %vm1683_vm7, %v1681_v11, %v3493_v21  ;;  %v1715_v51 = vsel %vm1683_vm7, %v1682_v16, %v3494_v59  ;;  %v3489_v28 = vunpack.i.h.bf16 %v3487_v58 }
 0x218   : > { %v3502_v61 = vpop.permute.xlu1 %3501 }
 0x219   : > { %v3504_v18 = vunpack.i.h.bf16 %v3502_v61  ;;  %v3503_v56 = vunpack.i.l.bf16 %v3502_v61  ;;  %v1712_v50 = vsel %vm1683_vm7, %v1679_v1, %v3488_v55  ;;  %v1713_v40 = vsel %vm1683_vm7, %v1680_v38, %v3489_v28 }
 0x21a   : > { %v3497_v2 = vpop.permute.xlu0 %3496 }
 0x21b   : > { %v3498_v39 = vunpack.i.l.bf16 %v3497_v2  ;;  %v1747_v46 = vsel %vm1716_vm8, %v1714_v13, %v3503_v56  ;;  %v1748_v7 = vsel %vm1716_vm8, %v1715_v51, %v3504_v18  ;;  %v3499_v0 = vunpack.i.h.bf16 %v3497_v2 }
 0x21c   : > { %v1368_v42 = vpop.permute.xlu1 %1367 }
 0x21d   : > { %v1780_v62 = vsel %vm1749_vm9, %v1747_v46, %v1368_v42  ;;  %v1781_v54 = vsel %vm1749_vm9, %v1748_v7, %v1368_v42  ;;  %v1745_v8 = vsel %vm1716_vm8, %v1712_v50, %v3498_v39  ;;  %v1746_v31 = vsel %vm1716_vm8, %v1713_v40, %v3499_v0 }
 0x21e   : > { %v3507_v3 = vpop.permute.xlu0 %3506 }
 0x21f   : > { %v3508_v34 = vunpack.i.l.bf16 %v3507_v3  ;;  %v3509_v26 = vunpack.i.h.bf16 %v3507_v3 }
 0x220   : > { %v1461_v9 = vpop.permute.xlu1 %1460 }
 0x221   : > { %v1813_v44 = vsel %vm1782_vm10, %v1780_v62, %v1461_v9  ;;  %v1814_v37 = vsel %vm1782_vm10, %v1781_v54, %v1461_v9  ;;  %v1778_v10 = vsel %vm1749_vm9, %v1745_v8, %v3508_v34  ;;  %v1779_v57 = vsel %vm1749_vm9, %v1746_v31, %v3509_v26 }
 0x222   : > { %v3512_v14 = vpop.permute.xlu0 %3511 }
 0x223   : > { %v3514_v17 = vunpack.i.h.bf16 %v3512_v14  ;;  %v3513_v6 = vunpack.i.l.bf16 %v3512_v14 }
 0x224   : > { %v1554_v53 = vpop.permute.xlu1 %1553 }
 0x225   : > { %v1846_v45 = vsel %vm1815_vm11, %v1813_v44, %v1554_v53  ;;  %v1847_v22 = vsel %vm1815_vm11, %v1814_v37, %v1554_v53  ;;  %v1811_v32 = vsel %vm1782_vm10, %v1778_v10, %v3513_v6  ;;  %v1812_v63 = vsel %vm1782_vm10, %v1779_v57, %v3514_v17 }
 0x226   : > { %v3517_v48 = vpop.permute.xlu0 %3516  ;;  %v1863_v30 = vpack.c.bf16 %v1847_v22, %v1846_v45 }
 0x227   : > { %v3519_v49 = vunpack.i.h.bf16 %v3517_v48  ;;  %v3518_v23 = vunpack.i.l.bf16 %v3517_v48 }
 0x229   : > { %v1844_v41 = vsel %vm1815_vm11, %v1811_v32, %v3518_v23  ;;  %v1845_v19 = vsel %vm1815_vm11, %v1812_v63, %v3519_v49 }
 0x22a   : > { %v1862_v20 = vpack.c.bf16 %v1845_v19, %v1844_v41 }
 0x22c   : > { %2792 = vmatprep.mubr.msk.bf16.mxu1 %vm1879_vm12, %v1862_v20 }
 0x22d   : > { %2793 = vmatmul.mubr.msk.bf16.gmra.mrb[12].mxu1 %vm1879_vm12, %v1863_v30 }
 0x25f   : > { %v2766_v5 = vpop.f32.mrb[0].mxu0 }
 0x260   : > { %v2708_v33 = vpack.c.bf16 %v2766_v5, %v2766_v5  ;;  %v1966_v36 = vpop.f32.mrb[1].mxu0  ;;  %v2327_v2 = vmul.f32 %v2766_v5, %v2766_v5  ;;  %v2257_v42 = vsel %vm1586_vm4, %v2766_v5, 0.0 }
 0x261   : > { %v2706_v58 = vpack.c.bf16 %v1966_v36, %v1966_v36  ;;  %v2325_v61 = vmul.f32 %v1966_v36, %v1966_v36  ;;  %v2767_v52 = vpop.f32.mrb[2].mxu0  ;;  %v2254_v60 = vsel %vm1586_vm4, %v1966_v36, 0.0 }
 0x262   : > { %2224 = vst.msk [vmem:[%s5364_s12 + $0x8] sm:$0xf] %vm2221_vm13, %v2708_v33  ;;  %v2709_v35 = vpack.c.bf16 %v2767_v52, %v2767_v52  ;;  %v1969_v15 = vpop.f32.mrb[3].mxu0  ;;  %v2328_v43 = vmul.f32 %v2767_v52, %v2767_v52  ;;  %v2360_v16 = vsel %vm1586_vm4, %v2327_v2, 0.0  ;;  %v2259_v25 = vsel %vm1586_vm4, %v2767_v52, 0.0 }
 0x263   : > { %2222 = vst.msk [vmem:[%s5364_s12] sm:$0xf] %vm2221_vm13, %v2706_v58  ;;  %v2707_v59 = vpack.c.bf16 %v1969_v15, %v1969_v15  ;;  %v2255_v21 = vsel %vm1586_vm4, %v1969_v15, 0.0  ;;  %v2326_v18 = vmul.f32 %v1969_v15, %v1969_v15  ;;  %v2357_v12 = vsel %vm1586_vm4, %v2325_v61, 0.0 }
 0x264   : > { %2225 = vst.msk [vmem:[%s5364_s12 + $0xc] sm:$0xf] %vm2221_vm13, %v2709_v35  ;;  %v2256_v56 = vadd.f32 %v2255_v21, %v2254_v60  ;;  %v2362_v55 = vsel %vm1586_vm4, %v2328_v43, 0.0 }
 0x265   : > { %2223 = vst.msk [vmem:[%s5364_s12 + $0x4] sm:$0xf] %vm2221_vm13, %v2707_v59  ;;  %v2358_v24 = vsel %vm1586_vm4, %v2326_v18, 0.0 }
 0x266   : > { %v2258_v3 = vadd.f32 %v2257_v42, %v2256_v56  ;;  %v2359_v4 = vadd.f32 %v2358_v24, %v2357_v12 }
 0x268   : > { %v2361_v11 = vadd.f32 %v2360_v16, %v2359_v4  ;;  %v2260_v29 = vadd.f32 %v2259_v25, %v2258_v3 }
 0x26a   : > { %v2363_v47 = vadd.f32 %v2362_v55, %v2361_v11 }
 0x273   : > { %v2770_v13 = vpop.f32.mrb[4].mxu0 }
 0x274   : > { %v2712_v51 = vpack.c.bf16 %v2770_v13, %v2770_v13  ;;  %v1982_v28 = vpop.f32.mrb[5].mxu0  ;;  %v2331_v50 = vmul.f32 %v2770_v13, %v2770_v13  ;;  %v2265_v17 = vsel %vm1586_vm4, %v2770_v13, 0.0 }
 0x275   : > { %v2710_v39 = vpack.c.bf16 %v1982_v28, %v1982_v28  ;;  %v2261_v46 = vsel %vm1586_vm4, %v1982_v28, 0.0  ;;  %v2329_v7 = vmul.f32 %v1982_v28, %v1982_v28  ;;  %v2771_v9 = vpop.f32.mrb[6].mxu0 }
 0x276   : > { %2228 = vst.msk [vmem:[%s5364_s12 + $0x18] sm:$0xf] %vm2221_vm13, %v2712_v51  ;;  %v2262_v1 = vadd.f32 %v2261_v46, %v2260_v29  ;;  %v2713_v0 = vpack.c.bf16 %v2771_v9, %v2771_v9  ;;  %v1985_v34 = vpop.f32.mrb[7].mxu0  ;;  %v2332_v6 = vmul.f32 %v2771_v9, %v2771_v9  ;;  %v2267_v44 = vsel %vm1586_vm4, %v2771_v9, 0.0 }
 0x277   : > { %2226 = vst.msk [vmem:[%s5364_s12 + $0x10] sm:$0xf] %vm2221_vm13, %v2710_v39  ;;  %v2364_v14 = vsel %vm1586_vm4, %v2329_v7, 0.0  ;;  %v2711_v27 = vpack.c.bf16 %v1985_v34, %v1985_v34  ;;  %v2263_v38 = vsel %vm1586_vm4, %v1985_v34, 0.0  ;;  %v2330_v54 = vmul.f32 %v1985_v34, %v1985_v34 }
 0x278   : > { %v2365_v26 = vadd.f32 %v2364_v14, %v2363_v47  ;;  %2229 = vst.msk [vmem:[%s5364_s12 + $0x1c] sm:$0xf] %vm2221_vm13, %v2713_v0  ;;  %v2264_v62 = vadd.f32 %v2263_v38, %v2262_v1  ;;  %v2368_v53 = vsel %vm1586_vm4, %v2331_v50, 0.0  ;;  %v2370_v45 = vsel %vm1586_vm4, %v2332_v6, 0.0 }
 0x279   : > { %2227 = vst.msk [vmem:[%s5364_s12 + $0x14] sm:$0xf] %vm2221_vm13, %v2711_v27  ;;  %v2366_v8 = vsel %vm1586_vm4, %v2330_v54, 0.0 }
 0x27a   : > { %v2266_v40 = vadd.f32 %v2265_v17, %v2264_v62  ;;  %v2367_v37 = vadd.f32 %v2366_v8, %v2365_v26 }
 0x27c   : > { %v2268_v31 = vadd.f32 %v2267_v44, %v2266_v40  ;;  %v2369_v10 = vadd.f32 %v2368_v53, %v2367_v37 }
 0x27e   : > { %v2371_v22 = vadd.f32 %v2370_v45, %v2369_v10 }
 0x288   : > { %v2774_v48 = vpop.f32.mrb[8].mxu0 }
 0x289   : > { %v2716_v57 = vpack.c.bf16 %v2774_v48, %v2774_v48  ;;  %v1998_v30 = vpop.f32.mrb[9].mxu0  ;;  %v2335_v58 = vmul.f32 %v2774_v48, %v2774_v48  ;;  %v2273_v35 = vsel %vm1586_vm4, %v2774_v48, 0.0 }
 0x28a   : > { %v2714_v49 = vpack.c.bf16 %v1998_v30, %v1998_v30  ;;  %v2269_v23 = vsel %vm1586_vm4, %v1998_v30, 0.0  ;;  %v2333_v32 = vmul.f32 %v1998_v30, %v1998_v30  ;;  %v2775_v63 = vpop.f32.mrb[10].mxu0 }
 0x28b   : > { %2232 = vst.msk [vmem:[%s5364_s12 + $0x28] sm:$0xf] %vm2221_vm13, %v2716_v57  ;;  %v2270_v41 = vadd.f32 %v2269_v23, %v2268_v31  ;;  %v2717_v19 = vpack.c.bf16 %v2775_v63, %v2775_v63  ;;  %v2001_v20 = vpop.f32.mrb[11].mxu0  ;;  %v2336_v15 = vmul.f32 %v2775_v63, %v2775_v63  ;;  %v2275_v21 = vsel %vm1586_vm4, %v2775_v63, 0.0 }
 0x28c   : > { %2230 = vst.msk [vmem:[%s5364_s12 + $0x20] sm:$0xf] %vm2221_vm13, %v2714_v49  ;;  %v2372_v5 = vsel %vm1586_vm4, %v2333_v32, 0.0  ;;  %v2715_v33 = vpack.c.bf16 %v2001_v20, %v2001_v20  ;;  %v2271_v36 = vsel %vm1586_vm4, %v2001_v20, 0.0  ;;  %v2334_v2 = vmul.f32 %v2001_v20, %v2001_v20 }
 0x28d   : > { %v2373_v61 = vadd.f32 %v2372_v5, %v2371_v22  ;;  %2233 = vst.msk [vmem:[%s5364_s12 + $0x2c] sm:$0xf] %vm2221_vm13, %v2717_v19  ;;  %v2272_v52 = vadd.f32 %v2271_v36, %v2270_v41  ;;  %v2376_v56 = vsel %vm1586_vm4, %v2335_v58, 0.0  ;;  %v2378_v43 = vsel %vm1586_vm4, %v2336_v15, 0.0 }
 0x28e   : > { %2231 = vst.msk [vmem:[%s5364_s12 + $0x24] sm:$0xf] %vm2221_vm13, %v2715_v33  ;;  %v2374_v59 = vsel %vm1586_vm4, %v2334_v2, 0.0 }
 0x28f   : > { %v2274_v60 = vadd.f32 %v2273_v35, %v2272_v52  ;;  %v2375_v18 = vadd.f32 %v2374_v59, %v2373_v61 }
 0x291   : > { %v2276_v42 = vadd.f32 %v2275_v21, %v2274_v60  ;;  %v2377_v12 = vadd.f32 %v2376_v56, %v2375_v18 }
 0x293   : > { %v2379_v24 = vadd.f32 %v2378_v43, %v2377_v12 }
 0x2a0   : > { %v2778_v3 = vpop.f32.mrb[12].mxu0 }
 0x2a1   : > { %v2720_v4 = vpack.c.bf16 %v2778_v3, %v2778_v3  ;;  %v2014_v16 = vpop.f32.mrb[13].mxu0  ;;  %v2339_v7 = vmul.f32 %v2778_v3, %v2778_v3  ;;  %v2281_v34 = vsel %vm1586_vm4, %v2778_v3, 0.0 }
 0x2a2   : > { %v2718_v25 = vpack.c.bf16 %v2014_v16, %v2014_v16  ;;  %v2277_v11 = vsel %vm1586_vm4, %v2014_v16, 0.0  ;;  %v2337_v29 = vmul.f32 %v2014_v16, %v2014_v16  ;;  %v2779_v55 = vpop.f32.mrb[14].mxu0 }
 0x2a3   : > { %2236 = vst.msk [vmem:[%s5364_s12 + $0x38] sm:$0xf] %vm2221_vm13, %v2720_v4  ;;  %v2278_v47 = vadd.f32 %v2277_v11, %v2276_v42  ;;  %v2721_v13 = vpack.c.bf16 %v2779_v55, %v2779_v55  ;;  %v2017_v51 = vpop.f32.mrb[15].mxu0  ;;  %v2340_v14 = vmul.f32 %v2779_v55, %v2779_v55  ;;  %v2283_v50 = vsel %vm1586_vm4, %v2779_v55, 0.0 }
 0x2a4   : > { %2234 = vst.msk [vmem:[%s5364_s12 + $0x30] sm:$0xf] %vm2221_vm13, %v2718_v25  ;;  %v2380_v28 = vsel %vm1586_vm4, %v2337_v29, 0.0  ;;  %v2719_v39 = vpack.c.bf16 %v2017_v51, %v2017_v51  ;;  %v2279_v46 = vsel %vm1586_vm4, %v2017_v51, 0.0  ;;  %v2338_v0 = vmul.f32 %v2017_v51, %v2017_v51 }
 0x2a5   : > { %v2381_v9 = vadd.f32 %v2380_v28, %v2379_v24  ;;  %2237 = vst.msk [vmem:[%s5364_s12 + $0x3c] sm:$0xf] %vm2221_vm13, %v2721_v13  ;;  %v2280_v1 = vadd.f32 %v2279_v46, %v2278_v47  ;;  %v2384_v62 = vsel %vm1586_vm4, %v2339_v7, 0.0  ;;  %v2386_v6 = vsel %vm1586_vm4, %v2340_v14, 0.0 }
 0x2a6   : > { %2235 = vst.msk [vmem:[%s5364_s12 + $0x34] sm:$0xf] %vm2221_vm13, %v2719_v39  ;;  %v2382_v38 = vsel %vm1586_vm4, %v2338_v0, 0.0 }
 0x2a7   : > { %v2282_v27 = vadd.f32 %v2281_v34, %v2280_v1  ;;  %v2383_v26 = vadd.f32 %v2382_v38, %v2381_v9 }
 0x2a9   : > { %v2284_v54 = vadd.f32 %v2283_v50, %v2282_v27  ;;  %v2385_v17 = vadd.f32 %v2384_v62, %v2383_v26 }
 0x2ab   : > { %v2387_v40 = vadd.f32 %v2386_v6, %v2385_v17 }
 0x2b8   : > { %v2782_v8 = vpop.f32.mrb[0].mxu1 }
 0x2b9   : > { %v2724_v44 = vpack.c.bf16 %v2782_v8, %v2782_v8  ;;  %v2030_v37 = vpop.f32.mrb[1].mxu1  ;;  %v2343_v32 = vmul.f32 %v2782_v8, %v2782_v8  ;;  %v2289_v20 = vsel %vm1586_vm4, %v2782_v8, 0.0 }
 0x2ba   : > { %v2722_v53 = vpack.c.bf16 %v2030_v37, %v2030_v37  ;;  %v2285_v31 = vsel %vm1586_vm4, %v2030_v37, 0.0  ;;  %v2341_v10 = vmul.f32 %v2030_v37, %v2030_v37  ;;  %v2783_v45 = vpop.f32.mrb[2].mxu1 }
 0x2bb   : > { %2240 = vst.msk [vmem:[%s5364_s12 + $0x48] sm:$0xf] %vm2221_vm13, %v2724_v44  ;;  %v2286_v22 = vadd.f32 %v2285_v31, %v2284_v54  ;;  %v2725_v48 = vpack.c.bf16 %v2783_v45, %v2783_v45  ;;  %v2033_v57 = vpop.f32.mrb[3].mxu1  ;;  %v2344_v5 = vmul.f32 %v2783_v45, %v2783_v45  ;;  %v2291_v58 = vsel %vm1586_vm4, %v2783_v45, 0.0 }
 0x2bc   : > { %2238 = vst.msk [vmem:[%s5364_s12 + $0x40] sm:$0xf] %vm2221_vm13, %v2722_v53  ;;  %v2388_v30 = vsel %vm1586_vm4, %v2341_v10, 0.0  ;;  %v2723_v49 = vpack.c.bf16 %v2033_v57, %v2033_v57  ;;  %v2287_v23 = vsel %vm1586_vm4, %v2033_v57, 0.0  ;;  %v2342_v19 = vmul.f32 %v2033_v57, %v2033_v57 }
 0x2bd   : > { %v2389_v63 = vadd.f32 %v2388_v30, %v2387_v40  ;;  %2241 = vst.msk [vmem:[%s5364_s12 + $0x4c] sm:$0xf] %vm2221_vm13, %v2725_v48  ;;  %v2288_v41 = vadd.f32 %v2287_v23, %v2286_v22  ;;  %v2392_v52 = vsel %vm1586_vm4, %v2343_v32, 0.0  ;;  %v2394_v15 = vsel %vm1586_vm4, %v2344_v5, 0.0 }
 0x2be   : > { %2239 = vst.msk [vmem:[%s5364_s12 + $0x44] sm:$0xf] %vm2221_vm13, %v2723_v49  ;;  %v2390_v36 = vsel %vm1586_vm4, %v2342_v19, 0.0 }
 0x2bf   : > { %v2290_v33 = vadd.f32 %v2289_v20, %v2288_v41  ;;  %v2391_v61 = vadd.f32 %v2390_v36, %v2389_v63 }
 0x2c1   : > { %v2292_v2 = vadd.f32 %v2291_v58, %v2290_v33  ;;  %v2393_v35 = vadd.f32 %v2392_v52, %v2391_v61 }
 0x2c3   : > { %v2395_v60 = vadd.f32 %v2394_v15, %v2393_v35 }
 0x2d0   : > { %v2786_v59 = vpop.f32.mrb[4].mxu1 }
 0x2d1   : > { %v2728_v21 = vpack.c.bf16 %v2786_v59, %v2786_v59  ;;  %v2046_v18 = vpop.f32.mrb[5].mxu1  ;;  %v2347_v29 = vmul.f32 %v2786_v59, %v2786_v59  ;;  %v2297_v51 = vsel %vm1586_vm4, %v2786_v59, 0.0 }
 0x2d2   : > { %v2726_v56 = vpack.c.bf16 %v2046_v18, %v2046_v18  ;;  %v2293_v42 = vsel %vm1586_vm4, %v2046_v18, 0.0  ;;  %v2345_v12 = vmul.f32 %v2046_v18, %v2046_v18  ;;  %v2787_v43 = vpop.f32.mrb[6].mxu1 }
 0x2d3   : > { %2244 = vst.msk [vmem:[%s5364_s12 + $0x58] sm:$0xf] %vm2221_vm13, %v2728_v21  ;;  %v2294_v24 = vadd.f32 %v2293_v42, %v2292_v2  ;;  %v2729_v3 = vpack.c.bf16 %v2787_v43, %v2787_v43  ;;  %v2049_v4 = vpop.f32.mrb[7].mxu1  ;;  %v2348_v28 = vmul.f32 %v2787_v43, %v2787_v43  ;;  %v2299_v7 = vsel %vm1586_vm4, %v2787_v43, 0.0 }
 0x2d4   : > { %2242 = vst.msk [vmem:[%s5364_s12 + $0x50] sm:$0xf] %vm2221_vm13, %v2726_v56  ;;  %v2396_v16 = vsel %vm1586_vm4, %v2345_v12, 0.0  ;;  %v2727_v25 = vpack.c.bf16 %v2049_v4, %v2049_v4  ;;  %v2295_v11 = vsel %vm1586_vm4, %v2049_v4, 0.0  ;;  %v2346_v13 = vmul.f32 %v2049_v4, %v2049_v4 }
 0x2d5   : > { %v2397_v55 = vadd.f32 %v2396_v16, %v2395_v60  ;;  %2245 = vst.msk [vmem:[%s5364_s12 + $0x5c] sm:$0xf] %vm2221_vm13, %v2729_v3  ;;  %v2296_v47 = vadd.f32 %v2295_v11, %v2294_v24  ;;  %v2400_v1 = vsel %vm1586_vm4, %v2347_v29, 0.0  ;;  %v2402_v14 = vsel %vm1586_vm4, %v2348_v28, 0.0 }
 0x2d6   : > { %2243 = vst.msk [vmem:[%s5364_s12 + $0x54] sm:$0xf] %vm2221_vm13, %v2727_v25  ;;  %v2398_v46 = vsel %vm1586_vm4, %v2346_v13, 0.0 }
 0x2d7   : > { %v2298_v39 = vadd.f32 %v2297_v51, %v2296_v47  ;;  %v2399_v9 = vadd.f32 %v2398_v46, %v2397_v55 }
 0x2d9   : > { %v2300_v0 = vadd.f32 %v2299_v7, %v2298_v39  ;;  %v2401_v34 = vadd.f32 %v2400_v1, %v2399_v9 }
 0x2db   : > { %v2403_v27 = vadd.f32 %v2402_v14, %v2401_v34 }
 0x2e8   : > { %v2790_v38 = vpop.f32.mrb[8].mxu1 }
 0x2e9   : > { %v2732_v50 = vpack.c.bf16 %v2790_v38, %v2790_v38  ;;  %v2062_v26 = vpop.f32.mrb[9].mxu1  ;;  %v2351_v10 = vmul.f32 %v2790_v38, %v2790_v38  ;;  %v2305_v57 = vsel %vm1586_vm4, %v2790_v38, 0.0 }
 0x2ea   : > { %v2730_v62 = vpack.c.bf16 %v2062_v26, %v2062_v26  ;;  %v2301_v54 = vsel %vm1586_vm4, %v2062_v26, 0.0  ;;  %v2349_v17 = vmul.f32 %v2062_v26, %v2062_v26  ;;  %v2791_v6 = vpop.f32.mrb[10].mxu1 }
 0x2eb   : > { %2248 = vst.msk [vmem:[%s5364_s12 + $0x68] sm:$0xf] %vm2221_vm13, %v2732_v50  ;;  %v2302_v40 = vadd.f32 %v2301_v54, %v2300_v0  ;;  %v2733_v8 = vpack.c.bf16 %v2791_v6, %v2791_v6  ;;  %v2065_v44 = vpop.f32.mrb[11].mxu1  ;;  %v2352_v30 = vmul.f32 %v2791_v6, %v2791_v6  ;;  %v2307_v32 = vsel %vm1586_vm4, %v2791_v6, 0.0 }
 0x2ec   : > { %2246 = vst.msk [vmem:[%s5364_s12 + $0x60] sm:$0xf] %vm2221_vm13, %v2730_v62  ;;  %v2404_v37 = vsel %vm1586_vm4, %v2349_v17, 0.0  ;;  %v2731_v53 = vpack.c.bf16 %v2065_v44, %v2065_v44  ;;  %v2303_v31 = vsel %vm1586_vm4, %v2065_v44, 0.0  ;;  %v2350_v48 = vmul.f32 %v2065_v44, %v2065_v44 }
 0x2ed   : > { %v2405_v45 = vadd.f32 %v2404_v37, %v2403_v27  ;;  %2249 = vst.msk [vmem:[%s5364_s12 + $0x6c] sm:$0xf] %vm2221_vm13, %v2733_v8  ;;  %v2304_v22 = vadd.f32 %v2303_v31, %v2302_v40  ;;  %v2408_v41 = vsel %vm1586_vm4, %v2351_v10, 0.0  ;;  %v2410_v5 = vsel %vm1586_vm4, %v2352_v30, 0.0 }
 0x2ee   : > { %2247 = vst.msk [vmem:[%s5364_s12 + $0x64] sm:$0xf] %vm2221_vm13, %v2731_v53  ;;  %v2406_v23 = vsel %vm1586_vm4, %v2350_v48, 0.0 }
 0x2ef   : > { %v2306_v49 = vadd.f32 %v2305_v57, %v2304_v22  ;;  %v2407_v63 = vadd.f32 %v2406_v23, %v2405_v45 }
 0x2f1   : > { %v2308_v19 = vadd.f32 %v2307_v32, %v2306_v49  ;;  %v2409_v20 = vadd.f32 %v2408_v41, %v2407_v63 }
 0x2f3   : > { %v2411_v33 = vadd.f32 %v2410_v5, %v2409_v20 }
 0x300   : > { %v2794_v36 = vpop.f32.mrb[12].mxu1 }
 0x301   : > { %v2736_v58 = vpack.c.bf16 %v2794_v36, %v2794_v36  ;;  %v2078_v61 = vpop.f32.mrb[13].mxu1  ;;  %v2355_v12 = vmul.f32 %v2794_v36, %v2794_v36  ;;  %v2313_v4 = vsel %vm1586_vm4, %v2794_v36, 0.0 }
 0x302   : > { %v2734_v52 = vpack.c.bf16 %v2078_v61, %v2078_v61  ;;  %v2309_v2 = vsel %vm1586_vm4, %v2078_v61, 0.0  ;;  %v2353_v35 = vmul.f32 %v2078_v61, %v2078_v61  ;;  %v2795_v15 = vpop.f32.mrb[14].mxu1 }
 0x303   : > { %2252 = vst.msk [vmem:[%s5364_s12 + $0x78] sm:$0xf] %vm2221_vm13, %v2736_v58  ;;  %v2310_v60 = vadd.f32 %v2309_v2, %v2308_v19  ;;  %v2737_v59 = vpack.c.bf16 %v2795_v15, %v2795_v15  ;;  %v2081_v21 = vpop.f32.mrb[15].mxu1  ;;  %v2356_v16 = vmul.f32 %v2795_v15, %v2795_v15 }
 0x304   : > { %2250 = vst.msk [vmem:[%s5364_s12 + $0x70] sm:$0xf] %vm2221_vm13, %v2734_v52  ;;  %v2412_v18 = vsel %vm1586_vm4, %v2353_v35, 0.0  ;;  %v2735_v56 = vpack.c.bf16 %v2081_v21, %v2081_v21  ;;  %v2311_v42 = vsel %vm1586_vm4, %v2081_v21, 0.0  ;;  %v2354_v3 = vmul.f32 %v2081_v21, %v2081_v21 }
 0x305   : > { %v2413_v43 = vadd.f32 %v2412_v18, %v2411_v33  ;;  %2253 = vst.msk [vmem:[%s5364_s12 + $0x7c] sm:$0xf] %vm2221_vm13, %v2737_v59  ;;  %v2312_v24 = vadd.f32 %v2311_v42, %v2310_v60 }
 0x306   : > { %2251 = vst.msk [vmem:[%s5364_s12 + $0x74] sm:$0xf] %vm2221_vm13, %v2735_v56  ;;  %v2414_v11 = vsel %vm1586_vm4, %v2354_v3, 0.0 }
 0x307   : > { %v2314_v25 = vadd.f32 %v2313_v4, %v2312_v24 }
 0x308   : > { %3652 = shalt.err (!%p3649_p13)
}
 0x309   : > { %s3653_s14 = scalar_lea.hbm %s5486_s9, 2048  ;;  %s3657_s7 = scalar_lea.hbm %s5622_s4, 4096 }
 0x30a   : > { %p3654_p0 = scmp.ne.s32.totalorder %s5486_s9, %s3653_s14  ;;  %p3658_p9 = scmp.lt.u32.totalorder %s5486_s9, %s5622_s4 }
 0x30b   : > { %p3659_p12 = scmp.lt.u32.totalorder %s3657_s7, %s3653_s14  ;;  %p3661_p1 = scmp.lt.u32.totalorder %s3653_s14, %s5486_s9 }
 0x30c   : > { %p3655_p5 = pnand %p3654_p0, %p3976_p6 }
 0x30d   : > { %p3660_p2 = por %p3659_p12, %p3658_p9 }
 0x30e   : > { %p3656_p11 = pneg %p3655_p5 }
 0x30f   : > { %p3662_p4 = por %p3661_p1, %p3660_p2 }
 0x311   : > { %p3663_p8 = pnand %p3662_p4, %p3656_p11 }
 0x313   : > { %3666 = shalt.err (!%p3663_p8)
}
 0x314   : > { %s3793_s8 = smov 64   ;;  %v2315_v29 = vsel %vm1586_vm4, %v2795_v15, 0.0  ;;  %v2415_v55 = vadd.f32 %v2414_v11, %v2413_v43  ;;  %v2416_v47 = vsel %vm1586_vm4, %v2355_v12, 0.0  ;;  %v2418_v28 = vsel %vm1586_vm4, %v2356_v16, 0.0  ;;  %s325_s15 = scalar_lea.vmem [#allocation13], %s4024_s20 }
 0x315   : > { %2818 = dma.vmem_to_hbm [thread:$0]  (%p3976_p6), %s5492_s10, 2048, %s5486_s9, %s2428_s18, %s3793_s8, %s3793_s8, %s3784_s27   ;;  %v2316_v13 = vadd.f32 %v2315_v29, %v2314_v25  ;;  %vm2323_vm14 = vcmask 24576  }
 0x316   : > { %v2417_v51 = vadd.f32 %v2416_v47, %v2415_v55  ;;  %s2432_s27 = sand.u32 1, %s3852_s25   ;;  %s2701_s10 = sshll.u32 %s3852_s25, 4 }
 0x317   : > { %v2317_v39 = vrot.slane %v2316_v13, 4  ;;  %s319_s9 = scalar_lea.vmem [#allocation11], %s4024_s20  ;;  %s2478_s19 = sshll.u32 %s325_s15, 4  ;;  %s5547_s19 = int_to_ptr.vmem [resolvable:$true] %s2478_s19 }
 0x318   : > { %v2419_v46 = vadd.f32 %v2418_v28, %v2417_v51  ;;  %s2465_s18 = sshll.u32 %s319_s9, 4  ;;  %s5537_s30 = scalar_lea.hbm %s5623_s5, %s2701_s10  ;;  %s5539_s18 = int_to_ptr.vmem [resolvable:$true] %s2465_s18 }
 0x319   : > { %v2318_v7 = vadd.f32 %v2317_v39, %v2316_v13  ;;  %s5545_s29 = scalar_lea.hbm %s5624_s6, %s2701_s10  ;;  %s5549_s11 = scalar_lea.sflag [#allocation12], %s2432_s27 }
 0x31a   : > { %v2420_v9 = vrot.slane %v2419_v46, 4  ;;  %s3667_s8 = scalar_lea.vmem %s5539_s18, 16  ;;  %s3794_s14 = smov [#allocation11]  }
 0x31b   : > { %v2319_v1 = vrot.slane %v2318_v7, 2  ;;  %p3668_p3 = scmp.ne.s32.totalorder %s5539_s18, %s3667_s8  ;;  %s3671_s12 = sshll.u32 %s3794_s14, 4  ;;  %s3672_s12 = int_to_ptr.vmem [resolvable:$false] %s3671_s12 }
 0x31c   : > { %v2421_v0 = vadd.f32 %v2420_v9, %v2419_v46  ;;  %s3673_s26 = scalar_lea.vmem %s3672_s12, 32  ;;  %p3674_p13 = scmp.lt.s32.totalorder %s5539_s18, %s3672_s12 }
 0x31d   : > { %v2320_v34 = vadd.f32 %v2319_v1, %v2318_v7  ;;  %p3669_p7 = pnand %p3668_p3, %p3976_p6  ;;  %p3675_p0 = scmp.lt.s32.totalorder %s3673_s26, %s3667_s8 }
 0x31e   : > { %v2422_v14 = vrot.slane %v2421_v0, 2 }
 0x31f   : > { %v2321_v27 = vrot.slane %v2320_v34, 1  ;;  %p3670_p10 = pneg %p3669_p7  ;;  %p3676_p5 = por %p3675_p0, %p3674_p13 }
 0x320   : > { %v2423_v38 = vadd.f32 %v2422_v14, %v2421_v0 }
 0x321   : > { %v2322_v50 = vadd.f32 %v2321_v27, %v2320_v34  ;;  %p3677_p11 = pnand %p3676_p5, %p3670_p10 }
 0x322   : > { %v2424_v26 = vrot.slane %v2423_v38, 1 }
 0x323   : > { %2324 = vst.msk [vmem:[%s319_s9] sm:$0x1] %vm2323_vm14, %v2322_v50 }
 0x324   : > { %v2425_v62 = vadd.f32 %v2424_v26, %v2423_v38 }
 0x325   : > { %3680 = shalt.err (!%p3677_p11)
}
 0x326   : > { %s3681_s27 = scalar_lea.hbm %s5537_s30, 16  ;;  %s3685_s25 = scalar_lea.hbm %s5623_s5, 32 }
 0x327   : > { %p3682_p9 = scmp.ne.s32.totalorder %s5537_s30, %s3681_s27  ;;  %p3686_p1 = scmp.lt.u32.totalorder %s5537_s30, %s5623_s5 }
 0x328   : > { %p3687_p4 = scmp.lt.u32.totalorder %s3685_s25, %s3681_s27  ;;  %p3689_p3 = scmp.lt.u32.totalorder %s3681_s27, %s5537_s30 }
 0x329   : > { %p3683_p12 = pnand %p3682_p9, %p3976_p6 }
 0x32a   : > { %p3688_p8 = por %p3687_p4, %p3686_p1 }
 0x32b   : > { %p3684_p2 = pneg %p3683_p12 }
 0x32c   : > { %p3690_p7 = por %p3689_p3, %p3688_p8 }
 0x32e   : > { %p3691_p10 = pnand %p3690_p7, %p3684_p2 }
 0x330   : > { %3694 = shalt.err (!%p3691_p10)
}
 0x331   : > { %2819 = dma.vmem_to_hbm [thread:$0]  (%p3976_p6), %s5539_s18, 16, %s5537_s30, %s5549_s11   ;;  %2426 = vst.msk [vmem:[%s325_s15] sm:$0x1] %vm2323_vm14, %v2425_v62 }
 0x332   : > { %s3695_s26 = scalar_lea.vmem %s5547_s19, 16  ;;  %s3795_s8 = smov [#allocation13]  }
 0x333   : > { %p3696_p13 = scmp.ne.s32.totalorder %s5547_s19, %s3695_s26  ;;  %s3699_s12 = sshll.u32 %s3795_s8, 4  ;;  %s3700_s12 = int_to_ptr.vmem [resolvable:$false] %s3699_s12 }
 0x334   : > { %s3701_s27 = scalar_lea.vmem %s3700_s12, 32  ;;  %p3702_p11 = scmp.lt.s32.totalorder %s5547_s19, %s3700_s12 }
 0x335   : > { %p3697_p0 = pnand %p3696_p13, %p3976_p6  ;;  %p3703_p9 = scmp.lt.s32.totalorder %s3701_s27, %s3695_s26 }
 0x337   : > { %p3698_p5 = pneg %p3697_p0  ;;  %p3704_p12 = por %p3703_p9, %p3702_p11 }
 0x339   : > { %p3705_p2 = pnand %p3704_p12, %p3698_p5 }
 0x33b   : > { %3708 = shalt.err (!%p3705_p2)
}
 0x33c   : > { %s3709_s20 = scalar_lea.hbm %s5545_s29, 16  ;;  %s3713_s30 = scalar_lea.hbm %s5624_s6, 32 }
 0x33d   : > { %p3710_p1 = scmp.ne.s32.totalorder %s5545_s29, %s3709_s20  ;;  %p3714_p3 = scmp.lt.u32.totalorder %s5545_s29, %s5624_s6 }
 0x33e   : > { %p3715_p7 = scmp.lt.u32.totalorder %s3713_s30, %s3709_s20  ;;  %p3717_p13 = scmp.lt.u32.totalorder %s3709_s20, %s5545_s29 }
 0x33f   : > { %p3711_p4 = pnand %p3710_p1, %p3976_p6 }
 0x340   : > { %p3716_p10 = por %p3715_p7, %p3714_p3 }
 0x341   : > { %p3712_p8 = pneg %p3711_p4 }
 0x342   : > { %p3718_p0 = por %p3717_p13, %p3716_p10 }
 0x344   : > { %p3719_p5 = pnand %p3718_p0, %p3712_p8 }
 0x346   : > { %3722 = shalt.err (!%p3719_p5)
}
 0x347   : > { %2820 = dma.vmem_to_hbm [thread:$0]  (%p3976_p6), %s5547_s19, 16, %s5545_s29, %s5549_s11  }
 0x348 PF: > { %s2490_s25 = sand.u32 1, %s3761_s21   ;;  %p5875_p11 = scmp.ne.s32.totalorder %s5712_s28, 0 }
 0x349   : > { %p5876_p9 = scmp.ge.s32.totalorder %s3773_s24, 2  ;;  %s2491_s7 = scalar_lea.sflag [#allocation4], %s2490_s25 }
 0x34b   : > { %p2839_p12 = pnand %p5876_p9, %p5875_p11 }
 0x34d   : > { %3752 = dma.done.wait (!%p2839_p12), %s2491_s7, 2048  }
 0x34e   : > { %3754 = vsyncadd (!%p2839_p12), %s2491_s7, 4294965248  ;;  %s5877_s14 = sadd.s32 4294967294, %s3773_s24  }
 0x34f   : > { %s2499_s26 = sand.u32 1, %s5877_s14  }
 0x350   : > { %s2500_s8 = scalar_lea.sflag [#allocation12], %s2499_s26 }
 0x351   : > { %3756 = dma.done.wait (!%p2839_p12), %s2500_s8, 32  }
 0x352   : > { %3758 = vsyncadd (!%p2839_p12), %s2500_s8, 4294967264  ;;  %p25_p6 = scmp.ge.s32.totalorder %s3962_s13, 4   ;;  %s5878_s21 = smov %s3765_s22 }
 0x353   : > { %s5879_s22 = smov %s3769_s23  ;;  %s5880_s23 = smov %s3972_s16 }
 0x354   : > { %s5881_s24 = smov %s3962_s13  ;;  %27 = sbr.rel (!%p25_p6) target bundleno = 9 (0x9), region = 125 }
 0x35b   :  { %2512 = vsyncpa [#allocation3], 1 }
 0x35c   :  { %2514 = vsyncpa [#allocation3 + $0x1], 1 }
 0x35d   :  { %2515 = vsyncpa [#allocation6], 1 }
 0x35e   :  { %2516 = vsyncpa [#allocation9], 1 }
 0x35f   :  { %2517 = vsyncpa [#allocation4], 1 }
 0x360   :  { %2519 = vsyncpa [#allocation4 + $0x1], 1 }
 0x361   :  { %2520 = vsyncpa [#allocation12], 1 }
 0x362   :  { %2522 = vsyncpa [#allocation12 + $0x1], 1 }

// kernel: conv_block_forward.5
= control target key start
LH: loop header
LB: loop body
LE: loop exit
PB: predicated region body
PF: predicated region fallthrough
CT: control target
= control target key end

     0   :  { %s7538_s0 = inlined_call_operand.hbm [shape: bf16[2,16,16,2], index: 0, kind: input, shape index: {}]   ;;  %s7539_s1 = inlined_call_operand.hbm [shape: bf16[2,16,16,4], index: 1, kind: input, shape index: {}]   ;;  %s7540_s2 = inlined_call_operand.hbm [shape: f32[2,16,16,4], index: 2, kind: input, shape index: {}]   ;;  %s7541_s3 = inlined_call_operand.hbm [shape: f32[1,1,2], index: 3, kind: input, shape index: {}]   ;;  %s7542_s4 = inlined_call_operand.hbm [shape: f32[1,1,2], index: 4, kind: input, shape index: {}]   ;;  %s7543_s5 = inlined_call_operand.hbm [shape: bf16[18,2], index: 5, kind: input, shape index: {}]   ;;  %s7544_s6 = inlined_call_operand.hbm [shape: f32[1,1,4], index: 6, kind: input, shape index: {}]   ;;  %s7545_s7 = inlined_call_operand.hbm [shape: f32[1,1,4], index: 7, kind: input, shape index: {}]   ;;  %s7546_s8 = inlined_call_operand.hbm [shape: bf16[4,8], index: 8, kind: input, shape index: {}]   ;;  %s7547_s9 = inlined_call_operand.hbm [shape: f32[2,16,16,8], index: 9, kind: output, shape index: {}]  }
   0x1   :  { %7727 = sst [smem:[#allocation100_spill]] %s7539_s1 }
   0x2   :  { %7728 = sst [smem:[#allocation101_spill]] %s7541_s3 }
   0x3   :  { %7729 = sst [smem:[#allocation102_spill]] %s7543_s5 }
   0x4   :  { %7730 = sst [smem:[#allocation103_spill]] %s7545_s7 }
   0x5   :  { %7731 = sst [smem:[#allocation104_spill]] %s7547_s9 }
   0x6   :  { %14 = vsyncpa [#allocation3], 0 }
   0x7   :  { %16 = vsyncpa [#allocation3 + $0x1], 0 }
   0x8   :  { %17 = vsyncpa [#allocation6], 0 }
   0x9   :  { %19 = vsyncpa [#allocation6 + $0x1], 0 }
   0xa   :  { %20 = vsyncpa [#allocation9], 0 }
   0xb   :  { %21 = vsyncpa [#allocation12], 0 }
   0xc   :  { %22 = vsyncpa [#allocation15], 0 }
   0xd   :  { %23 = vsyncpa [#allocation4], 0 }
   0xe   :  { %25 = vsyncpa [#allocation4 + $0x1], 0  ;;  %s4889_s30 = smov 0   ;;  %s4891_s10 = smov 0  }
   0xf   :  { %s4893_s11 = smov 0   ;;  %s4895_s12 = smov 0  }
  0x10 LB: > { %7732 = sst [smem:[#allocation24_spill]] %s4801_s30  ;;  %s4815_s13 = smov [#allocation8]   ;;  %s4813_s12 = sphi %s4895_s12, %s8010_s12   ;;  %s4809_s11 = sphi %s4893_s11, %s8012_s11   ;;  %s4805_s10 = sphi %s4891_s10, %s8014_s10   ;;  %s4801_s30 = sphi %s4889_s30, %s8013_s30  }
  0x11   : > { %7733 = sst [smem:[#allocation25_spill]] %s4809_s11  ;;  %s279_s14 = sshll.u32 %s4815_s13, 4  ;;  %s4915_s14 = int_to_ptr.vmem [resolvable:$true] %s279_s14 }
  0x12   : > { %s4910_s15 = sadd.s32 4294967295, %s4813_s12   ;;  %p3303_p0 = scmp.ge.s32.totalorder %s4813_s12, 1 }
  0x13   : > { %p7556_p1 = scmp.eq.s32.totalorder %s4910_s15, 0  ;;  %p266_p2 = scmp.lt.s32.totalorder %s4813_s12, 3 }
  0x14   : > { %s4816_s17 = smov [#allocation11]   ;;  %s4817_s20 = smov [#allocation14]  }
  0x15   : > { %p4917_p3 = pnand %p3303_p0, %p266_p2  ;;  %s300_s18 = sshll.u32 %s4816_s17, 4  ;;  %s4924_s18 = int_to_ptr.vmem [resolvable:$true] %s300_s18 }
  0x16   : > { %s325_s21 = sshll.u32 %s4817_s20, 4  ;;  %s7736_s3 = sld [smem:[#allocation101_spill]]  ;;  %s4932_s21 = int_to_ptr.vmem [resolvable:$true] %s325_s21 }
  0x17   : > { %s7734_s16 = scalar_select %p4917_p3, 1, 0 }
  0x18   : > { %p3675_p5 = pneg %p4917_p3 }
  0x1a   : > { %p4928_p6 = pnand %p3675_p5, %p7556_p1 }
  0x1c   : > { %s7735_s19 = scalar_select %p4928_p6, 1, 0 }
  0x1d   : > { %s4473_s24 = scalar_lea.hbm %s7736_s3, 16  ;;  %p4942_p8 = pneg %p4928_p6 }
  0x1e   : > { %p4474_p7 = scmp.ne.s32.totalorder %s7736_s3, %s4473_s24  ;;  %p4480_p11 = scmp.lt.u32.totalorder %s4473_s24, %s7736_s3 }
  0x1f   : > { %s7737_s27 = scalar_select %p4942_p8, 1, 0 }
  0x20   : > { %p4476_p9 = pnand %p4942_p8, %p4474_p7 }
  0x22   : > { %p4477_p10 = pneg %p4476_p9 }
  0x24   : > { %p4482_p12 = pnand %p4480_p11, %p4477_p10 }
  0x26   : > { %4485 = shalt.err (!%p4482_p12)
}
  0x27   : > { %s4486_s13 = scalar_lea.vmem %s4915_s14, 16  ;;  %s4493_s17 = scalar_lea.vmem %s4915_s14, 32 }
  0x28   : > { %p4487_p13 = scmp.ne.s32.totalorder %s4915_s14, %s4486_s13  ;;  %p4494_p5 = scmp.lt.s32.totalorder %s4915_s14, %s4915_s14 }
  0x29   : > { %p4495_p7 = scmp.lt.s32.totalorder %s4493_s17, %s4486_s13 }
  0x2a   : > { %p4489_p0 = pnand %p4487_p13, %p4942_p8 }
  0x2b   : > { %p4496_p9 = por %p4495_p7, %p4494_p5 }
  0x2c   : > { %p4490_p2 = pneg %p4489_p0 }
  0x2e   : > { %p4497_p4 = pnand %p4496_p9, %p4490_p2 }
  0x30   : > { %4500 = shalt.err (!%p4497_p4)
}
  0x31   : > { %3678 = dma.hbm_to_vmem [thread:$0]  (!%p4928_p6), %s7736_s3, 16, %s4915_s14, [#allocation9]  }
  0x32   : > { %s7738_s5 = sld [smem:[#allocation102_spill]] }
  0x38   : > { %s4501_s25 = scalar_lea.hbm %s7738_s5, 192 }
  0x39   : > { %p4502_p10 = scmp.ne.s32.totalorder %s7738_s5, %s4501_s25  ;;  %p4508_p4 = scmp.lt.u32.totalorder %s4501_s25, %s7738_s5 }
  0x3b   : > { %p4504_p11 = pnand %p4502_p10, %p4942_p8 }
  0x3d   : > { %p4505_p12 = pneg %p4504_p11 }
  0x3f   : > { %p4510_p13 = pnand %p4508_p4, %p4505_p12 }
  0x41   : > { %4513 = shalt.err (!%p4510_p13)
}
  0x42   : > { %s4514_s14 = scalar_lea.vmem %s4924_s18, 192  ;;  %p4522_p7 = scmp.lt.s32.totalorder %s4924_s18, %s4924_s18 }
  0x43   : > { %p4515_p0 = scmp.ne.s32.totalorder %s4924_s18, %s4514_s14  ;;  %p4523_p9 = scmp.lt.s32.totalorder %s4514_s14, %s4514_s14 }
  0x45   : > { %p4517_p2 = pnand %p4515_p0, %p4942_p8  ;;  %p4524_p10 = por %p4523_p9, %p4522_p7 }
  0x47   : > { %p4518_p5 = pneg %p4517_p2 }
  0x49   : > { %p4525_p11 = pnand %p4524_p10, %p4518_p5 }
  0x4b   : > { %4528 = shalt.err (!%p4525_p11)
}
  0x4c   : > { %s7549_s17 = smov 64   ;;  %s7551_s20 = smov 4  }
  0x4d   : > { %3684 = dma.hbm_to_vmem [thread:$0]  (!%p4928_p6), %s7738_s5, 192, %s4924_s18, [#allocation12], %s7549_s17, %s7549_s17, %s7551_s20  }
  0x4e   : > { %s7739_s7 = sld [smem:[#allocation103_spill]] }
  0x54   : > { %s4529_s26 = scalar_lea.hbm %s7739_s7, 16 }
  0x55   : > { %p4530_p12 = scmp.ne.s32.totalorder %s7739_s7, %s4529_s26  ;;  %p4536_p0 = scmp.lt.u32.totalorder %s4529_s26, %s7739_s7 }
  0x57   : > { %p4532_p4 = pnand %p4530_p12, %p4942_p8 }
  0x59   : > { %p4533_p13 = pneg %p4532_p4 }
  0x5b   : > { %p4538_p2 = pnand %p4536_p0, %p4533_p13 }
  0x5d   : > { %4541 = shalt.err (!%p4538_p2)
}
  0x5e   : > { %s4542_s18 = scalar_lea.vmem %s4932_s21, 16  ;;  %s4549_s22 = scalar_lea.vmem %s4932_s21, 32 }
  0x5f   : > { %p4543_p5 = scmp.ne.s32.totalorder %s4932_s21, %s4542_s18  ;;  %p4550_p10 = scmp.lt.s32.totalorder %s4932_s21, %s4932_s21 }
  0x60   : > { %p4551_p11 = scmp.lt.s32.totalorder %s4549_s22, %s4542_s18 }
  0x61   : > { %p4545_p7 = pnand %p4543_p5, %p4942_p8 }
  0x62   : > { %p4552_p12 = por %p4551_p11, %p4550_p10 }
  0x63   : > { %p4546_p9 = pneg %p4545_p7 }
  0x65   : > { %p4553_p4 = pnand %p4552_p12, %p4546_p9 }
  0x67   : > { %4556 = shalt.err (!%p4553_p4)
}
  0x68   : > { %3690 = dma.hbm_to_vmem [thread:$0]  (!%p4928_p6), %s7739_s7, 16, %s4932_s21, [#allocation15]  }
  0x69   : > { %s3302_s25 = sadd.s32 4294967294, %s4813_s12   ;;  %s5016_s26 = sadd.s32 1, %s4813_s12  }
  0x6a   : > { %7740 = sst [smem:[#allocation26_spill]] %s5016_s26  ;;  %s38_s28 = sadd.s32 1, %s4809_s11 }
  0x6b   : > { %s35_s29 = ssub.s32 %s4813_s12, %s5016_s26  ;;  %p45_p13 = scmp.ne.s32.totalorder %s4809_s11, %s4805_s10 }
  0x6c   : > { %p36_p0 = scmp.eq.s32.totalorder %s35_s29, 0  ;;  %p46_p2 = scmp.eq.s32.totalorder %s4813_s12, 0 }
  0x6d   : > { %p51_p5 = scmp.ne.s32.totalorder %s4805_s10, %s4801_s30  ;;  %p253_p7 = scmp.eq.s32.totalorder %s4910_s15, 1 }
  0x6e   : > { %s5028_s13 = scalar_select %p36_p0, %s4809_s11, %s38_s28  }
  0x6f   : > { %p47_p9 = por %p46_p2, %p45_p13  ;;  %p5032_p10 = por %p7556_p1, %p51_p5 }
  0x70   : > { %7741 = sst [smem:[#allocation27_spill]] %s5028_s13  ;;  %p5036_p11 = por %p253_p7, %p45_p13 }
  0x71   : > { %s7742_s21 = scalar_select %p5032_p10, 1, 0 }
  0x72   : > { %s7743_s14 = scalar_select %p5036_p11, 1, 0 }
  0x73   : > { %p259_p12 = scmp.eq.s32.totalorder %s3302_s25, 1  ;;  %p3714_p4 = scmp.lt.s32.totalorder %s4813_s12, 2 }
  0x74   : > { %7744 = sst [smem:[#allocation28_spill]] %s7743_s14  ;;  %s5042_s18 = sand.u32 1, %s4809_s11  }
  0x75   : > { %p5044_p3 = por %p259_p12, %p51_p5  ;;  %s7554_s23 = sshll.u32 %s5042_s18, 7 }
  0x76   : > { %s7555_s24 = sshll.u32 %s4813_s12, 11  ;;  %p5050_p0 = pnand %p3714_p4, %p47_p9 }
  0x77   : > { %s7745_s22 = scalar_select %p5044_p3, 1, 0 }
  0x78   : > { %s7747_s28 = scalar_select %p5050_p0, 1, 0 }
  0x79   : > { %7746 = sst [smem:[#allocation29_spill]] %s7745_s22  ;;  %s368_s29 = sand.u32 1, %s4813_s12  }
  0x7a   : > { %s7748_s1 = sld [smem:[#allocation100_spill]]  ;;  %s372_s3 = scalar_lea.vmem [#allocation5], %s7554_s23 }
  0x7b   : > { %s379_s5 = sshll.u32 %s372_s3, 4  ;;  %s5066_s7 = scalar_lea.sflag [#allocation6], %s368_s29  ;;  %s5064_s5 = int_to_ptr.vmem [resolvable:$true] %s379_s5 }
  0x7c   : > { %p5072_p2 = pneg %p5050_p0 }
  0x7e   : > { %s7749_s11 = scalar_select %p5072_p2, 1, 0 }
  0x80   : > { %s5060_s20 = scalar_lea.hbm %s7748_s1, %s7555_s24  ;;  %s4562_s23 = scalar_lea.hbm %s7748_s1, 4096 }
  0x81   : > { %s4557_s13 = scalar_lea.hbm %s5060_s20, 2048  ;;  %p4563_p9 = scmp.lt.u32.totalorder %s5060_s20, %s7748_s1 }
  0x82   : > { %p4558_p13 = scmp.ne.s32.totalorder %s5060_s20, %s4557_s13  ;;  %p4564_p12 = scmp.lt.u32.totalorder %s4562_s23, %s4557_s13 }
  0x83   : > { %p4566_p1 = scmp.lt.u32.totalorder %s4557_s13, %s5060_s20 }
  0x84   : > { %p4560_p5 = pnand %p5072_p2, %p4558_p13  ;;  %p4565_p4 = por %p4564_p12, %p4563_p9 }
  0x86   : > { %p4561_p7 = pneg %p4560_p5  ;;  %p4567_p3 = por %p4566_p1, %p4565_p4 }
  0x88   : > { %p4568_p11 = pnand %p4567_p3, %p4561_p7 }
  0x8a   : > { %4571 = shalt.err (!%p4568_p11)
}
  0x8b   : > { %s4572_s29 = scalar_lea.vmem %s5064_s5, 2048  ;;  %s4820_s17 = smov [#allocation5]  }
  0x8c   : > { %p4573_p13 = scmp.ne.s32.totalorder %s5064_s5, %s4572_s29  ;;  %s4577_s25 = sshll.u32 %s4820_s17, 4  ;;  %s4578_s25 = int_to_ptr.vmem [resolvable:$false] %s4577_s25 }
  0x8d   : > { %s4579_s24 = scalar_lea.vmem %s4578_s25, 4096  ;;  %p4580_p6 = scmp.lt.s32.totalorder %s5064_s5, %s4578_s25 }
  0x8e   : > { %p4575_p5 = pnand %p4573_p13, %p5072_p2  ;;  %p4581_p8 = scmp.lt.s32.totalorder %s4579_s24, %s4572_s29 }
  0x90   : > { %p4576_p10 = pneg %p4575_p5  ;;  %p4582_p9 = por %p4581_p8, %p4580_p6 }
  0x92   : > { %p4583_p12 = pnand %p4582_p9, %p4576_p10 }
  0x94   : > { %4586 = shalt.err (!%p4583_p12)
}
  0x95   : > { %s7750_s13 = smov 4   ;;  %s7751_s23 = smov 64  }
  0x96   : > { %3700 = dma.hbm_to_vmem [thread:$0]  (!%p5050_p0), %s5060_s20, 2048, %s5064_s5, %s5066_s7, %s7751_s23, %s7751_s23, %s7750_s13  }
  0x97   : > { %s4821_s3 = smov [#allocation10]   ;;  %s4822_s17 = smov [#allocation13]  }
  0x98   : > { %s290_s1 = sshll.u32 %s4821_s3, 4  ;;  %s314_s26 = sshll.u32 %s4822_s17, 4  ;;  %s291_s1 = int_to_ptr.vmem [resolvable:$true] %s290_s1  ;;  %s315_s26 = int_to_ptr.vmem [resolvable:$true] %s314_s26 }
  0x99   : > { %s4587_s24 = scalar_lea.hbm %s7542_s4, 16  ;;  %p7752_p3 = scmp.ne.s32.totalorder %s7737_s27, 0 }
  0x9a   : > { %p4588_p1 = scmp.ne.s32.totalorder %s7542_s4, %s4587_s24  ;;  %p4594_p10 = scmp.lt.u32.totalorder %s4587_s24, %s7542_s4 }
  0x9c   : > { %p4590_p6 = pnand %p4588_p1, %p7752_p3 }
  0x9e   : > { %p4591_p8 = pneg %p4590_p6 }
  0xa0   : > { %p4596_p11 = pnand %p4594_p10, %p4591_p8 }
  0xa2   : > { %4599 = shalt.err (!%p4596_p11)
}
  0xa3   : > { %s4600_s5 = scalar_lea.vmem %s291_s1, 16  ;;  %s4607_s20 = scalar_lea.vmem %s291_s1, 32 }
  0xa4   : > { %p4601_p7 = scmp.ne.s32.totalorder %s291_s1, %s4600_s5  ;;  %p4608_p5 = scmp.lt.s32.totalorder %s291_s1, %s291_s1 }
  0xa5   : > { %p4609_p9 = scmp.lt.s32.totalorder %s4607_s20, %s4600_s5 }
  0xa6   : > { %p4603_p4 = pnand %p4601_p7, %p7752_p3 }
  0xa7   : > { %p4610_p12 = por %p4609_p9, %p4608_p5 }
  0xa8   : > { %p4604_p13 = pneg %p4603_p4 }
  0xaa   : > { %p4611_p0 = pnand %p4610_p12, %p4604_p13 }
  0xac   : > { %4614 = shalt.err (!%p4611_p0)
}
  0xad   : > { %p7753_p1 = scmp.ne.s32.totalorder %s7735_s19, 0  ;;  %s4615_s3 = scalar_lea.hbm %s7544_s6, 16 }
  0xae   : > { %p4616_p6 = scmp.ne.s32.totalorder %s7544_s6, %s4615_s3  ;;  %p4622_p0 = scmp.lt.u32.totalorder %s4615_s3, %s7544_s6 }
  0xaf   : > { %3681 = dma.hbm_to_vmem [thread:$0]  (!%p7753_p1), %s7542_s4, 16, %s291_s1, [#allocation9]  }
  0xb0   : > { %p4618_p8 = pnand %p4616_p6, %p7752_p3 }
  0xb2   : > { %p4619_p10 = pneg %p4618_p8 }
  0xb4   : > { %p4624_p11 = pnand %p4622_p0, %p4619_p10 }
  0xb6   : > { %4627 = shalt.err (!%p4624_p11)
}
  0xb7   : > { %s4628_s5 = scalar_lea.vmem %s315_s26, 16  ;;  %s4635_s1 = scalar_lea.vmem %s315_s26, 32 }
  0xb8   : > { %p4629_p7 = scmp.ne.s32.totalorder %s315_s26, %s4628_s5  ;;  %p4636_p5 = scmp.lt.s32.totalorder %s315_s26, %s315_s26 }
  0xb9   : > { %p4637_p9 = scmp.lt.s32.totalorder %s4635_s1, %s4628_s5 }
  0xba   : > { %p4631_p4 = pnand %p4629_p7, %p7752_p3 }
  0xbb   : > { %p4638_p12 = por %p4637_p9, %p4636_p5 }
  0xbc   : > { %p4632_p13 = pneg %p4631_p4 }
  0xbe   : > { %p4639_p2 = pnand %p4638_p12, %p4632_p13 }
  0xc0   : > { %4642 = shalt.err (!%p4639_p2)
}
  0xc1   : > { %3687 = dma.hbm_to_vmem [thread:$0]  (!%p7753_p1), %s7544_s6, 16, %s315_s26, [#allocation12]  }
  0xc2   : > { %s4823_s22 = smov [#allocation16]   ;;  %s4643_s17 = scalar_lea.hbm %s7546_s8, 32 }
  0xc3   : > { %s336_s9 = sshll.u32 %s4823_s22, 4  ;;  %p4644_p6 = scmp.ne.s32.totalorder %s7546_s8, %s4643_s17  ;;  %s337_s9 = int_to_ptr.vmem [resolvable:$true] %s336_s9 }
  0xc4   : > { %p4650_p10 = scmp.lt.u32.totalorder %s4643_s17, %s7546_s8 }
  0xc5   : > { %p4646_p2 = pnand %p4644_p6, %p7752_p3 }
  0xc7   : > { %p4647_p8 = pneg %p4646_p2 }
  0xc9   : > { %p4652_p0 = pnand %p4650_p10, %p4647_p8 }
  0xcb   : > { %4655 = shalt.err (!%p4652_p0)
}
  0xcc   : > { %s4656_s26 = scalar_lea.vmem %s337_s9, 32  ;;  %p4664_p13 = scmp.lt.s32.totalorder %s337_s9, %s337_s9 }
  0xcd   : > { %p4657_p11 = scmp.ne.s32.totalorder %s337_s9, %s4656_s26  ;;  %p4665_p5 = scmp.lt.s32.totalorder %s4656_s26, %s4656_s26 }
  0xcf   : > { %p4659_p7 = pnand %p4657_p11, %p7752_p3  ;;  %p4666_p9 = por %p4665_p5, %p4664_p13 }
  0xd1   : > { %p4660_p4 = pneg %p4659_p7 }
  0xd3   : > { %p4667_p12 = pnand %p4666_p9, %p4660_p4 }
  0xd5   : > { %4670 = shalt.err (!%p4667_p12)
}
  0xd6   : > { %3693 = dma.hbm_to_vmem [thread:$0]  (!%p7753_p1), %s7546_s8, 32, %s337_s9, [#allocation15]  }
  0xd7   : > { %s7754_s30 = sshll.u32 %s4813_s12, 11  ;;  %s7755_s3 = sshll.u32 %s5042_s18, 7 }
  0xd8   : > { %s5158_s14 = scalar_lea.hbm %s7538_s0, %s7754_s30  ;;  %s351_s19 = scalar_lea.vmem [#allocation2], %s7755_s3 }
  0xd9   : > { %s358_s17 = sshll.u32 %s351_s19, 4  ;;  %s3317_s25 = sshll.u32 %s5042_s18, 8  ;;  %s5162_s17 = int_to_ptr.vmem [resolvable:$true] %s358_s17 }
  0xda   : > { %s348_s29 = scalar_lea.sflag [#allocation3], %s5042_s18  ;;  %s4671_s24 = scalar_lea.hbm %s5158_s14, 2048 }
  0xdb   : > { %p4672_p3 = scmp.ne.s32.totalorder %s5158_s14, %s4671_s24  ;;  %p7756_p1 = scmp.ne.s32.totalorder %s7749_s11, 0 }
  0xdc   : > { %s4676_s26 = scalar_lea.hbm %s7538_s0, 4096  ;;  %p4677_p8 = scmp.lt.u32.totalorder %s5158_s14, %s7538_s0 }
  0xdd   : > { %p4674_p6 = pnand %p4672_p3, %p7756_p1  ;;  %p4678_p10 = scmp.lt.u32.totalorder %s4676_s26, %s4671_s24 }
  0xde   : > { %p4680_p11 = scmp.lt.u32.totalorder %s4671_s24, %s5158_s14 }
  0xdf   : > { %p4675_p2 = pneg %p4674_p6  ;;  %p4679_p0 = por %p4678_p10, %p4677_p8 }
  0xe1   : > { %p4681_p7 = por %p4680_p11, %p4679_p0 }
  0xe3   : > { %p4682_p4 = pnand %p4681_p7, %p4675_p2 }
  0xe5   : > { %4685 = shalt.err (!%p4682_p4)
}
  0xe6   : > { %s4686_s30 = scalar_lea.vmem %s5162_s17, 2048  ;;  %s4824_s27 = smov [#allocation2]  }
  0xe7   : > { %p4687_p13 = scmp.ne.s32.totalorder %s5162_s17, %s4686_s30  ;;  %s4691_s22 = sshll.u32 %s4824_s27, 4  ;;  %s4692_s22 = int_to_ptr.vmem [resolvable:$false] %s4691_s22 }
  0xe8   : > { %s4693_s3 = scalar_lea.vmem %s4692_s22, 4096  ;;  %p4694_p12 = scmp.lt.s32.totalorder %s5162_s17, %s4692_s22 }
  0xe9   : > { %p4689_p5 = pnand %p4687_p13, %p7756_p1  ;;  %p4695_p3 = scmp.lt.s32.totalorder %s4693_s3, %s4686_s30 }
  0xeb   : > { %p4690_p9 = pneg %p4689_p5  ;;  %p4696_p6 = por %p4695_p3, %p4694_p12 }
  0xed   : > { %p4697_p8 = pnand %p4696_p6, %p4690_p9 }
  0xef   : > { %4700 = shalt.err (!%p4697_p8)
}
  0xf0   : > { %p7757_p2 = scmp.ne.s32.totalorder %s7747_s28, 0  ;;  %s3376_s19 = sshll.u32 %s4813_s12, 12 }
  0xf1   : > { %s5196_s5 = scalar_lea.hbm %s7540_s2, %s3376_s19  ;;  %s393_s26 = scalar_lea.vmem [#allocation7], %s3317_s25 }
  0xf2   : > { %3697 = dma.hbm_to_vmem [thread:$0]  (!%p7757_p2), %s5158_s14, 2048, %s5162_s17, %s348_s29, %s7751_s23, %s7751_s23, %s7750_s13  }
  0xf3   : > { %s400_s1 = sshll.u32 %s393_s26, 4  ;;  %s4701_s20 = scalar_lea.hbm %s5196_s5, 4096  ;;  %s5200_s1 = int_to_ptr.vmem [resolvable:$true] %s400_s1 }
  0xf4   : > { %p4702_p10 = scmp.ne.s32.totalorder %s5196_s5, %s4701_s20  ;;  %s4706_s14 = scalar_lea.hbm %s7540_s2, 8192 }
  0xf5   : > { %p4707_p7 = scmp.lt.u32.totalorder %s5196_s5, %s7540_s2  ;;  %p4708_p4 = scmp.lt.u32.totalorder %s4706_s14, %s4701_s20 }
  0xf6   : > { %p4704_p0 = pnand %p4702_p10, %p7756_p1  ;;  %p4710_p5 = scmp.lt.u32.totalorder %s4701_s20, %s5196_s5 }
  0xf7   : > { %p4709_p13 = por %p4708_p4, %p4707_p7 }
  0xf8   : > { %p4705_p11 = pneg %p4704_p0 }
  0xf9   : > { %p4711_p9 = por %p4710_p5, %p4709_p13 }
  0xfb   : > { %p4712_p12 = pnand %p4711_p9, %p4705_p11 }
  0xfd   : > { %4715 = shalt.err (!%p4712_p12)
}
  0xfe   : > { %s4716_s18 = scalar_lea.vmem %s5200_s1, 4096  ;;  %s4825_s25 = smov [#allocation7]  }
  0xff   : > { %p4717_p3 = scmp.ne.s32.totalorder %s5200_s1, %s4716_s18  ;;  %s4721_s30 = sshll.u32 %s4825_s25, 4  ;;  %s4722_s30 = int_to_ptr.vmem [resolvable:$false] %s4721_s30 }
 0x100   : > { %s4723_s27 = scalar_lea.vmem %s4722_s30, 8192  ;;  %p4724_p10 = scmp.lt.s32.totalorder %s5200_s1, %s4722_s30 }
 0x101   : > { %p4719_p6 = pnand %p4717_p3, %p7756_p1  ;;  %p4725_p0 = scmp.lt.s32.totalorder %s4723_s27, %s4716_s18 }
 0x103   : > { %p4720_p8 = pneg %p4719_p6  ;;  %p4726_p7 = por %p4725_p0, %p4724_p10 }
 0x105   : > { %p4727_p4 = pnand %p4726_p7, %p4720_p8 }
 0x107   : > { %4730 = shalt.err (!%p4727_p4)
}
 0x108   : > { %s4826_s22 = smov 128   ;;  %s4827_s3 = smov 8  }
 0x109   : > { %3703 = dma.hbm_to_vmem [thread:$0]  (!%p7757_p2), %s5196_s5, 4096, %s5200_s1, %s5066_s7, %s4826_s22, %s4826_s22, %s4827_s3  }
 0x10a   : > { %p7758_p1 = scmp.ne.s32.totalorder %s7734_s16, 0 }
 0x10c   : > { %412 = sbr.rel (%p7758_p1) target bundleno = 1072 (0x430), region = 56 }
 0x113   : > { %s5227_s11 = sand.u32 1, %s4805_s10   ;;  %p7759_p11 = scmp.ne.s32.totalorder %s7742_s21, 0 }
 0x114   : > { %s3321_s19 = sshll.u32 %s5227_s11, 7  ;;  %s415_s24 = scalar_lea.sflag [#allocation3], %s5227_s11 }
 0x115   : > { %s5231_s9 = scalar_lea.vmem [#allocation2], %s3321_s19 }
 0x116   : > { %4776 = dma.done.wait (%p7759_p11), %s415_s24, 2048  }
 0x117   : > { %4778 = vsyncadd (%p7759_p11), %s415_s24, 4294965248  ;;  %s423_s7 = sand.u32 1, %s4910_s15   ;;  %s5238_s28 = scalar_lea.vmem [#allocation5], %s3321_s19 }
 0x118   : > { %s424_s16 = scalar_lea.sflag [#allocation6], %s423_s7 }
 0x119   : > { %4780 = dma.done.wait (%p7759_p11), %s424_s16, 6144  }
 0x11a   : > { %4782 = vsyncadd (%p7759_p11), %s424_s16, 4294961152  ;;  %s3323_s5 = sshll.u32 %s5227_s11, 8  ;;  %p7760_p2 = scmp.eq.s32.totalorder %s4910_s15, 0 }
 0x11b   : > { %s5247_s26 = scalar_lea.vmem [#allocation7], %s3323_s5 }
 0x11c   : > { %4784 = dma.done.wait (%p7760_p2), [#allocation9], 32   ;;  %p7761_p13 = pmov %p7760_p2 }
 0x11d   : > { %p7762_p5 = pmov %p7760_p2 }
 0x11e   : > { %4786 = vsyncadd (%p7761_p13), [#allocation9], 4294967264 }
 0x11f   : > { %4788 = dma.done.wait (%p7762_p5), [#allocation12], 208   ;;  %p7763_p9 = pmov %p7760_p2 }
 0x120   : > { %p7764_p12 = pmov %p7760_p2 }
 0x121   : > { %4790 = vsyncadd (%p7763_p9), [#allocation12], 4294967088 }
 0x122   : > { %4792 = dma.done.wait (%p7764_p12), [#allocation15], 48   ;;  %p7765_p3 = pmov %p7760_p2 }
 0x123   : > { %v5262_v0 = vld [vmem:[%s5231_s9 + $0x8] sm:$0xff]   ;;  %v5265_v1 = vld [vmem:[%s5231_s9 + $0x10] sm:$0xff]   ;;  %v5267_v2 = vld [vmem:[#allocation8] ss:$0 sm:$0xff]  ;;  %vm715_vm0 = vcmask 1040384   ;;  %v7590_v3 = vmov 0.0  }
 0x124   : > { %4794 = vsyncadd (%p7765_p3), [#allocation15], 4294967248  ;;  %7766 = vst [vmem:[#allocation30_spill] sm:$0xff] %v5262_v0  ;;  %v5270_v4 = vrot.slane %v7590_v3, 1  ;;  %v7587_v5 = vunpack.c.l.bf16 %v5262_v0  ;;  %v7586_v6 = vunpack.c.h.bf16 %v5262_v0  ;;  %v7585_v7 = vunpack.c.l.bf16 %v5265_v1  ;;  %v5277_v9 = vld [vmem:[%s5231_s9] sm:$0xff]   ;;  %v5280_v10 = vld [vmem:[%s5231_s9 + $0x18] sm:$0xff]  }
 0x125   : > { %7767 = vst [vmem:[#allocation31_spill] sm:$0xff] %v5265_v1  ;;  %7768 = vst [vmem:[#allocation32_spill] sm:$0xff] %v5267_v2  ;;  %v7584_v8 = vunpack.c.h.bf16 %v5265_v1  ;;  %v5282_v11 = vld [vmem:[#allocation10] ss:$0 sm:$0xff]  ;;  %v7589_v12 = vunpack.c.l.bf16 %v5277_v9  ;;  %v7588_v13 = vunpack.c.h.bf16 %v5277_v9  ;;  %v7583_v14 = vunpack.c.l.bf16 %v5280_v10  ;;  %s4829_s21 = smov 2   ;;  %s4830_s1 = smov 4  }
 0x126   : > { %7769 = vst [vmem:[#allocation33_spill] sm:$0xff] %v5270_v4  ;;  %7770 = vst [vmem:[#allocation34_spill] sm:$0xff] %v5277_v9  ;;  %v7582_v15 = vunpack.c.h.bf16 %v5280_v10  ;;  %v579_v16 = vmul.f32 %v7587_v5, %v5267_v2  ;;  %v580_v17 = vmul.f32 %v7586_v6, %v5267_v2  ;;  %v581_v18 = vmul.f32 %v7585_v7, %v5267_v2  ;;  %s4831_s20 = smov 6   ;;  %s4832_s13 = smov 8  }
 0x127   : > { %7771 = vst [vmem:[#allocation35_spill] sm:$0xff] %v5280_v10  ;;  %7772 = vst [vmem:[#allocation36_spill] sm:$0xff] %v5282_v11  ;;  %v582_v19 = vmul.f32 %v7584_v8, %v5267_v2  ;;  %vm874_vm1 = vcmask 1046528   ;;  %v577_v20 = vmul.f32 %v7589_v12, %v5267_v2  ;;  %v578_v21 = vmul.f32 %v7588_v13, %v5267_v2  ;;  %v5502_v8 = vld [vmem:[%s5231_s9 + $0x40] sm:$0xff]   ;;  %s4833_s23 = smov 10   ;;  %s4834_s14 = smov 12  }
 0x128   : > { %v583_v22 = vmul.f32 %v7583_v14, %v5267_v2  ;;  %v584_v23 = vmul.f32 %v7582_v15, %v5267_v2  ;;  %v618_v24 = vadd.f32 %v5282_v11, %v579_v16  ;;  %v619_v25 = vadd.f32 %v5282_v11, %v580_v17  ;;  %7797 = vst [vmem:[#allocation61_spill] sm:$0xff] %v5502_v8  ;;  %s4835_s17 = smov 14   ;;  %s4836_s29 = smov 16  }
 0x129   : > { %v620_v26 = vadd.f32 %v5282_v11, %v581_v18  ;;  %v621_v27 = vadd.f32 %v5282_v11, %v582_v19  ;;  %v616_v28 = vadd.f32 %v5282_v11, %v577_v20  ;;  %v617_v29 = vadd.f32 %v5282_v11, %v578_v21  ;;  %v5366_v20 = vld [vmem:[%s5231_s9 + $0x20] sm:$0xff]   ;;  %s7284_s18 = scalar_lea.vmem [#allocation17], %s3323_s5  ;;  %s3377_s25 = sshll.u32 %s4910_s15, 12 }
 0x12a   : > { %v622_v30 = vadd.f32 %v5282_v11, %v583_v22  ;;  %v623_v31 = vadd.f32 %v5282_v11, %v584_v23  ;;  %v650_v32 = vmax.f32 %v618_v24, 0.0  ;;  %v651_v33 = vmax.f32 %v619_v25, 0.0  ;;  %7781 = vst [vmem:[#allocation45_spill] sm:$0xff] %v5366_v20  ;;  %v5377_v25 = vld [vmem:[%s5231_s9 + $0x28] sm:$0xff]   ;;  %s8003_s30 = sld [smem:[#allocation28_spill]]  ;;  %s3129_s27 = sshll.u32 %s7284_s18, 4  ;;  %s7491_s27 = int_to_ptr.vmem [resolvable:$true] %s3129_s27 }
 0x12b   : > { %v652_v34 = vmax.f32 %v620_v26, 0.0  ;;  %v653_v35 = vmax.f32 %v621_v27, 0.0  ;;  %v648_v36 = vmax.f32 %v616_v28, 0.0  ;;  %v649_v37 = vmax.f32 %v617_v29, 0.0  ;;  %7783 = vst [vmem:[#allocation47_spill] sm:$0xff] %v5377_v25  ;;  %s8004_s19 = sld [smem:[#allocation104_spill]] }
 0x12c   : > { %v654_v38 = vmax.f32 %v622_v30, 0.0  ;;  %v655_v39 = vmax.f32 %v623_v31, 0.0  ;;  %v719_v40 = vrot.slane %v650_v32, 7  ;;  %v720_v41 = vrot.slane %v651_v33, 7  ;;  %v5540_v30 = vld [vmem:[%s5231_s9 + $0x50] sm:$0xff]   ;;  %s3116_s15 = scalar_lea.sflag [#allocation4], %s5227_s11 }
 0x12d   : > { %v722_v42 = vrot.slane %v652_v34, 7  ;;  %v723_v43 = vrot.slane %v653_v35, 7  ;;  %v716_v44 = vrot.slane %v648_v36, 7  ;;  %v717_v45 = vrot.slane %v649_v37, 7  ;;  %7805 = vst [vmem:[#allocation69_spill] sm:$0xff] %v5540_v30  ;;  %s4837_s7 = smov [#allocation17]  }
 0x12e   : > { %v725_v46 = vrot.slane %v654_v38, 7  ;;  %v726_v47 = vrot.slane %v655_v39, 7  ;;  %v5321_v48 = vsel %vm715_vm0, %v719_v40, %v720_v41  ;;  %v5330_v51 = vsel %vm715_vm0, %v720_v41, 0.0  ;;  %v5404_v38 = vld [vmem:[%s5231_s9 + $0x30] sm:$0xff]   ;;  %s4735_s16 = sshll.u32 %s4837_s7, 4  ;;  %s4736_s16 = int_to_ptr.vmem [resolvable:$false] %s4735_s16 }
 0x12f   : > { %7773 = vst [vmem:[#allocation37_spill] sm:$0xff] %v5321_v48  ;;  %v5324_v49 = vsel %vm715_vm0, %v722_v42, %v723_v43  ;;  %v5327_v50 = vsel %vm715_vm0, 0.0, %v722_v42  ;;  %v883_v52 = vrot.slane %v5321_v48, 1  ;;  %v885_v53 = vrot.slane %v5330_v51, 1  ;;  %7788 = vst [vmem:[#allocation52_spill] sm:$0xff] %v5404_v38  ;;  %p4738_p7 = scmp.lt.s32.totalorder %s7491_s27, %s4736_s16 }
 0x130   : > { %7774 = vst [vmem:[#allocation38_spill] sm:$0xff] %v5324_v49  ;;  %v887_v54 = vrot.slane %v5327_v50, 1  ;;  %v888_v55 = vrot.slane %v5324_v49, 1  ;;  %v5337_v56 = vsel %vm715_vm0, %v716_v44, %v717_v45  ;;  %v5340_v57 = vsel %vm715_vm0, 0.0, %v716_v44  ;;  %p8005_p8 = scmp.ne.s32.totalorder %s8003_s30, 0 }
 0x131   : > { %7775 = vst [vmem:[#allocation39_spill] sm:$0xff] %v5337_v56  ;;  %v5343_v58 = vsel %vm715_vm0, %v717_v45, 0.0  ;;  %v5346_v59 = vrot.slane %v7590_v3, 2  ;;  %v5349_v60 = vsel %vm874_vm1, %v883_v52, %v885_v53  ;;  %v877_v62 = vrot.slane %v5340_v57, 1  ;;  %s7486_s24 = scalar_lea.hbm %s8004_s19, %s3377_s25 }
 0x132   : > { %7777 = vst [vmem:[#allocation41_spill] sm:$0xff] %v5349_v60  ;;  %v5352_v61 = vsel %vm874_vm1, %v887_v54, %v888_v55  ;;  %v878_v63 = vrot.slane %v5337_v56, 1  ;;  %v880_v17 = vrot.slane %v5343_v58, 1  ;;  %v5360_v18 = vsel %vm715_vm0, %v725_v46, %v726_v47 }
 0x133   : > { %7776 = vst [vmem:[#allocation40_spill] sm:$0xff] %v5346_v59  ;;  %7778 = vst [vmem:[#allocation42_spill] sm:$0xff] %v5352_v61  ;;  %v3784_v16 = vpack.i.bf16 %v5352_v61, %v5349_v60  ;;  %v5363_v19 = vsel %vm715_vm0, 0.0, %v725_v46  ;;  %v5372_v22 = vsel %vm715_vm0, %v723_v43, 0.0  ;;  %v893_v24 = vrot.slane %v5360_v18, 1  ;;  %v5418_v43 = vld [vmem:[%s5231_s9 + $0x38] sm:$0xff]  }
 0x134   : > { %7779 = vst [vmem:[#allocation43_spill] sm:$0xff] %v5360_v18  ;;  %7780 = vst [vmem:[#allocation44_spill] sm:$0xff] %v5363_v19  ;;  %v5369_v21 = vsel %vm874_vm1, %v877_v62, %v878_v63  ;;  %v892_v23 = vrot.slane %v5363_v19, 1  ;;  %v5381_v26 = vsel %vm874_vm1, %v878_v63, %v880_v17  ;;  %v890_v28 = vrot.slane %v5372_v22, 1  ;;  %v5676_v61 = vld [vmem:[%s5231_s9 + $0x70] sm:$0xff]  }
 0x135   : > { %7782 = vst [vmem:[#allocation46_spill] sm:$0xff] %v5369_v21  ;;  %3785 = vrot.lane.b32.xlu1 %v3784_v16, %s4829_s21  ;;  %7784 = vst [vmem:[#allocation48_spill] sm:$0xff] %v5381_v26  ;;  %v3774_v27 = vpack.i.bf16 %v5369_v21, %v5270_v4  ;;  %v5387_v29 = vsel %vm715_vm0, 0.0, %v719_v40  ;;  %v7581_v33 = vunpack.c.l.bf16 %v5366_v20  ;;  %v7580_v35 = vunpack.c.h.bf16 %v5366_v20 }
 0x136   : > { %7785 = vst [vmem:[#allocation49_spill] sm:$0xff] %v5387_v29  ;;  %v5392_v31 = vsel %vm874_vm1, %v892_v23, %v893_v24  ;;  %v882_v32 = vrot.slane %v5387_v29, 1  ;;  %v5398_v34 = vsel %vm874_vm1, %v888_v55, %v890_v28  ;;  %v7579_v36 = vunpack.c.l.bf16 %v5377_v25  ;;  %7790 = vst [vmem:[#allocation54_spill] sm:$0xff] %v5418_v43 }
 0x137   : > { %7786 = vst [vmem:[#allocation50_spill] sm:$0xff] %v5392_v31  ;;  %3775 = vrot.lane.b32.xlu0 %v3774_v27, %s4829_s21  ;;  %7787 = vst [vmem:[#allocation51_spill] sm:$0xff] %v5398_v34  ;;  %v7576_v37 = vunpack.c.h.bf16 %v5377_v25  ;;  %v3789_v39 = vpack.i.bf16 %v5392_v31, %v5398_v34  ;;  %v585_v41 = vmul.f32 %v7581_v33, %v5267_v2  ;;  %v5415_v42 = vsel %vm715_vm0, %v726_v47, 0.0 }
 0x138   : > { %v5409_v40 = vsel %vm874_vm1, %v882_v32, %v883_v52  ;;  %v586_v45 = vmul.f32 %v7580_v35, %v5267_v2  ;;  %v587_v46 = vmul.f32 %v7579_v36, %v5267_v2  ;;  %v895_v53 = vrot.slane %v5415_v42, 1  ;;  %7821 = vst [vmem:[#allocation84_spill] sm:$0xff] %v5676_v61 }
 0x139   : > { %7789 = vst [vmem:[#allocation53_spill] sm:$0xff] %v5409_v40  ;;  %v3779_v44 = vpack.i.bf16 %v5409_v40, %v5381_v26  ;;  %v588_v52 = vmul.f32 %v7576_v37, %v5267_v2  ;;  %3790 = vrot.lane.b32.xlu1 %v3789_v39, %s4829_s21  ;;  %v624_v47 = vadd.f32 %v5282_v11, %v585_v41  ;;  %v7574_v54 = vunpack.c.l.bf16 %v5404_v38 }
 0x13a   : > { %v7575_v55 = vunpack.c.h.bf16 %v5404_v38  ;;  %v625_v62 = vadd.f32 %v5282_v11, %v586_v45  ;;  %v626_v63 = vadd.f32 %v5282_v11, %v587_v46  ;;  %v7577_v17 = vunpack.c.l.bf16 %v5418_v43 }
 0x13b   : > { %3780 = vrot.lane.b32.xlu0 %v3779_v44, %s4829_s21  ;;  %v627_v16 = vadd.f32 %v5282_v11, %v588_v52  ;;  %v656_v23 = vmax.f32 %v624_v47, 0.0  ;;  %v5442_v27 = vsel %vm874_vm1, %v893_v24, %v895_v53  ;;  %v7578_v28 = vunpack.c.h.bf16 %v5418_v43 }
 0x13c   : > { %7791 = vst [vmem:[#allocation55_spill] sm:$0xff] %v5442_v27  ;;  %v589_v32 = vmul.f32 %v7574_v54, %v5267_v2  ;;  %v657_v39 = vmax.f32 %v625_v62, 0.0  ;;  %v658_v41 = vmax.f32 %v626_v63, 0.0  ;;  %v590_v45 = vmul.f32 %v7575_v55, %v5267_v2 }
 0x13d   : > { %v659_v44 = vmax.f32 %v627_v16, 0.0  ;;  %v728_v46 = vrot.slane %v656_v23, 7  ;;  %v591_v52 = vmul.f32 %v7577_v17, %v5267_v2  ;;  %v592_v24 = vmul.f32 %v7578_v28, %v5267_v2 }
 0x13e   : > { %v628_v47 = vadd.f32 %v5282_v11, %v589_v32  ;;  %v729_v53 = vrot.slane %v657_v39, 7  ;;  %v731_v54 = vrot.slane %v658_v41, 7  ;;  %v629_v63 = vadd.f32 %v5282_v11, %v590_v45 }
 0x13f   : > { %v732_v62 = vrot.slane %v659_v44, 7  ;;  %v5460_v16 = vsel %vm715_vm0, 0.0, %v728_v46  ;;  %v630_v23 = vadd.f32 %v5282_v11, %v591_v52  ;;  %v631_v55 = vadd.f32 %v5282_v11, %v592_v24 }
 0x140   : > { %v660_v37 = vmax.f32 %v628_v47, 0.0  ;;  %v5465_v17 = vsel %vm715_vm0, %v728_v46, %v729_v53  ;;  %v5471_v32 = vsel %vm715_vm0, 0.0, %v731_v54  ;;  %v5474_v39 = vsel %vm715_vm0, %v729_v53, 0.0 }
 0x141   : > { %v5468_v28 = vsel %vm715_vm0, %v731_v54, %v732_v62  ;;  %v898_v41 = vrot.slane %v5465_v17, 1  ;;  %v900_v44 = vrot.slane %v5474_v39, 1  ;;  %v902_v45 = vrot.slane %v5471_v32, 1 }
 0x142   : > { %7792 = vst [vmem:[#allocation56_spill] sm:$0xff] %v5468_v28  ;;  %v903_v52 = vrot.slane %v5468_v28, 1  ;;  %v897_v46 = vrot.slane %v5460_v16, 1  ;;  %v661_v24 = vmax.f32 %v629_v63, 0.0  ;;  %v662_v47 = vmax.f32 %v630_v23, 0.0 }
 0x143   : > { %v663_v36 = vmax.f32 %v631_v55, 0.0  ;;  %v5482_v54 = vsel %vm874_vm1, %v898_v41, %v900_v44  ;;  %v734_v35 = vrot.slane %v660_v37, 7  ;;  %v5488_v33 = vsel %vm715_vm0, %v732_v62, 0.0 }
 0x144   : > { %7793 = vst [vmem:[#allocation57_spill] sm:$0xff] %v5482_v54  ;;  %v5485_v53 = vsel %vm874_vm1, %v902_v45, %v903_v52  ;;  %v5493_v14 = vsel %vm874_vm1, %v897_v46, %v898_v41  ;;  %v735_v63 = vrot.slane %v661_v24, 7  ;;  %v737_v23 = vrot.slane %v662_v47, 7  ;;  %v5516_v24 = vld [vmem:[%s5231_s9 + $0x48] sm:$0xff]  }
 0x145   : > { %7794 = vst [vmem:[#allocation58_spill] sm:$0xff] %v5485_v53  ;;  %v3799_v15 = vpack.i.bf16 %v5485_v53, %v5482_v54  ;;  %7795 = vst [vmem:[#allocation59_spill] sm:$0xff] %v5493_v14  ;;  %v3794_v55 = vpack.i.bf16 %v5493_v14, %v5442_v27  ;;  %v738_v44 = vrot.slane %v663_v36, 7  ;;  %v5498_v45 = vsel %vm715_vm0, 0.0, %v734_v35 }
 0x146   : > { %7796 = vst [vmem:[#allocation60_spill] sm:$0xff] %v5498_v45  ;;  %v905_v37 = vrot.slane %v5488_v33, 1  ;;  %v5506_v62 = vsel %vm715_vm0, %v734_v35, %v735_v63  ;;  %v5509_v41 = vsel %vm715_vm0, 0.0, %v737_v23  ;;  %v5512_v46 = vsel %vm715_vm0, %v735_v63, 0.0  ;;  %7800 = vst [vmem:[#allocation64_spill] sm:$0xff] %v5516_v24 }
 0x147   : > { %3800 = vrot.lane.b32.xlu1 %v3799_v15, %s4829_s21  ;;  %7798 = vst [vmem:[#allocation62_spill] sm:$0xff] %v5506_v62  ;;  %7799 = vst [vmem:[#allocation63_spill] sm:$0xff] %v5509_v41  ;;  %v907_v36 = vrot.slane %v5498_v45, 1  ;;  %3795 = vrot.lane.b32.xlu0 %v3794_v55, %s4829_s21  ;;  %v5520_v47 = vsel %vm715_vm0, %v737_v23, %v738_v44  ;;  %v908_v15 = vrot.slane %v5506_v62, 1  ;;  %v910_v35 = vrot.slane %v5512_v46, 1 }
 0x148   : > { %7801 = vst [vmem:[#allocation65_spill] sm:$0xff] %v5520_v47  ;;  %v912_v7 = vrot.slane %v5509_v41, 1  ;;  %v913_v63 = vrot.slane %v5520_v47, 1  ;;  %v5527_v6 = vsel %vm874_vm1, %v903_v52, %v905_v37  ;;  %v7598_v5 = vunpack.c.l.bf16 %v5502_v8 }
 0x149   : > { %7802 = vst [vmem:[#allocation66_spill] sm:$0xff] %v5527_v6  ;;  %v7597_v13 = vunpack.c.h.bf16 %v5502_v8  ;;  %v5532_v55 = vsel %vm874_vm1, %v908_v15, %v910_v35  ;;  %v5535_v23 = vsel %vm874_vm1, %v907_v36, %v908_v15  ;;  %v7603_v12 = vunpack.c.l.bf16 %v5516_v24  ;;  %v5554_v15 = vld [vmem:[%s5231_s9 + $0x58] sm:$0xff]  }
 0x14a   : > { %7803 = vst [vmem:[#allocation67_spill] sm:$0xff] %v5532_v55  ;;  %7804 = vst [vmem:[#allocation68_spill] sm:$0xff] %v5535_v23  ;;  %v7606_v3 = vunpack.c.h.bf16 %v5516_v24  ;;  %v5543_v43 = vsel %vm874_vm1, %v912_v7, %v913_v63  ;;  %v3804_v52 = vpack.i.bf16 %v5535_v23, %v5527_v6  ;;  %v593_v37 = vmul.f32 %v7598_v5, %v5267_v2 }
 0x14b   : > { %7806 = vst [vmem:[#allocation70_spill] sm:$0xff] %v5543_v43  ;;  %v594_v36 = vmul.f32 %v7597_v13, %v5267_v2  ;;  %7807 = vst [vmem:[#allocation71_spill] sm:$0xff] %v5554_v15  ;;  %v3809_v35 = vpack.i.bf16 %v5543_v43, %v5532_v55  ;;  %v595_v7 = vmul.f32 %v7603_v12, %v5267_v2  ;;  %v5565_v25 = vsel %vm715_vm0, %v738_v44, 0.0 }
 0x14c   : > { %v596_v38 = vmul.f32 %v7606_v3, %v5267_v2  ;;  %3805 = vrot.lane.b32.xlu0 %v3804_v52, %s4829_s21  ;;  %v632_v13 = vadd.f32 %v5282_v11, %v593_v37  ;;  %v915_v8 = vrot.slane %v5565_v25, 1  ;;  %v7614_v20 = vunpack.c.l.bf16 %v5540_v30 }
 0x14d   : > { %v633_v5 = vadd.f32 %v5282_v11, %v594_v36  ;;  %3810 = vrot.lane.b32.xlu1 %v3809_v35, %s4829_s21  ;;  %v634_v12 = vadd.f32 %v5282_v11, %v595_v7  ;;  %v7617_v3 = vunpack.c.h.bf16 %v5540_v30  ;;  %v7615_v44 = vunpack.c.l.bf16 %v5554_v15 }
 0x14e   : > { %v635_v24 = vadd.f32 %v5282_v11, %v596_v38  ;;  %v664_v10 = vmax.f32 %v632_v13, 0.0  ;;  %v5578_v37 = vsel %vm874_vm1, %v913_v63, %v915_v8  ;;  %v7616_v36 = vunpack.c.h.bf16 %v5554_v15 }
 0x14f   : > { %v665_v52 = vmax.f32 %v633_v5, 0.0  ;;  %7808 = vst [vmem:[#allocation72_spill] sm:$0xff] %v5578_v37  ;;  %v666_v1 = vmax.f32 %v634_v12, 0.0  ;;  %v597_v35 = vmul.f32 %v7614_v20, %v5267_v2  ;;  %v598_v38 = vmul.f32 %v7617_v3, %v5267_v2 }
 0x150   : > { %v667_v0 = vmax.f32 %v635_v24, 0.0  ;;  %v740_v7 = vrot.slane %v664_v10, 7  ;;  %v599_v5 = vmul.f32 %v7615_v44, %v5267_v2  ;;  %v600_v8 = vmul.f32 %v7616_v36, %v5267_v2 }
 0x151   : > { %v741_v4 = vrot.slane %v665_v52, 7  ;;  %v743_v12 = vrot.slane %v666_v1, 7  ;;  %v636_v24 = vadd.f32 %v5282_v11, %v597_v35  ;;  %v637_v63 = vadd.f32 %v5282_v11, %v598_v38 }
 0x152   : > { %v744_v13 = vrot.slane %v667_v0, 7  ;;  %v5602_v52 = vsel %vm715_vm0, 0.0, %v740_v7  ;;  %v638_v44 = vadd.f32 %v5282_v11, %v599_v5  ;;  %v7647_v27 = vunpack.c.l.bf16 %v5676_v61 }
 0x153   : > { %v5596_v20 = vsel %vm715_vm0, %v740_v7, %v741_v4  ;;  %v5599_v10 = vsel %vm715_vm0, %v741_v4, 0.0  ;;  %7810 = vst [vmem:[#allocation74_spill] sm:$0xff] %v5602_v52  ;;  %v5609_v0 = vsel %vm715_vm0, 0.0, %v743_v12  ;;  %v917_v3 = vrot.slane %v5602_v52, 1 }
 0x154   : > { %7809 = vst [vmem:[#allocation73_spill] sm:$0xff] %v5596_v20  ;;  %v5606_v36 = vsel %vm715_vm0, %v743_v12, %v744_v13  ;;  %7812 = vst [vmem:[#allocation76_spill] sm:$0xff] %v5609_v0  ;;  %v918_v1 = vrot.slane %v5596_v20, 1  ;;  %v920_v35 = vrot.slane %v5599_v10, 1  ;;  %v922_v38 = vrot.slane %v5609_v0, 1  ;;  %v5621_v12 = vld [vmem:[%s5231_s9 + $0x60] sm:$0xff]  }
 0x155   : > { %7811 = vst [vmem:[#allocation75_spill] sm:$0xff] %v5606_v36  ;;  %v923_v4 = vrot.slane %v5606_v36, 1  ;;  %v639_v7 = vadd.f32 %v5282_v11, %v600_v8  ;;  %v668_v15 = vmax.f32 %v636_v24, 0.0  ;;  %v669_v30 = vmax.f32 %v637_v63, 0.0  ;;  %7813 = vst [vmem:[#allocation77_spill] sm:$0xff] %v5621_v12 }
 0x156   : > { %v5618_v5 = vsel %vm874_vm1, %v918_v1, %v920_v35  ;;  %v670_v9 = vmax.f32 %v638_v44, 0.0  ;;  %v5627_v23 = vsel %vm874_vm1, %v917_v3, %v918_v1  ;;  %v5630_v54 = vsel %vm715_vm0, %v744_v13, 0.0 }
 0x157   : > { %v5624_v55 = vsel %vm874_vm1, %v922_v38, %v923_v4  ;;  %v671_v43 = vmax.f32 %v639_v7, 0.0  ;;  %v3814_v24 = vpack.i.bf16 %v5627_v23, %v5578_v37  ;;  %v746_v44 = vrot.slane %v668_v15, 7 }
 0x158   : > { %v3819_v8 = vpack.i.bf16 %v5624_v55, %v5618_v5  ;;  %v747_v63 = vrot.slane %v669_v30, 7  ;;  %v749_v35 = vrot.slane %v670_v9, 7  ;;  %v925_v38 = vrot.slane %v5630_v54, 1  ;;  %v5651_v30 = vld [vmem:[%s5231_s9 + $0x68] sm:$0xff]  }
 0x159   : > { %v750_v14 = vrot.slane %v671_v43, 7  ;;  %3815 = vrot.lane.b32.xlu0 %v3814_v24, %s4829_s21  ;;  %v5647_v15 = vsel %vm715_vm0, 0.0, %v746_v44  ;;  %7816 = vst [vmem:[#allocation80_spill] sm:$0xff] %v5651_v30  ;;  %v7820_v53 = vunpack.c.l.bf16 %v5621_v12  ;;  %vm1045_vm2 = vcmask 1045504  }
 0x15a   : > { %3820 = vrot.lane.b32.xlu1 %v3819_v8, %s4829_s21  ;;  %v5641_v13 = vsel %vm715_vm0, %v746_v44, %v747_v63  ;;  %v5644_v1 = vsel %vm715_vm0, %v747_v63, 0.0  ;;  %7815 = vst [vmem:[#allocation79_spill] sm:$0xff] %v5647_v15  ;;  %v5657_v7 = vsel %vm715_vm0, 0.0, %v749_v35  ;;  %v5664_v44 = vsel %vm874_vm1, %v923_v4, %v925_v38 }
 0x15b   : > { %7814 = vst [vmem:[#allocation78_spill] sm:$0xff] %v5641_v13  ;;  %v5654_v43 = vsel %vm715_vm0, %v749_v35, %v750_v14  ;;  %7818 = vst [vmem:[#allocation82_spill] sm:$0xff] %v5657_v7  ;;  %v928_v8 = vrot.slane %v5641_v13, 1  ;;  %v930_v24 = vrot.slane %v5644_v1, 1  ;;  %v932_v63 = vrot.slane %v5657_v7, 1 }
 0x15c   : > { %7817 = vst [vmem:[#allocation81_spill] sm:$0xff] %v5654_v43  ;;  %v933_v3 = vrot.slane %v5654_v43, 1  ;;  %v927_v9 = vrot.slane %v5647_v15, 1  ;;  %v601_v34 = vmul.f32 %v7820_v53, %v5267_v2  ;;  %v7824_v38 = vunpack.c.h.bf16 %v5621_v12 }
 0x15d   : > { %v5668_v37 = vsel %vm874_vm1, %v928_v8, %v930_v24  ;;  %v5688_v6 = vsel %vm715_vm0, %v750_v14, 0.0  ;;  %v1049_v60 = vrot.slane %v5337_v56, 2  ;;  %vm1795_vm3 = vcmask 15360  }
 0x15e   : > { %7819 = vst [vmem:[#allocation83_spill] sm:$0xff] %v5668_v37  ;;  %v5679_v21 = vsel %vm874_vm1, %v932_v63, %v933_v3  ;;  %v5682_v4 = vsel %vm874_vm1, %v927_v9, %v928_v8  ;;  %v602_v24 = vmul.f32 %v7824_v38, %v5267_v2  ;;  %v7825_v63 = vunpack.c.l.bf16 %v5651_v30 }
 0x15f   : > { %7822 = vst [vmem:[#allocation85_spill] sm:$0xff] %v5679_v21  ;;  %7823 = vst [vmem:[#allocation86_spill] sm:$0xff] %v5682_v4  ;;  %v3829_v35 = vpack.i.bf16 %v5679_v21, %v5668_v37  ;;  %v3824_v53 = vpack.i.bf16 %v5682_v4, %v5664_v44  ;;  %v7826_v9 = vunpack.c.h.bf16 %v5651_v30  ;;  %v640_v12 = vadd.f32 %v5282_v11, %v601_v34 }
 0x160   : > { %v603_v26 = vmul.f32 %v7825_v63, %v5267_v2  ;;  %v641_v38 = vadd.f32 %v5282_v11, %v602_v24  ;;  %v935_v14 = vrot.slane %v5688_v6, 1  ;;  %v605_v24 = vmul.f32 %v7647_v27, %v5267_v2 }
 0x161   : > { %v604_v8 = vmul.f32 %v7826_v9, %v5267_v2  ;;  %3830 = vrot.lane.b32.xlu1 %v3829_v35, %s4829_s21  ;;  %3825 = vrot.lane.b32.xlu0 %v3824_v53, %s4829_s21  ;;  %v7648_v9 = vunpack.c.h.bf16 %v5676_v61  ;;  %v672_v34 = vmax.f32 %v640_v12, 0.0  ;;  %vm1827_vm4 = vcmask 31744  }
 0x162   : > { %v642_v63 = vadd.f32 %v5282_v11, %v603_v26  ;;  %v673_v31 = vmax.f32 %v641_v38, 0.0  ;;  %v5715_v35 = vsel %vm874_vm1, %v933_v3, %v935_v14  ;;  %v644_v12 = vadd.f32 %v5282_v11, %v605_v24 }
 0x163   : > { %v643_v30 = vadd.f32 %v5282_v11, %v604_v8  ;;  %7827 = vst [vmem:[#allocation87_spill] sm:$0xff] %v5715_v35  ;;  %v606_v26 = vmul.f32 %v7648_v9, %v5267_v2  ;;  %v752_v53 = vrot.slane %v672_v34, 7  ;;  %v1051_v38 = vrot.slane %v5343_v58, 2 }
 0x164   : > { %v674_v40 = vmax.f32 %v642_v63, 0.0  ;;  %v753_v8 = vrot.slane %v673_v31, 7  ;;  %v1053_v63 = vrot.slane %v5387_v29, 2  ;;  %v676_v31 = vmax.f32 %v644_v12, 0.0 }
 0x165   : > { %v675_v21 = vmax.f32 %v643_v30, 0.0  ;;  %v645_v27 = vadd.f32 %v5282_v11, %v606_v26  ;;  %v5731_v14 = vsel %vm715_vm0, 0.0, %v752_v53  ;;  %vm1859_vm5 = vcmask 48128  }
 0x166   : > { %v755_v37 = vrot.slane %v674_v40, 7  ;;  %v5725_v30 = vsel %vm715_vm0, %v752_v53, %v753_v8  ;;  %v5728_v3 = vsel %vm715_vm0, %v753_v8, 0.0  ;;  %7829 = vst [vmem:[#allocation89_spill] sm:$0xff] %v5731_v14  ;;  %v937_v8 = vrot.slane %v5731_v14, 1 }
 0x167   : > { %v756_v4 = vrot.slane %v675_v21, 7  ;;  %7828 = vst [vmem:[#allocation88_spill] sm:$0xff] %v5725_v30  ;;  %v938_v21 = vrot.slane %v5725_v30, 1  ;;  %v940_v40 = vrot.slane %v5728_v3, 1  ;;  %v677_v9 = vmax.f32 %v645_v27, 0.0 }
 0x168   : > { %v5737_v58 = vsel %vm715_vm0, 0.0, %v755_v37  ;;  %v758_v12 = vrot.slane %v676_v31, 7  ;;  %vm1892_vm6 = vcmask 64512   ;;  %vm1925_vm7 = vcmask 80896  }
 0x169   : > { %v5734_v34 = vsel %vm715_vm0, %v755_v37, %v756_v4  ;;  %7831 = vst [vmem:[#allocation91_spill] sm:$0xff] %v5737_v58  ;;  %v942_v24 = vrot.slane %v5737_v58, 1  ;;  %v5745_v53 = vsel %vm874_vm1, %v938_v21, %v940_v40  ;;  %v5748_v61 = vsel %vm715_vm0, %v756_v4, 0.0 }
 0x16a   : > { %7830 = vst [vmem:[#allocation90_spill] sm:$0xff] %v5734_v34  ;;  %v943_v26 = vrot.slane %v5734_v34, 1  ;;  %7832 = vst [vmem:[#allocation92_spill] sm:$0xff] %v5745_v53  ;;  %v1054_v37 = vrot.slane %v5321_v48, 2  ;;  %v5755_v2 = vsel %vm874_vm1, %v937_v8, %v938_v21  ;;  %v759_v56 = vrot.slane %v677_v9, 7 }
 0x16b   : > { %7834 = vst [vmem:[#allocation94_spill] sm:$0xff] %v5755_v2  ;;  %v945_v29 = vrot.slane %v5748_v61, 1  ;;  %v3834_v31 = vpack.i.bf16 %v5755_v2, %v5715_v35  ;;  %v5763_v4 = vsel %vm715_vm0, 0.0, %v758_v12  ;;  %v5766_v40 = vsel %vm1045_vm2, %v1049_v60, %v1051_v38 }
 0x16c   : > { %v5752_v11 = vsel %vm874_vm1, %v942_v24, %v943_v26  ;;  %7835 = vst [vmem:[#allocation95_spill] sm:$0xff] %v5763_v4  ;;  %v5769_v24 = vsel %vm715_vm0, %v758_v12, %v759_v56  ;;  %v5772_v21 = vsel %vm715_vm0, %v759_v56, 0.0  ;;  %v947_v9 = vrot.slane %v5763_v4, 1 }
 0x16d   : > { %7833 = vst [vmem:[#allocation93_spill] sm:$0xff] %v5752_v11  ;;  %v3839_v27 = vpack.i.bf16 %v5752_v11, %v5745_v53  ;;  %7836 = vst [vmem:[#allocation96_spill] sm:$0xff] %v5769_v24  ;;  %v5776_v8 = vsel %vm1045_vm2, %v1053_v63, %v1054_v37  ;;  %3835 = vrot.lane.b32.xlu0 %v3834_v31, %s4829_s21  ;;  %v948_v11 = vrot.slane %v5769_v24, 1  ;;  %v950_v38 = vrot.slane %v5772_v21, 1 }
 0x16e   : > { %v5783_v53 = vsel %vm874_vm1, %v943_v26, %v945_v29  ;;  %v1048_v12 = vrot.slane %v5340_v57, 2  ;;  %v1059_v56 = vrot.slane %v5324_v49, 2  ;;  %v1061_v2 = vrot.slane %v5372_v22, 2 }
 0x16f   : > { %3840 = vrot.lane.b32.xlu1 %v3839_v27, %s4829_s21  ;;  %7837 = vst [vmem:[#allocation97_spill] sm:$0xff] %v5783_v53  ;;  %v1063_v63 = vrot.slane %v5363_v19, 2  ;;  %v1064_v35 = vrot.slane %v5360_v18, 2  ;;  %v949_v27 = vsel %vm874_vm1, %v947_v9, %v948_v11  ;;  %v951_v31 = vsel %vm874_vm1, %v948_v11, %v950_v38 }
 0x170   : > { %v3854_v48 = vpack.i.bf16 %v5776_v8, %v5766_v40  ;;  %v5795_v29 = vsel %vm1045_vm2, %v1048_v12, %v1049_v60  ;;  %v5797_v26 = vpack.i.bf16 %v951_v31, %v949_v27  ;;  %v3844_v49 = vpack.i.bf16 %v949_v27, %v5783_v53 }
 0x171   : > { %v7839_v22 = vrot.slane %v5330_v51, 2  ;;  %v5807_v9 = vsel %vm1045_vm2, %v1059_v56, %v1061_v2  ;;  %v5810_v11 = vsel %vm1045_vm2, %v1063_v63, %v1064_v35  ;;  %v1058_v60 = vrot.slane %v5327_v50, 2 }
 0x172   : > { %7838 = vst [vmem:[#allocation98_spill] sm:$0xff] %v5797_v26  ;;  %v1069_v38 = vrot.slane %v5465_v17, 2  ;;  %3845 = vrot.lane.b32.xlu0 %v3844_v49, %s4829_s21  ;;  %v3849_v51 = vpack.i.bf16 %v5795_v29, %v5346_v59  ;;  %v1073_v12 = vrot.slane %v5471_v32, 2  ;;  %v1074_v27 = vrot.slane %v5468_v28, 2 }
 0x173   : > { %v5803_v19 = vsel %vm1045_vm2, %v1054_v37, %v7839_v22  ;;  %1012 = vrot.lane.b32.xlu1 %v951_v31, %s4829_s21  ;;  %v1071_v37 = vrot.slane %v5474_v39, 2  ;;  %v5821_v2 = vsel %vm1045_vm2, %v1058_v60, %v1059_v56  ;;  %v1066_v63 = vrot.slane %v5415_v42, 2 }
 0x174   : > { %v1068_v31 = vrot.slane %v5460_v16, 2  ;;  %v3864_v22 = vpack.i.bf16 %v5810_v11, %v5807_v9  ;;  %v3859_v49 = vpack.i.bf16 %v5821_v2, %v5803_v19  ;;  %v1079_v59 = vrot.slane %v5506_v62, 2 }
 0x175   : > { %v5832_v39 = vsel %vm1045_vm2, %v1069_v38, %v1071_v37  ;;  %v5835_v56 = vsel %vm1045_vm2, %v1073_v12, %v1074_v27  ;;  %v5838_v42 = vsel %vm1045_vm2, %v1064_v35, %v1066_v63  ;;  %v1081_v60 = vrot.slane %v5512_v46, 2 }
 0x176   : > { %3850 = vrot.lane.b32.xlu0 %v3849_v51, %s4830_s1  ;;  %v5843_v26 = vsel %vm1045_vm2, %v1068_v31, %v1069_v38  ;;  %v1083_v53 = vrot.slane %v5509_v41, 2  ;;  %v1076_v37 = vrot.slane %v5488_v33, 2  ;;  %v1078_v62 = vrot.slane %v5498_v45, 2 }
 0x177   : > { %3855 = vrot.lane.b32.xlu1 %v3854_v48, %s4830_s1  ;;  %v1084_v48 = vrot.slane %v5520_v47, 2  ;;  %v1089_v12 = vrot.slane %v5596_v20, 2  ;;  %v1091_v35 = vrot.slane %v5599_v10, 2  ;;  %v1093_v63 = vrot.slane %v5609_v0, 2 }
 0x178   : > { %v1094_v46 = vrot.slane %v5606_v36, 2  ;;  %v3874_v38 = vpack.i.bf16 %v5835_v56, %v5832_v39  ;;  %v3869_v51 = vpack.i.bf16 %v5843_v26, %v5838_v42  ;;  %v1086_v33 = vrot.slane %v5565_v25, 2 }
 0x179   : > { %v1088_v31 = vrot.slane %v5602_v52, 2  ;;  %v5862_v10 = vsel %vm1045_vm2, %v1079_v59, %v1081_v60  ;;  %v5865_v20 = vsel %vm1045_vm2, %v1083_v53, %v1084_v48  ;;  %v5871_v36 = vsel %vm1045_vm2, %v1078_v62, %v1079_v59 }
 0x17a   : > { %3860 = vrot.lane.b32.xlu0 %v3859_v49, %s4830_s1  ;;  %v5874_v0 = vsel %vm1045_vm2, %v1089_v12, %v1091_v35  ;;  %v5877_v25 = vsel %vm1045_vm2, %v1093_v63, %v1094_v46  ;;  %v1099_v49 = vrot.slane %v5641_v13, 2  ;;  %v1101_v60 = vrot.slane %v5644_v1, 2 }
 0x17b   : > { %3865 = vrot.lane.b32.xlu1 %v3864_v22, %s4830_s1  ;;  %v5868_v22 = vsel %vm1045_vm2, %v1074_v27, %v1076_v37  ;;  %v3884_v53 = vpack.i.bf16 %v5865_v20, %v5862_v10  ;;  %v5887_v59 = vsel %vm1045_vm2, %v1084_v48, %v1086_v33  ;;  %v5890_v62 = vsel %vm1045_vm2, %v1088_v31, %v1089_v12 }
 0x17c   : > { %v3879_v27 = vpack.i.bf16 %v5871_v36, %v5868_v22  ;;  %v1103_v37 = vrot.slane %v5657_v7, 2  ;;  %v1104_v1 = vrot.slane %v5654_v43, 2  ;;  %v1096_v35 = vrot.slane %v5630_v54, 2 }
 0x17d   : > { %v1098_v63 = vrot.slane %v5647_v15, 2  ;;  %v3889_v48 = vpack.i.bf16 %v5890_v62, %v5887_v59  ;;  %v1102_v33 = vsel %vm1045_vm2, %v1099_v49, %v1101_v60  ;;  %v1118_v12 = vrot.slane %v5763_v4, 2 }
 0x17e   : > { %3870 = vrot.lane.b32.xlu0 %v3869_v51, %s4830_s1  ;;  %v1119_v51 = vrot.slane %v5769_v24, 2  ;;  %v1109_v31 = vrot.slane %v5725_v30, 2  ;;  %v1111_v54 = vrot.slane %v5728_v3, 2  ;;  %v1113_v13 = vrot.slane %v5737_v58, 2 }
 0x17f   : > { %3875 = vrot.lane.b32.xlu1 %v3874_v38, %s4830_s1  ;;  %v3894_v38 = vpack.i.bf16 %v5877_v25, %v5874_v0  ;;  %v1121_v15 = vrot.slane %v5772_v21, 2  ;;  %v1105_v43 = vsel %vm1045_vm2, %v1103_v37, %v1104_v1  ;;  %v1097_v60 = vsel %vm1045_vm2, %v1094_v46, %v1096_v35 }
 0x180   : > { %v1100_v4 = vsel %vm1045_vm2, %v1098_v63, %v1099_v49  ;;  %v1114_v24 = vrot.slane %v5734_v34, 2  ;;  %v1108_v30 = vrot.slane %v5731_v14, 2  ;;  %v1120_v3 = vsel %vm1045_vm2, %v1118_v12, %v1119_v51 }
 0x181   : > { %v1122_v58 = vsel %vm1045_vm2, %v1119_v51, %v1121_v15  ;;  %v3904_v21 = vpack.i.bf16 %v1105_v43, %v1102_v33  ;;  %v3899_v46 = vpack.i.bf16 %v1100_v4, %v1097_v60  ;;  %v5923_v49 = vsel %vm1045_vm2, %v1109_v31, %v1111_v54 }
 0x182   : > { %3880 = vrot.lane.b32.xlu0 %v3879_v27, %s4830_s1  ;;  %v5918_v7 = vpack.i.bf16 %v1122_v58, %v1120_v3  ;;  %v5926_v27 = vsel %vm1045_vm2, %v1113_v13, %v1114_v24  ;;  %v1110_v37 = vsel %vm1045_vm2, %v1108_v30, %v1109_v31  ;;  %v1116_v15 = vrot.slane %v5748_v61, 2  ;;  %v7845_v31 = vld [vmem:[#allocation39_spill] sm:$0xff] }
 0x183   : > { %3885 = vrot.lane.b32.xlu1 %v3884_v53, %s4830_s1  ;;  %v1106_v53 = vrot.slane %v5688_v6, 2  ;;  %v3914_v35 = vpack.i.bf16 %v5926_v27, %v5923_v49  ;;  %v5941_v13 = vpack.i.bf16 %v5618_v5, %v5627_v23  ;;  %v5954_v51 = vpack.i.bf16 %v5803_v19, %v5776_v8 }
 0x184   : > { %7840 = vst [vmem:[#allocation99_spill] sm:$0xff] %v5918_v7  ;;  %v5944_v30 = vsel %vm1045_vm2, %v1114_v24, %v1116_v15  ;;  %v5961_v23 = vpack.i.bf16 %v5807_v9, %v5821_v2  ;;  %v5965_v5 = vpack.i.bf16 %v5838_v42, %v5810_v11  ;;  %v7844_v24 = vld [vmem:[#allocation37_spill] sm:$0xff]  ;;  %v5974_v8 = vpack.i.bf16 %v5832_v39, %v5843_v26  ;;  %v5980_v2 = vld [vmem:[%s5231_s9 + $0x78] sm:$0xff]   ;;  %v7847_v26 = vld [vmem:[#allocation44_spill] sm:$0xff]  ;;  %s4731_s9 = scalar_lea.vmem %s7491_s27, 4096 }
 0x185   : > { %v1107_v6 = vsel %vm1045_vm2, %v1104_v1, %v1106_v53  ;;  %v7841_v1 = vld [vmem:[#allocation86_spill] sm:$0xff]  ;;  %v3924_v9 = vpack.i.bf16 %v7845_v31, %v5340_v57  ;;  %v5984_v11 = vpack.i.bf16 %v5868_v22, %v5835_v56  ;;  %v5994_v39 = vpack.i.bf16 %v5360_v18, %v7847_v26  ;;  %v7878_v7 = vld [vmem:[#allocation59_spill] sm:$0xff]  ;;  %p4732_p6 = scmp.ne.s32.totalorder %s7491_s27, %s4731_s9 }
 0x186   : > { %3890 = vrot.lane.b32.xlu0 %v3889_v48, %s4830_s1  ;;  %v3909_v63 = vpack.i.bf16 %v1110_v37, %v1107_v6  ;;  %v7842_v48 = vld [vmem:[#allocation83_spill] sm:$0xff]  ;;  %7846 = vst [vmem:[#allocation86_spill] sm:$0xff] %v5980_v2  ;;  %v7848_v42 = vld [vmem:[#allocation38_spill] sm:$0xff]  ;;  %v6002_v56 = vpack.i.bf16 %v5887_v59, %v5865_v20  ;;  %v6009_v22 = vpack.i.bf16 %v5874_v0, %v5890_v62  ;;  %v7849_v0 = vld [vmem:[#allocation32_spill] sm:$0xff]  ;;  %vm1958_vm8 = vcmask 97280  }
 0x187   : > { %3895 = vrot.lane.b32.xlu1 %v3894_v38, %s4830_s1  ;;  %v5937_v38 = vpack.i.bf16 %v5664_v44, %v5624_v55  ;;  %v5950_v12 = vpack.i.bf16 %v7842_v48, %v7841_v1  ;;  %v3919_v55 = vpack.i.bf16 %v1120_v3, %v5944_v30  ;;  %v7843_v44 = vld [vmem:[#allocation49_spill] sm:$0xff]  ;;  %v5998_v54 = vpack.i.bf16 %v7848_v42, %v5327_v50  ;;  %p4733_p10 = pnand %p4732_p6, %p8005_p8 }
 0x188   : > { %v5970_v19 = vpack.i.bf16 %v7844_v24, %v7843_v44  ;;  %v6012_v53 = vpack.i.bf16 %v1097_v60, %v5877_v25  ;;  %v6018_v20 = vpack.i.bf16 %v5468_v28, %v5471_v32  ;;  %v6020_v59 = vpack.i.bf16 %v1102_v33, %v1100_v4  ;;  %v7850_v33 = vld [vmem:[#allocation62_spill] sm:$0xff]  ;;  %v7854_v1 = vld [vmem:[#allocation73_spill] sm:$0xff] }
 0x189   : > { %v6026_v3 = vpack.i.bf16 %v5465_v17, %v5460_v16  ;;  %v6034_v60 = vpack.i.bf16 %v1107_v6, %v1105_v43  ;;  %v6040_v4 = vpack.i.bf16 %v5520_v47, %v5509_v41  ;;  %v7852_v43 = vld [vmem:[#allocation76_spill] sm:$0xff]  ;;  %v7853_v6 = vld [vmem:[#allocation75_spill] sm:$0xff]  ;;  %v6060_v48 = vpack.i.bf16 %v7854_v1, %v5602_v52  ;;  %v7874_v47 = vld [vmem:[#allocation42_spill] sm:$0xff]  ;;  %p4734_p0 = pneg %p4733_p10 }
 0x18a   : > { %3900 = vrot.lane.b32.xlu0 %v3899_v46, %s4830_s1  ;;  %v7851_v46 = vld [vmem:[#allocation36_spill] sm:$0xff]  ;;  %v7875_v52 = vld [vmem:[#allocation51_spill] sm:$0xff]  ;;  %vm1991_vm9 = vcmask 113664   ;;  %vm2024_vm10 = vcmask 130048   ;;  %vm2502_vm11 = vcmask 1041408   ;;  %vm2082_vm12 = vcmask 146432  }
 0x18b   : > { %3905 = vrot.lane.b32.xlu1 %v3904_v21, %s4830_s1  ;;  %v6046_v21 = vpack.i.bf16 %v7850_v33, %v5498_v45  ;;  %v4014_v1 = vpack.i.bf16 %v7875_v52, %v7874_v47  ;;  %v7880_v52 = vld [vmem:[#allocation70_spill] sm:$0xff] }
 0x18e   : > { %3910 = vrot.lane.b32.xlu0 %v3909_v63, %s4830_s1  ;;  %v6054_v63 = vpack.i.bf16 %v7853_v6, %v7852_v43  ;;  %v6075_v43 = vpack.i.bf16 %v5923_v49, %v1110_v37  ;;  %v7863_v37 = vld [vmem:[#allocation95_spill] sm:$0xff] }
 0x18f   : > { %3915 = vrot.lane.b32.xlu1 %v3914_v35, %s4830_s1 }
 0x192   : > { %3920 = vrot.lane.b32.xlu0 %v3919_v55, %s4830_s1 }
 0x193   : > { %1183 = vrot.lane.b32.xlu1 %v1122_v58, %s4830_s1  ;;  %v5988_v58 = vpack.i.bf16 %v5862_v10, %v5871_v36  ;;  %v7697_v36 = vunpack.c.l.bf16 %v5980_v2  ;;  %v7696_v10 = vunpack.c.h.bf16 %v5980_v2  ;;  %v7870_v2 = vld [vmem:[#allocation55_spill] sm:$0xff] }
 0x195   : > { %v607_v25 = vmul.f32 %v7697_v36, %v7849_v0  ;;  %v608_v62 = vmul.f32 %v7696_v10, %v7849_v0  ;;  %v7855_v0 = vld [vmem:[#allocation82_spill] sm:$0xff] }
 0x196   : > { %3925 = vrot.lane.b32.xlu0 %v3924_v9, %s4831_s20  ;;  %v7858_v10 = vld [vmem:[#allocation78_spill] sm:$0xff] }
 0x197   : > { %3930 = vrot.lane.b32.xlu1 %v5970_v19, %s4831_s20  ;;  %v646_v15 = vadd.f32 %v7851_v46, %v607_v25  ;;  %v647_v35 = vadd.f32 %v7851_v46, %v608_v62  ;;  %v7856_v25 = vld [vmem:[#allocation81_spill] sm:$0xff]  ;;  %v7857_v46 = vld [vmem:[#allocation79_spill] sm:$0xff] }
 0x198   : > { %v6066_v62 = vpack.i.bf16 %v7856_v25, %v7855_v0  ;;  %v6072_v36 = vpack.i.bf16 %v7858_v10, %v7857_v46  ;;  %v7861_v25 = vld [vmem:[#allocation88_spill] sm:$0xff]  ;;  %v7869_v10 = vld [vmem:[#allocation50_spill] sm:$0xff] }
 0x199   : > { %v678_v55 = vmax.f32 %v646_v15, 0.0  ;;  %v679_v9 = vmax.f32 %v647_v35, 0.0  ;;  %v7859_v15 = vld [vmem:[#allocation91_spill] sm:$0xff]  ;;  %v6087_v0 = vpack.i.bf16 %v7861_v25, %v5731_v14  ;;  %v6103_v14 = vpack.i.bf16 %v5944_v30, %v5926_v27  ;;  %v7868_v25 = vld [vmem:[#allocation41_spill] sm:$0xff]  ;;  %v7872_v27 = vld [vmem:[#allocation46_spill] sm:$0xff] }
 0x19a   : > { %3935 = vrot.lane.b32.xlu0 %v5998_v54, %s4831_s20  ;;  %v6081_v35 = vpack.i.bf16 %v5734_v34, %v7859_v15  ;;  %v7864_v34 = vld [vmem:[#allocation96_spill] sm:$0xff] }
 0x19b   : > { %3940 = vrot.lane.b32.xlu1 %v5994_v39, %s4831_s20  ;;  %v761_v61 = vrot.slane %v678_v55, 7  ;;  %v762_v6 = vrot.slane %v679_v9, 7  ;;  %v6099_v15 = vpack.i.bf16 %v7864_v34, %v7863_v37  ;;  %7866 = vst [vmem:[#allocation39_spill] sm:$0xff] %v6103_v14  ;;  %v6114_v37 = vpack.i.bf16 %v7870_v2, %v7869_v10  ;;  %v7871_v34 = vld [vmem:[#allocation48_spill] sm:$0xff]  ;;  %v7879_v2 = vld [vmem:[#allocation57_spill] sm:$0xff] }
 0x19c   : > { %7860 = vst [vmem:[#allocation83_spill] sm:$0xff] %v6081_v35  ;;  %v7873_v30 = vpack.i.bf16 %v7871_v34, %v7872_v27  ;;  %v6131_v10 = vpack.i.bf16 %v7879_v2, %v7878_v7  ;;  %v7882_v7 = vld [vmem:[#allocation68_spill] sm:$0xff]  ;;  %v7883_v2 = vld [vmem:[#allocation67_spill] sm:$0xff] }
 0x19d   : > { %v763_v55 = vsel %vm715_vm0, %v761_v61, %v762_v6  ;;  %v826_v9 = vsel %vm715_vm0, 0.0, %v761_v61  ;;  %7865 = vst [vmem:[#allocation37_spill] sm:$0xff] %v6099_v15  ;;  %v7867_v61 = vld [vmem:[#allocation53_spill] sm:$0xff]  ;;  %v842_v47 = vsel %vm715_vm0, %v762_v6, 0.0  ;;  %v6148_v14 = vpack.i.bf16 %v7883_v2, %v7882_v7 }
 0x19e   : > { %3945 = vrot.lane.b32.xlu0 %v6026_v3, %s4831_s20  ;;  %v6093_v49 = vpack.i.bf16 %v763_v55, %v826_v9  ;;  %v4009_v46 = vpack.i.bf16 %v7868_v25, %v7867_v61  ;;  %v7876_v25 = vld [vmem:[#allocation58_spill] sm:$0xff]  ;;  %v1415_v33 = vrot.slane %v826_v9, 2  ;;  %v1416_v41 = vrot.slane %v763_v55, 2 }
 0x19f   : > { %3950 = vrot.lane.b32.xlu1 %v6018_v20, %s4831_s20  ;;  %v7877_v61 = vld [vmem:[#allocation66_spill] sm:$0xff]  ;;  %v1418_v18 = vrot.slane %v842_v47, 2 }
 0x1a0   : > { %7862 = vst [vmem:[#allocation49_spill] sm:$0xff] %v6093_v49 }
 0x1a2   : > { %3955 = vrot.lane.b32.xlu0 %v6046_v21, %s4831_s20 }
 0x1a3   : > { %3960 = vrot.lane.b32.xlu1 %v6040_v4, %s4831_s20 }
 0x1a6   : > { %3965 = vrot.lane.b32.xlu0 %v6060_v48, %s4831_s20 }
 0x1a7   : > { %3970 = vrot.lane.b32.xlu1 %v6054_v63, %s4831_s20  ;;  %v6133_v34 = vpop.permute.xlu1 %3785 }
 0x1a9   : > { %v6135_v27 = vpop.permute.xlu0 %3775 }
 0x1aa   : > { %3975 = vrot.lane.b32.xlu0 %v6072_v36, %s4831_s20 }
 0x1ab   : > { %3980 = vrot.lane.b32.xlu1 %v6066_v62, %s4831_s20 }
 0x1ae   : > { %3985 = vrot.lane.b32.xlu0 %v6087_v0, %s4831_s20 }
 0x1af   : > { %3990 = vrot.lane.b32.xlu1 %v6081_v35, %s4831_s20  ;;  %v1314_v35 = vrot.slane %v826_v9, 1  ;;  %v1417_v9 = vsel %vm1045_vm2, %v1415_v33, %v1416_v41  ;;  %v7884_v33 = vpack.i.bf16 %v5766_v40, %v5795_v29 }
 0x1b2   : > { %3995 = vrot.lane.b32.xlu0 %v6099_v15, %s4831_s20  ;;  %v1315_v15 = vrot.slane %v763_v55, 1  ;;  %v1419_v55 = vsel %vm1045_vm2, %v1416_v41, %v1418_v18  ;;  %v4470_v18 = vld [vmem:[#allocation11 + $0x8] ss:$0 sps:$4 sm:$0x11]  }
 0x1b3   : > { %4000 = vrot.lane.b32.xlu1 %v6093_v49, %s4831_s20  ;;  %v6126_v49 = vpack.i.bf16 %v7877_v61, %v7876_v25  ;;  %v1317_v61 = vrot.slane %v842_v47, 1  ;;  %v4469_v47 = vld [vmem:[#allocation11] sm:$0xff]   ;;  %v2132_v40 = vsel %vm715_vm0, %v4470_v18, 0 }
 0x1b4   : > { %v1316_v28 = vsel %vm874_vm1, %v1314_v35, %v1315_v15  ;;  %v6164_v35 = vpack.i.bf16 %v1419_v55, %v1417_v9  ;;  %3571 = vmatprep.subr.bf16.mxu0 %v4469_v47 }
 0x1b5   : > { %v1318_v6 = vsel %vm874_vm1, %v1315_v15, %v1317_v61  ;;  %3572 = vmatpush3.bf16.msra.mxu0 %v4469_v47 }
 0x1b6   : > { %4005 = vrot.lane.b32.xlu0 %v7873_v30, %s4832_s13  ;;  %v7881_v30 = vld [vmem:[#allocation72_spill] sm:$0xff]  ;;  %v6152_v45 = vpack.i.bf16 %v1318_v6, %v1316_v28  ;;  %3641 = vmatprep.subr.msk.bf16.mxu0 %vm715_vm0, %v4470_v18  ;;  %v7896_v18 = vld [vmem:[#allocation87_spill] sm:$0xff] }
 0x1b7   : > { %4010 = vrot.lane.b32.xlu1 %v4009_v46, %s4832_s13  ;;  %v6142_v25 = vpack.i.bf16 %v7881_v30, %v7880_v52  ;;  %v6156_v52 = vpop.permute.xlu1 %3790  ;;  %v6158_v30 = vpop.permute.xlu0 %3780 }
 0x1b9   : > { %3574 = vmatpush3.bf16.msra.mxu0 %v2132_v40 }
 0x1ba   : > { %4015 = vrot.lane.b32.xlu0 %v4014_v1, %s4832_s13 }
 0x1bb   : > { %4020 = vrot.lane.b32.xlu1 %v6114_v37, %s4832_s13  ;;  %v6170_v28 = vpop.permute.xlu1 %3800  ;;  %v6172_v15 = vpop.permute.xlu0 %3795 }
 0x1be   : > { %4025 = vrot.lane.b32.xlu0 %v6131_v10, %s4832_s13 }
 0x1bf   : > { %4030 = vrot.lane.b32.xlu1 %v6126_v49, %s4832_s13  ;;  %v6182_v41 = vpop.permute.xlu1 %3810  ;;  %v6184_v61 = vpop.permute.xlu0 %3805 }
 0x1c2   : > { %4035 = vrot.lane.b32.xlu0 %v6148_v14, %s4832_s13 }
 0x1c3   : > { %4040 = vrot.lane.b32.xlu1 %v6142_v25, %s4832_s13 }
 0x1c6   : > { %4045 = vrot.lane.b32.xlu0 %v5941_v13, %s4832_s13 }
 0x1c7   : > { %4050 = vrot.lane.b32.xlu1 %v5937_v38, %s4832_s13 }
 0x1ca   : > { %4055 = vrot.lane.b32.xlu0 %v5950_v12, %s4832_s13 }
 0x1cb   : > { %4060 = vrot.lane.b32.xlu1 %v7884_v33, %s4833_s23 }
 0x1cc   : > { %v6193_v29 = vpop.permute.xlu1 %3820 }
 0x1ce   : > { %4065 = vrot.lane.b32.xlu0 %v5954_v51, %s4833_s23 }
 0x1cf   : > { %4070 = vrot.lane.b32.xlu1 %v5970_v19, %s4834_s14  ;;  %v6195_v19 = vpop.permute.xlu0 %3815 }
 0x1d2   : > { %4075 = vrot.lane.b32.xlu0 %v5998_v54, %s4834_s14 }
 0x1d3   : > { %4080 = vrot.lane.b32.xlu1 %v4009_v46, %s4835_s17  ;;  %v6202_v7 = vpop.permute.xlu1 %3830  ;;  %v6204_v2 = vpop.permute.xlu0 %3825 }
 0x1d6   : > { %4085 = vrot.lane.b32.xlu0 %v4014_v1, %s4835_s17 }
 0x1d7   : > { %4090 = vrot.lane.b32.xlu1 %v5954_v51, %s4836_s29 }
 0x1da   : > { %4095 = vrot.lane.b32.xlu0 %v5961_v23, %s4836_s29 }
 0x1db   : > { %4100 = vrot.lane.b32.xlu1 %v5961_v23, %s4833_s23 }
 0x1de   : > { %4105 = vrot.lane.b32.xlu0 %v5965_v5, %s4833_s23 }
 0x1df   : > { %4110 = vrot.lane.b32.xlu1 %v5994_v39, %s4834_s14  ;;  %v6214_v51 = vpop.permute.xlu0 %3835 }
 0x1e0   : > { %7886 = vst [vmem:[#allocation38_spill] sm:$0xff] %v6214_v51 }
 0x1e1   : > { %v6212_v54 = vpop.permute.xlu1 %3840 }
 0x1e2   : > { %7885 = vst [vmem:[#allocation44_spill] sm:$0xff] %v6212_v54  ;;  %4115 = vrot.lane.b32.xlu0 %v6026_v3, %s4834_s14  ;;  %v3812_v54 = vunpack.i.l.bf16 %v6182_v41 }
 0x1e3   : > { %4120 = vrot.lane.b32.xlu1 %v6114_v37, %s4835_s17 }
 0x1e4   : > { %v6222_v46 = vpop.permute.xlu0 %3845 }
 0x1e5   : > { %v6220_v1 = vpop.permute.xlu1 %1012  ;;  %7888 = vst [vmem:[#allocation36_spill] sm:$0xff] %v6222_v46 }
 0x1e6   : > { %7887 = vst [vmem:[#allocation32_spill] sm:$0xff] %v6220_v1  ;;  %4125 = vrot.lane.b32.xlu0 %v6131_v10, %s4835_s17  ;;  %v3777_v1 = vunpack.i.l.bf16 %v6135_v27 }
 0x1e7   : > { %4130 = vrot.lane.b32.xlu1 %v5965_v5, %s4836_s29 }
 0x1e8   : > { %v6230_v39 = vpop.permute.xlu0 %3850 }
 0x1e9   : > { %v6228_v23 = vpop.permute.xlu1 %3855 }
 0x1ea   : > { %4135 = vrot.lane.b32.xlu0 %v5974_v8, %s4836_s29 }
 0x1eb   : > { %4140 = vrot.lane.b32.xlu1 %v5974_v8, %s4833_s23 }
 0x1ec   : > { %v6238_v37 = vpop.permute.xlu0 %3860 }
 0x1ed   : > { %v6236_v3 = vpop.permute.xlu1 %3865 }
 0x1ee   : > { %4145 = vrot.lane.b32.xlu0 %v5984_v11, %s4833_s23 }
 0x1ef   : > { %4150 = vrot.lane.b32.xlu1 %v6018_v20, %s4834_s14 }
 0x1f0   : > { %v6246_v10 = vpop.permute.xlu0 %3870 }
 0x1f1   : > { %v6244_v5 = vpop.permute.xlu1 %3875 }
 0x1f2   : > { %4155 = vrot.lane.b32.xlu0 %v6046_v21, %s4834_s14 }
 0x1f3   : > { %4160 = vrot.lane.b32.xlu1 %v6126_v49, %s4835_s17 }
 0x1f4   : > { %v6254_v6 = vpop.permute.xlu0 %3880 }
 0x1f5   : > { %v6252_v8 = vpop.permute.xlu1 %3885 }
 0x1f6   : > { %4165 = vrot.lane.b32.xlu0 %v6148_v14, %s4835_s17 }
 0x1f7   : > { %4170 = vrot.lane.b32.xlu1 %v5984_v11, %s4836_s29 }
 0x1f8   : > { %v6262_v9 = vpop.permute.xlu0 %3890 }
 0x1f9   : > { %v6260_v20 = vpop.permute.xlu1 %3895 }
 0x1fa   : > { %4175 = vrot.lane.b32.xlu0 %v5988_v58, %s4836_s29 }
 0x1fb   : > { %4180 = vrot.lane.b32.xlu1 %v5988_v58, %s4833_s23 }
 0x1fc   : > { %v6270_v49 = vpop.permute.xlu0 %3900 }
 0x1fd   : > { %v6268_v21 = vpop.permute.xlu1 %3905  ;;  %7890 = vst [vmem:[#allocation41_spill] sm:$0xff] %v6270_v49 }
 0x1fe   : > { %7889 = vst [vmem:[#allocation53_spill] sm:$0xff] %v6268_v21  ;;  %4185 = vrot.lane.b32.xlu0 %v6002_v56, %s4833_s23 }
 0x1ff   : > { %4190 = vrot.lane.b32.xlu1 %v6040_v4, %s4834_s14 }
 0x200   : > { %v6278_v11 = vpop.permute.xlu0 %3910 }
 0x201   : > { %v6276_v14 = vpop.permute.xlu1 %3915  ;;  %7892 = vst [vmem:[#allocation55_spill] sm:$0xff] %v6278_v11  ;;  %v7901_v11 = vld [vmem:[#allocation94_spill] sm:$0xff] }
 0x202   : > { %7891 = vst [vmem:[#allocation50_spill] sm:$0xff] %v6276_v14  ;;  %4195 = vrot.lane.b32.xlu0 %v6060_v48, %s4834_s14  ;;  %v7902_v14 = vld [vmem:[#allocation92_spill] sm:$0xff] }
 0x203   : > { %4200 = vrot.lane.b32.xlu1 %v6142_v25, %s4835_s17  ;;  %v4289_v51 = vpack.i.bf16 %v7902_v14, %v7901_v11  ;;  %v3783_v11 = vunpack.i.h.bf16 %v6158_v30 }
 0x204   : > { %v6286_v55 = vpop.permute.xlu0 %3920 }
 0x205   : > { %v6284_v58 = vpop.permute.xlu1 %1183  ;;  %7894 = vst [vmem:[#allocation46_spill] sm:$0xff] %v6286_v55 }
 0x206   : > { %7893 = vst [vmem:[#allocation48_spill] sm:$0xff] %v6284_v58  ;;  %4205 = vrot.lane.b32.xlu0 %v5941_v13, %s4835_s17 }
 0x207   : > { %4210 = vrot.lane.b32.xlu1 %v6002_v56, %s4836_s29 }
 0x208   : > { %v6294_v47 = vpop.permute.xlu0 %3925 }
 0x209   : > { %v6292_v4 = vpop.permute.xlu1 %3930 }
 0x20a   : > { %4215 = vrot.lane.b32.xlu0 %v6009_v22, %s4836_s29 }
 0x20b   : > { %4220 = vrot.lane.b32.xlu1 %v6009_v22, %s4833_s23 }
 0x20c   : > { %v6302_v25 = vpop.permute.xlu0 %3935 }
 0x20d   : > { %v6300_v48 = vpop.permute.xlu1 %3940 }
 0x20e   : > { %4225 = vrot.lane.b32.xlu0 %v6012_v53, %s4833_s23 }
 0x20f   : > { %4230 = vrot.lane.b32.xlu1 %v6054_v63, %s4834_s14  ;;  %v7895_v63 = vld [vmem:[#allocation85_spill] sm:$0xff] }
 0x210   : > { %v6310_v56 = vpop.permute.xlu0 %3945  ;;  %v4259_v40 = vpack.i.bf16 %v7896_v18, %v7895_v63  ;;  %v3778_v18 = vunpack.i.h.bf16 %v6135_v27  ;;  %v3793_v27 = vunpack.i.h.bf16 %v6156_v52 }
 0x211   : > { %v6308_v13 = vpop.permute.xlu1 %3950 }
 0x212   : > { %4235 = vrot.lane.b32.xlu0 %v6072_v36, %s4834_s14  ;;  %v1797_v14 = vsel %vm1795_vm3, %v5340_v57, %v3778_v18  ;;  %v3797_v57 = vunpack.i.l.bf16 %v6172_v15  ;;  %v1803_v18 = vsel %vm1795_vm3, %v7847_v26, %v3793_v27  ;;  %v7909_v27 = vld [vmem:[#allocation56_spill] sm:$0xff] }
 0x213   : > { %4240 = vrot.lane.b32.xlu1 %v5937_v38, %s4835_s17 }
 0x214   : > { %v6318_v33 = vpop.permute.xlu0 %3955 }
 0x215   : > { %v6316_v22 = vpop.permute.xlu1 %3960 }
 0x216   : > { %4245 = vrot.lane.b32.xlu0 %v5950_v12, %s4835_s17  ;;  %v3788_v12 = vunpack.i.h.bf16 %v6133_v34 }
 0x217   : > { %4250 = vrot.lane.b32.xlu1 %v6012_v53, %s4836_s29  ;;  %v3787_v53 = vunpack.i.l.bf16 %v6133_v34 }
 0x218   : > { %v6328_v58 = vpop.permute.xlu0 %3965 }
 0x219   : > { %v6326_v55 = vpop.permute.xlu1 %3970  ;;  %v6361_v34 = vsel %vm1795_vm3, %v7844_v24, %v3787_v53  ;;  %v3803_v24 = vunpack.i.h.bf16 %v6170_v28  ;;  %v3802_v53 = vunpack.i.l.bf16 %v6170_v28 }
 0x21a   : > { %4255 = vrot.lane.b32.xlu0 %v6020_v59, %s4836_s29 }
 0x21b   : > { %4260 = vrot.lane.b32.xlu1 %v4259_v40, %s4832_s13  ;;  %v1807_v26 = vsel %vm1795_vm3, %v5471_v32, %v3803_v24  ;;  %v3857_v32 = vunpack.i.l.bf16 %v6228_v23 }
 0x21c   : > { %v6335_v36 = vpop.permute.xlu0 %3975 }
 0x21d   : > { %v6333_v38 = vpop.permute.xlu1 %3980  ;;  %7898 = vst [vmem:[#allocation51_spill] sm:$0xff] %v6335_v36 }
 0x21e   : > { %7897 = vst [vmem:[#allocation42_spill] sm:$0xff] %v6333_v38  ;;  %4265 = vrot.lane.b32.xlu0 %v6020_v59, %s4833_s23  ;;  %v6357_v59 = vsel %vm1795_vm3, %v5327_v50, %v3788_v12  ;;  %v3782_v50 = vunpack.i.l.bf16 %v6158_v30  ;;  %v3807_v30 = vunpack.i.l.bf16 %v6184_v61  ;;  %v3887_v38 = vunpack.i.l.bf16 %v6252_v8 }
 0x21f   : > { %4270 = vrot.lane.b32.xlu1 %v6034_v60, %s4833_s23 }
 0x220   : > { %v6347_v46 = vpop.permute.xlu0 %3985 }
 0x221   : > { %v6343_v63 = vpop.permute.xlu1 %3990  ;;  %7900 = vst [vmem:[#allocation66_spill] sm:$0xff] %v6347_v46  ;;  %v3792_v46 = vunpack.i.l.bf16 %v6156_v52  ;;  %v3798_v52 = vunpack.i.h.bf16 %v6172_v15  ;;  %v1799_v15 = vsel %vm1795_vm3, %v7843_v44, %v3783_v11  ;;  %v1808_v11 = vsel %vm1795_vm3, %v7909_v27, %v3807_v30 }
 0x222   : > { %7899 = vst [vmem:[#allocation58_spill] sm:$0xff] %v6343_v63  ;;  %4275 = vrot.lane.b32.xlu0 %v6066_v62, %s4834_s14  ;;  %v1796_v62 = vsel %vm1795_vm3, 0.0, %v3777_v1  ;;  %v7906_v63 = vld [vmem:[#allocation97_spill] sm:$0xff]  ;;  %v3808_v1 = vunpack.i.h.bf16 %v6184_v61  ;;  %v1798_v61 = vsel %vm1795_vm3, %v7845_v31, %v3782_v50  ;;  %v7911_v50 = vld [vmem:[#allocation62_spill] sm:$0xff]  ;;  %v3878_v27 = vunpack.i.h.bf16 %v6244_v5 }
 0x223   : > { %4280 = vrot.lane.b32.xlu1 %v6087_v0, %s4834_s14  ;;  %v1802_v28 = vsel %vm1795_vm3, %v7848_v42, %v3792_v46  ;;  %v1806_v42 = vsel %vm1795_vm3, %v5465_v17, %v3802_v53  ;;  %v1805_v46 = vsel %vm1795_vm3, %v5460_v16, %v3798_v52  ;;  %v7910_v17 = vld [vmem:[#allocation63_spill] sm:$0xff]  ;;  %v1810_v24 = vsel %vm1795_vm3, %v7911_v50, %v3812_v54 }
 0x224   : > { %v6372_v12 = vpop.permute.xlu0 %3995  ;;  %v3858_v53 = vunpack.i.h.bf16 %v6228_v23  ;;  %v3852_v52 = vunpack.i.l.bf16 %v6230_v39  ;;  %v3863_v54 = vunpack.i.h.bf16 %v6238_v37  ;;  %v3862_v23 = vunpack.i.l.bf16 %v6238_v37 }
 0x225   : > { %v6365_v0 = vpop.permute.xlu1 %4000  ;;  %7904 = vst [vmem:[#allocation57_spill] sm:$0xff] %v6372_v12  ;;  %v3813_v12 = vunpack.i.h.bf16 %v6182_v41  ;;  %v7907_v41 = vld [vmem:[#allocation43_spill] sm:$0xff]  ;;  %v1830_v50 = vsel %vm1827_vm4, %v1798_v61, %v3857_v32  ;;  %v3873_v37 = vunpack.i.h.bf16 %v6246_v10  ;;  %v3882_v32 = vunpack.i.l.bf16 %v6254_v6 }
 0x226   : > { %7903 = vst [vmem:[#allocation59_spill] sm:$0xff] %v6365_v0  ;;  %v7905_v0 = vld [vmem:[#allocation93_spill] sm:$0xff]  ;;  %4285 = vrot.lane.b32.xlu0 %v4259_v40, %s4835_s17  ;;  %v1804_v44 = vsel %vm1795_vm3, %v7907_v41, %v3797_v57  ;;  %v7908_v40 = vld [vmem:[#allocation60_spill] sm:$0xff]  ;;  %v3868_v41 = vunpack.i.h.bf16 %v6236_v3  ;;  %v1828_v30 = vsel %vm1827_vm4, %v1796_v62, %v3852_v52  ;;  %v1833_v62 = vsel %vm1827_vm4, %v6357_v59, %v3863_v54  ;;  %v7914_v54 = vld [vmem:[#allocation83_spill] sm:$0xff] }
 0x227   : > { %4290 = vrot.lane.b32.xlu1 %v4289_v51, %s4835_s17  ;;  %v6380_v36 = vpack.i.bf16 %v7906_v63, %v7905_v0  ;;  %v1809_v31 = vsel %vm1795_vm3, %v7908_v40, %v3808_v1  ;;  %v6419_v16 = vsel %vm1795_vm3, %v7910_v17, %v3813_v12  ;;  %v3867_v40 = vunpack.i.l.bf16 %v6236_v3 }
 0x228   : > { %v6398_v0 = vpop.permute.xlu0 %4005  ;;  %v3872_v1 = vunpack.i.l.bf16 %v6246_v10  ;;  %v1831_v3 = vsel %vm1827_vm4, %v1799_v15, %v3858_v53  ;;  %v1835_v61 = vsel %vm1827_vm4, %v1803_v18, %v3868_v41  ;;  %v1832_v10 = vsel %vm1827_vm4, %v6361_v34, %v3862_v23  ;;  %v7913_v41 = vld [vmem:[#allocation37_spill] sm:$0xff] }
 0x229   : > { %v6392_v63 = vpop.permute.xlu1 %4010  ;;  %v1839_v15 = vsel %vm1827_vm4, %v1807_v26, %v3878_v27  ;;  %v3932_v52 = vunpack.i.l.bf16 %v6292_v4  ;;  %v1837_v59 = vsel %vm1827_vm4, %v1805_v46, %v3873_v37  ;;  %v1842_v34 = vsel %vm1827_vm4, %v1810_v24, %v3887_v38 }
 0x22a   : > { %4295 = vrot.lane.b32.xlu0 %v6034_v60, %s4836_s29  ;;  %v3853_v60 = vunpack.i.h.bf16 %v6230_v39  ;;  %v3877_v39 = vunpack.i.l.bf16 %v6244_v5  ;;  %v3883_v5 = vunpack.i.h.bf16 %v6254_v6  ;;  %v1836_v53 = vsel %vm1827_vm4, %v1804_v44, %v3872_v1 }
 0x22b   : > { %4300 = vrot.lane.b32.xlu1 %v6075_v43, %s4836_s29  ;;  %v3933_v6 = vunpack.i.h.bf16 %v6292_v4  ;;  %v3927_v26 = vunpack.i.l.bf16 %v6294_v47  ;;  %v3943_v4 = vunpack.i.h.bf16 %v6300_v48  ;;  %v3942_v1 = vunpack.i.l.bf16 %v6300_v48 }
 0x22c   : > { %v6431_v12 = vpop.permute.xlu0 %4015  ;;  %v1829_v17 = vsel %vm1827_vm4, %v1797_v14, %v3853_v60  ;;  %v7912_v14 = vld [vmem:[#allocation39_spill] sm:$0xff]  ;;  %v1838_v18 = vsel %vm1827_vm4, %v1806_v42, %v3877_v39  ;;  %v1840_v42 = vsel %vm1827_vm4, %v1808_v11, %v3882_v32  ;;  %v1841_v44 = vsel %vm1827_vm4, %v1809_v31, %v3883_v5 }
 0x22d   : > { %v6425_v57 = vpop.permute.xlu1 %4020  ;;  %v3938_v46 = vunpack.i.h.bf16 %v6302_v25  ;;  %v3937_v38 = vunpack.i.l.bf16 %v6302_v25  ;;  %v3953_v24 = vunpack.i.h.bf16 %v6308_v13  ;;  %v1862_v11 = vsel %vm1859_vm5, %v1829_v17, %v3932_v52 }
 0x22e   : > { %4305 = vrot.lane.b32.xlu0 %v4289_v51, %s4832_s13  ;;  %v1834_v51 = vsel %vm1827_vm4, %v1802_v28, %v3867_v40  ;;  %v3928_v28 = vunpack.i.h.bf16 %v6294_v47  ;;  %v3952_v47 = vunpack.i.l.bf16 %v6308_v13  ;;  %v1863_v31 = vsel %vm1859_vm5, %v1830_v50, %v3933_v6 }
 0x22f   : > { %4310 = vrot.lane.b32.xlu1 %v6380_v36, %s4832_s13  ;;  %v3948_v40 = vunpack.i.h.bf16 %v6310_v56  ;;  %v3947_v48 = vunpack.i.l.bf16 %v6310_v56  ;;  %v1860_v25 = vsel %vm1859_vm5, %v1828_v30, %v3927_v26  ;;  %v3963_v13 = vunpack.i.h.bf16 %v6316_v22 }
 0x230   : > { %v6454_v21 = vpop.permute.xlu0 %4025  ;;  %v1861_v23 = vsel %vm1859_vm5, %v1828_v30, %v3928_v28  ;;  %v3962_v27 = vunpack.i.l.bf16 %v6316_v22  ;;  %v1866_v17 = vsel %vm1859_vm5, %v1833_v62, %v3942_v1  ;;  %v1867_v50 = vsel %vm1859_vm5, %v1834_v51, %v3943_v4  ;;  %v7915_v62 = vld [vmem:[#allocation98_spill] sm:$0xff]  ;;  %v6548_v4 = vld [vmem:[#allocation13] ss:$0 sm:$0xff] }
 0x231   : > { %v6448_v49 = vpop.permute.xlu1 %4030  ;;  %v3958_v37 = vunpack.i.h.bf16 %v6318_v33  ;;  %v3957_v56 = vunpack.i.l.bf16 %v6318_v33  ;;  %v1864_v32 = vsel %vm1859_vm5, %v1831_v3, %v3937_v38  ;;  %v1865_v30 = vsel %vm1859_vm5, %v1832_v10, %v3938_v46 }
 0x232   : > { %4315 = vrot.lane.b32.xlu0 %v6075_v43, %s4833_s23  ;;  %v6509_v6 = vsel %vm1859_vm5, %v1837_v59, %v3952_v47  ;;  %v6512_v22 = vsel %vm1859_vm5, %v1838_v18, %v3953_v24  ;;  %v6517_v51 = vsel %vm1859_vm5, %v1835_v61, %v3947_v48  ;;  %v6520_v33 = vsel %vm1859_vm5, %v1836_v53, %v3948_v40  ;;  %v2297_v24 = vld [vmem:[%s5247_s26 + $0x10] sm:$0xff] }
 0x233   : > { %4320 = vrot.lane.b32.xlu1 %v7912_v14, %s4833_s23  ;;  %v4013_v3 = vunpack.i.h.bf16 %v6392_v63  ;;  %v4012_v10 = vunpack.i.l.bf16 %v6392_v63  ;;  %v6527_v18 = vsel %vm1859_vm5, %v1841_v44, %v3962_v27  ;;  %v6530_v52 = vsel %vm1859_vm5, %v1842_v34, %v3963_v13  ;;  %v2295_v44 = vld [vmem:[%s5247_s26] sm:$0xff]  ;;  %v6564_v40 = vld [vmem:[#allocation14] ss:$0 sm:$0xff] }
 0x234   : > { %v6480_v43 = vpop.permute.xlu0 %4035  ;;  %v4008_v61 = vunpack.i.h.bf16 %v6398_v0  ;;  %v4007_v53 = vunpack.i.l.bf16 %v6398_v0  ;;  %v6537_v63 = vsel %vm1859_vm5, %v1839_v15, %v3957_v56  ;;  %v4023_v28 = vunpack.i.h.bf16 %v6425_v57  ;;  %v2296_v0 = vld [vmem:[%s5247_s26 + $0x8] sm:$0xff]  ;;  %v7916_v15 = vld [vmem:[#allocation99_spill] sm:$0xff] }
 0x235   : > { %v6474_v60 = vpop.permute.xlu1 %4040  ;;  %v4022_v34 = vunpack.i.l.bf16 %v6425_v57  ;;  %v4018_v1 = vunpack.i.h.bf16 %v6431_v12  ;;  %v4017_v46 = vunpack.i.l.bf16 %v6431_v12  ;;  %v2335_v38 = vmul.f32 %v6548_v4, %v2296_v0  ;;  %v2298_v57 = vld [vmem:[%s5247_s26 + $0x18] sm:$0xff] }
 0x236   : > { %4325 = vrot.lane.b32.xlu0 %v7914_v54, %s4834_s14  ;;  %v1895_v47 = vsel %vm1892_vm6, %v1862_v11, %v4012_v10  ;;  %v2336_v12 = vmul.f32 %v6548_v4, %v2297_v24  ;;  %v2337_v48 = vmul.f32 %v6548_v4, %v2298_v57  ;;  %v1893_v54 = vsel %vm1892_vm6, %v1860_v25, %v4007_v53 }
 0x237   : > { %4330 = vrot.lane.b32.xlu1 %v7913_v41, %s4834_s14  ;;  %v6560_v41 = vsel %vm1892_vm6, %v1863_v31, %v4013_v3  ;;  %v1894_v13 = vsel %vm1892_vm6, %v1861_v23, %v4008_v61  ;;  %v2374_v31 = vadd.f32 %v6564_v40, %v2335_v38  ;;  %v6581_v25 = vsel %vm1892_vm6, %v1864_v32, %v4017_v46  ;;  %v2453_v61 = vld [vmem:[#allocation16] sm:$0x3] }
 0x238   : > { %v6504_v5 = vpop.permute.xlu0 %4045  ;;  %v2375_v3 = vadd.f32 %v6564_v40, %v2336_v12  ;;  %v2376_v10 = vadd.f32 %v6564_v40, %v2337_v48  ;;  %v6584_v23 = vsel %vm1892_vm6, %v1865_v30, %v4018_v1  ;;  %3642 = vmatprep.subr.msk.bf16.mxu1 %vm2502_vm11, %v2453_v61  ;;  %v2504_v32 = vsel %vm2502_vm11, %v2453_v61, 0 }
 0x239   : > { %v6498_v39 = vpop.permute.xlu1 %4050  ;;  %3608 = vmatpush3.bf16.msra.mxu1 %v2504_v32  ;;  %v4033_v46 = vunpack.i.h.bf16 %v6448_v49  ;;  %v4028_v12 = vunpack.i.h.bf16 %v6454_v21 }
 0x23a   : > { %4335 = vrot.lane.b32.xlu0 %v6380_v36, %s4835_s17  ;;  %v6540_v36 = vsel %vm1859_vm5, %v1840_v42, %v3958_v37  ;;  %v2334_v42 = vmul.f32 %v6548_v4, %v2295_v44  ;;  %v6573_v37 = vsel %vm1892_vm6, %v1866_v17, %v4022_v34  ;;  %v2407_v0 = vmax.f32 %v2375_v3, 0.0 }
 0x23b   : > { %4340 = vrot.lane.b32.xlu1 %v7915_v62, %s4835_s17  ;;  %v2408_v1 = vmax.f32 %v2376_v10, 0.0 }
 0x23c   : > { %v6544_v26 = vpop.permute.xlu0 %4055  ;;  %v2373_v11 = vadd.f32 %v6564_v40, %v2334_v42 }
 0x23d   : > { %v6534_v59 = vpop.permute.xlu1 %4060 }
 0x23e   : > { %4345 = vrot.lane.b32.xlu0 %v7912_v14, %s4836_s29  ;;  %v6576_v14 = vsel %vm1892_vm6, %v1867_v50, %v4023_v28  ;;  %v2405_v17 = vmax.f32 %v2373_v11, 0.0  ;;  %v4032_v50 = vunpack.i.l.bf16 %v6448_v49  ;;  %v4062_v53 = vunpack.i.l.bf16 %v6534_v59 }
 0x23f   : > { %4350 = vrot.lane.b32.xlu1 %v7916_v15, %s4836_s29  ;;  %v2406_v28 = vmax.f32 %v2374_v31, 0.0  ;;  %v4063_v30 = vunpack.i.h.bf16 %v6534_v59  ;;  %v2438_v11 = vpack.c.bf16 %v2408_v1, %v2407_v0  ;;  %v4027_v59 = vunpack.i.l.bf16 %v6454_v21  ;;  %v7918_v0 = vld [vmem:[#allocation49_spill] sm:$0xff] }
 0x240   : > { %v4066_v56 = vpop.permute.xlu0 %4065  ;;  %v1926_v31 = vsel %vm1925_vm7, %v1893_v54, %v4062_v53  ;;  %v6604_v49 = vsel %vm1892_vm6, %v6509_v6, %v4032_v50  ;;  %v7917_v50 = vmov 0.0  }
 0x241   : > { %v4071_v27 = vpop.permute.xlu1 %4070  ;;  %v4067_v38 = vunpack.i.l.bf16 %v4066_v56  ;;  %v2437_v57 = vpack.c.bf16 %v2406_v28, %v2405_v17  ;;  %v4068_v3 = vunpack.i.h.bf16 %v4066_v56 }
 0x242   : > { %4355 = vrot.lane.b32.xlu0 %v7915_v62, %s4832_s13  ;;  %v4072_v34 = vunpack.i.l.bf16 %v4071_v27  ;;  %v4073_v42 = vunpack.i.h.bf16 %v4071_v27  ;;  %v1927_v27 = vsel %vm1925_vm7, %v1894_v13, %v4063_v30 }
 0x243   : > { %4360 = vrot.lane.b32.xlu1 %v6152_v45, %s4832_s13  ;;  %3609 = vmatprep.mubr.msk.bf16.mxu1 %vm1827_vm4, %v2437_v57  ;;  %v1928_v54 = vsel %vm1925_vm7, %v1895_v47, %v4067_v38  ;;  %v1929_v47 = vsel %vm1925_vm7, %v6560_v41, %v4068_v3  ;;  %v6624_v38 = vsel %vm1892_vm6, %v6512_v22, %v4033_v46 }
 0x244   : > { %v4076_v24 = vpop.permute.xlu0 %4075  ;;  %v1959_v32 = vsel %vm1958_vm8, %v1926_v31, %v4072_v34  ;;  %3610 = vmatmul.mubr.msk.bf16.vlgmr.msra.gmra.mrb[0].mxu1 %vm1827_vm4, %v2438_v11  ;;  %v2300_v11 = vld [vmem:[%s5247_s26 + $0x28] sm:$0xff]  ;;  %v2301_v31 = vld [vmem:[%s5247_s26 + $0x30] sm:$0xff] }
 0x245   : > { %v4081_v44 = vpop.permute.xlu1 %4080  ;;  %v4077_v10 = vunpack.i.l.bf16 %v4076_v24  ;;  %v4078_v61 = vunpack.i.h.bf16 %v4076_v24 }
 0x246   : > { %v4083_v62 = vunpack.i.h.bf16 %v4081_v44  ;;  %v4082_v48 = vunpack.i.l.bf16 %v4081_v44  ;;  %4365 = vrot.lane.b32.xlu0 %v7916_v15, %s4833_s23  ;;  %v1960_v15 = vsel %vm1958_vm8, %v1927_v27, %v4073_v42 }
 0x247   : > { %4370 = vrot.lane.b32.xlu1 %v6164_v35, %s4833_s23  ;;  %v1961_v34 = vsel %vm1958_vm8, %v1928_v54, %v4077_v10  ;;  %v1962_v24 = vsel %vm1958_vm8, %v1929_v47, %v4078_v61  ;;  %v7919_v54 = vld [vmem:[#allocation34_spill] sm:$0xff] }
 0x248   : > { %v4086_v28 = vpop.permute.xlu0 %4085  ;;  %v1992_v13 = vsel %vm1991_vm9, %v1959_v32, %v4082_v48  ;;  %v1993_v30 = vsel %vm1991_vm9, %v1960_v15, %v4083_v62  ;;  %v2299_v48 = vld [vmem:[%s5247_s26 + $0x20] sm:$0xff]  ;;  %v2302_v32 = vld [vmem:[%s5247_s26 + $0x38] sm:$0xff]  ;;  %v7920_v22 = vunpack.c.l.bf16 %v7919_v54  ;;  %v7921_v46 = vunpack.c.h.bf16 %v7919_v54 }
 0x249   : > { %v4091_v17 = vpop.permute.xlu1 %4090  ;;  %v4088_v44 = vunpack.i.h.bf16 %v4086_v28  ;;  %v4087_v6 = vunpack.i.l.bf16 %v4086_v28  ;;  %v2338_v27 = vmul.f32 %v6548_v4, %v2299_v48  ;;  %v7922_v28 = vld [vmem:[#allocation33_spill] sm:$0xff]  ;;  %v2340_v15 = vmul.f32 %v6548_v4, %v2301_v31 }
 0x24a   : > { %v4093_v56 = vunpack.i.h.bf16 %v4091_v17  ;;  %v4092_v53 = vunpack.i.l.bf16 %v4091_v17  ;;  %4375 = vrot.lane.b32.xlu0 %v7918_v0, %s4834_s14  ;;  %v2339_v17 = vmul.f32 %v6548_v4, %v2300_v11  ;;  %v4389_v61 = vpack.i.bf16 %v7921_v46, %v7920_v22  ;;  %v2304_v31 = vld [vmem:[%s5247_s26 + $0x48] sm:$0xff] }
 0x24b   : > { %1576 = vrot.lane.b32.xlu1 %v7917_v50, %s4834_s14  ;;  %v1994_v57 = vsel %vm1991_vm9, %v1961_v34, %v4087_v6  ;;  %v1995_v3 = vsel %vm1991_vm9, %v1962_v24, %v4088_v44  ;;  %v2341_v44 = vmul.f32 %v6548_v4, %v2302_v32  ;;  %v2303_v24 = vld [vmem:[%s5247_s26 + $0x40] sm:$0xff] }
 0x24c   : > { %v2025_v1 = vsel %vm2024_vm10, %v1992_v13, %v4092_v53  ;;  %v2026_v42 = vsel %vm2024_vm10, %v1993_v30, %v4093_v56  ;;  %v4096_v10 = vpop.permute.xlu0 %4095  ;;  %v2377_v13 = vadd.f32 %v6564_v40, %v2338_v27  ;;  %v2378_v30 = vadd.f32 %v6564_v40, %v2339_v17  ;;  %v7923_v17 = vld [vmem:[#allocation40_spill] sm:$0xff] }
 0x24d   : > { %v4101_v62 = vpop.permute.xlu1 %4100  ;;  %v2057_v41 = vpack.c.bf16 %v2026_v42, %v2025_v1  ;;  %v4098_v56 = vunpack.i.h.bf16 %v4096_v10  ;;  %v4097_v53 = vunpack.i.l.bf16 %v4096_v10  ;;  %v2379_v1 = vadd.f32 %v6564_v40, %v2340_v15 }
 0x24e   : > { %v4103_v6 = vunpack.i.h.bf16 %v4101_v62  ;;  %v4102_v50 = vunpack.i.l.bf16 %v4101_v62  ;;  %4380 = vrot.lane.b32.xlu0 %v6152_v45, %s4835_s17  ;;  %v2380_v42 = vadd.f32 %v6564_v40, %v2341_v44  ;;  %v2409_v45 = vmax.f32 %v2377_v13, 0.0 }
 0x24f   : > { %1669 = vrot.lane.b32.xlu1 %v7922_v28, %s4835_s17  ;;  %3575 = vmatprep.mubr.msk.bf16.mxu0 %vm2082_vm12, %v2057_v41  ;;  %v2027_v47 = vsel %vm2024_vm10, %v1994_v57, %v4097_v53  ;;  %v2028_v34 = vsel %vm2024_vm10, %v1995_v3, %v4098_v56  ;;  %v2410_v57 = vmax.f32 %v2378_v30, 0.0  ;;  %v2411_v3 = vmax.f32 %v2379_v1, 0.0  ;;  %v2305_v56 = vld [vmem:[%s5247_s26 + $0x50] sm:$0xff] }
 0x250   : > { %v4106_v62 = vpop.permute.xlu0 %4105  ;;  %v2058_v11 = vpack.c.bf16 %v2028_v34, %v2027_v47  ;;  %v1930_v32 = vsel %vm1925_vm7, %v6581_v25, %v4102_v50  ;;  %v1931_v54 = vsel %vm1925_vm7, %v6584_v23, %v4103_v6  ;;  %v2412_v22 = vmax.f32 %v2380_v42, 0.0  ;;  %v2306_v50 = vld [vmem:[%s5247_s26 + $0x58] sm:$0xff]  ;;  %v2307_v42 = vld [vmem:[%s5247_s26 + $0x60] sm:$0xff] }
 0x251   : > { %v4111_v0 = vpop.permute.xlu1 %4110  ;;  %v4108_v10 = vunpack.i.h.bf16 %v4106_v62  ;;  %v4107_v27 = vunpack.i.l.bf16 %v4106_v62  ;;  %v2342_v46 = vmul.f32 %v6548_v4, %v2303_v24  ;;  %v2439_v44 = vpack.c.bf16 %v2410_v57, %v2409_v45 }
 0x252   : > { %v4113_v41 = vunpack.i.h.bf16 %v4111_v0  ;;  %v4112_v48 = vunpack.i.l.bf16 %v4111_v0  ;;  %4385 = vrot.lane.b32.xlu0 %v6164_v35, %s4836_s29  ;;  %3576 = vmatmul.mubr.msk.bf16.vlgmr.msra.gmra.mrb[0].mxu0 %vm2082_vm12, %v2058_v11  ;;  %v2343_v25 = vmul.f32 %v6548_v4, %v2304_v31  ;;  %v2440_v35 = vpack.c.bf16 %v2412_v22, %v2411_v3 }
 0x253   : > { %1762 = vrot.lane.b32.xlu1 %v7923_v17, %s4836_s29  ;;  %v2381_v30 = vadd.f32 %v6564_v40, %v2342_v46  ;;  %v1933_v47 = vsel %vm1925_vm7, %v6576_v14, %v4108_v10  ;;  %v1932_v34 = vsel %vm1925_vm7, %v6573_v37, %v4107_v27  ;;  %3613 = vmatprep.mubr.msk.bf16.mxu1 %vm1827_vm4, %v2439_v44  ;;  %v2308_v10 = vld [vmem:[%s5247_s26 + $0x68] sm:$0xff]  ;;  %v2309_v44 = vld [vmem:[%s5247_s26 + $0x70] sm:$0xff] }
 0x254   : > { %v1963_v53 = vsel %vm1958_vm8, %v1930_v32, %v4112_v48  ;;  %v1964_v28 = vsel %vm1958_vm8, %v1931_v54, %v4113_v41  ;;  %v4116_v13 = vpop.permute.xlu0 %4115  ;;  %v2382_v0 = vadd.f32 %v6564_v40, %v2343_v25  ;;  %v2344_v1 = vmul.f32 %v6548_v4, %v2305_v56  ;;  %3614 = vmatmul.mubr.msk.bf16.gmra.mrb[4].mxu1 %vm1827_vm4, %v2440_v35  ;;  %v2310_v35 = vld [vmem:[%s5247_s26 + $0x78] sm:$0xff] }
 0x255   : > { %v4121_v15 = vpop.permute.xlu1 %4120  ;;  %v4118_v24 = vunpack.i.h.bf16 %v4116_v13  ;;  %v4117_v41 = vunpack.i.l.bf16 %v4116_v13  ;;  %v2413_v48 = vmax.f32 %v2381_v30, 0.0  ;;  %v2345_v62 = vmul.f32 %v6548_v4, %v2306_v50 }
 0x256   : > { %v4123_v23 = vunpack.i.h.bf16 %v4121_v15  ;;  %v4122_v6 = vunpack.i.l.bf16 %v4121_v15  ;;  %4390 = vrot.lane.b32.xlu0 %v4389_v61, %s4830_s1  ;;  %v2414_v45 = vmax.f32 %v2382_v0, 0.0  ;;  %v2383_v31 = vadd.f32 %v6564_v40, %v2344_v1 }
 0x257   : > { %v2384_v3 = vadd.f32 %v6564_v40, %v2345_v62  ;;  %v2346_v32 = vmul.f32 %v6548_v4, %v2307_v42  ;;  %v2347_v15 = vmul.f32 %v6548_v4, %v2308_v10  ;;  %v1965_v25 = vsel %vm1958_vm8, %v1932_v34, %v4117_v41  ;;  %v2311_v62 = vld [vmem:[%s5247_s26 + $0x80] sm:$0xff] }
 0x258   : > { %v1996_v14 = vsel %vm1991_vm9, %v1963_v53, %v4122_v6  ;;  %v1997_v37 = vsel %vm1991_vm9, %v1964_v28, %v4123_v23  ;;  %v4126_v57 = vpop.permute.xlu0 %4125  ;;  %v2441_v22 = vpack.c.bf16 %v2414_v45, %v2413_v48  ;;  %v2415_v46 = vmax.f32 %v2383_v31, 0.0 }
 0x259   : > { %v4131_v11 = vpop.permute.xlu1 %4130  ;;  %v4128_v54 = vunpack.i.h.bf16 %v4126_v57  ;;  %v4127_v61 = vunpack.i.l.bf16 %v4126_v57  ;;  %v2416_v28 = vmax.f32 %v2384_v3, 0.0  ;;  %v1966_v50 = vsel %vm1958_vm8, %v1933_v47, %v4118_v24  ;;  %v2312_v57 = vld [vmem:[%s5247_s26 + $0x88] sm:$0xff] }
 0x25a   : > { %v4133_v27 = vunpack.i.h.bf16 %v4131_v11  ;;  %v4132_v17 = vunpack.i.l.bf16 %v4131_v11  ;;  %3617 = vmatprep.mubr.msk.bf16.mxu1 %vm1827_vm4, %v2441_v22  ;;  %v2385_v13 = vadd.f32 %v6564_v40, %v2346_v32  ;;  %v2386_v48 = vadd.f32 %v6564_v40, %v2347_v15 }
 0x25b   : > { %v1998_v30 = vsel %vm1991_vm9, %v1965_v25, %v4127_v61  ;;  %v1999_v0 = vsel %vm1991_vm9, %v1966_v50, %v4128_v54  ;;  %v2442_v42 = vpack.c.bf16 %v2416_v28, %v2415_v46  ;;  %v2348_v24 = vmul.f32 %v6548_v4, %v2309_v44  ;;  %v2313_v44 = vld [vmem:[%s5247_s26 + $0x90] sm:$0xff] }
 0x25c   : > { %v2029_v56 = vsel %vm2024_vm10, %v1996_v14, %v4132_v17  ;;  %v2030_v53 = vsel %vm2024_vm10, %v1997_v37, %v4133_v27  ;;  %v4136_v1 = vpop.permute.xlu0 %4135  ;;  %v2417_v47 = vmax.f32 %v2385_v13, 0.0  ;;  %v2418_v11 = vmax.f32 %v2386_v48, 0.0  ;;  %v2314_v13 = vld [vmem:[%s5247_s26 + $0x98] sm:$0xff] }
 0x25d   : > { %v4141_v23 = vpop.permute.xlu1 %4140  ;;  %v2059_v6 = vpack.c.bf16 %v2030_v53, %v2029_v56  ;;  %v4138_v34 = vunpack.i.h.bf16 %v4136_v1  ;;  %v4137_v41 = vunpack.i.l.bf16 %v4136_v1  ;;  %3618 = vmatmul.mubr.msk.bf16.gmra.mrb[8].mxu1 %vm1827_vm4, %v2442_v42  ;;  %v2349_v45 = vmul.f32 %v6548_v4, %v2310_v35 }
 0x25e   : > { %v4143_v14 = vunpack.i.h.bf16 %v4141_v23  ;;  %v4142_v37 = vunpack.i.l.bf16 %v4141_v23  ;;  %v2387_v17 = vadd.f32 %v6564_v40, %v2348_v24  ;;  %v2350_v3 = vmul.f32 %v6548_v4, %v2311_v62 }
 0x25f   : > { %3579 = vmatprep.mubr.msk.bf16.mxu0 %vm2082_vm12, %v2059_v6  ;;  %v2031_v31 = vsel %vm2024_vm10, %v1998_v30, %v4137_v41  ;;  %v2032_v10 = vsel %vm2024_vm10, %v1999_v0, %v4138_v34  ;;  %v1901_v32 = vsel %vm1892_vm6, %v6517_v51, %v4027_v59  ;;  %v1902_v54 = vsel %vm1892_vm6, %v6520_v33, %v4028_v12 }
 0x260   : > { %v6717_v61 = vpop.permute.xlu0 %4145  ;;  %v2060_v22 = vpack.c.bf16 %v2032_v10, %v2031_v31  ;;  %v2443_v46 = vpack.c.bf16 %v2418_v11, %v2417_v47  ;;  %v2388_v28 = vadd.f32 %v6564_v40, %v2349_v45  ;;  %v2419_v15 = vmax.f32 %v2387_v17, 0.0 }
 0x261   : > { %v4151_v27 = vpop.permute.xlu1 %4150  ;;  %v3817_v25 = vunpack.i.l.bf16 %v6195_v19  ;;  %v1934_v51 = vsel %vm1925_vm7, %v1901_v32, %v4142_v37  ;;  %v1935_v21 = vsel %vm1925_vm7, %v1902_v54, %v4143_v14  ;;  %v2351_v33 = vmul.f32 %v6548_v4, %v2312_v57 }
 0x262   : > { %v4153_v56 = vunpack.i.h.bf16 %v4151_v27  ;;  %v4152_v53 = vunpack.i.l.bf16 %v4151_v27  ;;  %3580 = vmatmul.mubr.msk.bf16.gmra.mrb[4].mxu0 %vm2082_vm12, %v2060_v22  ;;  %3621 = vmatprep.mubr.msk.bf16.mxu1 %vm1827_vm4, %v2443_v46  ;;  %v4148_v12 = vunpack.i.h.bf16 %v6717_v61  ;;  %v4147_v59 = vunpack.i.l.bf16 %v6717_v61  ;;  %v7924_v27 = vld [vmem:[#allocation30_spill] sm:$0xff] }
 0x263   : > { %v2420_v23 = vmax.f32 %v2388_v28, 0.0  ;;  %v2389_v6 = vadd.f32 %v6564_v40, %v2350_v3  ;;  %v2390_v1 = vadd.f32 %v6564_v40, %v2351_v33  ;;  %v2352_v42 = vmul.f32 %v6548_v4, %v2313_v44 }
 0x264   : > { %v4156_v0 = vpop.permute.xlu0 %4155  ;;  %v1967_v48 = vsel %vm1958_vm8, %v1934_v51, %v4152_v53  ;;  %v1968_v62 = vsel %vm1958_vm8, %v1935_v21, %v4153_v56  ;;  %v2353_v37 = vmul.f32 %v6548_v4, %v2314_v13  ;;  %v7925_v17 = vunpack.c.l.bf16 %v7924_v27 }
 0x265   : > { %v4161_v50 = vpop.permute.xlu1 %4160  ;;  %v2444_v34 = vpack.c.bf16 %v2420_v23, %v2419_v15  ;;  %v2421_v41 = vmax.f32 %v2389_v6, 0.0  ;;  %v4158_v47 = vunpack.i.h.bf16 %v4156_v0  ;;  %v4157_v24 = vunpack.i.l.bf16 %v4156_v0  ;;  %v7927_v15 = vld [vmem:[#allocation31_spill] sm:$0xff] }
 0x266   : > { %v4163_v35 = vunpack.i.h.bf16 %v4161_v50  ;;  %v4162_v30 = vunpack.i.l.bf16 %v4161_v50  ;;  %v2422_v14 = vmax.f32 %v2390_v1, 0.0  ;;  %v2391_v10 = vadd.f32 %v6564_v40, %v2352_v42  ;;  %v7930_v6 = vld [vmem:[#allocation35_spill] sm:$0xff] }
 0x267   : > { %3622 = vmatmul.mubr.msk.bf16.gmra.mrb[12].mxu1 %vm1827_vm4, %v2444_v34  ;;  %v7926_v57 = vunpack.c.h.bf16 %v7924_v27  ;;  %v2392_v46 = vadd.f32 %v6564_v40, %v2353_v37  ;;  %v7928_v44 = vunpack.c.l.bf16 %v7927_v15  ;;  %v7929_v51 = vunpack.c.h.bf16 %v7927_v15  ;;  %v2315_v37 = vld [vmem:[%s5247_s26 + $0xa0] sm:$0xff] }
 0x268   : > { %v2000_v11 = vsel %vm1991_vm9, %v1967_v48, %v4162_v30  ;;  %v2001_v45 = vsel %vm1991_vm9, %v1968_v62, %v4163_v35  ;;  %v4166_v61 = vpop.permute.xlu0 %4165  ;;  %v2445_v22 = vpack.c.bf16 %v2422_v14, %v2421_v41  ;;  %v2423_v28 = vmax.f32 %v2391_v10, 0.0  ;;  %v7933_v62 = vld [vmem:[#allocation45_spill] sm:$0xff] }
 0x269   : > { %v4171_v31 = vpop.permute.xlu1 %4170  ;;  %v4394_v3 = vpack.i.bf16 %v7926_v57, %v7925_v17  ;;  %v4168_v56 = vunpack.i.h.bf16 %v4166_v61  ;;  %v4167_v53 = vunpack.i.l.bf16 %v4166_v61  ;;  %v4399_v21 = vpack.i.bf16 %v7929_v51, %v7928_v44  ;;  %v7939_v51 = vld [vmem:[#allocation52_spill] sm:$0xff] }
 0x26a   : > { %v4173_v32 = vunpack.i.h.bf16 %v4171_v31  ;;  %v4172_v54 = vunpack.i.l.bf16 %v4171_v31  ;;  %3625 = vmatprep.mubr.msk.bf16.mxu1 %vm1827_vm4, %v2445_v22  ;;  %v2424_v23 = vmax.f32 %v2392_v46, 0.0  ;;  %v7931_v13 = vunpack.c.l.bf16 %v7930_v6  ;;  %v2317_v22 = vld [vmem:[%s5247_s26 + $0xb0] sm:$0xff] }
 0x26b   : > { %4395 = vrot.lane.b32.xlu1 %v4394_v3, %s4830_s1  ;;  %v7932_v35 = vunpack.c.h.bf16 %v7930_v6  ;;  %v4043_v0 = vunpack.i.h.bf16 %v6474_v60  ;;  %v1936_v1 = vsel %vm1925_vm7, %v6604_v49, %v4147_v59  ;;  %4400 = vrot.lane.b32.xlu0 %v4399_v21, %s4830_s1  ;;  %v7934_v34 = vunpack.c.l.bf16 %v7933_v62  ;;  %v7936_v3 = vld [vmem:[#allocation47_spill] sm:$0xff] }
 0x26c   : > { %v2033_v33 = vsel %vm2024_vm10, %v2000_v11, %v4172_v54  ;;  %v2034_v50 = vsel %vm2024_vm10, %v2001_v45, %v4173_v32  ;;  %v7935_v41 = vunpack.c.h.bf16 %v7933_v62  ;;  %v2316_v11 = vld [vmem:[%s5247_s26 + $0xa8] sm:$0xff]  ;;  %v4042_v45 = vunpack.i.l.bf16 %v6474_v60  ;;  %v4176_v59 = vpop.permute.xlu0 %4175 }
 0x26d   : > { %v4404_v30 = vpack.i.bf16 %v7932_v35, %v7931_v13  ;;  %v2061_v42 = vpack.c.bf16 %v2034_v50, %v2033_v33  ;;  %v6760_v48 = vpop.permute.xlu1 %4180  ;;  %v1937_v31 = vsel %vm1925_vm7, %v6624_v38, %v4148_v12  ;;  %v1969_v49 = vsel %vm1958_vm8, %v1936_v1, %v4157_v24  ;;  %v2318_v33 = vld [vmem:[%s5247_s26 + $0xb8] sm:$0xff] }
 0x26e   : > { %v4409_v14 = vpack.i.bf16 %v7935_v41, %v7934_v34  ;;  %v2446_v10 = vpack.c.bf16 %v2424_v23, %v2423_v28  ;;  %v1970_v27 = vsel %vm1958_vm8, %v1937_v31, %v4158_v47  ;;  %v4178_v17 = vunpack.i.h.bf16 %v4176_v59  ;;  %v7942_v1 = vld [vmem:[#allocation54_spill] sm:$0xff] }
 0x26f   : > { %v4177_v57 = vunpack.i.l.bf16 %v4176_v59  ;;  %3583 = vmatprep.mubr.msk.bf16.mxu0 %vm2082_vm12, %v2061_v42  ;;  %4405 = vrot.lane.b32.xlu1 %v4404_v30, %s4830_s1  ;;  %v7937_v32 = vunpack.c.l.bf16 %v7936_v3  ;;  %v7938_v54 = vunpack.c.h.bf16 %v7936_v3  ;;  %v2002_v38 = vsel %vm1991_vm9, %v1969_v49, %v4167_v53 }
 0x270   : > { %v2003_v12 = vsel %vm1991_vm9, %v1970_v27, %v4168_v56  ;;  %v2354_v24 = vmul.f32 %v6548_v4, %v2315_v37  ;;  %v2355_v47 = vmul.f32 %v6548_v4, %v2316_v11  ;;  %v4038_v46 = vunpack.i.h.bf16 %v6480_v43  ;;  %3626 = vmatmul.mubr.msk.bf16.gmra.mrb[16].mxu1 %vm1827_vm4, %v2446_v10  ;;  %4410 = vrot.lane.b32.xlu0 %v4409_v14, %s4830_s1  ;;  %v6798_v13 = vpop.permute.xlu0 %4185  ;;  %v7945_v37 = vld [vmem:[#allocation61_spill] sm:$0xff] }
 0x271   : > { %v4414_v61 = vpack.i.bf16 %v7938_v54, %v7937_v32  ;;  %v2035_v28 = vsel %vm2024_vm10, %v2002_v38, %v4177_v57  ;;  %v2036_v15 = vsel %vm2024_vm10, %v2003_v12, %v4178_v17  ;;  %v4191_v44 = vpop.permute.xlu1 %4190  ;;  %v7940_v53 = vunpack.c.l.bf16 %v7939_v51 }
 0x272   : > { %v7941_v56 = vunpack.c.h.bf16 %v7939_v51  ;;  %v1907_v50 = vsel %vm1892_vm6, %v6527_v18, %v4042_v45  ;;  %v4037_v23 = vunpack.i.l.bf16 %v6480_v43  ;;  %v2062_v6 = vpack.c.bf16 %v2036_v15, %v2035_v28 }
 0x273   : > { %v2393_v35 = vadd.f32 %v6564_v40, %v2354_v24  ;;  %v4183_v30 = vunpack.i.h.bf16 %v6760_v48  ;;  %4415 = vrot.lane.b32.xlu1 %v4414_v61, %s4830_s1  ;;  %v7943_v42 = vunpack.c.l.bf16 %v7942_v1  ;;  %v7944_v62 = vunpack.c.h.bf16 %v7942_v1  ;;  %v7948_v24 = vld [vmem:[#allocation64_spill] sm:$0xff] }
 0x274   : > { %v4419_v21 = vpack.i.bf16 %v7941_v56, %v7940_v53  ;;  %v2394_v41 = vadd.f32 %v6564_v40, %v2355_v47  ;;  %v2356_v18 = vmul.f32 %v6548_v4, %v2317_v22  ;;  %v4182_v43 = vunpack.i.l.bf16 %v6760_v48  ;;  %3584 = vmatmul.mubr.msk.bf16.gmra.mrb[8].mxu0 %vm2082_vm12, %v2062_v6  ;;  %v4196_v54 = vpop.permute.xlu0 %4195  ;;  %v7951_v56 = vld [vmem:[#allocation69_spill] sm:$0xff] }
 0x275   : > { %v4424_v34 = vpack.i.bf16 %v7944_v62, %v7943_v42  ;;  %v2425_v14 = vmax.f32 %v2393_v35, 0.0  ;;  %v7946_v11 = vunpack.c.l.bf16 %v7945_v37  ;;  %v7947_v45 = vunpack.c.h.bf16 %v7945_v37  ;;  %v4201_v27 = vpop.permute.xlu1 %4200 }
 0x276   : > { %v2357_v49 = vmul.f32 %v6548_v4, %v2318_v33  ;;  %v4193_v59 = vunpack.i.h.bf16 %v4191_v44  ;;  %v4192_v10 = vunpack.i.l.bf16 %v4191_v44  ;;  %4420 = vrot.lane.b32.xlu0 %v4419_v21, %s4830_s1  ;;  %v2426_v17 = vmax.f32 %v2394_v41, 0.0  ;;  %v7954_v41 = vld [vmem:[#allocation71_spill] sm:$0xff] }
 0x277   : > { %v4429_v31 = vpack.i.bf16 %v7947_v45, %v7946_v11  ;;  %v2395_v57 = vadd.f32 %v6564_v40, %v2356_v18  ;;  %v1905_v48 = vsel %vm1892_vm6, %v6537_v63, %v4037_v23  ;;  %v1906_v3 = vsel %vm1892_vm6, %v6540_v36, %v4038_v46  ;;  %4425 = vrot.lane.b32.xlu1 %v4424_v34, %s4830_s1 }
 0x278   : > { %v4203_v32 = vunpack.i.h.bf16 %v4201_v27  ;;  %v2396_v61 = vadd.f32 %v6564_v40, %v2357_v49  ;;  %v4202_v38 = vunpack.i.l.bf16 %v4201_v27  ;;  %v2447_v4 = vpack.c.bf16 %v2426_v17, %v2425_v14  ;;  %v4206_v1 = vpop.permute.xlu0 %4205  ;;  %v7957_v17 = vld [vmem:[#allocation77_spill] sm:$0xff] }
 0x279   : > { %v2427_v12 = vmax.f32 %v2395_v57, 0.0  ;;  %v7949_v47 = vunpack.c.l.bf16 %v7948_v24  ;;  %v7950_v22 = vunpack.c.h.bf16 %v7948_v24  ;;  %v1938_v15 = vsel %vm1925_vm7, %v1905_v48, %v4182_v43  ;;  %v4211_v53 = vpop.permute.xlu1 %4210  ;;  %v7962_v24 = vld [vmem:[#allocation80_spill] sm:$0xff] }
 0x27a   : > { %v1939_v63 = vsel %vm1925_vm7, %v1906_v3, %v4183_v30  ;;  %v4188_v36 = vunpack.i.h.bf16 %v6798_v13  ;;  %v2428_v46 = vmax.f32 %v2396_v61, 0.0  ;;  %v1971_v44 = vsel %vm1958_vm8, %v1938_v15, %v4192_v10  ;;  %3629 = vmatprep.mubr.msk.bf16.mxu1 %vm1827_vm4, %v2447_v4  ;;  %4430 = vrot.lane.b32.xlu0 %v4429_v31, %s4830_s1 }
 0x27b   : > { %v4434_v28 = vpack.i.bf16 %v7950_v22, %v7949_v47  ;;  %v1972_v40 = vsel %vm1958_vm8, %v1939_v63, %v4193_v59  ;;  %v4187_v51 = vunpack.i.l.bf16 %v6798_v13  ;;  %v7952_v21 = vunpack.c.l.bf16 %v7951_v56 }
 0x27c   : > { %v7953_v33 = vunpack.c.h.bf16 %v7951_v56  ;;  %v4197_v6 = vunpack.i.l.bf16 %v4196_v54  ;;  %v4213_v35 = vunpack.i.h.bf16 %v4211_v53  ;;  %v4212_v30 = vunpack.i.l.bf16 %v4211_v53  ;;  %v7965_v53 = vld [vmem:[#allocation84_spill] sm:$0xff] }
 0x27d   : > { %v2448_v42 = vpack.c.bf16 %v2428_v46, %v2427_v12  ;;  %v2004_v62 = vsel %vm1991_vm9, %v1971_v44, %v4202_v38  ;;  %v2005_v34 = vsel %vm1991_vm9, %v1972_v40, %v4203_v32  ;;  %v4198_v13 = vunpack.i.h.bf16 %v4196_v54  ;;  %4435 = vrot.lane.b32.xlu1 %v4434_v28, %s4830_s1  ;;  %v4221_v27 = vpop.permute.xlu1 %4220  ;;  %v7961_v54 = vld [vmem:[#allocation73_spill] sm:$0xff] }
 0x27e   : > { %v4439_v23 = vpack.i.bf16 %v7953_v33, %v7952_v21  ;;  %v7955_v18 = vunpack.c.l.bf16 %v7954_v41  ;;  %v7956_v43 = vunpack.c.h.bf16 %v7954_v41  ;;  %v2037_v37 = vsel %vm2024_vm10, %v2004_v62, %v4212_v30  ;;  %v7970_v62 = vld [vmem:[#allocation65_spill] sm:$0xff] }
 0x27f   : > { %v2038_v11 = vsel %vm2024_vm10, %v2005_v34, %v4213_v35  ;;  %v4208_v45 = vunpack.i.h.bf16 %v4206_v1  ;;  %v4207_v31 = vunpack.i.l.bf16 %v4206_v1  ;;  %3630 = vmatmul.mubr.msk.bf16.gmra.mrb[20].mxu1 %vm1827_vm4, %v2448_v42  ;;  %v1908_v49 = vsel %vm1892_vm6, %v6530_v52, %v4043_v0 }
 0x280   : > { %v4444_v14 = vpack.i.bf16 %v7956_v43, %v7955_v18  ;;  %v1940_v59 = vsel %vm1925_vm7, %v1907_v50, %v4187_v51  ;;  %v2063_v10 = vpack.c.bf16 %v2038_v11, %v2037_v37  ;;  %4440 = vrot.lane.b32.xlu0 %v4439_v23, %s4830_s1  ;;  %v7958_v57 = vunpack.c.l.bf16 %v7957_v17  ;;  %v4216_v50 = vpop.permute.xlu0 %4215  ;;  %v7971_v18 = vld [vmem:[#allocation86_spill] sm:$0xff] }
 0x281   : > { %v7959_v48 = vunpack.c.h.bf16 %v7957_v17  ;;  %v7960_v32 = vunpack.i.l.bf16 %v6193_v29  ;;  %v3888_v60 = vunpack.i.h.bf16 %v6252_v8  ;;  %v1941_v52 = vsel %vm1925_vm7, %v1908_v49, %v4188_v36  ;;  %v4231_v51 = vpop.permute.xlu1 %4230 }
 0x282   : > { %v1973_v0 = vsel %vm1958_vm8, %v1940_v59, %v4197_v6  ;;  %v1974_v38 = vsel %vm1958_vm8, %v1941_v52, %v4198_v13  ;;  %v4218_v4 = vunpack.i.h.bf16 %v4216_v50  ;;  %v4217_v12 = vunpack.i.l.bf16 %v4216_v50  ;;  %3587 = vmatprep.mubr.msk.bf16.mxu0 %vm2082_vm12, %v2063_v10  ;;  %4445 = vrot.lane.b32.xlu1 %v4444_v14, %s4830_s1  ;;  %v7969_v6 = vld [vmem:[#allocation74_spill] sm:$0xff] }
 0x283   : > { %v4449_v3 = vpack.i.bf16 %v7959_v48, %v7958_v57  ;;  %v1814_v61 = vsel %vm1795_vm3, %v7961_v54, %v7960_v32  ;;  %v7963_v47 = vunpack.c.l.bf16 %v7962_v24  ;;  %v7964_v22 = vunpack.c.h.bf16 %v7962_v24 }
 0x284   : > { %v3897_v8 = vunpack.i.l.bf16 %v6260_v20  ;;  %v3893_v15 = vunpack.i.h.bf16 %v6262_v9  ;;  %v2006_v63 = vsel %vm1991_vm9, %v1973_v0, %v4207_v31  ;;  %v2007_v36 = vsel %vm1991_vm9, %v1974_v38, %v4208_v45  ;;  %v4226_v42 = vpop.permute.xlu0 %4225 }
 0x285   : > { %v4454_v28 = vpack.i.bf16 %v7964_v22, %v7963_v47  ;;  %v3892_v46 = vunpack.i.l.bf16 %v6262_v9  ;;  %v2039_v44 = vsel %vm2024_vm10, %v2006_v63, %v4217_v12  ;;  %v2040_v40 = vsel %vm2024_vm10, %v2007_v36, %v4218_v4  ;;  %4450 = vrot.lane.b32.xlu0 %v4449_v3, %s4830_s1  ;;  %v4241_v59 = vpop.permute.xlu1 %4240 }
 0x286   : > { %v7966_v56 = vunpack.c.l.bf16 %v7965_v53  ;;  %v7967_v21 = vunpack.c.h.bf16 %v7965_v53  ;;  %v7968_v23 = vunpack.i.h.bf16 %v6195_v19  ;;  %v3973_v30 = vunpack.i.h.bf16 %v6326_v55 }
 0x287   : > { %v3972_v9 = vunpack.i.l.bf16 %v6326_v55  ;;  %v2064_v1 = vpack.c.bf16 %v2040_v40, %v2039_v44  ;;  %v1812_v34 = vsel %vm1795_vm3, %v7970_v62, %v3817_v25  ;;  %v3968_v13 = vunpack.i.h.bf16 %v6328_v58  ;;  %4455 = vrot.lane.b32.xlu1 %v4454_v28, %s4830_s1 }
 0x288   : > { %v4459_v33 = vpack.i.bf16 %v7967_v21, %v7966_v56  ;;  %v1813_v35 = vsel %vm1795_vm3, %v7969_v6, %v7968_v23  ;;  %v3967_v41 = vunpack.i.l.bf16 %v6328_v58  ;;  %v7972_v43 = vunpack.c.l.bf16 %v7971_v18  ;;  %v4236_v48 = vpop.permute.xlu0 %4235 }
 0x289   : > { %v7973_v14 = vunpack.c.h.bf16 %v7971_v18  ;;  %v1843_v55 = vsel %vm1827_vm4, %v6419_v16, %v3888_v60  ;;  %v1846_v11 = vsel %vm1827_vm4, %v1814_v61, %v3897_v8  ;;  %v4048_v19 = vunpack.i.h.bf16 %v6504_v5  ;;  %3588 = vmatmul.mubr.msk.bf16.gmra.mrb[12].mxu0 %vm2082_vm12, %v2064_v1  ;;  %v4251_v12 = vpop.permute.xlu1 %4250 }
 0x28a   : > { %v4047_v25 = vunpack.i.l.bf16 %v6504_v5  ;;  %v1844_v58 = vsel %vm1827_vm4, %v1812_v34, %v3892_v46  ;;  %v1845_v45 = vsel %vm1827_vm4, %v1813_v35, %v3893_v15  ;;  %v4223_v31 = vunpack.i.h.bf16 %v4221_v27  ;;  %4460 = vrot.lane.b32.xlu0 %v4459_v33, %s4830_s1 }
 0x28b   : > { %v4464_v37 = vpack.i.bf16 %v7973_v14, %v7972_v43  ;;  %v4222_v49 = vunpack.i.l.bf16 %v4221_v27  ;;  %v1878_v10 = vsel %vm1859_vm5, %v1845_v45, %v3972_v9  ;;  %v1879_v16 = vsel %vm1859_vm5, %v1846_v11, %v3973_v30  ;;  %v7976_v11 = vld [vmem:[#allocation53_spill] sm:$0xff] }
 0x28c   : > { %v4233_v17 = vunpack.i.h.bf16 %v4231_v51  ;;  %v4232_v57 = vunpack.i.l.bf16 %v4231_v51  ;;  %v1876_v5 = vsel %vm1859_vm5, %v1843_v55, %v3967_v41  ;;  %v1877_v3 = vsel %vm1859_vm5, %v1844_v58, %v3968_v13  ;;  %v4246_v8 = vpop.permute.xlu0 %4245  ;;  %v7975_v41 = vld [vmem:[#allocation76_spill] sm:$0xff] }
 0x28d   : > { %v4243_v32 = vunpack.i.h.bf16 %v4241_v59  ;;  %v4242_v54 = vunpack.i.l.bf16 %v4241_v59  ;;  %4465 = vrot.lane.b32.xlu1 %v4464_v37, %s4830_s1  ;;  %v4053_v27 = vunpack.i.h.bf16 %v6498_v39  ;;  %v4052_v61 = vunpack.i.l.bf16 %v6498_v39  ;;  %v6931_v33 = vpop.permute.xlu1 %4260 }
 0x28e   : > { %v1909_v60 = vsel %vm1892_vm6, %v1876_v5, %v4047_v25  ;;  %v1910_v52 = vsel %vm1892_vm6, %v1877_v3, %v4048_v19  ;;  %v4228_v38 = vunpack.i.h.bf16 %v4226_v42  ;;  %v4227_v4 = vunpack.i.l.bf16 %v4226_v42 }
 0x28f   : > { %v1942_v0 = vsel %vm1925_vm7, %v1909_v60, %v4222_v49  ;;  %v1943_v50 = vsel %vm1925_vm7, %v1910_v52, %v4223_v31  ;;  %v4253_v22 = vunpack.i.h.bf16 %v4251_v12  ;;  %v4252_v28 = vunpack.i.l.bf16 %v4251_v12  ;;  %v7977_v31 = vld [vmem:[#allocation41_spill] sm:$0xff]  ;;  %v7983_v60 = vld [vmem:[#allocation51_spill] sm:$0xff] }
 0x290   : > { %v1975_v24 = vsel %vm1958_vm8, %v1942_v0, %v4232_v57  ;;  %v1976_v47 = vsel %vm1958_vm8, %v1943_v50, %v4233_v17  ;;  %v4238_v63 = vunpack.i.h.bf16 %v4236_v48  ;;  %v4237_v36 = vunpack.i.l.bf16 %v4236_v48  ;;  %v4256_v9 = vpop.permute.xlu0 %4255  ;;  %v7979_v57 = vld [vmem:[#allocation79_spill] sm:$0xff]  ;;  %v7980_v48 = vld [vmem:[#allocation42_spill] sm:$0xff] }
 0x291   : > { %v2008_v39 = vsel %vm1991_vm9, %v1975_v24, %v4242_v54  ;;  %v2009_v15 = vsel %vm1991_vm9, %v1976_v47, %v4243_v32  ;;  %v4248_v40 = vunpack.i.h.bf16 %v4246_v8  ;;  %v4247_v51 = vunpack.i.l.bf16 %v4246_v8  ;;  %v4271_v45 = vpop.permute.xlu1 %4270  ;;  %v7981_v32 = vld [vmem:[#allocation75_spill] sm:$0xff]  ;;  %v7984_v50 = vld [vmem:[#allocation38_spill] sm:$0xff] }
 0x292   : > { %v2041_v46 = vsel %vm2024_vm10, %v2008_v39, %v4252_v28  ;;  %v2042_v44 = vsel %vm2024_vm10, %v2009_v15, %v4253_v22  ;;  %v1911_v53 = vsel %vm1892_vm6, %v1878_v10, %v4052_v61  ;;  %v1912_v56 = vsel %vm1892_vm6, %v1879_v16, %v4053_v27  ;;  %v7978_v16 = vld [vmem:[#allocation78_spill] sm:$0xff]  ;;  %v7982_v27 = vld [vmem:[#allocation44_spill] sm:$0xff] }
 0x293   : > { %v2065_v21 = vpack.c.bf16 %v2042_v44, %v2041_v46  ;;  %v3832_v23 = vunpack.i.l.bf16 %v6202_v7  ;;  %v3828_v6 = vunpack.i.h.bf16 %v6204_v2  ;;  %v1945_v35 = vsel %vm1925_vm7, %v1912_v56, %v4228_v38 }
 0x294   : > { %v1944_v30 = vsel %vm1925_vm7, %v1911_v53, %v4227_v4  ;;  %v1978_v42 = vsel %vm1958_vm8, %v1945_v35, %v4238_v63  ;;  %v4258_v62 = vunpack.i.h.bf16 %v4256_v9  ;;  %v4257_v34 = vunpack.i.l.bf16 %v4256_v9  ;;  %v4266_v10 = vpop.permute.xlu0 %4265 }
 0x295   : > { %v1977_v1 = vsel %vm1958_vm8, %v1944_v30, %v4237_v36  ;;  %3591 = vmatprep.mubr.msk.bf16.mxu0 %vm2082_vm12, %v2065_v21  ;;  %v7974_v13 = vunpack.i.h.bf16 %v6193_v29  ;;  %v3827_v43 = vunpack.i.l.bf16 %v6204_v2  ;;  %v2011_v37 = vsel %vm1991_vm9, %v1978_v42, %v4248_v40  ;;  %v4281_v47 = vpop.permute.xlu1 %4280 }
 0x296   : > { %v2010_v14 = vsel %vm1991_vm9, %v1977_v1, %v4247_v51  ;;  %v3898_v55 = vunpack.i.h.bf16 %v6260_v20  ;;  %v3907_v19 = vunpack.i.l.bf16 %v7976_v11  ;;  %v2044_v58 = vsel %vm2024_vm10, %v2011_v37, %v4258_v62 }
 0x297   : > { %v1815_v18 = vsel %vm1795_vm3, %v7975_v41, %v7974_v13  ;;  %v2043_v25 = vsel %vm2024_vm10, %v2010_v14, %v4257_v34  ;;  %v3833_v29 = vunpack.i.h.bf16 %v6202_v7  ;;  %v3903_v49 = vunpack.i.h.bf16 %v7977_v31  ;;  %v7989_v7 = vld [vmem:[#allocation81_spill] sm:$0xff] }
 0x298   : > { %v3902_v59 = vunpack.i.l.bf16 %v7977_v31  ;;  %v2066_v2 = vpack.c.bf16 %v2044_v58, %v2043_v25  ;;  %v1818_v17 = vsel %vm1795_vm3, %v7978_v16, %v3832_v23  ;;  %v1817_v20 = vsel %vm1795_vm3, %v7979_v57, %v3828_v6  ;;  %v4276_v15 = vpop.permute.xlu0 %4275 }
 0x299   : > { %v3983_v5 = vunpack.i.h.bf16 %v7980_v48  ;;  %v3982_v3 = vunpack.i.l.bf16 %v7980_v48  ;;  %v1816_v54 = vsel %vm1795_vm3, %v7981_v32, %v3827_v43  ;;  %v3842_v61 = vunpack.i.l.bf16 %v7982_v27 }
 0x29a   : > { %v3978_v52 = vunpack.i.h.bf16 %v7983_v60  ;;  %v3977_v0 = vunpack.i.l.bf16 %v7983_v60  ;;  %3592 = vmatmul.mubr.msk.bf16.gmra.mrb[16].mxu0 %vm2082_vm12, %v2066_v2  ;;  %v3838_v38 = vunpack.i.h.bf16 %v7984_v50  ;;  %v3837_v4 = vunpack.i.l.bf16 %v7984_v50 }
 0x29b   : > { %v1847_v12 = vsel %vm1827_vm4, %v1815_v18, %v3898_v55  ;;  %v1850_v24 = vsel %vm1827_vm4, %v1818_v17, %v3907_v19  ;;  %v1848_v22 = vsel %vm1827_vm4, %v1816_v54, %v3902_v59  ;;  %v1849_v28 = vsel %vm1827_vm4, %v1817_v20, %v3903_v49 }
 0x29c   : > { %v4058_v8 = vunpack.i.h.bf16 %v6544_v26  ;;  %v4057_v39 = vunpack.i.l.bf16 %v6544_v26  ;;  %v1882_v63 = vsel %vm1859_vm5, %v1849_v28, %v3982_v3  ;;  %v1883_v36 = vsel %vm1859_vm5, %v1850_v24, %v3983_v5  ;;  %v4291_v26 = vpop.permute.xlu1 %4290  ;;  %v4286_v62 = vpop.permute.xlu0 %4285 }
 0x29d   : > { %v4263_v46 = vunpack.i.h.bf16 %v6931_v33  ;;  %v4262_v44 = vunpack.i.l.bf16 %v6931_v33  ;;  %v1880_v40 = vsel %vm1859_vm5, %v1847_v12, %v3977_v0  ;;  %v1881_v51 = vsel %vm1859_vm5, %v1848_v22, %v3978_v52  ;;  %v7985_v22 = vld [vmem:[#allocation82_spill] sm:$0xff] }
 0x29e   : > { %v4273_v53 = vunpack.i.h.bf16 %v4271_v45  ;;  %v4272_v56 = vunpack.i.l.bf16 %v4271_v45  ;;  %v4268_v21 = vunpack.i.h.bf16 %v4266_v10  ;;  %v4267_v23 = vunpack.i.l.bf16 %v4266_v10 }
 0x29f   : > { %v4283_v6 = vunpack.i.h.bf16 %v4281_v47  ;;  %v4282_v35 = vunpack.i.l.bf16 %v4281_v47  ;;  %v1913_v30 = vsel %vm1892_vm6, %v1880_v40, %v4057_v39  ;;  %v1914_v9 = vsel %vm1892_vm6, %v1881_v51, %v4058_v8  ;;  %v7986_v8 = vld [vmem:[#allocation88_spill] sm:$0xff] }
 0x2a0   : > { %v4278_v1 = vunpack.i.h.bf16 %v4276_v15  ;;  %v4277_v42 = vunpack.i.l.bf16 %v4276_v15  ;;  %v1916_v33 = vsel %vm1892_vm6, %v1883_v36, %v4263_v46  ;;  %v1915_v34 = vsel %vm1892_vm6, %v1882_v63, %v4262_v44  ;;  %v4301_v45 = vpop.permute.xlu1 %4300  ;;  %v4296_v10 = vpop.permute.xlu0 %4295  ;;  %v7987_v15 = vld [vmem:[#allocation50_spill] sm:$0xff]  ;;  %v2319_v36 = vld [vmem:[%s5247_s26 + $0xc0] sm:$0xff]  ;;  %v2320_v46 = vld [vmem:[%s5247_s26 + $0xc8] sm:$0xff] }
 0x2a1   : > { %v4293_v13 = vunpack.i.h.bf16 %v4291_v26  ;;  %v4292_v41 = vunpack.i.l.bf16 %v4291_v26  ;;  %v1948_v18 = vsel %vm1925_vm7, %v1915_v34, %v4272_v56  ;;  %v1949_v43 = vsel %vm1925_vm7, %v1916_v33, %v4273_v53  ;;  %v2321_v53 = vld [vmem:[%s5247_s26 + $0xd0] sm:$0xff]  ;;  %v2322_v56 = vld [vmem:[%s5247_s26 + $0xd8] sm:$0xff] }
 0x2a2   : > { %v4288_v14 = vunpack.i.h.bf16 %v4286_v62  ;;  %v4287_v37 = vunpack.i.l.bf16 %v4286_v62  ;;  %v1946_v55 = vsel %vm1925_vm7, %v1913_v30, %v4267_v23  ;;  %v1947_v19 = vsel %vm1925_vm7, %v1914_v9, %v4268_v21  ;;  %v7990_v21 = vld [vmem:[#allocation55_spill] sm:$0xff]  ;;  %v7991_v26 = vld [vmem:[#allocation58_spill] sm:$0xff] }
 0x2a3   : > { %v1981_v25 = vsel %vm1958_vm8, %v1948_v18, %v4282_v35  ;;  %v1982_v58 = vsel %vm1958_vm8, %v1949_v43, %v4283_v6  ;;  %v1979_v31 = vsel %vm1958_vm8, %v1946_v55, %v4277_v42  ;;  %v1980_v49 = vsel %vm1958_vm8, %v1947_v19, %v4278_v1  ;;  %v7038_v1 = vld [vmem:[#allocation14] ss:$0 sm:$0xff]  ;;  %v7992_v18 = vld [vmem:[#allocation66_spill] sm:$0xff] }
 0x2a4   : > { %v4303_v59 = vunpack.i.h.bf16 %v4301_v45  ;;  %v4302_v2 = vunpack.i.l.bf16 %v4301_v45  ;;  %v2014_v16 = vsel %vm1991_vm9, %v1981_v25, %v4292_v41  ;;  %v2015_v17 = vsel %vm1991_vm9, %v1982_v58, %v4293_v13  ;;  %v7000_v0 = vpop.permute.xlu1 %4310  ;;  %v7003_v47 = vpop.permute.xlu0 %4305 }
 0x2a5   : > { %v4298_v57 = vunpack.i.h.bf16 %v4296_v10  ;;  %v4297_v20 = vunpack.i.l.bf16 %v4296_v10  ;;  %v2012_v48 = vsel %vm1991_vm9, %v1979_v31, %v4287_v37  ;;  %v2013_v5 = vsel %vm1991_vm9, %v1980_v49, %v4288_v14 }
 0x2a6   : > { %v2047_v3 = vsel %vm2024_vm10, %v2014_v16, %v4302_v2  ;;  %v2048_v32 = vsel %vm2024_vm10, %v2015_v17, %v4303_v59  ;;  %v3908_v12 = vunpack.i.h.bf16 %v7976_v11  ;;  %v1819_v28 = vsel %vm1795_vm3, %v7985_v22, %v3833_v29  ;;  %v7988_v11 = vld [vmem:[#allocation89_spill] sm:$0xff] }
 0x2a7   : > { %v2068_v54 = vpack.c.bf16 %v2048_v32, %v2047_v3  ;;  %v2045_v60 = vsel %vm2024_vm10, %v2012_v48, %v4297_v20  ;;  %v2046_v52 = vsel %vm2024_vm10, %v2013_v5, %v4298_v57  ;;  %v1822_v39 = vsel %vm1795_vm3, %v7986_v8, %v3842_v61  ;;  %v7025_v29 = vld [vmem:[#allocation13] ss:$0 sm:$0xff] }
 0x2a8   : > { %v2067_v24 = vpack.c.bf16 %v2046_v52, %v2045_v60  ;;  %v3917_v63 = vunpack.i.l.bf16 %v7987_v15  ;;  %v1821_v44 = vsel %vm1795_vm3, %v7988_v11, %v3838_v38  ;;  %v1820_v40 = vsel %vm1795_vm3, %v7989_v7, %v3837_v4  ;;  %v4321_v50 = vpop.permute.xlu1 %4320  ;;  %v4316_v9 = vpop.permute.xlu0 %4315 }
 0x2a9   : > { %v2358_v61 = vmul.f32 %v7025_v29, %v2319_v36  ;;  %v2359_v51 = vmul.f32 %v7025_v29, %v2320_v46  ;;  %v3913_v23 = vunpack.i.h.bf16 %v7990_v21  ;;  %v3912_v6 = vunpack.i.l.bf16 %v7990_v21 }
 0x2aa   : > { %3595 = vmatprep.mubr.msk.bf16.mxu0 %vm2082_vm12, %v2067_v24  ;;  %v2360_v38 = vmul.f32 %v7025_v29, %v2321_v53  ;;  %v2361_v4 = vmul.f32 %v7025_v29, %v2322_v56  ;;  %v1851_v35 = vsel %vm1827_vm4, %v1819_v28, %v3908_v12  ;;  %v3992_v30 = vunpack.i.l.bf16 %v7991_v26 }
 0x2ab   : > { %3596 = vmatmul.mubr.msk.bf16.gmra.mrb[20].mxu0 %vm2082_vm12, %v2068_v54  ;;  %v2397_v42 = vadd.f32 %v7038_v1, %v2358_v61  ;;  %v2398_v62 = vadd.f32 %v7038_v1, %v2359_v51  ;;  %v1854_v33 = vsel %vm1827_vm4, %v1822_v39, %v3917_v63  ;;  %v3993_v34 = vunpack.i.h.bf16 %v7991_v26 }
 0x2ac   : > { %v2399_v13 = vadd.f32 %v7038_v1, %v2360_v38  ;;  %v2400_v41 = vadd.f32 %v7038_v1, %v2361_v4  ;;  %v3988_v43 = vunpack.i.h.bf16 %v7992_v18  ;;  %v3987_v14 = vunpack.i.l.bf16 %v7992_v18  ;;  %v4331_v58 = vpop.permute.xlu1 %4330  ;;  %v4326_v10 = vpop.permute.xlu0 %4325 }
 0x2ad   : > { %v2429_v37 = vmax.f32 %v2397_v42, 0.0  ;;  %v2430_v55 = vmax.f32 %v2398_v62, 0.0  ;;  %v1852_v19 = vsel %vm1827_vm4, %v1820_v40, %v3912_v6  ;;  %v1853_v25 = vsel %vm1827_vm4, %v1821_v44, %v3913_v23 }
 0x2ae   : > { %v2431_v45 = vmax.f32 %v2399_v13, 0.0  ;;  %v2432_v31 = vmax.f32 %v2400_v41, 0.0  ;;  %v1886_v49 = vsel %vm1859_vm5, %v1853_v25, %v3992_v30  ;;  %v4313_v59 = vunpack.i.h.bf16 %v7000_v0 }
 0x2af   : > { %v4312_v2 = vunpack.i.l.bf16 %v7000_v0  ;;  %v2449_v16 = vpack.c.bf16 %v2430_v55, %v2429_v37  ;;  %v1887_v17 = vsel %vm1859_vm5, %v1854_v33, %v3993_v34  ;;  %v4308_v57 = vunpack.i.h.bf16 %v7003_v47  ;;  %v7993_v55 = vld [vmem:[#allocation36_spill] sm:$0xff] }
 0x2b0   : > { %v4307_v20 = vunpack.i.l.bf16 %v7003_v47  ;;  %v2450_v48 = vpack.c.bf16 %v2432_v31, %v2431_v45  ;;  %v1884_v5 = vsel %vm1859_vm5, %v1851_v35, %v3987_v14  ;;  %v1885_v3 = vsel %vm1859_vm5, %v1852_v19, %v3988_v43  ;;  %v4341_v24 = vpop.permute.xlu1 %4340  ;;  %v4336_v39 = vpop.permute.xlu0 %4335 }
 0x2b1   : > { %v4323_v32 = vunpack.i.h.bf16 %v4321_v50  ;;  %v4322_v54 = vunpack.i.l.bf16 %v4321_v50  ;;  %3633 = vmatprep.mubr.msk.bf16.mxu1 %vm1827_vm4, %v2449_v16  ;;  %v4318_v60 = vunpack.i.h.bf16 %v4316_v9  ;;  %v4317_v52 = vunpack.i.l.bf16 %v4316_v9  ;;  %v2326_v16 = vld [vmem:[%s5247_s26 + $0xf8] sm:$0xff] }
 0x2b2   : > { %v4333_v0 = vunpack.i.h.bf16 %v4331_v58  ;;  %v4332_v12 = vunpack.i.l.bf16 %v4331_v58  ;;  %3634 = vmatmul.mubr.msk.bf16.gmra.mrb[24].mxu1 %vm1827_vm4, %v2450_v48  ;;  %v1920_v22 = vsel %vm1892_vm6, %v1887_v17, %v4313_v59  ;;  %v1919_v47 = vsel %vm1892_vm6, %v1886_v49, %v4312_v2  ;;  %v2323_v49 = vld [vmem:[%s5247_s26 + $0xe0] sm:$0xff]  ;;  %v2324_v59 = vld [vmem:[%s5247_s26 + $0xe8] sm:$0xff] }
 0x2b3   : > { %v4328_v28 = vunpack.i.h.bf16 %v4326_v10  ;;  %v4327_v8 = vunpack.i.l.bf16 %v4326_v10  ;;  %v1917_v63 = vsel %vm1892_vm6, %v1884_v5, %v4307_v20  ;;  %v1918_v36 = vsel %vm1892_vm6, %v1885_v3, %v4308_v57  ;;  %v2325_v10 = vld [vmem:[%s5247_s26 + $0xf0] sm:$0xff]  ;;  %v7994_v17 = vld [vmem:[#allocation91_spill] sm:$0xff]  ;;  %v7995_v20 = vld [vmem:[#allocation32_spill] sm:$0xff] }
 0x2b4   : > { %v4343_v46 = vunpack.i.h.bf16 %v4341_v24  ;;  %v4342_v11 = vunpack.i.l.bf16 %v4341_v24  ;;  %v1952_v44 = vsel %vm1925_vm7, %v1919_v47, %v4322_v54  ;;  %v1953_v7 = vsel %vm1925_vm7, %v1920_v22, %v4323_v32  ;;  %v4351_v23 = vpop.permute.xlu1 %4350  ;;  %v4346_v35 = vpop.permute.xlu0 %4345  ;;  %v7996_v48 = vld [vmem:[#allocation96_spill] sm:$0xff]  ;;  %v7997_v54 = vld [vmem:[#allocation95_spill] sm:$0xff] }
 0x2b5   : > { %v4338_v40 = vunpack.i.h.bf16 %v4336_v39  ;;  %v4337_v61 = vunpack.i.l.bf16 %v4336_v39  ;;  %v1950_v51 = vsel %vm1925_vm7, %v1917_v63, %v4317_v52  ;;  %v1951_v53 = vsel %vm1925_vm7, %v1918_v36, %v4318_v60  ;;  %v7998_v52 = vld [vmem:[#allocation90_spill] sm:$0xff] }
 0x2b6   : > { %v1985_v56 = vsel %vm1958_vm8, %v1952_v44, %v4332_v12  ;;  %v1986_v21 = vsel %vm1958_vm8, %v1953_v7, %v4333_v0  ;;  %v1983_v6 = vsel %vm1958_vm8, %v1950_v51, %v4327_v8  ;;  %v1984_v50 = vsel %vm1958_vm8, %v1951_v53, %v4328_v28  ;;  %v7999_v28 = vld [vmem:[#allocation48_spill] sm:$0xff]  ;;  %v8000_v63 = vld [vmem:[#allocation46_spill] sm:$0xff]  ;;  %v8001_v7 = vld [vmem:[#allocation59_spill] sm:$0xff] }
 0x2b7   : > { %v4353_v38 = vunpack.i.h.bf16 %v4351_v23  ;;  %v4352_v4 = vunpack.i.l.bf16 %v4351_v23  ;;  %v2018_v26 = vsel %vm1991_vm9, %v1985_v56, %v4342_v11  ;;  %v2019_v30 = vsel %vm1991_vm9, %v1986_v21, %v4343_v46  ;;  %v8002_v21 = vld [vmem:[#allocation57_spill] sm:$0xff] }
 0x2b8   : > { %v4348_v9 = vunpack.i.h.bf16 %v4346_v35  ;;  %v4347_v42 = vunpack.i.l.bf16 %v4346_v35  ;;  %v2016_v62 = vsel %vm1991_vm9, %v1983_v6, %v4337_v61  ;;  %v2017_v33 = vsel %vm1991_vm9, %v1984_v50, %v4338_v40  ;;  %v4361_v37 = vpop.permute.xlu1 %4360  ;;  %v7083_v45 = vpop.permute.xlu0 %4355 }
 0x2b9   : > { %v2051_v34 = vsel %vm2024_vm10, %v2018_v26, %v4352_v4  ;;  %v2052_v13 = vsel %vm2024_vm10, %v2019_v30, %v4353_v38  ;;  %v3843_v41 = vunpack.i.h.bf16 %v7982_v27  ;;  %v3848_v19 = vunpack.i.h.bf16 %v7993_v55 }
 0x2ba   : > { %v2070_v18 = vpack.c.bf16 %v2052_v13, %v2051_v34  ;;  %v2049_v43 = vsel %vm2024_vm10, %v2016_v62, %v4347_v42  ;;  %v2050_v14 = vsel %vm2024_vm10, %v2017_v33, %v4348_v9  ;;  %v3847_v25 = vunpack.i.l.bf16 %v7993_v55 }
 0x2bb   : > { %v2069_v58 = vpack.c.bf16 %v2050_v14, %v2049_v43  ;;  %v3918_v31 = vunpack.i.h.bf16 %v7987_v15  ;;  %v2362_v27 = vmul.f32 %v7025_v29, %v2323_v49  ;;  %v2363_v2 = vmul.f32 %v7025_v29, %v2324_v59 }
 0x2bc   : > { %v1823_v57 = vsel %vm1795_vm3, %v7994_v17, %v3843_v41  ;;  %v1826_v5 = vsel %vm1795_vm3, %v7996_v48, %v7995_v20  ;;  %v4371_v15 = vpop.permute.xlu1 %4370  ;;  %v2364_v3 = vmul.f32 %v7025_v29, %v2325_v10  ;;  %v2365_v32 = vmul.f32 %v7025_v29, %v2326_v16  ;;  %v4366_v12 = vpop.permute.xlu0 %4365 }
 0x2bd   : > { %3599 = vmatprep.mubr.msk.bf16.mxu0 %vm2082_vm12, %v2069_v58  ;;  %v1825_v60 = vsel %vm1795_vm3, %v7997_v54, %v3848_v19  ;;  %v1824_v0 = vsel %vm1795_vm3, %v7998_v52, %v3847_v25  ;;  %v2401_v24 = vadd.f32 %v7038_v1, %v2362_v27  ;;  %v2402_v22 = vadd.f32 %v7038_v1, %v2363_v2 }
 0x2be   : > { %3600 = vmatmul.mubr.msk.bf16.gmra.mrb[24].mxu0 %vm2082_vm12, %v2070_v18  ;;  %v1855_v47 = vsel %vm1827_vm4, %v1823_v57, %v3918_v31  ;;  %v1858_v8 = vsel %vm1827_vm4, %v1826_v5, %v7999_v28  ;;  %v2403_v39 = vadd.f32 %v7038_v1, %v2364_v3  ;;  %v2404_v29 = vadd.f32 %v7038_v1, %v2365_v32 }
 0x2bf   : > { %v3923_v36 = vunpack.i.h.bf16 %v8000_v63  ;;  %v3922_v46 = vunpack.i.l.bf16 %v8000_v63  ;;  %v2433_v11 = vmax.f32 %v2401_v24, 0.0  ;;  %v2434_v44 = vmax.f32 %v2402_v22, 0.0 }
 0x2c0   : > { %v4003_v40 = vunpack.i.h.bf16 %v8001_v7  ;;  %v4002_v61 = vunpack.i.l.bf16 %v8001_v7  ;;  %v1577_v51 = vpop.permute.xlu1 %1576  ;;  %v2435_v53 = vmax.f32 %v2403_v39, 0.0  ;;  %v2436_v56 = vmax.f32 %v2404_v29, 0.0  ;;  %v4376_v38 = vpop.permute.xlu0 %4375 }
 0x2c1   : > { %v3998_v23 = vunpack.i.h.bf16 %v8002_v21  ;;  %v4363_v6 = vunpack.i.h.bf16 %v4361_v37  ;;  %v4362_v50 = vunpack.i.l.bf16 %v4361_v37  ;;  %v2451_v4 = vpack.c.bf16 %v2434_v44, %v2433_v11 }
 0x2c2   : > { %v3997_v1 = vunpack.i.l.bf16 %v8002_v21  ;;  %v4373_v35 = vunpack.i.h.bf16 %v4371_v15  ;;  %v4372_v26 = vunpack.i.l.bf16 %v4371_v15  ;;  %v2452_v30 = vpack.c.bf16 %v2436_v56, %v2435_v53 }
 0x2c3   : > { %v1856_v9 = vsel %vm1827_vm4, %v1824_v0, %v3922_v46  ;;  %v1857_v42 = vsel %vm1827_vm4, %v1825_v60, %v3923_v36  ;;  %v4358_v62 = vunpack.i.h.bf16 %v7083_v45  ;;  %v4357_v33 = vunpack.i.l.bf16 %v7083_v45  ;;  %3637 = vmatprep.mubr.msk.bf16.mxu1 %vm1827_vm4, %v2451_v4 }
 0x2c4   : > { %v1891_v34 = vsel %vm1859_vm5, %v1858_v8, %v4003_v40  ;;  %v1890_v13 = vsel %vm1859_vm5, %v1857_v42, %v4002_v61  ;;  %v4368_v41 = vunpack.i.h.bf16 %v4366_v12  ;;  %v4367_v18 = vunpack.i.l.bf16 %v4366_v12  ;;  %v1670_v43 = vpop.permute.xlu1 %1669  ;;  %3638 = vmatmul.mubr.msk.bf16.gmra.mrb[28].mxu1 %vm1827_vm4, %v2452_v30  ;;  %v4381_v25 = vpop.permute.xlu0 %4380 }
 0x2c5   : > { %v1923_v14 = vsel %vm1892_vm6, %v1890_v13, %v4362_v50  ;;  %v1924_v37 = vsel %vm1892_vm6, %v1891_v34, %v4363_v6  ;;  %v4378_v55 = vunpack.i.h.bf16 %v4376_v38  ;;  %v4377_v19 = vunpack.i.l.bf16 %v4376_v38 }
 0x2c6   : > { %v1888_v58 = vsel %vm1859_vm5, %v1855_v47, %v3997_v1  ;;  %v1889_v45 = vsel %vm1859_vm5, %v1856_v9, %v3998_v23  ;;  %v1956_v31 = vsel %vm1925_vm7, %v1923_v14, %v4372_v26  ;;  %v1957_v49 = vsel %vm1925_vm7, %v1924_v37, %v4373_v35 }
 0x2c7   : > { %v1921_v59 = vsel %vm1892_vm6, %v1888_v58, %v4357_v33  ;;  %v1922_v27 = vsel %vm1892_vm6, %v1889_v45, %v4358_v62  ;;  %v4383_v2 = vunpack.i.h.bf16 %v4381_v25  ;;  %v4382_v10 = vunpack.i.l.bf16 %v4381_v25 }
 0x2c8   : > { %v1954_v16 = vsel %vm1925_vm7, %v1921_v59, %v4367_v18  ;;  %v1955_v17 = vsel %vm1925_vm7, %v1922_v27, %v4368_v41  ;;  %v1763_v57 = vpop.permute.xlu1 %1762  ;;  %v1989_v20 = vsel %vm1958_vm8, %v1956_v31, %v1577_v51  ;;  %v1990_v48 = vsel %vm1958_vm8, %v1957_v49, %v1577_v51  ;;  %v4386_v3 = vpop.permute.xlu0 %4385 }
 0x2c9   : > { %v1987_v5 = vsel %vm1958_vm8, %v1954_v16, %v4377_v19  ;;  %v1988_v15 = vsel %vm1958_vm8, %v1955_v17, %v4378_v55  ;;  %v2022_v32 = vsel %vm1991_vm9, %v1989_v20, %v1670_v43  ;;  %v2023_v54 = vsel %vm1991_vm9, %v1990_v48, %v1670_v43 }
 0x2ca   : > { %v4388_v60 = vunpack.i.h.bf16 %v4386_v3  ;;  %v4387_v52 = vunpack.i.l.bf16 %v4386_v3  ;;  %v2020_v0 = vsel %vm1991_vm9, %v1987_v5, %v4382_v10  ;;  %v2021_v12 = vsel %vm1991_vm9, %v1988_v15, %v4383_v2 }
 0x2cb   : > { %v2055_v24 = vsel %vm2024_vm10, %v2022_v32, %v1763_v57  ;;  %v2056_v22 = vsel %vm2024_vm10, %v2023_v54, %v1763_v57 }
 0x2cc   : > { %v2053_v47 = vsel %vm2024_vm10, %v2020_v0, %v4387_v52  ;;  %v2054_v28 = vsel %vm2024_vm10, %v2021_v12, %v4388_v60  ;;  %v2072_v39 = vpack.c.bf16 %v2056_v22, %v2055_v24  ;;  %v7208_v59 = vpop.permute.xlu0 %4390 }
 0x2cd   : > { %v2071_v8 = vpack.c.bf16 %v2054_v28, %v2053_v47 }
 0x2cf   : > { %3603 = vmatprep.mubr.msk.bf16.mxu0 %vm2082_vm12, %v2071_v8 }
 0x2d0   : > { %3604 = vmatmul.mubr.msk.bf16.gmra.mrb[28].mxu0 %vm2082_vm12, %v2072_v39 }
 0x2dd   : > { %v4396_v2 = vpop.permute.xlu1 %4395  ;;  %v7218_v17 = vpop.permute.xlu0 %4400 }
 0x2e1   : > { %v7220_v57 = vpop.permute.xlu1 %4405 }
 0x2e2   : > { %v7224_v48 = vpop.permute.xlu0 %4410 }
 0x2e5   : > { %v7226_v15 = vpop.permute.xlu1 %4415 }
 0x2e8   : > { %v7230_v60 = vpop.permute.xlu0 %4420 }
 0x2e9   : > { %v7233_v52 = vpop.permute.xlu1 %4425 }
 0x2ec   : > { %v7240_v24 = vpop.permute.xlu0 %4430 }
 0x2ef   : > { %v7244_v47 = vpop.permute.xlu1 %4435 }
 0x2f2   : > { %v7248_v8 = vpop.permute.xlu0 %4440 }
 0x2f4   : > { %v7250_v39 = vpop.permute.xlu1 %4445 }
 0x317   : > { %v7150_v29 = vpop.f32.mrb[0].mxu1 }
 0x318   : > { %v7152_v63 = vpop.f32.mrb[1].mxu1 }
 0x319   : > { %v7154_v36 = vpop.f32.mrb[2].mxu1 }
 0x31a   : > { %v7156_v46 = vpop.f32.mrb[3].mxu1 }
 0x325   : > { %v3577_v11 = vpop.f32.mrb[0].mxu0 }
 0x326   : > { %2895 = vrot.lane.b32.xlu0 %v3577_v11, %s4831_s20  ;;  %v2168_v44 = vpop.f32.mrb[1].mxu0 }
 0x327   : > { %v3578_v7 = vpop.f32.mrb[2].mxu0  ;;  %v7160_v61 = vpop.f32.mrb[4].mxu1 }
 0x328   : > { %2897 = vrot.lane.b32.xlu1 %v3578_v7, %s4831_s20  ;;  %v2171_v40 = vpop.f32.mrb[3].mxu0  ;;  %v7163_v51 = vpop.f32.mrb[5].mxu1 }
 0x329   : > { %v7165_v53 = vpop.f32.mrb[6].mxu1 }
 0x32a   : > { %2891 = vrot.lane.b32.xlu0 %v2168_v44, %s4831_s20  ;;  %v7168_v56 = vpop.f32.mrb[7].mxu1 }
 0x32c   : > { %2893 = vrot.lane.b32.xlu1 %v2171_v40, %s4831_s20  ;;  %v7253_v40 = vpop.permute.xlu0 %4450 }
 0x330   : > { %v7172_v38 = vpop.f32.mrb[8].mxu1 }
 0x331   : > { %v7175_v4 = vpop.f32.mrb[9].mxu1 }
 0x332   : > { %v7177_v1 = vpop.f32.mrb[10].mxu1 }
 0x333   : > { %v7180_v35 = vpop.f32.mrb[11].mxu1 }
 0x335   : > { %v3581_v21 = vpop.f32.mrb[4].mxu0 }
 0x336   : > { %2903 = vrot.lane.b32.xlu0 %v3581_v21, %s4831_s20  ;;  %v2184_v23 = vpop.f32.mrb[5].mxu0 }
 0x337   : > { %v3582_v6 = vpop.f32.mrb[6].mxu0 }
 0x338   : > { %2905 = vrot.lane.b32.xlu1 %v3582_v6, %s4831_s20  ;;  %v2187_v50 = vpop.f32.mrb[7].mxu0  ;;  %v3521_v6 = vld [vmem:[%s5238_s28 + $0x8] sm:$0xff]  }
 0x33a   : > { %2899 = vrot.lane.b32.xlu0 %v2184_v23, %s4831_s20  ;;  %v7184_v62 = vpop.f32.mrb[12].mxu1  ;;  %v7256_v23 = vpop.permute.xlu1 %4455 }
 0x33b   : > { %v7187_v33 = vpop.f32.mrb[13].mxu1 }
 0x33c   : > { %2901 = vrot.lane.b32.xlu1 %v2187_v50, %s4831_s20  ;;  %v7189_v34 = vpop.f32.mrb[14].mxu1  ;;  %v4397_v50 = vunpack.i.l.bf16 %v4396_v2 }
 0x33d   : > { %v7192_v13 = vpop.f32.mrb[15].mxu1 }
 0x343   : > { %v7196_v37 = vpop.f32.mrb[16].mxu1 }
 0x344   : > { %v7199_v55 = vpop.f32.mrb[17].mxu1 }
 0x345   : > { %v7201_v19 = vpop.f32.mrb[18].mxu1 }
 0x346   : > { %v7204_v25 = vpop.f32.mrb[19].mxu1 }
 0x347   : > { %v3585_v26 = vpop.f32.mrb[8].mxu0 }
 0x348   : > { %2911 = vrot.lane.b32.xlu0 %v3585_v26, %s4831_s20  ;;  %v2200_v30 = vpop.f32.mrb[9].mxu0  ;;  %v7261_v26 = vpop.permute.xlu0 %4460 }
 0x349   : > { %v3586_v9 = vpop.f32.mrb[10].mxu0 }
 0x34a   : > { %2913 = vrot.lane.b32.xlu1 %v3586_v9, %s4831_s20  ;;  %v2203_v42 = vpop.f32.mrb[11].mxu0 }
 0x34c   : > { %2907 = vrot.lane.b32.xlu0 %v2200_v30, %s4831_s20  ;;  %v3448_v30 = vunpack.c.l.bf16 %v3521_v6 }
 0x34e   : > { %2909 = vrot.lane.b32.xlu1 %v2203_v42, %s4831_s20  ;;  %v3443_v42 = vld [vmem:[%s5238_s28] sm:$0xff]  }
 0x352   : > { %v7210_v27 = vpop.f32.mrb[20].mxu1 }
 0x353   : > { %v7213_v10 = vpop.f32.mrb[21].mxu1 }
 0x354   : > { %v7216_v16 = vpop.f32.mrb[22].mxu1 }
 0x355   : > { %v7222_v20 = vpop.f32.mrb[23].mxu1 }
 0x35c   : > { %v3589_v41 = vpop.f32.mrb[12].mxu0 }
 0x35d   : > { %2919 = vrot.lane.b32.xlu0 %v3589_v41, %s4831_s20  ;;  %v2216_v18 = vpop.f32.mrb[13].mxu0 }
 0x35e   : > { %v3590_v43 = vpop.f32.mrb[14].mxu0 }
 0x35f   : > { %2921 = vrot.lane.b32.xlu1 %v3590_v43, %s4831_s20  ;;  %v2219_v14 = vpop.f32.mrb[15].mxu0  ;;  %v7268_v43 = vpop.permute.xlu1 %4465 }
 0x361   : > { %2915 = vrot.lane.b32.xlu0 %v2216_v18, %s4831_s20  ;;  %v4398_v18 = vunpack.i.h.bf16 %v4396_v2 }
 0x363   : > { %2917 = vrot.lane.b32.xlu1 %v2219_v14, %s4831_s20  ;;  %v3449_v14 = vunpack.c.h.bf16 %v3521_v6 }
 0x36d   : > { %v3593_v58 = vpop.f32.mrb[16].mxu0 }
 0x36e   : > { %2927 = vrot.lane.b32.xlu0 %v3593_v58, %s4831_s20  ;;  %v2232_v45 = vpop.f32.mrb[17].mxu0 }
 0x36f   : > { %v3594_v31 = vpop.f32.mrb[18].mxu0 }
 0x370   : > { %2929 = vrot.lane.b32.xlu1 %v3594_v31, %s4831_s20  ;;  %v2235_v49 = vpop.f32.mrb[19].mxu0  ;;  %v4392_v31 = vunpack.i.l.bf16 %v7208_v59 }
 0x372   : > { %2923 = vrot.lane.b32.xlu0 %v2232_v45, %s4831_s20 }
 0x374   : > { %2925 = vrot.lane.b32.xlu1 %v2235_v49, %s4831_s20  ;;  %v2989_v49 = vsel %vm1827_vm4, %v3448_v30, %v4397_v50 }
 0x37e   : > { %v3597_v5 = vpop.f32.mrb[20].mxu0 }
 0x37f   : > { %2935 = vrot.lane.b32.xlu0 %v3597_v5, %s4831_s20  ;;  %v2248_v3 = vpop.f32.mrb[21].mxu0  ;;  %v3444_v5 = vunpack.c.l.bf16 %v3443_v42 }
 0x380   : > { %v3598_v32 = vpop.f32.mrb[22].mxu0 }
 0x381   : > { %2937 = vrot.lane.b32.xlu1 %v3598_v32, %s4831_s20  ;;  %v2251_v54 = vpop.f32.mrb[23].mxu0 }
 0x383   : > { %2931 = vrot.lane.b32.xlu0 %v2248_v3, %s4831_s20  ;;  %v4393_v3 = vunpack.i.h.bf16 %v7208_v59 }
 0x385   : > { %2933 = vrot.lane.b32.xlu1 %v2251_v54, %s4831_s20  ;;  %v7236_v0 = vpop.f32.mrb[24].mxu1  ;;  %v2990_v54 = vsel %vm1827_vm4, %v3449_v14, %v4398_v18 }
 0x386   : > { %v7238_v12 = vpop.f32.mrb[25].mxu1 }
 0x387   : > { %v7242_v22 = vpop.f32.mrb[26].mxu1 }
 0x388   : > { %v7246_v28 = vpop.f32.mrb[27].mxu1 }
 0x391   : > { %v3601_v11 = vpop.f32.mrb[24].mxu0 }
 0x392   : > { %2943 = vrot.lane.b32.xlu0 %v3601_v11, %s4831_s20  ;;  %v2264_v44 = vpop.f32.mrb[25].mxu0  ;;  %v3445_v11 = vunpack.c.h.bf16 %v3443_v42 }
 0x393   : > { %v3602_v7 = vpop.f32.mrb[26].mxu0 }
 0x394   : > { %2945 = vrot.lane.b32.xlu1 %v3602_v7, %s4831_s20  ;;  %v2267_v21 = vpop.f32.mrb[27].mxu0 }
 0x396   : > { %2939 = vrot.lane.b32.xlu0 %v2264_v44, %s4831_s20 }
 0x397   : > { %v7263_v9 = vpop.f32.mrb[28].mxu1 }
 0x398   : > { %2941 = vrot.lane.b32.xlu1 %v2267_v21, %s4831_s20  ;;  %v7266_v41 = vpop.f32.mrb[29].mxu1  ;;  %v2896_v32 = vpop.permute.xlu0 %2895  ;;  %v2987_v21 = vsel %vm1827_vm4, %v3444_v5, %v4392_v31  ;;  %v3523_v5 = vld [vmem:[%s5238_s28 + $0x18] sm:$0xff]  }
 0x399   : > { %v7270_v58 = vpop.f32.mrb[30].mxu1  ;;  %v3021_v2 = vsel %vm1859_vm5, %v2989_v49, %v2896_v32 }
 0x39a   : > { %v7272_v45 = vpop.f32.mrb[31].mxu1  ;;  %v3053_v44 = vadd.f32 %v7150_v29, %v3021_v2  ;;  %v2898_v7 = vpop.permute.xlu1 %2897  ;;  %v2988_v29 = vsel %vm1827_vm4, %v3445_v11, %v4393_v3  ;;  %v3522_v11 = vld [vmem:[%s5238_s28 + $0x10] sm:$0xff]   ;;  %v4408_v2 = vunpack.i.h.bf16 %v7220_v57 }
 0x39b   : > { %v3022_v6 = vsel %vm1859_vm5, %v2990_v54, %v2898_v7  ;;  %v4407_v54 = vunpack.i.l.bf16 %v7220_v57 }
 0x39c   : > { %3085 = vst.msk [vmem:[%s7284_s18 + $0x10] sm:$0xff] %vm1892_vm6, %v3053_v44  ;;  %v3054_v59 = vadd.f32 %v7154_v36, %v3022_v6  ;;  %v2892_v50 = vpop.permute.xlu0 %2891  ;;  %v3457_v44 = vunpack.c.h.bf16 %v3523_v5  ;;  %v4403_v6 = vunpack.i.h.bf16 %v7218_v17 }
 0x39d   : > { %v3019_v30 = vsel %vm1859_vm5, %v2987_v21, %v2892_v50  ;;  %v3452_v21 = vunpack.c.l.bf16 %v3522_v11 }
 0x39e   : > { %3086 = vst.msk [vmem:[%s7284_s18 + $0x18] sm:$0xff] %vm1892_vm6, %v3054_v59  ;;  %v3051_v42 = vadd.f32 %v3019_v30, %v7152_v63  ;;  %v2894_v18 = vpop.permute.xlu1 %2893  ;;  %v3456_v63 = vunpack.c.l.bf16 %v3523_v5  ;;  %v2994_v50 = vsel %vm1827_vm4, %v3457_v44, %v4408_v2  ;;  %v4418_v2 = vunpack.i.h.bf16 %v7226_v15 }
 0x39f   : > { %v3020_v49 = vsel %vm1859_vm5, %v2988_v29, %v2894_v18  ;;  %v3453_v29 = vunpack.c.h.bf16 %v3522_v11  ;;  %v3524_v11 = vld [vmem:[%s5238_s28 + $0x20] sm:$0xff]  }
 0x3a0   : > { %3083 = vst.msk [vmem:[%s7284_s18] sm:$0xff] %vm1892_vm6, %v3051_v42  ;;  %v3052_v36 = vadd.f32 %v3020_v49, %v7156_v46  ;;  %v4402_v46 = vunpack.i.l.bf16 %v7218_v17  ;;  %v2993_v7 = vsel %vm1827_vm4, %v3456_v63, %v4407_v54  ;;  %v4417_v63 = vunpack.i.l.bf16 %v7226_v15 }
 0x3a1   : > { %v2992_v49 = vsel %vm1827_vm4, %v3453_v29, %v4403_v6 }
 0x3a2   : > { %3084 = vst.msk [vmem:[%s7284_s18 + $0x8] sm:$0xff] %vm1892_vm6, %v3052_v36  ;;  %v2991_v18 = vsel %vm1827_vm4, %v3452_v21, %v4402_v46  ;;  %v4413_v21 = vunpack.i.h.bf16 %v7224_v48 }
 0x3a3   : > { %v3605_v14 = vpop.f32.mrb[28].mxu0 }
 0x3a4   : > { %v2280_v31 = vpop.f32.mrb[29].mxu0 }
 0x3a5   : > { %2947 = vrot.lane.b32.xlu0 %v2280_v31, %s4831_s20  ;;  %v3606_v3 = vpop.f32.mrb[30].mxu0 }
 0x3a6   : > { %v2283_v32 = vpop.f32.mrb[31].mxu0 }
 0x3a7   : > { %2949 = vrot.lane.b32.xlu1 %v2283_v32, %s4831_s20  ;;  %v3525_v32 = vld [vmem:[%s5238_s28 + $0x28] sm:$0xff]  }
 0x3a8   : > { %v2904_v59 = vpop.permute.xlu0 %2903  ;;  %v3465_v44 = vunpack.c.h.bf16 %v3525_v32 }
 0x3a9   : > { %2951 = vrot.lane.b32.xlu0 %v3605_v14, %s4831_s20  ;;  %v3025_v57 = vsel %vm1859_vm5, %v2993_v7, %v2904_v59  ;;  %v3460_v7 = vunpack.c.l.bf16 %v3524_v11  ;;  %v3461_v59 = vunpack.c.h.bf16 %v3524_v11 }
 0x3aa   : > { %v3057_v30 = vadd.f32 %v7160_v61, %v3025_v57  ;;  %v2906_v42 = vpop.permute.xlu1 %2905 }
 0x3ab   : > { %2953 = vrot.lane.b32.xlu1 %v3606_v3, %s4831_s20  ;;  %v3026_v14 = vsel %vm1859_vm5, %v2994_v50, %v2906_v42 }
 0x3ac   : > { %3089 = vst.msk [vmem:[%s7284_s18 + $0x30] sm:$0xff] %vm1892_vm6, %v3057_v30  ;;  %v3058_v17 = vadd.f32 %v7165_v53, %v3026_v14  ;;  %v2900_v31 = vpop.permute.xlu0 %2899  ;;  %v3464_v53 = vunpack.c.l.bf16 %v3525_v32 }
 0x3ad   : > { %v3023_v5 = vsel %vm1859_vm5, %v2991_v18, %v2900_v31  ;;  %v2996_v18 = vsel %vm1827_vm4, %v3461_v59, %v4413_v21 }
 0x3ae   : > { %3090 = vst.msk [vmem:[%s7284_s18 + $0x38] sm:$0xff] %vm1892_vm6, %v3058_v17  ;;  %v3055_v61 = vadd.f32 %v3023_v5, %v7163_v51  ;;  %v2902_v36 = vpop.permute.xlu1 %2901  ;;  %v4412_v51 = vunpack.i.l.bf16 %v7224_v48  ;;  %v2997_v46 = vsel %vm1827_vm4, %v3464_v53, %v4417_v63 }
 0x3af   : > { %v3024_v3 = vsel %vm1859_vm5, %v2992_v49, %v2902_v36  ;;  %v3527_v49 = vld [vmem:[%s5238_s28 + $0x38] sm:$0xff]   ;;  %v3526_v36 = vld [vmem:[%s5238_s28 + $0x30] sm:$0xff]  }
 0x3b0   : > { %3087 = vst.msk [vmem:[%s7284_s18 + $0x20] sm:$0xff] %vm1892_vm6, %v3055_v61  ;;  %v3056_v54 = vadd.f32 %v3024_v3, %v7168_v56  ;;  %v2998_v56 = vsel %vm1827_vm4, %v3465_v44, %v4418_v2  ;;  %v2995_v57 = vsel %vm1827_vm4, %v3460_v7, %v4412_v51  ;;  %v4427_v61 = vunpack.i.l.bf16 %v7233_v52 }
 0x3b1   : > { %v4428_v3 = vunpack.i.h.bf16 %v7233_v52  ;;  %v3473_v32 = vunpack.c.h.bf16 %v3527_v49  ;;  %v3468_v63 = vunpack.c.l.bf16 %v3526_v36  ;;  %v4423_v2 = vunpack.i.h.bf16 %v7230_v60 }
 0x3b2   : > { %3088 = vst.msk [vmem:[%s7284_s18 + $0x28] sm:$0xff] %vm1892_vm6, %v3056_v54 }
 0x3b3   : > { %v3002_v11 = vsel %vm1827_vm4, %v3473_v32, %v4428_v3 }
 0x3ba   : > { %v2912_v6 = vpop.permute.xlu0 %2911 }
 0x3bb   : > { %v3029_v50 = vsel %vm1859_vm5, %v2997_v46, %v2912_v6  ;;  %v3469_v46 = vunpack.c.h.bf16 %v3526_v36 }
 0x3bc   : > { %v3061_v29 = vadd.f32 %v7172_v38, %v3029_v50  ;;  %v2914_v15 = vpop.permute.xlu1 %2913 }
 0x3bd   : > { %v3030_v30 = vsel %vm1859_vm5, %v2998_v56, %v2914_v15  ;;  %v3000_v59 = vsel %vm1827_vm4, %v3469_v46, %v4423_v2  ;;  %v3529_v15 = vld [vmem:[%s5238_s28 + $0x48] sm:$0xff]   ;;  %v4448_v2 = vunpack.i.h.bf16 %v7250_v39 }
 0x3be   : > { %3093 = vst.msk [vmem:[%s7284_s18 + $0x50] sm:$0xff] %vm1892_vm6, %v3061_v29  ;;  %v3062_v48 = vadd.f32 %v7177_v1, %v3030_v30  ;;  %v2908_v42 = vpop.permute.xlu0 %2907  ;;  %v3472_v1 = vunpack.c.l.bf16 %v3527_v49  ;;  %v3528_v30 = vld [vmem:[%s5238_s28 + $0x40] sm:$0xff]  }
 0x3bf   : > { %v3027_v14 = vsel %vm1859_vm5, %v2995_v57, %v2908_v42  ;;  %v3480_v57 = vunpack.c.l.bf16 %v3529_v15  ;;  %v4432_v42 = vunpack.i.l.bf16 %v7240_v24 }
 0x3c0   : > { %3094 = vst.msk [vmem:[%s7284_s18 + $0x58] sm:$0xff] %vm1892_vm6, %v3062_v48  ;;  %v3059_v38 = vadd.f32 %v3027_v14, %v7175_v4  ;;  %v2910_v17 = vpop.permute.xlu1 %2909  ;;  %v4422_v4 = vunpack.i.l.bf16 %v7230_v60  ;;  %v3001_v54 = vsel %vm1827_vm4, %v3472_v1, %v4427_v61  ;;  %v4438_v48 = vunpack.i.h.bf16 %v7244_v47 }
 0x3c1   : > { %v3028_v31 = vsel %vm1859_vm5, %v2996_v18, %v2910_v17  ;;  %v4433_v17 = vunpack.i.h.bf16 %v7240_v24 }
 0x3c2   : > { %3091 = vst.msk [vmem:[%s7284_s18 + $0x40] sm:$0xff] %vm1892_vm6, %v3059_v38  ;;  %v3060_v5 = vadd.f32 %v3028_v31, %v7180_v35  ;;  %v2999_v52 = vsel %vm1827_vm4, %v3468_v63, %v4422_v4  ;;  %v3476_v38 = vunpack.c.l.bf16 %v3528_v30 }
 0x3c4   : > { %3092 = vst.msk [vmem:[%s7284_s18 + $0x48] sm:$0xff] %vm1892_vm6, %v3060_v5  ;;  %v3003_v36 = vsel %vm1827_vm4, %v3476_v38, %v4432_v42  ;;  %v4458_v42 = vunpack.i.h.bf16 %v7256_v23 }
 0x3cf   : > { %v2920_v53 = vpop.permute.xlu0 %2919 }
 0x3d0   : > { %v3033_v35 = vsel %vm1859_vm5, %v3001_v54, %v2920_v53  ;;  %v4447_v53 = vunpack.i.l.bf16 %v7250_v39 }
 0x3d1   : > { %v3065_v44 = vadd.f32 %v7184_v62, %v3033_v35  ;;  %v2922_v51 = vpop.permute.xlu1 %2921  ;;  %v3530_v35 = vld [vmem:[%s5238_s28 + $0x50] sm:$0xff]  }
 0x3d2   : > { %v3034_v7 = vsel %vm1859_vm5, %v3002_v11, %v2922_v51  ;;  %v3484_v46 = vunpack.c.l.bf16 %v3530_v35  ;;  %v3485_v39 = vunpack.c.h.bf16 %v3530_v35 }
 0x3d3   : > { %3097 = vst.msk [vmem:[%s7284_s18 + $0x70] sm:$0xff] %vm1892_vm6, %v3065_v44  ;;  %v3066_v21 = vadd.f32 %v7189_v34, %v3034_v7  ;;  %v2916_v6 = vpop.permute.xlu0 %2915  ;;  %v4437_v34 = vunpack.i.l.bf16 %v7244_v47  ;;  %v3477_v47 = vunpack.c.h.bf16 %v3528_v30  ;;  %v4442_v44 = vunpack.i.l.bf16 %v7248_v8 }
 0x3d4   : > { %v3031_v56 = vsel %vm1859_vm5, %v2999_v52, %v2916_v6  ;;  %v4443_v7 = vunpack.i.h.bf16 %v7248_v8  ;;  %v4457_v30 = vunpack.i.l.bf16 %v7256_v23 }
 0x3d5   : > { %3098 = vst.msk [vmem:[%s7284_s18 + $0x78] sm:$0xff] %vm1892_vm6, %v3066_v21  ;;  %v3063_v62 = vadd.f32 %v3031_v56, %v7187_v33  ;;  %v2918_v60 = vpop.permute.xlu1 %2917  ;;  %v3481_v33 = vunpack.c.h.bf16 %v3529_v15  ;;  %v3005_v14 = vsel %vm1827_vm4, %v3480_v57, %v4437_v34  ;;  %v3004_v4 = vsel %vm1827_vm4, %v3477_v47, %v4433_v17 }
 0x3d6   : > { %v3032_v50 = vsel %vm1859_vm5, %v3000_v59, %v2918_v60  ;;  %v3007_v59 = vsel %vm1827_vm4, %v3484_v46, %v4442_v44  ;;  %v3008_v15 = vsel %vm1827_vm4, %v3485_v39, %v4443_v7  ;;  %v4453_v17 = vunpack.i.h.bf16 %v7253_v40 }
 0x3d7   : > { %3095 = vst.msk [vmem:[%s7284_s18 + $0x60] sm:$0xff] %vm1892_vm6, %v3063_v62  ;;  %v3064_v29 = vadd.f32 %v3032_v50, %v7192_v13  ;;  %v3006_v5 = vsel %vm1827_vm4, %v3481_v33, %v4438_v48  ;;  %v3532_v33 = vld [vmem:[%s5238_s28 + $0x60] sm:$0xff]  }
 0x3d8   : > { %v3493_v23 = vunpack.c.h.bf16 %v3532_v33 }
 0x3d9   : > { %3096 = vst.msk [vmem:[%s7284_s18 + $0x68] sm:$0xff] %vm1892_vm6, %v3064_v29 }
 0x3e0   : > { %v2928_v18 = vpop.permute.xlu0 %2927 }
 0x3e1   : > { %v3037_v13 = vsel %vm1859_vm5, %v3005_v14, %v2928_v18  ;;  %v4452_v18 = vunpack.i.l.bf16 %v7253_v40 }
 0x3e2   : > { %v3069_v31 = vadd.f32 %v7196_v37, %v3037_v13  ;;  %v2930_v49 = vpop.permute.xlu1 %2929  ;;  %v3492_v13 = vunpack.c.l.bf16 %v3532_v33 }
 0x3e3   : > { %v3038_v61 = vsel %vm1859_vm5, %v3006_v5, %v2930_v49 }
 0x3e4   : > { %3101 = vst.msk [vmem:[%s7284_s18 + $0x90] sm:$0xff] %vm1892_vm6, %v3069_v31  ;;  %v3070_v1 = vadd.f32 %v7201_v19, %v3038_v61  ;;  %v2924_v3 = vpop.permute.xlu0 %2923  ;;  %v3531_v19 = vld [vmem:[%s5238_s28 + $0x58] sm:$0xff]  }
 0x3e5   : > { %v3035_v24 = vsel %vm1859_vm5, %v3003_v36, %v2924_v3  ;;  %v3488_v11 = vunpack.c.l.bf16 %v3531_v19 }
 0x3e6   : > { %3102 = vst.msk [vmem:[%s7284_s18 + $0x98] sm:$0xff] %vm1892_vm6, %v3070_v1  ;;  %v3067_v37 = vadd.f32 %v3035_v24, %v7199_v55  ;;  %v2926_v32 = vpop.permute.xlu1 %2925  ;;  %v3489_v55 = vunpack.c.h.bf16 %v3531_v19  ;;  %v3011_v1 = vsel %vm1827_vm4, %v3492_v13, %v4452_v18  ;;  %v3012_v24 = vsel %vm1827_vm4, %v3493_v23, %v4453_v17 }
 0x3e7   : > { %v3036_v54 = vsel %vm1859_vm5, %v3004_v4, %v2926_v32  ;;  %v3009_v52 = vsel %vm1827_vm4, %v3488_v11, %v4447_v53  ;;  %v4462_v4 = vunpack.i.l.bf16 %v7261_v26  ;;  %v4463_v19 = vunpack.i.h.bf16 %v7261_v26 }
 0x3e8   : > { %3099 = vst.msk [vmem:[%s7284_s18 + $0x80] sm:$0xff] %vm1892_vm6, %v3067_v37  ;;  %v3068_v63 = vadd.f32 %v3036_v54, %v7204_v25  ;;  %v3010_v56 = vsel %vm1827_vm4, %v3489_v55, %v4448_v2  ;;  %v4467_v53 = vunpack.i.l.bf16 %v7268_v43  ;;  %v4468_v55 = vunpack.i.h.bf16 %v7268_v43 }
 0x3ea   : > { %3100 = vst.msk [vmem:[%s7284_s18 + $0x88] sm:$0xff] %vm1892_vm6, %v3068_v63  ;;  %v3535_v63 = vld [vmem:[%s5238_s28 + $0x78] sm:$0xff]  }
 0x3eb   : > { %v3505_v26 = vunpack.c.h.bf16 %v3535_v63 }
 0x3f1   : > { %v2936_v51 = vpop.permute.xlu0 %2935 }
 0x3f2   : > { %v3041_v25 = vsel %vm1859_vm5, %v3009_v52, %v2936_v51 }
 0x3f3   : > { %v3073_v21 = vadd.f32 %v7210_v27, %v3041_v25  ;;  %v2938_v6 = vpop.permute.xlu1 %2937 }
 0x3f4   : > { %v3042_v62 = vsel %vm1859_vm5, %v3010_v56, %v2938_v6  ;;  %v3018_v6 = vsel %vm1827_vm4, %v3505_v26, %v4468_v55 }
 0x3f5   : > { %3105 = vst.msk [vmem:[%s7284_s18 + $0xb0] sm:$0xff] %vm1892_vm6, %v3073_v21  ;;  %v3074_v60 = vadd.f32 %v7216_v16, %v3042_v62  ;;  %v2932_v50 = vpop.permute.xlu0 %2931  ;;  %v3533_v16 = vld [vmem:[%s5238_s28 + $0x68] sm:$0xff]  }
 0x3f6   : > { %v3039_v8 = vsel %vm1859_vm5, %v3007_v59, %v2932_v50  ;;  %v3496_v48 = vunpack.c.l.bf16 %v3533_v16 }
 0x3f7   : > { %3106 = vst.msk [vmem:[%s7284_s18 + $0xb8] sm:$0xff] %vm1892_vm6, %v3074_v60  ;;  %v3071_v27 = vadd.f32 %v3039_v8, %v7213_v10  ;;  %v2934_v29 = vpop.permute.xlu1 %2933  ;;  %v3497_v10 = vunpack.c.h.bf16 %v3533_v16 }
 0x3f8   : > { %v3040_v34 = vsel %vm1859_vm5, %v3008_v15, %v2934_v29  ;;  %v3013_v38 = vsel %vm1827_vm4, %v3496_v48, %v4457_v30 }
 0x3f9   : > { %3103 = vst.msk [vmem:[%s7284_s18 + $0xa0] sm:$0xff] %vm1892_vm6, %v3071_v27  ;;  %v3072_v57 = vadd.f32 %v3040_v34, %v7222_v20  ;;  %v3014_v5 = vsel %vm1827_vm4, %v3497_v10, %v4458_v42 }
 0x3fb   : > { %3104 = vst.msk [vmem:[%s7284_s18 + $0xa8] sm:$0xff] %vm1892_vm6, %v3072_v57 }
 0x404   : > { %v2944_v14 = vpop.permute.xlu0 %2943 }
 0x405   : > { %v3045_v20 = vsel %vm1859_vm5, %v3013_v38, %v2944_v14 }
 0x406   : > { %v3077_v31 = vadd.f32 %v7236_v0, %v3045_v20  ;;  %v2946_v49 = vpop.permute.xlu1 %2945 }
 0x407   : > { %v3046_v47 = vsel %vm1859_vm5, %v3014_v5, %v2946_v49 }
 0x408   : > { %3109 = vst.msk [vmem:[%s7284_s18 + $0xd0] sm:$0xff] %vm1892_vm6, %v3077_v31  ;;  %v3078_v61 = vadd.f32 %v7242_v22, %v3046_v47  ;;  %v2940_v36 = vpop.permute.xlu0 %2939  ;;  %v3534_v22 = vld [vmem:[%s5238_s28 + $0x70] sm:$0xff]   ;;  %s4737_s28 = scalar_lea.vmem %s4736_s16, 8192 }
 0x409   : > { %v3043_v40 = vsel %vm1859_vm5, %v3011_v1, %v2940_v36  ;;  %v3500_v54 = vunpack.c.l.bf16 %v3534_v22  ;;  %p4739_p4 = scmp.lt.s32.totalorder %s4737_s28, %s4731_s9 }
 0x40a   : > { %3110 = vst.msk [vmem:[%s7284_s18 + $0xd8] sm:$0xff] %vm1892_vm6, %v3078_v61  ;;  %v3075_v0 = vadd.f32 %v3043_v40, %v7238_v12  ;;  %v2942_v3 = vpop.permute.xlu1 %2941  ;;  %v3501_v12 = vunpack.c.h.bf16 %v3534_v22 }
 0x40b   : > { %v3044_v37 = vsel %vm1859_vm5, %v3012_v24, %v2942_v3  ;;  %v3015_v35 = vsel %vm1827_vm4, %v3500_v54, %v4462_v4  ;;  %p4740_p1 = por %p4739_p4, %p4738_p7 }
 0x40c   : > { %3107 = vst.msk [vmem:[%s7284_s18 + $0xc0] sm:$0xff] %vm1892_vm6, %v3075_v0  ;;  %v3076_v32 = vadd.f32 %v3044_v37, %v7246_v28  ;;  %v3504_v28 = vunpack.c.l.bf16 %v3535_v63  ;;  %v3016_v52 = vsel %vm1827_vm4, %v3501_v12, %v4463_v19 }
 0x40d   : > { %p4741_p11 = pnand %p4740_p1, %p4734_p0 }
 0x40e   : > { %3108 = vst.msk [vmem:[%s7284_s18 + $0xc8] sm:$0xff] %vm1892_vm6, %v3076_v32  ;;  %v3017_v7 = vsel %vm1827_vm4, %v3504_v28, %v4467_v53 }
 0x417   : > { %v2948_v11 = vpop.permute.xlu0 %2947 }
 0x418   : > { %v3047_v2 = vsel %vm1859_vm5, %v3015_v35, %v2948_v11 }
 0x419   : > { %v3079_v44 = vadd.f32 %v3047_v2, %v7266_v41  ;;  %v2950_v51 = vpop.permute.xlu1 %2949 }
 0x41a   : > { %v3048_v46 = vsel %vm1859_vm5, %v3016_v52, %v2950_v51 }
 0x41b   : > { %3111 = vst.msk [vmem:[%s7284_s18 + $0xe0] sm:$0xff] %vm1892_vm6, %v3079_v44  ;;  %v3080_v25 = vadd.f32 %v3048_v46, %v7272_v45  ;;  %v2952_v21 = vpop.permute.xlu0 %2951 }
 0x41c   : > { %v3049_v41 = vsel %vm1859_vm5, %v3017_v7, %v2952_v21 }
 0x41d   : > { %3112 = vst.msk [vmem:[%s7284_s18 + $0xe8] sm:$0xff] %vm1892_vm6, %v3080_v25  ;;  %v3081_v43 = vadd.f32 %v7263_v9, %v3049_v41  ;;  %v2954_v56 = vpop.permute.xlu1 %2953 }
 0x41e   : > { %v3050_v39 = vsel %vm1859_vm5, %v3018_v6, %v2954_v56 }
 0x41f   : > { %3113 = vst.msk [vmem:[%s7284_s18 + $0xf0] sm:$0xff] %vm1892_vm6, %v3081_v43  ;;  %v3082_v45 = vadd.f32 %v7270_v58, %v3050_v39 }
 0x421   : > { %3114 = vst.msk [vmem:[%s7284_s18 + $0xf8] sm:$0xff] %vm1892_vm6, %v3082_v45 }
 0x422   : > { %4744 = shalt.err (!%p4741_p11)
}
 0x423   : > { %s4745_s5 = scalar_lea.hbm %s7486_s24, 4096  ;;  %s4749_s1 = scalar_lea.hbm %s8004_s19, 8192 }
 0x424   : > { %p4746_p2 = scmp.ne.s32.totalorder %s7486_s24, %s4745_s5  ;;  %p4750_p9 = scmp.lt.u32.totalorder %s7486_s24, %s8004_s19 }
 0x425   : > { %p4751_p12 = scmp.lt.u32.totalorder %s4749_s1, %s4745_s5  ;;  %p4753_p6 = scmp.lt.u32.totalorder %s4745_s5, %s7486_s24 }
 0x426   : > { %p4747_p13 = pnand %p4746_p2, %p8005_p8 }
 0x427   : > { %p4752_p3 = por %p4751_p12, %p4750_p9 }
 0x428   : > { %p4748_p5 = pneg %p4747_p13 }
 0x429   : > { %p4754_p10 = por %p4753_p6, %p4752_p3 }
 0x42b   : > { %p4755_p0 = pnand %p4754_p10, %p4748_p5 }
 0x42d   : > { %4758 = shalt.err (!%p4755_p0)
}
 0x42e   : > { %s4838_s14 = smov 128  }
 0x42f   : > { %3673 = dma.vmem_to_hbm [thread:$0]  (%p8005_p8), %s7491_s27, 4096, %s7486_s24, %s3116_s15, %s4838_s14, %s4838_s14, %s4832_s13  }
 0x430 PF: > { %s8006_s17 = sld [smem:[#allocation24_spill]]  ;;  %s8007_s29 = sld [smem:[#allocation29_spill]] }
 0x431   : > { %p8009_p4 = scmp.ge.s32.totalorder %s4813_s12, 2 }
 0x436   : > { %s3144_s18 = sand.u32 1, %s8006_s17   ;;  %p8008_p7 = scmp.ne.s32.totalorder %s8007_s29, 0 }
 0x437   : > { %s3145_s25 = scalar_lea.sflag [#allocation4], %s3144_s18 }
 0x438   : > { %p3705_p1 = pnand %p8009_p4, %p8008_p7 }
 0x43a   : > { %4796 = dma.done.wait (!%p3705_p1), %s3145_s25, 4096  }
 0x43b   : > { %4798 = vsyncadd (!%p3705_p1), %s3145_s25, 4294963200  ;;  %s8010_s12 = sld [smem:[#allocation26_spill]]  ;;  %s8011_s22 = sld [smem:[#allocation25_spill]] }
 0x43c   : > { %s8012_s11 = sld [smem:[#allocation27_spill]]  ;;  %s8013_s30 = smov %s4805_s10 }
 0x441   : > { %p28_p11 = scmp.ge.s32.totalorder %s8010_s12, 4   ;;  %s8014_s10 = smov %s8011_s22 }
 0x443   :  { %30 = sbr.rel (!%p28_p11) target bundleno = 16 (0x10), region = 149 }
 0x44a   :  { %3150 = vsyncpa [#allocation3], 1 }
 0x44b   :  { %3152 = vsyncpa [#allocation3 + $0x1], 1 }
 0x44c   :  { %3153 = vsyncpa [#allocation6], 1 }
 0x44d   :  { %3155 = vsyncpa [#allocation6 + $0x1], 1 }
 0x44e   :  { %3156 = vsyncpa [#allocation9], 1 }
 0x44f   :  { %3157 = vsyncpa [#allocation12], 1 }
 0x450   :  { %3158 = vsyncpa [#allocation15], 1 }
 0x451   :  { %3159 = vsyncpa [#allocation4], 1 }
 0x452   :  { %3161 = vsyncpa [#allocation4 + $0x1], 1 }

// kernel: conv_block_forward.4
= control target key start
LH: loop header
LB: loop body
LE: loop exit
PB: predicated region body
PF: predicated region fallthrough
CT: control target
= control target key end

     0   :  { %12 = vsyncpa [#allocation3], 0  ;;  %s5737_s0 = inlined_call_operand.hbm [shape: bf16[2,16,16,4], index: 0, kind: input, shape index: {}]   ;;  %s5738_s1 = inlined_call_operand.hbm [shape: f32[1,1,4], index: 1, kind: input, shape index: {}]   ;;  %s5739_s2 = inlined_call_operand.hbm [shape: f32[1,1,4], index: 2, kind: input, shape index: {}]   ;;  %s5740_s3 = inlined_call_operand.hbm [shape: bf16[36,2], index: 3, kind: input, shape index: {}]   ;;  %s5741_s4 = inlined_call_operand.hbm [shape: bf16[2,16,16,2], index: 4, kind: output, shape index: {0}]   ;;  %s5742_s5 = inlined_call_operand.hbm [shape: f32[2,1,2], index: 5, kind: output, shape index: {1}]   ;;  %s5743_s6 = inlined_call_operand.hbm [shape: f32[2,1,2], index: 6, kind: output, shape index: {2}]  }
   0x1   :  { %14 = vsyncpa [#allocation3 + $0x1], 0 }
   0x2   :  { %15 = vsyncpa [#allocation6], 0 }
   0x3   :  { %16 = vsyncpa [#allocation9], 0 }
   0x4   :  { %17 = vsyncpa [#allocation4], 0 }
   0x5   :  { %19 = vsyncpa [#allocation4 + $0x1], 0 }
   0x6   :  { %20 = vsyncpa [#allocation12], 0 }
   0x7   :  { %22 = vsyncpa [#allocation12 + $0x1], 0  ;;  %s3939_s21 = smov 0   ;;  %s3941_s22 = smov 0  }
   0x8   :  { %s3943_s23 = smov 0   ;;  %s3945_s24 = smov 0  }
   0x9 LB: > { %s3960_s25 = sadd.s32 4294967295, %s3883_s24   ;;  %s5747_s26 = sadd.s32 4294967294, %s3883_s24   ;;  %s3883_s24 = sphi %s3945_s24, %s5970_s24   ;;  %s3879_s23 = sphi %s3943_s23, %s5969_s23   ;;  %s3875_s22 = sphi %s3941_s22, %s5968_s22   ;;  %s3871_s21 = sphi %s3939_s21, %s5967_s21  }
   0xa   : > { %p48_p0 = scmp.ne.s32.totalorder %s3875_s22, %s3871_s21  ;;  %p5744_p1 = scmp.eq.s32.totalorder %s3960_s25, 0 }
   0xb   : > { %p141_p3 = scmp.eq.s32.totalorder %s5747_s26, 1  ;;  %p2664_p5 = scmp.ge.s32.totalorder %s3883_s24, 1 }
   0xc   : > { %p3971_p4 = por %p5744_p1, %p48_p0  ;;  %p200_p7 = scmp.lt.s32.totalorder %s3883_s24, 3 }
   0xd   : > { %p3976_p6 = por %p141_p3, %p48_p0  ;;  %s3885_s30 = smov [#allocation5]  }
   0xe   : > { %s5819_s27 = scalar_select %p3971_p4, 1, 0 }
   0xf   : > { %s5820_s28 = scalar_select %p3976_p6, 1, 0 }
  0x10   : > { %p3981_p8 = pnand %p2664_p5, %p200_p7  ;;  %s213_s7 = sshll.u32 %s3885_s30, 4  ;;  %s214_s7 = int_to_ptr.vmem [resolvable:$true] %s213_s7 }
  0x11   : > { %s3886_s8 = smov [#allocation7]   ;;  %s3887_s11 = smov [#allocation8]  }
  0x12   : > { %s5821_s29 = scalar_select %p3981_p8, 1, 0 }
  0x13   : > { %p2936_p10 = pneg %p3981_p8  ;;  %s224_s9 = sshll.u32 %s3886_s8, 4  ;;  %s3994_s9 = int_to_ptr.vmem [resolvable:$true] %s224_s9 }
  0x14   : > { %s234_s12 = sshll.u32 %s3887_s11, 4  ;;  %s3635_s15 = scalar_lea.hbm %s5738_s1, 16  ;;  %s3996_s12 = int_to_ptr.vmem [resolvable:$true] %s234_s12 }
  0x15   : > { %p3990_p11 = pnand %p2936_p10, %p5744_p1  ;;  %p3636_p12 = scmp.ne.s32.totalorder %s5738_s1, %s3635_s15 }
  0x16   : > { %p3642_p5 = scmp.lt.u32.totalorder %s3635_s15, %s5738_s1 }
  0x17   : > { %p4006_p13 = pneg %p3990_p11 }
  0x19   : > { %p3638_p0 = pnand %p4006_p13, %p3636_p12 }
  0x1b   : > { %p3639_p3 = pneg %p3638_p0 }
  0x1d   : > { %p3644_p7 = pnand %p3642_p5, %p3639_p3 }
  0x1f   : > { %3647 = shalt.err (!%p3644_p7)
}
  0x20   : > { %s3648_s30 = scalar_lea.vmem %s214_s7, 16  ;;  %s3655_s8 = scalar_lea.vmem %s214_s7, 32 }
  0x21   : > { %p3649_p10 = scmp.ne.s32.totalorder %s214_s7, %s3648_s30  ;;  %p3656_p2 = scmp.lt.s32.totalorder %s214_s7, %s214_s7 }
  0x22   : > { %p3657_p6 = scmp.lt.s32.totalorder %s3655_s8, %s3648_s30 }
  0x23   : > { %p3651_p9 = pnand %p3649_p10, %p4006_p13 }
  0x24   : > { %p3658_p4 = por %p3657_p6, %p3656_p2 }
  0x25   : > { %p3652_p1 = pneg %p3651_p9 }
  0x27   : > { %p3659_p8 = pnand %p3658_p4, %p3652_p1 }
  0x29   : > { %3662 = shalt.err (!%p3659_p8)
}
  0x2a   : > { %2939 = dma.hbm_to_vmem [thread:$0]  (!%p3990_p11), %s5738_s1, 16, %s214_s7, [#allocation6]  }
  0x2b   : > { %s3663_s16 = scalar_lea.hbm %s5739_s2, 16 }
  0x2c   : > { %p3664_p9 = scmp.ne.s32.totalorder %s5739_s2, %s3663_s16  ;;  %p3670_p1 = scmp.lt.u32.totalorder %s3663_s16, %s5739_s2 }
  0x2e   : > { %p3666_p12 = pnand %p3664_p9, %p4006_p13 }
  0x30   : > { %p3667_p2 = pneg %p3666_p12 }
  0x32   : > { %p3672_p4 = pnand %p3670_p1, %p3667_p2 }
  0x34   : > { %3675 = shalt.err (!%p3672_p4)
}
  0x35   : > { %s3676_s7 = scalar_lea.vmem %s3994_s9, 16  ;;  %s3683_s8 = scalar_lea.vmem %s3994_s9, 32 }
  0x36   : > { %p3677_p6 = scmp.ne.s32.totalorder %s3994_s9, %s3676_s7  ;;  %p3684_p3 = scmp.lt.s32.totalorder %s3994_s9, %s3994_s9 }
  0x37   : > { %p3685_p5 = scmp.lt.s32.totalorder %s3683_s8, %s3676_s7 }
  0x38   : > { %p3679_p8 = pnand %p3677_p6, %p4006_p13 }
  0x39   : > { %p3686_p7 = por %p3685_p5, %p3684_p3 }
  0x3a   : > { %p3680_p0 = pneg %p3679_p8 }
  0x3c   : > { %p3687_p10 = pnand %p3686_p7, %p3680_p0 }
  0x3e   : > { %3690 = shalt.err (!%p3687_p10)
}
  0x3f   : > { %2942 = dma.hbm_to_vmem [thread:$0]  (!%p3990_p11), %s5739_s2, 16, %s3994_s9, [#allocation6]  }
  0x40   : > { %s3691_s16 = scalar_lea.hbm %s5740_s3, 320 }
  0x41   : > { %p3692_p9 = scmp.ne.s32.totalorder %s5740_s3, %s3691_s16  ;;  %p3698_p1 = scmp.lt.u32.totalorder %s3691_s16, %s5740_s3 }
  0x43   : > { %p3694_p12 = pnand %p3692_p9, %p4006_p13 }
  0x45   : > { %p3695_p2 = pneg %p3694_p12 }
  0x47   : > { %p3700_p4 = pnand %p3698_p1, %p3695_p2 }
  0x49   : > { %3703 = shalt.err (!%p3700_p4)
}
  0x4a   : > { %s3704_s9 = scalar_lea.vmem %s3996_s12, 320  ;;  %p3712_p3 = scmp.lt.s32.totalorder %s3996_s12, %s3996_s12 }
  0x4b   : > { %p3705_p6 = scmp.ne.s32.totalorder %s3996_s12, %s3704_s9  ;;  %p3713_p5 = scmp.lt.s32.totalorder %s3704_s9, %s3704_s9 }
  0x4d   : > { %p3707_p8 = pnand %p3705_p6, %p4006_p13  ;;  %p3714_p7 = por %p3713_p5, %p3712_p3 }
  0x4f   : > { %p3708_p0 = pneg %p3707_p8 }
  0x51   : > { %p3715_p10 = pnand %p3714_p7, %p3708_p0 }
  0x53   : > { %3718 = shalt.err (!%p3715_p10)
}
  0x54   : > { %s3888_s7 = smov 64   ;;  %s3889_s18 = smov 4  }
  0x55   : > { %2945 = dma.hbm_to_vmem [thread:$0]  (!%p3990_p11), %s5740_s3, 320, %s3996_s12, [#allocation9], %s3888_s7, %s3888_s7, %s3889_s18  }
  0x56   : > { %s4073_s13 = sadd.s32 1, %s3883_s24   ;;  %s35_s15 = sadd.s32 1, %s3879_s23 }
  0x57   : > { %s32_s14 = ssub.s32 %s3883_s24, %s4073_s13  ;;  %p42_p9 = scmp.ne.s32.totalorder %s3879_s23, %s3875_s22 }
  0x58   : > { %p33_p13 = scmp.eq.s32.totalorder %s32_s14, 0  ;;  %p43_p12 = scmp.eq.s32.totalorder %s3883_s24, 0 }
  0x59   : > { %p2963_p2 = scmp.lt.s32.totalorder %s3883_s24, 2  ;;  %p5824_p4 = scmp.eq.s32.totalorder %s3960_s25, 1 }
  0x5a   : > { %s4083_s16 = scalar_select %p33_p13, %s3879_s23, %s35_s15  }
  0x5b   : > { %p44_p1 = por %p43_p12, %p42_p9  ;;  %p4087_p6 = por %p5824_p4, %p42_p9 }
  0x5c   : > { %s248_s17 = sand.u32 1, %s3879_s23   ;;  %s2738_s19 = sshll.u32 %s3883_s24, 11 }
  0x5d   : > { %s2669_s12 = sshll.u32 %s248_s17, 7  ;;  %s4096_s9 = scalar_lea.hbm %s5737_s0, %s2738_s19 }
  0x5e   : > { %s252_s8 = scalar_lea.vmem [#allocation2], %s2669_s12  ;;  %p4098_p11 = pnand %p2963_p2, %p44_p1 }
  0x5f   : > { %s259_s11 = sshll.u32 %s252_s8, 4  ;;  %s4104_s15 = scalar_lea.sflag [#allocation3], %s248_s17  ;;  %s4102_s11 = int_to_ptr.vmem [resolvable:$true] %s259_s11 }
  0x60   : > { %s3719_s26 = scalar_lea.hbm %s4096_s9, 2048  ;;  %p3721_p0 = pneg %p4098_p11 }
  0x61   : > { %p3720_p8 = scmp.ne.s32.totalorder %s4096_s9, %s3719_s26  ;;  %s3724_s20 = scalar_lea.hbm %s5737_s0, 4096 }
  0x62   : > { %p3725_p7 = scmp.lt.u32.totalorder %s4096_s9, %s5737_s0  ;;  %p3726_p10 = scmp.lt.u32.totalorder %s3724_s20, %s3719_s26 }
  0x63   : > { %p3722_p3 = pnand %p3721_p0, %p3720_p8  ;;  %p3728_p9 = scmp.lt.u32.totalorder %s3719_s26, %s4096_s9 }
  0x64   : > { %p3727_p13 = por %p3726_p10, %p3725_p7 }
  0x65   : > { %p3723_p5 = pneg %p3722_p3 }
  0x66   : > { %p3729_p12 = por %p3728_p9, %p3727_p13 }
  0x68   : > { %p3730_p2 = pnand %p3729_p12, %p3723_p5 }
  0x6a   : > { %3733 = shalt.err (!%p3730_p2)
}
  0x6b   : > { %s3734_s17 = scalar_lea.vmem %s4102_s11, 2048  ;;  %s3890_s19 = smov [#allocation2]  }
  0x6c   : > { %p3735_p1 = scmp.ne.s32.totalorder %s4102_s11, %s3734_s17  ;;  %s3739_s12 = sshll.u32 %s3890_s19, 4  ;;  %s3740_s12 = int_to_ptr.vmem [resolvable:$false] %s3739_s12 }
  0x6d   : > { %s3741_s30 = scalar_lea.vmem %s3740_s12, 4096  ;;  %p3742_p3 = scmp.lt.s32.totalorder %s4102_s11, %s3740_s12 }
  0x6e   : > { %p3737_p4 = pnand %p3735_p1, %p3721_p0  ;;  %p3743_p7 = scmp.lt.s32.totalorder %s3741_s30, %s3734_s17 }
  0x70   : > { %p3738_p8 = pneg %p3737_p4  ;;  %p3744_p10 = por %p3743_p7, %p3742_p3 }
  0x72   : > { %p3745_p13 = pnand %p3744_p10, %p3738_p8 }
  0x74   : > { %3748 = shalt.err (!%p3745_p13)
}
  0x75   : > { %2949 = dma.hbm_to_vmem [thread:$0]  (!%p4098_p11), %s4096_s9, 2048, %s4102_s11, %s4104_s15, %s3888_s7, %s3888_s7, %s3889_s18  }
  0x76   : > { %p5827_p0 = scmp.ne.s32.totalorder %s5821_s29, 0 }
  0x78   : > { %271 = sbr.rel (%p5827_p0) target bundleno = 845 (0x34d), region = 36 }
  0x7f   : > { %s4138_s26 = sand.u32 1, %s3875_s22   ;;  %p5828_p5 = scmp.ne.s32.totalorder %s5819_s27, 0 }
  0x80   : > { %s2673_s20 = sshll.u32 %s4138_s26, 7  ;;  %s274_s8 = scalar_lea.sflag [#allocation3], %s4138_s26 }
  0x81   : > { %s4144_s14 = scalar_lea.vmem [#allocation2], %s2673_s20 }
  0x82   : > { %3850 = dma.done.wait (%p5828_p5), %s274_s8, 2048  }
  0x83   : > { %3852 = vsyncadd (%p5828_p5), %s274_s8, 4294965248  ;;  %p5829_p11 = scmp.eq.s32.totalorder %s3960_s25, 0 }
  0x85   : > { %3854 = dma.done.wait (%p5829_p11), [#allocation6], 32   ;;  %p5830_p9 = pmov %p5829_p11 }
  0x87   : > { %3856 = vsyncadd (%p5830_p9), [#allocation6], 4294967264  ;;  %p5831_p12 = pmov %p5830_p9 }
  0x88   : > { %p5832_p2 = pmov %p5830_p9 }
  0x89   : > { %3858 = dma.done.wait (%p5831_p12), [#allocation9], 320  }
  0x8a   : > { %3860 = vsyncadd (%p5832_p2), [#allocation9], 4294966976  ;;  %v2836_v0 = vld [vmem:[%s4144_s14 + $0x8] sm:$0xff]   ;;  %v2837_v1 = vld [vmem:[%s4144_s14 + $0x10] sm:$0xff]   ;;  %vm538_vm0 = vcmask 1040384   ;;  %v5748_v3 = vmov 0.0  }
  0x8b   : > { %v4160_v2 = vld [vmem:[#allocation5] ss:$0 sm:$0xff]  ;;  %v4163_v4 = vrot.slane %v5748_v3, 1  ;;  %v2778_v5 = vunpack.c.l.bf16 %v2836_v0  ;;  %v2779_v6 = vunpack.c.h.bf16 %v2836_v0  ;;  %v2782_v7 = vunpack.c.l.bf16 %v2837_v1  ;;  %v2838_v10 = vld [vmem:[%s4144_s14 + $0x18] sm:$0xff]   ;;  %v4167_v11 = vld [vmem:[#allocation7] ss:$0 sm:$0xff] }
  0x8c   : > { %v2783_v8 = vunpack.c.h.bf16 %v2837_v1  ;;  %v2773_v9 = vld [vmem:[%s4144_s14] sm:$0xff]   ;;  %v2786_v14 = vunpack.c.l.bf16 %v2838_v10  ;;  %v2787_v15 = vunpack.c.h.bf16 %v2838_v10  ;;  %vm697_vm1 = vcmask 1046528   ;;  %s3892_s27 = smov 4   ;;  %s3893_s29 = smov 8  }
  0x8d   : > { %5833 = vst [vmem:[#allocation19_spill] sm:$0xff] %v4163_v4  ;;  %v2774_v12 = vunpack.c.l.bf16 %v2773_v9  ;;  %v2775_v13 = vunpack.c.h.bf16 %v2773_v9  ;;  %v400_v16 = vmul.f32 %v2778_v5, %v4160_v2  ;;  %v401_v17 = vmul.f32 %v2779_v6, %v4160_v2  ;;  %s3894_s7 = smov 12   ;;  %s3895_s18 = smov 16  }
  0x8e   : > { %v402_v18 = vmul.f32 %v2782_v7, %v4160_v2  ;;  %v403_v19 = vmul.f32 %v2783_v8, %v4160_v2  ;;  %v404_v22 = vmul.f32 %v2786_v14, %v4160_v2  ;;  %v405_v23 = vmul.f32 %v2787_v15, %v4160_v2  ;;  %v2839_v7 = vld [vmem:[%s4144_s14 + $0x20] sm:$0xff]   ;;  %s3896_s9 = smov 20   ;;  %s3897_s11 = smov 24  }
  0x8f   : > { %v398_v20 = vmul.f32 %v2774_v12, %v4160_v2  ;;  %v399_v21 = vmul.f32 %v2775_v13, %v4160_v2  ;;  %v439_v24 = vadd.f32 %v4167_v11, %v400_v16  ;;  %v440_v25 = vadd.f32 %v4167_v11, %v401_v17  ;;  %v2840_v13 = vld [vmem:[%s4144_s14 + $0x28] sm:$0xff]   ;;  %s3898_s15 = smov 28   ;;  %s3899_s17 = smov 32  }
  0x90   : > { %v441_v26 = vadd.f32 %v4167_v11, %v402_v18  ;;  %v442_v27 = vadd.f32 %v4167_v11, %v403_v19  ;;  %v443_v30 = vadd.f32 %v4167_v11, %v404_v22  ;;  %v444_v31 = vadd.f32 %v4167_v11, %v405_v23  ;;  %s5483_s19 = scalar_lea.vmem [#allocation10], %s2673_s20  ;;  %s2771_s12 = sshll.u32 %s3960_s25, 11 }
  0x91   : > { %v437_v28 = vadd.f32 %v4167_v11, %v398_v20  ;;  %v438_v29 = vadd.f32 %v4167_v11, %v399_v21  ;;  %v471_v32 = vmax.f32 %v439_v24, 0.0  ;;  %v472_v33 = vmax.f32 %v440_v25, 0.0  ;;  %s2482_s30 = sshll.u32 %s5483_s19, 4  ;;  %s5611_s30 = int_to_ptr.vmem [resolvable:$true] %s2482_s30 }
  0x92   : > { %v473_v34 = vmax.f32 %v441_v26, 0.0  ;;  %v474_v35 = vmax.f32 %v442_v27, 0.0  ;;  %v475_v38 = vmax.f32 %v443_v30, 0.0  ;;  %v476_v39 = vmax.f32 %v444_v31, 0.0  ;;  %v2841_v26 = vld [vmem:[%s4144_s14 + $0x30] sm:$0xff]   ;;  %v2842_v31 = vld [vmem:[%s4144_s14 + $0x38] sm:$0xff]  }
  0x93   : > { %v469_v36 = vmax.f32 %v437_v28, 0.0  ;;  %v470_v37 = vmax.f32 %v438_v29, 0.0  ;;  %v542_v40 = vrot.slane %v471_v32, 7  ;;  %v543_v41 = vrot.slane %v472_v33, 7 }
  0x94   : > { %v545_v42 = vrot.slane %v473_v34, 7  ;;  %v546_v43 = vrot.slane %v474_v35, 7  ;;  %v548_v46 = vrot.slane %v475_v38, 7  ;;  %v549_v47 = vrot.slane %v476_v39, 7 }
  0x95   : > { %v539_v44 = vrot.slane %v469_v36, 7  ;;  %v540_v45 = vrot.slane %v470_v37, 7  ;;  %v4186_v48 = vsel %vm538_vm0, %v542_v40, %v543_v41  ;;  %v4195_v51 = vsel %vm538_vm0, %v543_v41, 0.0 }
  0x96   : > { %5834 = vst [vmem:[#allocation20_spill] sm:$0xff] %v4186_v48  ;;  %v4189_v49 = vsel %vm538_vm0, %v545_v42, %v546_v43  ;;  %v4192_v50 = vsel %vm538_vm0, 0.0, %v545_v42  ;;  %v706_v52 = vrot.slane %v4186_v48, 1  ;;  %v708_v53 = vrot.slane %v4195_v51, 1 }
  0x97   : > { %5835 = vst [vmem:[#allocation21_spill] sm:$0xff] %v4189_v49  ;;  %v710_v54 = vrot.slane %v4192_v50, 1  ;;  %v711_v55 = vrot.slane %v4189_v49, 1  ;;  %v4202_v56 = vsel %vm538_vm0, %v539_v44, %v540_v45  ;;  %v4205_v57 = vsel %vm538_vm0, 0.0, %v539_v44 }
  0x98   : > { %5836 = vst [vmem:[#allocation22_spill] sm:$0xff] %v4202_v56  ;;  %v4208_v58 = vsel %vm538_vm0, %v540_v45, 0.0  ;;  %v4211_v59 = vrot.slane %v5748_v3, 2  ;;  %v4214_v60 = vsel %vm697_vm1, %v706_v52, %v708_v53  ;;  %v700_v62 = vrot.slane %v4205_v57, 1 }
  0x99   : > { %5838 = vst [vmem:[#allocation24_spill] sm:$0xff] %v4214_v60  ;;  %v4217_v61 = vsel %vm697_vm1, %v710_v54, %v711_v55  ;;  %v701_v63 = vrot.slane %v4202_v56, 1  ;;  %v703_v1 = vrot.slane %v4208_v58, 1  ;;  %v4225_v5 = vsel %vm538_vm0, %v548_v46, %v549_v47 }
  0x9a   : > { %5837 = vst [vmem:[#allocation23_spill] sm:$0xff] %v4211_v59  ;;  %5839 = vst [vmem:[#allocation25_spill] sm:$0xff] %v4217_v61  ;;  %v3025_v0 = vpack.i.bf16 %v4217_v61, %v4214_v60  ;;  %v4228_v6 = vsel %vm538_vm0, 0.0, %v548_v46  ;;  %v4235_v9 = vsel %vm538_vm0, %v546_v43, 0.0  ;;  %v716_v12 = vrot.slane %v4225_v5, 1 }
  0x9b   : > { %5840 = vst [vmem:[#allocation26_spill] sm:$0xff] %v4225_v5  ;;  %5841 = vst [vmem:[#allocation27_spill] sm:$0xff] %v4228_v6  ;;  %v4232_v8 = vsel %vm697_vm1, %v700_v62, %v701_v63  ;;  %v715_v10 = vrot.slane %v4228_v6, 1  ;;  %v4242_v14 = vsel %vm697_vm1, %v701_v63, %v703_v1  ;;  %v713_v16 = vrot.slane %v4235_v9, 1 }
  0x9c   : > { %5842 = vst [vmem:[#allocation28_spill] sm:$0xff] %v4232_v8  ;;  %3026 = vrot.lane.b32.xlu1 %v3025_v0, %s3892_s27  ;;  %5843 = vst [vmem:[#allocation29_spill] sm:$0xff] %v4242_v14  ;;  %v3015_v15 = vpack.i.bf16 %v4232_v8, %v4163_v4  ;;  %v4248_v17 = vsel %vm538_vm0, 0.0, %v542_v40  ;;  %v2790_v21 = vunpack.c.l.bf16 %v2839_v7  ;;  %v2791_v23 = vunpack.c.h.bf16 %v2839_v7 }
  0x9d   : > { %5844 = vst [vmem:[#allocation30_spill] sm:$0xff] %v4248_v17  ;;  %v4253_v19 = vsel %vm697_vm1, %v715_v10, %v716_v12  ;;  %v705_v20 = vrot.slane %v4248_v17, 1  ;;  %v4258_v22 = vsel %vm697_vm1, %v711_v55, %v713_v16  ;;  %v2794_v24 = vunpack.c.l.bf16 %v2840_v13 }
  0x9e   : > { %5845 = vst [vmem:[#allocation31_spill] sm:$0xff] %v4253_v19  ;;  %3016 = vrot.lane.b32.xlu0 %v3015_v15, %s3892_s27  ;;  %5846 = vst [vmem:[#allocation32_spill] sm:$0xff] %v4258_v22  ;;  %v2795_v25 = vunpack.c.h.bf16 %v2840_v13  ;;  %v3030_v27 = vpack.i.bf16 %v4253_v19, %v4258_v22  ;;  %v406_v29 = vmul.f32 %v2790_v21, %v4160_v2  ;;  %v4268_v30 = vsel %vm538_vm0, %v549_v47, 0.0  ;;  %v2849_v19 = vld [vmem:[%s4144_s14 + $0x70] sm:$0xff]  }
  0x9f   : > { %v4264_v28 = vsel %vm697_vm1, %v705_v20, %v706_v52  ;;  %v407_v33 = vmul.f32 %v2791_v23, %v4160_v2  ;;  %v408_v34 = vmul.f32 %v2794_v24, %v4160_v2  ;;  %v718_v37 = vrot.slane %v4268_v30, 1 }
  0xa0   : > { %5847 = vst [vmem:[#allocation33_spill] sm:$0xff] %v4264_v28  ;;  %v3020_v32 = vpack.i.bf16 %v4264_v28, %v4242_v14  ;;  %v409_v35 = vmul.f32 %v2795_v25, %v4160_v2  ;;  %3031 = vrot.lane.b32.xlu1 %v3030_v27, %s3892_s27  ;;  %v445_v36 = vadd.f32 %v4167_v11, %v406_v29  ;;  %v2798_v38 = vunpack.c.l.bf16 %v2841_v26 }
  0xa1   : > { %v2799_v39 = vunpack.c.h.bf16 %v2841_v26  ;;  %v446_v40 = vadd.f32 %v4167_v11, %v407_v33  ;;  %v447_v41 = vadd.f32 %v4167_v11, %v408_v34  ;;  %v2802_v43 = vunpack.c.l.bf16 %v2842_v31 }
  0xa2   : > { %3021 = vrot.lane.b32.xlu0 %v3020_v32, %s3892_s27  ;;  %v448_v42 = vadd.f32 %v4167_v11, %v409_v35  ;;  %v477_v44 = vmax.f32 %v445_v36, 0.0  ;;  %v4284_v45 = vsel %vm697_vm1, %v716_v12, %v718_v37  ;;  %v2803_v46 = vunpack.c.h.bf16 %v2842_v31 }
  0xa3   : > { %5848 = vst [vmem:[#allocation34_spill] sm:$0xff] %v4284_v45  ;;  %v410_v47 = vmul.f32 %v2798_v38, %v4160_v2  ;;  %v478_v52 = vmax.f32 %v446_v40, 0.0  ;;  %v479_v53 = vmax.f32 %v447_v41, 0.0  ;;  %v411_v55 = vmul.f32 %v2799_v39, %v4160_v2 }
  0xa4   : > { %v480_v54 = vmax.f32 %v448_v42, 0.0  ;;  %v551_v62 = vrot.slane %v477_v44, 7  ;;  %v412_v63 = vmul.f32 %v2802_v43, %v4160_v2  ;;  %v413_v0 = vmul.f32 %v2803_v46, %v4160_v2 }
  0xa5   : > { %v449_v1 = vadd.f32 %v4167_v11, %v410_v47  ;;  %v552_v7 = vrot.slane %v478_v52, 7  ;;  %v554_v10 = vrot.slane %v479_v53, 7  ;;  %v450_v12 = vadd.f32 %v4167_v11, %v411_v55 }
  0xa6   : > { %v555_v13 = vrot.slane %v480_v54, 7  ;;  %v4293_v15 = vsel %vm538_vm0, 0.0, %v551_v62  ;;  %v451_v16 = vadd.f32 %v4167_v11, %v412_v63  ;;  %v452_v20 = vadd.f32 %v4167_v11, %v413_v0  ;;  %v2843_v54 = vld [vmem:[%s4144_s14 + $0x40] sm:$0xff]  }
  0xa7   : > { %5849 = vst [vmem:[#allocation35_spill] sm:$0xff] %v4293_v15  ;;  %v481_v21 = vmax.f32 %v449_v1, 0.0  ;;  %v4298_v23 = vsel %vm538_vm0, %v551_v62, %v552_v7  ;;  %v4304_v25 = vsel %vm538_vm0, 0.0, %v554_v10  ;;  %v4307_v26 = vsel %vm538_vm0, %v552_v7, 0.0  ;;  %v2844_v1 = vld [vmem:[%s4144_s14 + $0x48] sm:$0xff]  }
  0xa8   : > { %5850 = vst [vmem:[#allocation36_spill] sm:$0xff] %v4298_v23  ;;  %v4301_v24 = vsel %vm538_vm0, %v554_v10, %v555_v13  ;;  %v721_v27 = vrot.slane %v4298_v23, 1  ;;  %v723_v29 = vrot.slane %v4307_v26, 1  ;;  %v725_v31 = vrot.slane %v4304_v25, 1 }
  0xa9   : > { %v726_v32 = vrot.slane %v4301_v24, 1  ;;  %v720_v33 = vrot.slane %v4293_v15, 1  ;;  %v482_v34 = vmax.f32 %v450_v12, 0.0  ;;  %v483_v35 = vmax.f32 %v451_v16, 0.0 }
  0xaa   : > { %v484_v36 = vmax.f32 %v452_v20, 0.0  ;;  %v4315_v37 = vsel %vm697_vm1, %v721_v27, %v723_v29  ;;  %v557_v39 = vrot.slane %v481_v21, 7  ;;  %v4321_v40 = vsel %vm538_vm0, %v555_v13, 0.0 }
  0xab   : > { %5851 = vst [vmem:[#allocation37_spill] sm:$0xff] %v4315_v37  ;;  %v4318_v38 = vsel %vm697_vm1, %v725_v31, %v726_v32  ;;  %v4326_v42 = vsel %vm697_vm1, %v720_v33, %v721_v27  ;;  %v558_v43 = vrot.slane %v482_v34, 7  ;;  %v560_v44 = vrot.slane %v483_v35, 7  ;;  %v2845_v35 = vld [vmem:[%s4144_s14 + $0x50] sm:$0xff]  }
  0xac   : > { %5852 = vst [vmem:[#allocation38_spill] sm:$0xff] %v4318_v38  ;;  %v3040_v41 = vpack.i.bf16 %v4318_v38, %v4315_v37  ;;  %5853 = vst [vmem:[#allocation39_spill] sm:$0xff] %v4326_v42  ;;  %v3035_v46 = vpack.i.bf16 %v4326_v42, %v4284_v45  ;;  %v561_v47 = vrot.slane %v484_v36, 7  ;;  %v4331_v52 = vsel %vm538_vm0, 0.0, %v557_v39 }
  0xad   : > { %v728_v53 = vrot.slane %v4321_v40, 1  ;;  %v4337_v55 = vsel %vm538_vm0, %v557_v39, %v558_v43  ;;  %v4340_v62 = vsel %vm538_vm0, 0.0, %v560_v44  ;;  %v4343_v63 = vsel %vm538_vm0, %v558_v43, 0.0  ;;  %v2846_v43 = vld [vmem:[%s4144_s14 + $0x58] sm:$0xff]  }
  0xae   : > { %3041 = vrot.lane.b32.xlu1 %v3040_v41, %s3892_s27  ;;  %5854 = vst [vmem:[#allocation40_spill] sm:$0xff] %v4337_v55  ;;  %5855 = vst [vmem:[#allocation41_spill] sm:$0xff] %v4340_v62  ;;  %v730_v0 = vrot.slane %v4331_v52, 1  ;;  %3036 = vrot.lane.b32.xlu0 %v3035_v46, %s3892_s27  ;;  %v4349_v7 = vsel %vm538_vm0, %v560_v44, %v561_v47  ;;  %v731_v10 = vrot.slane %v4337_v55, 1  ;;  %v733_v13 = vrot.slane %v4343_v63, 1 }
  0xaf   : > { %5856 = vst [vmem:[#allocation42_spill] sm:$0xff] %v4349_v7  ;;  %v735_v12 = vrot.slane %v4340_v62, 1  ;;  %v736_v16 = vrot.slane %v4349_v7, 1  ;;  %v4356_v20 = vsel %vm697_vm1, %v726_v32, %v728_v53  ;;  %v2806_v21 = vunpack.c.l.bf16 %v2843_v54 }
  0xb0   : > { %5857 = vst [vmem:[#allocation43_spill] sm:$0xff] %v4356_v20  ;;  %v2807_v27 = vunpack.c.h.bf16 %v2843_v54  ;;  %v4359_v29 = vsel %vm697_vm1, %v731_v10, %v733_v13  ;;  %v4362_v31 = vsel %vm697_vm1, %v730_v0, %v731_v10  ;;  %v2810_v33 = vunpack.c.l.bf16 %v2844_v1 }
  0xb1   : > { %5858 = vst [vmem:[#allocation44_spill] sm:$0xff] %v4359_v29  ;;  %5859 = vst [vmem:[#allocation45_spill] sm:$0xff] %v4362_v31  ;;  %v2811_v34 = vunpack.c.h.bf16 %v2844_v1  ;;  %v4366_v36 = vsel %vm697_vm1, %v735_v12, %v736_v16  ;;  %v3045_v39 = vpack.i.bf16 %v4362_v31, %v4356_v20  ;;  %v414_v32 = vmul.f32 %v2806_v21, %v4160_v2 }
  0xb2   : > { %5860 = vst [vmem:[#allocation46_spill] sm:$0xff] %v4366_v36  ;;  %v415_v41 = vmul.f32 %v2807_v27, %v4160_v2  ;;  %v3050_v44 = vpack.i.bf16 %v4366_v36, %v4359_v29  ;;  %v416_v46 = vmul.f32 %v2810_v33, %v4160_v2  ;;  %v4378_v54 = vsel %vm538_vm0, %v561_v47, 0.0 }
  0xb3   : > { %v417_v53 = vmul.f32 %v2811_v34, %v4160_v2  ;;  %3046 = vrot.lane.b32.xlu0 %v3045_v39, %s3892_s27  ;;  %v453_v0 = vadd.f32 %v4167_v11, %v414_v32  ;;  %v738_v10 = vrot.slane %v4378_v54, 1  ;;  %v2814_v13 = vunpack.c.l.bf16 %v2845_v35 }
  0xb4   : > { %v454_v1 = vadd.f32 %v4167_v11, %v415_v41  ;;  %3051 = vrot.lane.b32.xlu1 %v3050_v44, %s3892_s27  ;;  %v455_v12 = vadd.f32 %v4167_v11, %v416_v46  ;;  %v2815_v27 = vunpack.c.h.bf16 %v2845_v35  ;;  %v2818_v33 = vunpack.c.l.bf16 %v2846_v43 }
  0xb5   : > { %v456_v21 = vadd.f32 %v4167_v11, %v417_v53  ;;  %v485_v34 = vmax.f32 %v453_v0, 0.0  ;;  %v4388_v3 = vsel %vm697_vm1, %v736_v16, %v738_v10  ;;  %v2819_v39 = vunpack.c.h.bf16 %v2846_v43 }
  0xb6   : > { %v486_v47 = vmax.f32 %v454_v1, 0.0  ;;  %5861 = vst [vmem:[#allocation47_spill] sm:$0xff] %v4388_v3  ;;  %v487_v32 = vmax.f32 %v455_v12, 0.0  ;;  %v418_v41 = vmul.f32 %v2814_v13, %v4160_v2  ;;  %v419_v4 = vmul.f32 %v2815_v27, %v4160_v2 }
  0xb7   : > { %v488_v18 = vmax.f32 %v456_v21, 0.0  ;;  %v563_v36 = vrot.slane %v485_v34, 7  ;;  %v420_v46 = vmul.f32 %v2818_v33, %v4160_v2  ;;  %v421_v53 = vmul.f32 %v2819_v39, %v4160_v2 }
  0xb8   : > { %v564_v44 = vrot.slane %v486_v47, 7  ;;  %v566_v35 = vrot.slane %v487_v32, 7  ;;  %v457_v0 = vadd.f32 %v4167_v11, %v418_v41  ;;  %v458_v16 = vadd.f32 %v4167_v11, %v419_v4 }
  0xb9   : > { %v567_v29 = vrot.slane %v488_v18, 7  ;;  %v4403_v10 = vsel %vm538_vm0, 0.0, %v563_v36  ;;  %v459_v13 = vadd.f32 %v4167_v11, %v420_v46  ;;  %vm868_vm2 = vcmask 1045504  }
  0xba   : > { %v4397_v43 = vsel %vm538_vm0, %v563_v36, %v564_v44  ;;  %v4400_v1 = vsel %vm538_vm0, %v564_v44, 0.0  ;;  %5863 = vst [vmem:[#allocation49_spill] sm:$0xff] %v4403_v10  ;;  %v4410_v18 = vsel %vm538_vm0, 0.0, %v566_v35  ;;  %v740_v34 = vrot.slane %v4403_v10, 1  ;;  %v2847_v44 = vld [vmem:[%s4144_s14 + $0x60] sm:$0xff]  }
  0xbb   : > { %5862 = vst [vmem:[#allocation48_spill] sm:$0xff] %v4397_v43  ;;  %v4407_v12 = vsel %vm538_vm0, %v566_v35, %v567_v29  ;;  %5865 = vst [vmem:[#allocation51_spill] sm:$0xff] %v4410_v18  ;;  %v741_v4 = vrot.slane %v4397_v43, 1  ;;  %v743_v21 = vrot.slane %v4400_v1, 1  ;;  %v745_v27 = vrot.slane %v4410_v18, 1 }
  0xbc   : > { %5864 = vst [vmem:[#allocation50_spill] sm:$0xff] %v4407_v12  ;;  %v746_v33 = vrot.slane %v4407_v12, 1  ;;  %v460_v36 = vadd.f32 %v4167_v11, %v421_v53  ;;  %v489_v39 = vmax.f32 %v457_v0, 0.0  ;;  %v490_v32 = vmax.f32 %v458_v16, 0.0 }
  0xbd   : > { %v4419_v47 = vsel %vm697_vm1, %v741_v4, %v743_v21  ;;  %v491_v41 = vmax.f32 %v459_v13, 0.0  ;;  %v4426_v35 = vsel %vm697_vm1, %v740_v34, %v741_v4  ;;  %v4429_v20 = vsel %vm538_vm0, %v567_v29, 0.0 }
  0xbe   : > { %v4423_v46 = vsel %vm697_vm1, %v745_v27, %v746_v33  ;;  %v492_v31 = vmax.f32 %v460_v36, 0.0  ;;  %v3055_v0 = vpack.i.bf16 %v4426_v35, %v4388_v3  ;;  %v569_v16 = vrot.slane %v489_v39, 7  ;;  %v2848_v39 = vld [vmem:[%s4144_s14 + $0x68] sm:$0xff]  }
  0xbf   : > { %v3060_v53 = vpack.i.bf16 %v4423_v46, %v4419_v47  ;;  %v570_v13 = vrot.slane %v490_v32, 7  ;;  %v572_v21 = vrot.slane %v491_v41, 7  ;;  %v748_v27 = vrot.slane %v4429_v20, 1 }
  0xc0   : > { %v573_v38 = vrot.slane %v492_v31, 7  ;;  %v2822_v37 = vunpack.c.l.bf16 %v2847_v44  ;;  %3056 = vrot.lane.b32.xlu0 %v3055_v0, %s3892_s27  ;;  %v4445_v34 = vsel %vm538_vm0, 0.0, %v569_v16  ;;  %v2823_v36 = vunpack.c.h.bf16 %v2847_v44 }
  0xc1   : > { %3061 = vrot.lane.b32.xlu1 %v3060_v53, %s3892_s27  ;;  %v4439_v29 = vsel %vm538_vm0, %v569_v16, %v570_v13  ;;  %v4442_v4 = vsel %vm538_vm0, %v570_v13, 0.0  ;;  %v4452_v32 = vsel %vm538_vm0, 0.0, %v572_v21  ;;  %v4459_v3 = vsel %vm697_vm1, %v746_v33, %v748_v27 }
  0xc2   : > { %v4449_v31 = vsel %vm538_vm0, %v572_v21, %v573_v38  ;;  %v751_v41 = vrot.slane %v4439_v29, 1  ;;  %v753_v53 = vrot.slane %v4442_v4, 1  ;;  %v755_v0 = vrot.slane %v4452_v32, 1 }
  0xc3   : > { %5866 = vst [vmem:[#allocation52_spill] sm:$0xff] %v4449_v31  ;;  %v756_v13 = vrot.slane %v4449_v31, 1  ;;  %v750_v44 = vrot.slane %v4445_v34, 1  ;;  %v2826_v42 = vunpack.c.l.bf16 %v2848_v39  ;;  %v2827_v45 = vunpack.c.h.bf16 %v2848_v39 }
  0xc4   : > { %v4463_v16 = vsel %vm697_vm1, %v751_v41, %v753_v53  ;;  %v422_v21 = vmul.f32 %v2822_v37, %v4160_v2  ;;  %v423_v60 = vmul.f32 %v2823_v36, %v4160_v2  ;;  %v4475_v33 = vsel %vm538_vm0, %v573_v38, 0.0 }
  0xc5   : > { %5867 = vst [vmem:[#allocation53_spill] sm:$0xff] %v4463_v16  ;;  %v4468_v22 = vsel %vm697_vm1, %v755_v0, %v756_v13  ;;  %v4471_v61 = vsel %vm697_vm1, %v750_v44, %v751_v41  ;;  %v424_v37 = vmul.f32 %v2826_v42, %v4160_v2  ;;  %v425_v53 = vmul.f32 %v2827_v45, %v4160_v2 }
  0xc6   : > { %5868 = vst [vmem:[#allocation54_spill] sm:$0xff] %v4468_v22  ;;  %5869 = vst [vmem:[#allocation55_spill] sm:$0xff] %v4471_v61  ;;  %v3070_v27 = vpack.i.bf16 %v4468_v22, %v4463_v16  ;;  %v3065_v39 = vpack.i.bf16 %v4471_v61, %v4459_v3  ;;  %v461_v0 = vadd.f32 %v4167_v11, %v422_v21  ;;  %v758_v44 = vrot.slane %v4475_v33, 1 }
  0xc7   : > { %v462_v41 = vadd.f32 %v4167_v11, %v423_v60  ;;  %v2830_v36 = vunpack.c.l.bf16 %v2849_v19  ;;  %v463_v28 = vadd.f32 %v4167_v11, %v424_v37  ;;  %v464_v42 = vadd.f32 %v4167_v11, %v425_v53 }
  0xc8   : > { %3071 = vrot.lane.b32.xlu1 %v3070_v27, %s3892_s27  ;;  %3066 = vrot.lane.b32.xlu0 %v3065_v39, %s3892_s27  ;;  %v2831_v8 = vunpack.c.h.bf16 %v2849_v19  ;;  %v493_v45 = vmax.f32 %v461_v0, 0.0  ;;  %v872_v60 = vrot.slane %v4202_v56, 2  ;;  %v4494_v61 = vsel %vm697_vm1, %v756_v13, %v758_v44 }
  0xc9   : > { %v494_v14 = vmax.f32 %v462_v41, 0.0  ;;  %v426_v21 = vmul.f32 %v2830_v36, %v4160_v2  ;;  %v495_v22 = vmax.f32 %v463_v28, 0.0  ;;  %v496_v16 = vmax.f32 %v464_v42, 0.0  ;;  %5870 = vst [vmem:[#allocation56_spill] sm:$0xff] %v4494_v61 }
  0xca   : > { %v427_v27 = vmul.f32 %v2831_v8, %v4160_v2  ;;  %v575_v38 = vrot.slane %v493_v45, 7  ;;  %v874_v53 = vrot.slane %v4208_v58, 2  ;;  %v876_v36 = vrot.slane %v4248_v17, 2 }
  0xcb   : > { %v576_v39 = vrot.slane %v494_v14, 7  ;;  %v465_v37 = vadd.f32 %v4167_v11, %v426_v21  ;;  %v578_v19 = vrot.slane %v495_v22, 7  ;;  %v579_v0 = vrot.slane %v496_v16, 7 }
  0xcc   : > { %v466_v41 = vadd.f32 %v4167_v11, %v427_v27  ;;  %v4508_v2 = vsel %vm538_vm0, 0.0, %v575_v38  ;;  %vm1960_vm3 = vcmask 1041408   ;;  %vm1618_vm4 = vcmask 31744  }
  0xcd   : > { %v4502_v28 = vsel %vm538_vm0, %v575_v38, %v576_v39  ;;  %v4505_v13 = vsel %vm538_vm0, %v576_v39, 0.0  ;;  %v497_v8 = vmax.f32 %v465_v37, 0.0  ;;  %v4511_v14 = vsel %vm538_vm0, %v578_v19, %v579_v0 }
  0xce   : > { %5871 = vst [vmem:[#allocation57_spill] sm:$0xff] %v4502_v28  ;;  %v4514_v58 = vsel %vm538_vm0, 0.0, %v578_v19  ;;  %v761_v11 = vrot.slane %v4502_v28, 1  ;;  %v763_v22 = vrot.slane %v4505_v13, 1  ;;  %v766_v44 = vrot.slane %v4511_v14, 1 }
  0xcf   : > { %5872 = vst [vmem:[#allocation58_spill] sm:$0xff] %v4514_v58  ;;  %v765_v16 = vrot.slane %v4514_v58, 1  ;;  %v760_v42 = vrot.slane %v4508_v2, 1  ;;  %v498_v45 = vmax.f32 %v466_v41, 0.0  ;;  %v581_v21 = vrot.slane %v497_v8, 7 }
  0xd0   : > { %v4522_v38 = vsel %vm697_vm1, %v761_v11, %v763_v22  ;;  %v4525_v27 = vsel %vm538_vm0, %v579_v0, 0.0  ;;  %v877_v39 = vrot.slane %v4186_v48, 2  ;;  %v4543_v22 = vsel %vm868_vm2, %v872_v60, %v874_v53 }
  0xd1   : > { %5873 = vst [vmem:[#allocation59_spill] sm:$0xff] %v4522_v38  ;;  %v4529_v37 = vsel %vm697_vm1, %v765_v16, %v766_v44  ;;  %v4532_v19 = vsel %vm697_vm1, %v760_v42, %v761_v11  ;;  %v582_v56 = vrot.slane %v498_v45, 7  ;;  %v768_v17 = vrot.slane %v4525_v27, 1 }
  0xd2   : > { %5874 = vst [vmem:[#allocation60_spill] sm:$0xff] %v4529_v37  ;;  %5875 = vst [vmem:[#allocation61_spill] sm:$0xff] %v4532_v19  ;;  %v3080_v41 = vpack.i.bf16 %v4529_v37, %v4522_v38  ;;  %v3075_v8 = vpack.i.bf16 %v4532_v19, %v4494_v61  ;;  %v4540_v0 = vsel %vm538_vm0, 0.0, %v581_v21  ;;  %v4553_v45 = vsel %vm868_vm2, %v876_v36, %v877_v39 }
  0xd3   : > { %5876 = vst [vmem:[#allocation62_spill] sm:$0xff] %v4540_v0  ;;  %v4546_v16 = vsel %vm538_vm0, %v581_v21, %v582_v56  ;;  %v4549_v11 = vsel %vm538_vm0, %v582_v56, 0.0  ;;  %v770_v42 = vrot.slane %v4540_v0, 1  ;;  %v4560_v38 = vsel %vm697_vm1, %v766_v44, %v768_v17 }
  0xd4   : > { %5877 = vst [vmem:[#allocation63_spill] sm:$0xff] %v4546_v16  ;;  %3081 = vrot.lane.b32.xlu1 %v3080_v41, %s3892_s27  ;;  %3076 = vrot.lane.b32.xlu0 %v3075_v8, %s3892_s27  ;;  %v771_v37 = vrot.slane %v4546_v16, 1  ;;  %v773_v53 = vrot.slane %v4549_v11, 1  ;;  %5878 = vst [vmem:[#allocation64_spill] sm:$0xff] %v4560_v38  ;;  %v871_v21 = vrot.slane %v4205_v57, 2  ;;  %v882_v56 = vrot.slane %v4189_v49, 2 }
  0xd5   : > { %v884_v19 = vrot.slane %v4235_v9, 2  ;;  %v886_v36 = vrot.slane %v4228_v6, 2  ;;  %v887_v61 = vrot.slane %v4225_v5, 2  ;;  %v3095_v48 = vpack.i.bf16 %v4553_v45, %v4543_v22 }
  0xd6   : > { %v772_v41 = vsel %vm697_vm1, %v770_v42, %v771_v37  ;;  %v774_v8 = vsel %vm697_vm1, %v771_v37, %v773_v53  ;;  %v4572_v17 = vsel %vm868_vm2, %v871_v21, %v872_v60  ;;  %v5880_v9 = vrot.slane %v4195_v51, 2 }
  0xd7   : > { %v4574_v44 = vpack.i.bf16 %v774_v8, %v772_v41  ;;  %v3085_v49 = vpack.i.bf16 %v772_v41, %v4560_v38  ;;  %v4584_v42 = vsel %vm868_vm2, %v882_v56, %v884_v19  ;;  %v4587_v37 = vsel %vm868_vm2, %v886_v36, %v887_v61 }
  0xd8   : > { %v4580_v6 = vsel %vm868_vm2, %v877_v39, %v5880_v9  ;;  %835 = vrot.lane.b32.xlu1 %v774_v8, %s3892_s27  ;;  %v881_v60 = vrot.slane %v4192_v50, 2  ;;  %v892_v53 = vrot.slane %v4298_v23, 2  ;;  %v3090_v51 = vpack.i.bf16 %v4572_v17, %v4211_v59 }
  0xd9   : > { %5879 = vst [vmem:[#allocation65_spill] sm:$0xff] %v4574_v44  ;;  %3086 = vrot.lane.b32.xlu0 %v3085_v49, %s3892_s27  ;;  %v894_v39 = vrot.slane %v4307_v26, 2  ;;  %v896_v21 = vrot.slane %v4304_v25, 2  ;;  %v897_v41 = vrot.slane %v4301_v24, 2  ;;  %v889_v36 = vrot.slane %v4268_v30, 2 }
  0xda   : > { %v4598_v19 = vsel %vm868_vm2, %v881_v60, %v882_v56  ;;  %v891_v8 = vrot.slane %v4293_v15, 2  ;;  %v3105_v9 = vpack.i.bf16 %v4587_v37, %v4584_v42  ;;  %v902_v59 = vrot.slane %v4337_v55, 2 }
  0xdb   : > { %v3100_v49 = vpack.i.bf16 %v4598_v19, %v4580_v6  ;;  %v4609_v26 = vsel %vm868_vm2, %v892_v53, %v894_v39  ;;  %v4612_v56 = vsel %vm868_vm2, %v896_v21, %v897_v41  ;;  %v4615_v30 = vsel %vm868_vm2, %v887_v61, %v889_v36 }
  0xdc   : > { %3096 = vrot.lane.b32.xlu1 %v3095_v48, %s3893_s29  ;;  %v904_v60 = vrot.slane %v4343_v63, 2  ;;  %v4620_v44 = vsel %vm868_vm2, %v891_v8, %v892_v53  ;;  %v906_v38 = vrot.slane %v4340_v62, 2  ;;  %v907_v48 = vrot.slane %v4349_v7, 2 }
  0xdd   : > { %3091 = vrot.lane.b32.xlu0 %v3090_v51, %s3893_s29  ;;  %v899_v39 = vrot.slane %v4321_v40, 2  ;;  %v901_v55 = vrot.slane %v4331_v52, 2  ;;  %v912_v21 = vrot.slane %v4397_v43, 2  ;;  %v914_v61 = vrot.slane %v4400_v1, 2 }
  0xde   : > { %v916_v36 = vrot.slane %v4410_v18, 2  ;;  %v917_v63 = vrot.slane %v4407_v12, 2  ;;  %v3115_v53 = vpack.i.bf16 %v4612_v56, %v4609_v26  ;;  %v3110_v51 = vpack.i.bf16 %v4620_v44, %v4615_v30 }
  0xdf   : > { %v909_v40 = vrot.slane %v4378_v54, 2  ;;  %v911_v8 = vrot.slane %v4403_v10, 2  ;;  %v905_v1 = vsel %vm868_vm2, %v902_v59, %v904_v60  ;;  %v908_v18 = vsel %vm868_vm2, %v906_v38, %v907_v48 }
  0xe0   : > { %3106 = vrot.lane.b32.xlu1 %v3105_v9, %s3893_s29  ;;  %v900_v12 = vsel %vm868_vm2, %v897_v41, %v899_v39  ;;  %v903_v9 = vsel %vm868_vm2, %v901_v55, %v902_v59  ;;  %v915_v43 = vsel %vm868_vm2, %v912_v21, %v914_v61  ;;  %v918_v7 = vsel %vm868_vm2, %v916_v36, %v917_v63 }
  0xe1   : > { %3101 = vrot.lane.b32.xlu0 %v3100_v49, %s3893_s29  ;;  %v922_v62 = vrot.slane %v4439_v29, 2  ;;  %v924_v54 = vrot.slane %v4442_v4, 2  ;;  %v3125_v10 = vpack.i.bf16 %v908_v18, %v905_v1  ;;  %v3120_v49 = vpack.i.bf16 %v903_v9, %v900_v12 }
  0xe2   : > { %v910_v60 = vsel %vm868_vm2, %v907_v48, %v909_v40  ;;  %v913_v38 = vsel %vm868_vm2, %v911_v8, %v912_v21  ;;  %v926_v59 = vrot.slane %v4452_v32, 2  ;;  %v927_v55 = vrot.slane %v4449_v31, 2 }
  0xe3   : > { %v919_v41 = vrot.slane %v4429_v20, 2  ;;  %v921_v39 = vrot.slane %v4445_v34, 2  ;;  %v3135_v61 = vpack.i.bf16 %v918_v7, %v915_v43  ;;  %v3130_v4 = vpack.i.bf16 %v913_v38, %v910_v60 }
  0xe4   : > { %3116 = vrot.lane.b32.xlu1 %v3115_v53, %s3893_s29  ;;  %v925_v36 = vsel %vm868_vm2, %v922_v62, %v924_v54  ;;  %v941_v53 = vrot.slane %v4540_v0, 2  ;;  %v942_v48 = vrot.slane %v4546_v16, 2  ;;  %v932_v21 = vrot.slane %v4502_v28, 2 }
  0xe5   : > { %3111 = vrot.lane.b32.xlu0 %v3110_v51, %s3893_s29  ;;  %v934_v51 = vrot.slane %v4505_v13, 2  ;;  %v936_v40 = vrot.slane %v4514_v58, 2  ;;  %v944_v20 = vrot.slane %v4549_v11, 2  ;;  %v928_v8 = vsel %vm868_vm2, %v926_v59, %v927_v55 }
  0xe6   : > { %v920_v54 = vsel %vm868_vm2, %v917_v63, %v919_v41  ;;  %v923_v0 = vsel %vm868_vm2, %v921_v39, %v922_v62  ;;  %v937_v16 = vrot.slane %v4511_v14, 2  ;;  %v931_v31 = vrot.slane %v4508_v2, 2 }
  0xe7   : > { %v943_v13 = vsel %vm868_vm2, %v941_v53, %v942_v48  ;;  %v945_v28 = vsel %vm868_vm2, %v942_v48, %v944_v20  ;;  %v3145_v11 = vpack.i.bf16 %v928_v8, %v925_v36  ;;  %v3140_v63 = vpack.i.bf16 %v923_v0, %v920_v54  ;;  %v5891_v20 = vld [vmem:[#allocation61_spill] sm:$0xff] }
  0xe8   : > { %3126 = vrot.lane.b32.xlu1 %v3125_v10, %s3893_s29  ;;  %v929_v10 = vrot.slane %v4475_v33, 2  ;;  %v4671_v58 = vpack.i.bf16 %v945_v28, %v943_v13  ;;  %v935_v62 = vsel %vm868_vm2, %v932_v21, %v934_v51  ;;  %v933_v59 = vsel %vm868_vm2, %v931_v31, %v932_v21  ;;  %v5890_v51 = vld [vmem:[#allocation21_spill] sm:$0xff] }
  0xe9   : > { %3121 = vrot.lane.b32.xlu0 %v3120_v49, %s3893_s29  ;;  %v4677_v49 = vsel %vm868_vm2, %v936_v40, %v937_v16  ;;  %v939_v41 = vrot.slane %v4525_v27, 2  ;;  %v4691_v53 = vpack.i.bf16 %v4609_v26, %v4620_v44  ;;  %v4695_v31 = vpack.i.bf16 %v900_v12, %v4612_v56  ;;  %v5882_v12 = vld [vmem:[#allocation30_spill] sm:$0xff]  ;;  %v5883_v26 = vld [vmem:[#allocation20_spill] sm:$0xff] }
  0xea   : > { %5881 = vst [vmem:[#allocation66_spill] sm:$0xff] %v4671_v58  ;;  %v930_v33 = vsel %vm868_vm2, %v927_v55, %v929_v10  ;;  %v3155_v39 = vpack.i.bf16 %v4677_v49, %v935_v62  ;;  %v4697_v27 = vpack.i.bf16 %v905_v1, %v903_v9  ;;  %v4705_v48 = vpack.i.bf16 %v4419_v47, %v4426_v35  ;;  %v5885_v47 = vld [vmem:[#allocation55_spill] sm:$0xff]  ;;  %v5886_v35 = vld [vmem:[#allocation53_spill] sm:$0xff] }
  0xeb   : > { %v940_v55 = vsel %vm868_vm2, %v937_v16, %v939_v41  ;;  %v4707_v44 = vpack.i.bf16 %v915_v43, %v913_v38  ;;  %v4711_v16 = vpack.i.bf16 %v4459_v3, %v4423_v46  ;;  %v3170_v56 = vpack.i.bf16 %v5883_v26, %v5882_v12  ;;  %v5887_v3 = vld [vmem:[#allocation54_spill] sm:$0xff]  ;;  %v5888_v46 = vld [vmem:[#allocation56_spill] sm:$0xff] }
  0xec   : > { %3136 = vrot.lane.b32.xlu1 %v3135_v61, %s3893_s29  ;;  %v4686_v61 = vpack.i.bf16 %v4615_v30, %v4587_v37  ;;  %v3160_v37 = vpack.i.bf16 %v943_v13, %v940_v55  ;;  %v4701_v30 = vpack.i.bf16 %v910_v60, %v908_v18  ;;  %v4716_v1 = vpack.i.bf16 %v920_v54, %v918_v7  ;;  %v5884_v18 = vld [vmem:[#allocation22_spill] sm:$0xff]  ;;  %v5889_v7 = vld [vmem:[#allocation27_spill] sm:$0xff]  ;;  %v5894_v13 = vld [vmem:[#allocation28_spill] sm:$0xff] }
  0xed   : > { %3131 = vrot.lane.b32.xlu0 %v3130_v4, %s3893_s29  ;;  %v3150_v4 = vpack.i.bf16 %v933_v59, %v930_v33  ;;  %v3165_v9 = vpack.i.bf16 %v5884_v18, %v4205_v57  ;;  %v4723_v43 = vpack.i.bf16 %v5886_v35, %v5885_v47  ;;  %v4725_v60 = vpack.i.bf16 %v925_v36, %v923_v0  ;;  %v3630_v36 = vld [vmem:[#allocation8] sm:$0xff]   ;;  %v5892_v54 = vld [vmem:[#allocation59_spill] sm:$0xff]  ;;  %v5902_v35 = vld [vmem:[#allocation34_spill] sm:$0xff] }
  0xee   : > { %v4729_v38 = vpack.i.bf16 %v5888_v46, %v5887_v3  ;;  %v4734_v21 = vpack.i.bf16 %v930_v33, %v928_v8  ;;  %v3175_v40 = vpack.i.bf16 %v5890_v51, %v4192_v50  ;;  %v3185_v0 = vpack.i.bf16 %v4298_v23, %v4293_v15  ;;  %v5893_v8 = vld [vmem:[#allocation29_spill] sm:$0xff]  ;;  %v5897_v41 = vld [vmem:[#allocation24_spill] sm:$0xff]  ;;  %2870 = vmatprep.subr.bf16.mxu0 %v3630_v36  ;;  %v5901_v47 = vld [vmem:[#allocation31_spill] sm:$0xff] }
  0xef   : > { %v4745_v10 = vpack.i.bf16 %v5892_v54, %v5891_v20  ;;  %v5896_v33 = vld [vmem:[#allocation33_spill] sm:$0xff]  ;;  %2871 = vmatpush3.bf16.msra.mxu0 %v3630_v36  ;;  %2908 = vmatprep.subr.bf16.mxu1 %v3630_v36  ;;  %v3245_v3 = vpack.i.bf16 %v5902_v35, %v5901_v47  ;;  %v5905_v20 = vld [vmem:[#allocation38_spill] sm:$0xff]  ;;  %v5906_v54 = vld [vmem:[#allocation43_spill] sm:$0xff]  ;;  %vm1650_vm5 = vcmask 64512   ;;  %vm1682_vm6 = vcmask 97280  }
  0xf0   : > { %3146 = vrot.lane.b32.xlu1 %v3145_v11, %s3893_s29  ;;  %v5895_v11 = vpack.i.bf16 %v5893_v8, %v5894_v13  ;;  %2911 = vmatpush3.bf16.msra.mxu1 %v3630_v36  ;;  %v5909_v13 = vld [vmem:[#allocation40_spill] sm:$0xff]  ;;  %v5915_v47 = vld [vmem:[#allocation47_spill] sm:$0xff]  ;;  %v5921_v23 = vld [vmem:[#allocation50_spill] sm:$0xff]  ;;  %vm1715_vm7 = vcmask 130048   ;;  %vm1748_vm8 = vcmask 162816   ;;  %vm1781_vm9 = vcmask 195584  }
  0xf1   : > { %3141 = vrot.lane.b32.xlu0 %v3140_v63, %s3893_s29  ;;  %v3200_v63 = vpack.i.bf16 %v4543_v22, %v4572_v17  ;;  %v3205_v22 = vpack.i.bf16 %v4580_v6, %v4553_v45  ;;  %v3632_v17 = vld [vmem:[#allocation8 + $0x10] ss:$0 sps:$4 sm:$0x33]   ;;  %v5898_v6 = vld [vmem:[#allocation25_spill] sm:$0xff]  ;;  %v5899_v45 = vld [vmem:[#allocation32_spill] sm:$0xff]  ;;  %vm1814_vm10 = vcmask 228352  }
  0xf2   : > { %v5920_v15 = vld [vmem:[#allocation51_spill] sm:$0xff]  ;;  %vm1847_vm11 = vcmask 261120   ;;  %vm1911_vm12 = vcmask 293888   ;;  %vm2253_vm13 = vcmask 11264   ;;  %vm2286_vm14 = vcmask 15360  }
  0xf4   : > { %3156 = vrot.lane.b32.xlu1 %v3155_v39, %s3893_s29  ;;  %v3195_v39 = vpack.i.bf16 %v5897_v41, %v5896_v33  ;;  %v5910_v41 = vld [vmem:[#allocation45_spill] sm:$0xff] }
  0xf5   : > { %3151 = vrot.lane.b32.xlu0 %v3150_v4, %s3893_s29  ;;  %v3631_v4 = vld [vmem:[#allocation8 + $0x8] sm:$0xff]  }
  0xf6   : > { %2872 = vmatprep.subr.bf16.mxu0 %v3631_v4  ;;  %2909 = vmatprep.subr.bf16.mxu1 %v3631_v4 }
  0xf7   : > { %2873 = vmatpush3.bf16.msra.mxu0 %v3631_v4  ;;  %2912 = vmatpush3.bf16.msra.mxu1 %v3631_v4 }
  0xf8   : > { %1006 = vrot.lane.b32.xlu1 %v945_v28, %s3893_s29  ;;  %v3180_v28 = vpack.i.bf16 %v4225_v5, %v5889_v7  ;;  %2914 = vmatprep.subr.msk.bf16.mxu0 %vm1960_vm3, %v3632_v17  ;;  %v4885_v7 = vpack.i.bf16 %v5921_v23, %v5920_v15 }
  0xf9   : > { %3161 = vrot.lane.b32.xlu0 %v3160_v37, %s3893_s29  ;;  %v4756_v37 = vpack.i.bf16 %v935_v62, %v933_v59  ;;  %v1962_v62 = vsel %vm1960_vm3, %v3632_v17, 0  ;;  %2915 = vmatprep.subr.msk.bf16.mxu1 %vm1960_vm3, %v3632_v17  ;;  %v3225_v59 = vpack.i.bf16 %v5899_v45, %v5898_v6  ;;  %v5912_v6 = vld [vmem:[#allocation41_spill] sm:$0xff]  ;;  %v5913_v45 = vld [vmem:[#allocation42_spill] sm:$0xff]  ;;  %s2461_s29 = scalar_lea.sflag [#allocation4], %s4138_s26 }
  0xfb   : > { %2875 = vmatpush3.bf16.msra.mxu0 %v1962_v62  ;;  %2913 = vmatpush3.bf16.msra.mxu1 %v1962_v62 }
  0xfc   : > { %3171 = vrot.lane.b32.xlu1 %v3170_v56, %s3894_s7 }
  0xfd   : > { %3166 = vrot.lane.b32.xlu0 %v3165_v9, %s3894_s7  ;;  %v4769_v9 = vpack.i.bf16 %v940_v55, %v4677_v49 }
  0xff   : > { %5900 = vst [vmem:[#allocation30_spill] sm:$0xff] %v4769_v9 }
 0x100   : > { %3181 = vrot.lane.b32.xlu1 %v3180_v28, %s3894_s7 }
 0x101   : > { %3176 = vrot.lane.b32.xlu0 %v3175_v40, %s3894_s7 }
 0x104   : > { %3191 = vrot.lane.b32.xlu1 %v5895_v11, %s3895_s18  ;;  %v3320_v11 = vpack.i.bf16 %v5909_v13, %v4331_v52 }
 0x105   : > { %3186 = vrot.lane.b32.xlu0 %v3185_v0, %s3894_s7 }
 0x108   : > { %3201 = vrot.lane.b32.xlu1 %v3200_v63, %s3896_s9 }
 0x109   : > { %3196 = vrot.lane.b32.xlu0 %v3195_v39, %s3895_s18 }
 0x10c   : > { %3211 = vrot.lane.b32.xlu1 %v3170_v56, %s3897_s11  ;;  %v3235_v56 = vpack.i.bf16 %v4584_v42, %v4598_v19  ;;  %v5903_v42 = vld [vmem:[#allocation39_spill] sm:$0xff]  ;;  %v5904_v19 = vld [vmem:[#allocation37_spill] sm:$0xff] }
 0x10d   : > { %3206 = vrot.lane.b32.xlu0 %v3205_v22, %s3896_s9  ;;  %v3275_v46 = vpack.i.bf16 %v5904_v19, %v5903_v42 }
 0x10e   : > { %v4784_v49 = vpop.permute.xlu1 %3026 }
 0x110   : > { %3221 = vrot.lane.b32.xlu1 %v3195_v39, %s3898_s15  ;;  %v4786_v55 = vpop.permute.xlu0 %3016  ;;  %v5911_v39 = vld [vmem:[#allocation44_spill] sm:$0xff] }
 0x111   : > { %3216 = vrot.lane.b32.xlu0 %v3175_v40, %s3897_s11  ;;  %v3330_v4 = vpack.i.bf16 %v5911_v39, %v5910_v41 }
 0x112   : > { %v4796_v40 = vpop.permute.xlu1 %3031 }
 0x114   : > { %3231 = vrot.lane.b32.xlu1 %v3205_v22, %s3899_s17  ;;  %v4798_v36 = vpop.permute.xlu0 %3021 }
 0x115   : > { %3226 = vrot.lane.b32.xlu0 %v3225_v59, %s3898_s15 }
 0x118   : > { %3241 = vrot.lane.b32.xlu1 %v3225_v59, %s3895_s18  ;;  %v3350_v59 = vpack.i.bf16 %v5913_v45, %v5912_v6 }
 0x119   : > { %3236 = vrot.lane.b32.xlu0 %v3235_v56, %s3899_s17 }
 0x11c   : > { %3251 = vrot.lane.b32.xlu1 %v3235_v56, %s3896_s9  ;;  %v5914_v56 = vld [vmem:[#allocation46_spill] sm:$0xff] }
 0x11d   : > { %3246 = vrot.lane.b32.xlu0 %v3245_v3, %s3895_s18  ;;  %v3360_v35 = vpack.i.bf16 %v5915_v47, %v5914_v56 }
 0x120   : > { %3261 = vrot.lane.b32.xlu1 %v3180_v28, %s3897_s11  ;;  %v3290_v28 = vpack.i.bf16 %v4301_v24, %v4304_v25  ;;  %v4806_v8 = vpop.permute.xlu1 %3041 }
 0x121   : > { %3256 = vrot.lane.b32.xlu0 %v4686_v61, %s3896_s9  ;;  %5907 = vst [vmem:[#allocation20_spill] sm:$0xff] %v4806_v8  ;;  %v3044_v39 = vunpack.i.h.bf16 %v4806_v8 }
 0x124   : > { %3271 = vrot.lane.b32.xlu1 %v3245_v3, %s3898_s15 }
 0x125   : > { %3266 = vrot.lane.b32.xlu0 %v3185_v0, %s3897_s11  ;;  %v3300_v0 = vpack.i.bf16 %v5906_v54, %v5905_v20 }
 0x126   : > { %v3052_v63 = vpop.permute.xlu1 %3051 }
 0x128   : > { %3281 = vrot.lane.b32.xlu1 %v4686_v61, %s3899_s17  ;;  %v4808_v61 = vpop.permute.xlu0 %3036 }
 0x129   : > { %3276 = vrot.lane.b32.xlu0 %v3275_v46, %s3898_s15  ;;  %5908 = vst [vmem:[#allocation22_spill] sm:$0xff] %v4808_v61 }
 0x12c   : > { %3291 = vrot.lane.b32.xlu1 %v3290_v28, %s3894_s7  ;;  %v4816_v33 = vpop.permute.xlu0 %3046 }
 0x12d   : > { %3286 = vrot.lane.b32.xlu0 %v4691_v53, %s3899_s17 }
 0x130   : > { %3301 = vrot.lane.b32.xlu1 %v3300_v0, %s3895_s18 }
 0x131   : > { %3296 = vrot.lane.b32.xlu0 %v3275_v46, %s3895_s18 }
 0x132   : > { %v4826_v17 = vpop.permute.xlu0 %3056 }
 0x133   : > { %v4824_v22 = vpop.permute.xlu1 %3061  ;;  %v3058_v58 = vunpack.i.l.bf16 %v4826_v17 }
 0x134   : > { %3311 = vrot.lane.b32.xlu1 %v4695_v31, %s3896_s9  ;;  %v3064_v8 = vunpack.i.h.bf16 %v4824_v22 }
 0x135   : > { %3306 = vrot.lane.b32.xlu0 %v4691_v53, %s3896_s9 }
 0x138   : > { %3321 = vrot.lane.b32.xlu1 %v3320_v11, %s3897_s11 }
 0x139   : > { %3316 = vrot.lane.b32.xlu0 %v3290_v28, %s3897_s11  ;;  %v5917_v28 = vld [vmem:[#allocation48_spill] sm:$0xff] }
 0x13a   : > { %v4832_v62 = vpop.permute.xlu1 %3071  ;;  %v4834_v53 = vpop.permute.xlu0 %3066 }
 0x13c   : > { %3331 = vrot.lane.b32.xlu1 %v3330_v4, %s3898_s15 }
 0x13d   : > { %3326 = vrot.lane.b32.xlu0 %v3300_v0, %s3898_s15 }
 0x140   : > { %3341 = vrot.lane.b32.xlu1 %v4697_v27, %s3899_s17 }
 0x141   : > { %3336 = vrot.lane.b32.xlu0 %v4695_v31, %s3899_s17  ;;  %v5916_v31 = vld [vmem:[#allocation49_spill] sm:$0xff] }
 0x142   : > { %v3380_v20 = vpack.i.bf16 %v5917_v28, %v5916_v31 }
 0x144   : > { %3351 = vrot.lane.b32.xlu1 %v3350_v59, %s3894_s7 }
 0x145   : > { %3346 = vrot.lane.b32.xlu0 %v3320_v11, %s3894_s7 }
 0x146   : > { %v4844_v3 = vpop.permute.xlu1 %3081  ;;  %v4846_v42 = vpop.permute.xlu0 %3076 }
 0x148   : > { %3361 = vrot.lane.b32.xlu1 %v3360_v35, %s3895_s18 }
 0x149   : > { %3356 = vrot.lane.b32.xlu0 %v3330_v4, %s3895_s18  ;;  %v3053_v4 = vunpack.i.l.bf16 %v3052_v63 }
 0x14a   : > { %v4850_v19 = vpop.permute.xlu1 %835 }
 0x14b   : > { %v4852_v46 = vpop.permute.xlu0 %3086 }
 0x14c   : > { %3371 = vrot.lane.b32.xlu1 %v4701_v30, %s3896_s9 }
 0x14d   : > { %3366 = vrot.lane.b32.xlu0 %v4697_v27, %s3896_s9  ;;  %v3054_v27 = vunpack.i.h.bf16 %v3052_v63  ;;  %v3049_v63 = vunpack.i.h.bf16 %v4816_v33 }
 0x14e   : > { %v4860_v54 = vpop.permute.xlu1 %3096 }
 0x14f   : > { %v4862_v0 = vpop.permute.xlu0 %3091 }
 0x150   : > { %3381 = vrot.lane.b32.xlu1 %v3380_v20, %s3897_s11 }
 0x151   : > { %3376 = vrot.lane.b32.xlu0 %v3350_v59, %s3897_s11  ;;  %v1630_v59 = vsel %vm1618_vm4, %v4304_v25, %v3044_v39  ;;  %v1634_v25 = vsel %vm1618_vm4, %v5912_v6, %v3054_v27  ;;  %v1633_v39 = vsel %vm1618_vm4, %v5909_v13, %v3053_v4  ;;  %v1632_v13 = vsel %vm1618_vm4, %v4331_v52, %v3049_v63 }
 0x152   : > { %v4866_v11 = vpop.permute.xlu1 %3106 }
 0x153   : > { %v4868_v41 = vpop.permute.xlu0 %3101 }
 0x154   : > { %3391 = vrot.lane.b32.xlu1 %v4705_v48, %s3898_s15 }
 0x155   : > { %3386 = vrot.lane.b32.xlu0 %v3360_v35, %s3898_s15  ;;  %v3048_v35 = vunpack.i.l.bf16 %v4816_v33  ;;  %v3063_v33 = vunpack.i.l.bf16 %v4824_v22 }
 0x156   : > { %v4874_v56 = vpop.permute.xlu1 %3116 }
 0x157   : > { %5918 = vst [vmem:[#allocation55_spill] sm:$0xff] %v4874_v56  ;;  %v3119_v47 = vunpack.i.h.bf16 %v4874_v56  ;;  %v4877_v5 = vpop.permute.xlu0 %3111  ;;  %v4900_v56 = vpack.i.bf16 %v4439_v29, %v4445_v34  ;;  %v1631_v4 = vsel %vm1618_vm4, %v4301_v24, %v3048_v35  ;;  %v1638_v24 = vsel %vm1618_vm4, %v5920_v15, %v3064_v8 }
 0x158   : > { %5919 = vst [vmem:[#allocation53_spill] sm:$0xff] %v4877_v5  ;;  %3401 = vrot.lane.b32.xlu1 %v4707_v44, %s3899_s17  ;;  %v1637_v35 = vsel %vm1618_vm4, %v5917_v28, %v3063_v33  ;;  %v3068_v15 = vunpack.i.l.bf16 %v4834_v53 }
 0x159   : > { %v4890_v61 = vsel %vm1650_vm5, %v1630_v59, %v3119_v47  ;;  %3396 = vrot.lane.b32.xlu0 %v4701_v30, %s3899_s17  ;;  %v3059_v30 = vunpack.i.h.bf16 %v4826_v17  ;;  %v3074_v17 = vunpack.i.h.bf16 %v4832_v62 }
 0x15a   : > { %5922 = vst [vmem:[#allocation54_spill] sm:$0xff] %v4890_v61  ;;  %v3127_v5 = vpop.permute.xlu1 %3126 }
 0x15b   : > { %v3129_v47 = vunpack.i.h.bf16 %v3127_v5  ;;  %v3128_v59 = vunpack.i.l.bf16 %v3127_v5  ;;  %v3122_v61 = vpop.permute.xlu0 %3121 }
 0x15c   : > { %v3124_v6 = vunpack.i.h.bf16 %v3122_v61  ;;  %v3123_v27 = vunpack.i.l.bf16 %v3122_v61  ;;  %3411 = vrot.lane.b32.xlu1 %v4885_v7, %s3894_s7  ;;  %v3073_v61 = vunpack.i.l.bf16 %v4832_v62  ;;  %v1635_v62 = vsel %vm1618_vm4, %v5913_v45, %v3058_v58 }
 0x15d   : > { %v4913_v22 = vsel %vm1650_vm5, %v1634_v25, %v3129_v47  ;;  %v4916_v5 = vsel %vm1650_vm5, %v1633_v39, %v3128_v59  ;;  %3406 = vrot.lane.b32.xlu0 %v3380_v20, %s3894_s7  ;;  %v1636_v47 = vsel %vm1618_vm4, %v5916_v31, %v3059_v30  ;;  %v1642_v58 = vsel %vm1618_vm4, %v4452_v32, %v3074_v17 }
 0x15e   : > { %v4922_v9 = vsel %vm1650_vm5, %v1631_v4, %v3123_v27  ;;  %v4925_v52 = vsel %vm1650_vm5, %v1632_v13, %v3124_v6  ;;  %v3137_v63 = vpop.permute.xlu1 %3136  ;;  %v3069_v6 = vunpack.i.h.bf16 %v4834_v53  ;;  %v1641_v45 = vsel %vm1618_vm4, %v4439_v29, %v3073_v61 }
 0x15f   : > { %v3139_v25 = vunpack.i.h.bf16 %v3137_v63  ;;  %v3138_v39 = vunpack.i.l.bf16 %v3137_v63  ;;  %v3132_v20 = vpop.permute.xlu0 %3131  ;;  %v3084_v30 = vunpack.i.h.bf16 %v4844_v3  ;;  %v3083_v13 = vunpack.i.l.bf16 %v4844_v3 }
 0x160   : > { %v3134_v59 = vunpack.i.h.bf16 %v3132_v20  ;;  %v3133_v27 = vunpack.i.l.bf16 %v3132_v20  ;;  %3421 = vrot.lane.b32.xlu1 %v4711_v16, %s3895_s18  ;;  %v3078_v17 = vunpack.i.l.bf16 %v4846_v42  ;;  %v1640_v61 = vsel %vm1618_vm4, %v4445_v34, %v3069_v6  ;;  %v5924_v34 = vld [vmem:[#allocation58_spill] sm:$0xff] }
 0x161   : > { %v4940_v8 = vsel %vm1650_vm5, %v1638_v24, %v3139_v25  ;;  %v4943_v28 = vsel %vm1650_vm5, %v1637_v35, %v3138_v39  ;;  %3416 = vrot.lane.b32.xlu0 %v4705_v48, %s3895_s18  ;;  %v3079_v24 = vunpack.i.h.bf16 %v4846_v42  ;;  %v1639_v25 = vsel %vm1618_vm4, %v5921_v23, %v3068_v15  ;;  %v5925_v23 = vld [vmem:[#allocation57_spill] sm:$0xff] }
 0x162   : > { %v4952_v31 = vsel %vm1650_vm5, %v1635_v62, %v3133_v27  ;;  %v4955_v53 = vsel %vm1650_vm5, %v1636_v47, %v3134_v59  ;;  %v3147_v33 = vpop.permute.xlu1 %3146  ;;  %v1646_v62 = vsel %vm1618_vm4, %v5924_v34, %v3084_v30  ;;  %v1645_v59 = vsel %vm1618_vm4, %v5925_v23, %v3083_v13 }
 0x163   : > { %v3149_v4 = vunpack.i.h.bf16 %v3147_v33  ;;  %v3148_v63 = vunpack.i.l.bf16 %v3147_v33  ;;  %v3142_v48 = vpop.permute.xlu0 %3141  ;;  %v3088_v30 = vunpack.i.l.bf16 %v4852_v46 }
 0x164   : > { %v3144_v35 = vunpack.i.h.bf16 %v3142_v48  ;;  %v3143_v29 = vunpack.i.l.bf16 %v3142_v48  ;;  %3431 = vrot.lane.b32.xlu1 %v4716_v1, %s3896_s9 }
 0x165   : > { %v4968_v3 = vsel %vm1650_vm5, %v1642_v58, %v3149_v4  ;;  %v4971_v39 = vsel %vm1650_vm5, %v1641_v45, %v3148_v63  ;;  %3426 = vrot.lane.b32.xlu0 %v4707_v44, %s3896_s9  ;;  %v1644_v58 = vsel %vm1618_vm4, %v4508_v2, %v3079_v24  ;;  %v5926_v44 = vld [vmem:[#allocation52_spill] sm:$0xff]  ;;  %v3089_v63 = vunpack.i.h.bf16 %v4852_v46  ;;  %v5929_v24 = vld [vmem:[#allocation63_spill] sm:$0xff] }
 0x166   : > { %5923 = vst [vmem:[#allocation56_spill] sm:$0xff] %v4968_v3  ;;  %v4976_v42 = vsel %vm1650_vm5, %v1639_v25, %v3143_v29  ;;  %v4979_v20 = vsel %vm1650_vm5, %v1640_v61, %v3144_v35  ;;  %v3157_v47 = vpop.permute.xlu1 %3156  ;;  %v1643_v45 = vsel %vm1618_vm4, %v5926_v44, %v3078_v17  ;;  %v1649_v17 = vsel %vm1618_vm4, %v5929_v24, %v4850_v19 }
 0x167   : > { %v3159_v27 = vunpack.i.h.bf16 %v3157_v47  ;;  %v3158_v6 = vunpack.i.l.bf16 %v3157_v47  ;;  %v3152_v15 = vpop.permute.xlu0 %3151 }
 0x168   : > { %v3154_v33 = vunpack.i.h.bf16 %v3152_v15  ;;  %v3153_v4 = vunpack.i.l.bf16 %v3152_v15  ;;  %3441 = vrot.lane.b32.xlu1 %v4900_v56, %s3897_s11 }
 0x169   : > { %v4994_v13 = vsel %vm1650_vm5, %v1646_v62, %v3159_v27  ;;  %v4997_v48 = vsel %vm1650_vm5, %v1645_v59, %v3158_v6  ;;  %3436 = vrot.lane.b32.xlu0 %v4885_v7, %s3897_s11  ;;  %v5933_v7 = vld [vmem:[#allocation62_spill] sm:$0xff]  ;;  %v1647_v59 = vsel %vm1618_vm4, %v4511_v14, %v3088_v30 }
 0x16a   : > { %5927 = vst [vmem:[#allocation21_spill] sm:$0xff] %v4994_v13  ;;  %5928 = vst [vmem:[#allocation61_spill] sm:$0xff] %v4997_v48  ;;  %v5005_v35 = vsel %vm1650_vm5, %v1643_v45, %v3153_v4  ;;  %v5008_v29 = vsel %vm1650_vm5, %v1644_v58, %v3154_v33  ;;  %v1007_v46 = vpop.permute.xlu1 %1006  ;;  %v1648_v19 = vsel %vm1618_vm4, %v5933_v7, %v3089_v63 }
 0x16b   : > { %5930 = vst [vmem:[#allocation59_spill] sm:$0xff] %v5005_v35  ;;  %5931 = vst [vmem:[#allocation29_spill] sm:$0xff] %v5008_v29  ;;  %v5011_v61 = vsel %vm1650_vm5, %v1649_v17, %v1007_v46  ;;  %v3162_v25 = vpop.permute.xlu0 %3161  ;;  %v3470_v45 = vpack.i.bf16 %v5926_v44, %v4452_v32  ;;  %v3633_v32 = vld [vmem:[#allocation5] ss:$0 sm:$0xff] }
 0x16c   : > { %5932 = vst [vmem:[#allocation28_spill] sm:$0xff] %v5011_v61  ;;  %v3164_v47 = vunpack.i.h.bf16 %v3162_v25  ;;  %v3163_v62 = vunpack.i.l.bf16 %v3162_v25  ;;  %3451 = vrot.lane.b32.xlu1 %v4723_v43, %s3898_s15  ;;  %v3019_v25 = vunpack.i.h.bf16 %v4786_v55 }
 0x16d   : > { %3446 = vrot.lane.b32.xlu0 %v4711_v16, %s3898_s15  ;;  %v2850_v16 = vld [vmem:[%s4144_s14 + $0x78] sm:$0xff]   ;;  %s5605_s14 = scalar_lea.hbm %s5741_s4, %s2771_s12 }
 0x16e   : > { %v5022_v27 = vsel %vm1650_vm5, %v1647_v59, %v3163_v62  ;;  %v5025_v6 = vsel %vm1650_vm5, %v1648_v19, %v3164_v47  ;;  %v5027_v15 = vpop.permute.xlu1 %3171  ;;  %v2834_v63 = vunpack.c.l.bf16 %v2850_v16  ;;  %v2835_v30 = vunpack.c.h.bf16 %v2850_v16  ;;  %v3634_v16 = vld [vmem:[#allocation7] ss:$0 sm:$0xff] }
 0x16f   : > { %5934 = vst [vmem:[#allocation33_spill] sm:$0xff] %v5022_v27  ;;  %5935 = vst [vmem:[#allocation24_spill] sm:$0xff] %v5025_v6  ;;  %v5029_v58 = vpop.permute.xlu0 %3166  ;;  %v5059_v19 = vpack.i.bf16 %v5925_v23, %v4508_v2  ;;  %v3023_v59 = vunpack.i.l.bf16 %v4798_v36  ;;  %v3098_v2 = vunpack.i.l.bf16 %v4860_v54  ;;  %v5937_v27 = vld [vmem:[#allocation64_spill] sm:$0xff] }
 0x170   : > { %3461 = vrot.lane.b32.xlu1 %v4725_v60, %s3899_s17  ;;  %v429_v44 = vmul.f32 %v3633_v32, %v2835_v30 }
 0x171   : > { %3456 = vrot.lane.b32.xlu0 %v4716_v1, %s3899_s17  ;;  %v428_v1 = vmul.f32 %v3633_v32, %v2834_v63  ;;  %v1620_v32 = vsel %vm1618_vm4, %v4205_v57, %v3019_v25  ;;  %v1621_v57 = vsel %vm1618_vm4, %v5884_v18, %v3023_v59  ;;  %v3168_v25 = vunpack.i.l.bf16 %v5029_v58 }
 0x172   : > { %v5038_v33 = vpop.permute.xlu1 %3181  ;;  %v5075_v23 = vadd.f32 %v3634_v16, %v429_v44  ;;  %v3174_v44 = vunpack.i.h.bf16 %v5027_v15 }
 0x173   : > { %v5040_v4 = vpop.permute.xlu0 %3176  ;;  %v5068_v63 = vadd.f32 %v3634_v16, %v428_v1  ;;  %v3173_v16 = vunpack.i.l.bf16 %v5027_v15 }
 0x174   : > { %3471 = vrot.lane.b32.xlu1 %v3470_v45, %s3894_s7  ;;  %v500_v18 = vmax.f32 %v5075_v23, 0.0 }
 0x175   : > { %3466 = vrot.lane.b32.xlu0 %v4900_v56, %s3894_s7  ;;  %v3018_v56 = vunpack.i.l.bf16 %v4786_v55  ;;  %v5936_v55 = vld [vmem:[#allocation60_spill] sm:$0xff] }
 0x176   : > { %v5045_v17 = vpop.permute.xlu1 %3191  ;;  %v5083_v30 = vpack.i.bf16 %v5937_v27, %v5936_v55  ;;  %v499_v27 = vmax.f32 %v5068_v63, 0.0 }
 0x177   : > { %v5047_v46 = vpop.permute.xlu0 %3186  ;;  %v1619_v13 = vsel %vm1618_vm4, 0.0, %v3018_v56  ;;  %v1653_v56 = vsel %vm1650_vm5, %v1621_v57, %v3098_v2  ;;  %v3194_v55 = vunpack.i.h.bf16 %v5045_v17 }
 0x178   : > { %3481 = vrot.lane.b32.xlu1 %v4729_v38, %s3895_s18  ;;  %v1686_v2 = vsel %vm1682_vm6, %v1653_v56, %v3174_v44 }
 0x179   : > { %3476 = vrot.lane.b32.xlu0 %v4723_v43, %s3895_s18  ;;  %v5066_v43 = vpack.i.bf16 %v4511_v14, %v5924_v34  ;;  %v3094_v14 = vunpack.i.h.bf16 %v4862_v0  ;;  %v3093_v34 = vunpack.i.l.bf16 %v4862_v0  ;;  %v3169_v0 = vunpack.i.h.bf16 %v5029_v58 }
 0x17a   : > { %v3202_v47 = vpop.permute.xlu1 %3201 }
 0x17b   : > { %v5055_v62 = vpop.permute.xlu0 %3196  ;;  %v1651_v15 = vsel %vm1650_vm5, %v1619_v13, %v3093_v34  ;;  %v1652_v58 = vsel %vm1650_vm5, %v1620_v32, %v3094_v14  ;;  %v3204_v59 = vunpack.i.h.bf16 %v3202_v47  ;;  %v3203_v61 = vunpack.i.l.bf16 %v3202_v47 }
 0x17c   : > { %3491 = vrot.lane.b32.xlu1 %v4734_v21, %s3896_s9  ;;  %v1685_v63 = vsel %vm1682_vm6, %v1652_v58, %v3173_v16  ;;  %v3199_v32 = vunpack.i.h.bf16 %v5055_v62  ;;  %v3198_v14 = vunpack.i.l.bf16 %v5055_v62 }
 0x17d   : > { %3486 = vrot.lane.b32.xlu0 %v4725_v60, %s3896_s9  ;;  %v3193_v60 = vunpack.i.l.bf16 %v5045_v17  ;;  %v1683_v17 = vsel %vm1682_vm6, %v1651_v15, %v3168_v25 }
 0x17e   : > { %v3212_v1 = vpop.permute.xlu1 %3211 }
 0x17f   : > { %v3207_v6 = vpop.permute.xlu0 %3206  ;;  %v3214_v57 = vunpack.i.h.bf16 %v3212_v1  ;;  %v3213_v3 = vunpack.i.l.bf16 %v3212_v1  ;;  %v1716_v13 = vsel %vm1715_vm7, %v1683_v17, %v3193_v60  ;;  %v1719_v17 = vsel %vm1715_vm7, %v1686_v2, %v3199_v32 }
 0x180   : > { %3501 = vrot.lane.b32.xlu1 %v5059_v19, %s3897_s11  ;;  %v1749_v34 = vsel %vm1748_vm8, %v1716_v13, %v3203_v61  ;;  %v3209_v44 = vunpack.i.h.bf16 %v3207_v6 }
 0x181   : > { %3496 = vrot.lane.b32.xlu0 %v3470_v45, %s3897_s11  ;;  %v1684_v45 = vsel %vm1682_vm6, %v1651_v15, %v3169_v0  ;;  %v1782_v0 = vsel %vm1781_vm9, %v1749_v34, %v3213_v3  ;;  %v584_v34 = vrot.slane %v499_v27, 7 }
 0x182   : > { %v3222_v35 = vpop.permute.xlu1 %3221  ;;  %v1717_v47 = vsel %vm1715_vm7, %v1684_v45, %v3194_v55  ;;  %v1752_v13 = vsel %vm1748_vm8, %v1719_v17, %v3209_v44 }
 0x183   : > { %v3217_v29 = vpop.permute.xlu0 %3216  ;;  %v3224_v48 = vunpack.i.h.bf16 %v3222_v35  ;;  %v3223_v23 = vunpack.i.l.bf16 %v3222_v35  ;;  %v1750_v1 = vsel %vm1748_vm8, %v1717_v47, %v3204_v59  ;;  %v3208_v35 = vunpack.i.l.bf16 %v3207_v6 }
 0x184   : > { %3511 = vrot.lane.b32.xlu1 %v4745_v10, %s3898_s15  ;;  %v1783_v60 = vsel %vm1781_vm9, %v1750_v1, %v3214_v57  ;;  %v3219_v15 = vunpack.i.h.bf16 %v3217_v29  ;;  %v3218_v58 = vunpack.i.l.bf16 %v3217_v29  ;;  %v3024_v57 = vunpack.i.h.bf16 %v4798_v36 }
 0x185   : > { %3506 = vrot.lane.b32.xlu0 %v4729_v38, %s3898_s15  ;;  %v1815_v38 = vsel %vm1814_vm10, %v1782_v0, %v3223_v23  ;;  %v1816_v61 = vsel %vm1814_vm10, %v1783_v60, %v3224_v48  ;;  %v1718_v29 = vsel %vm1715_vm7, %v1685_v63, %v3198_v14  ;;  %v5938_v14 = vunpack.i.h.bf16 %v4784_v49 }
 0x186   : > { %v3232_v16 = vpop.permute.xlu1 %3231  ;;  %v1751_v48 = vsel %vm1748_vm8, %v1718_v29, %v3208_v35 }
 0x187   : > { %v3234_v25 = vunpack.i.h.bf16 %v3232_v16  ;;  %v3233_v56 = vunpack.i.l.bf16 %v3232_v16  ;;  %v3227_v55 = vpop.permute.xlu0 %3226  ;;  %v1784_v1 = vsel %vm1781_vm9, %v1751_v48, %v3218_v58  ;;  %v1785_v16 = vsel %vm1781_vm9, %v1752_v13, %v3219_v15 }
 0x188   : > { %3521 = vrot.lane.b32.xlu1 %v4756_v37, %s3899_s17  ;;  %v3229_v62 = vunpack.i.h.bf16 %v3227_v55  ;;  %v3228_v59 = vunpack.i.l.bf16 %v3227_v55  ;;  %v1624_v44 = vsel %vm1618_vm4, %v4192_v50, %v5938_v14  ;;  %v5940_v15 = vunpack.i.l.bf16 %v4796_v40 }
 0x189   : > { %3516 = vrot.lane.b32.xlu0 %v4734_v21, %s3899_s17  ;;  %v1848_v3 = vsel %vm1847_vm11, %v1815_v38, %v3233_v56  ;;  %v1849_v6 = vsel %vm1847_vm11, %v1816_v61, %v3234_v25  ;;  %v585_v21 = vrot.slane %v500_v18, 7  ;;  %v5155_v56 = vsel %vm538_vm0, 0.0, %v584_v34 }
 0x18a   : > { %v5130_v45 = vpop.permute.xlu1 %3241  ;;  %v1880_v23 = vpack.c.bf16 %v1849_v6, %v1848_v3  ;;  %v1817_v63 = vsel %vm1814_vm10, %v1784_v1, %v3228_v59  ;;  %v1818_v2 = vsel %vm1814_vm10, %v1785_v16, %v3229_v62  ;;  %v1625_v58 = vsel %vm1618_vm4, %v5890_v51, %v5940_v15 }
 0x18b   : > { %v3237_v47 = vpop.permute.xlu0 %3236  ;;  %v5152_v25 = vsel %vm538_vm0, %v584_v34, %v585_v21  ;;  %v1622_v50 = vsel %vm1618_vm4, %v5882_v12, %v3024_v57  ;;  %v5171_v38 = vpack.i.bf16 %v5929_v24, %v5933_v7  ;;  %v3108_v61 = vunpack.i.l.bf16 %v4866_v11  ;;  %v5941_v57 = vld [vmem:[#allocation30_spill] sm:$0xff] }
 0x18c   : > { %v3239_v0 = vunpack.i.h.bf16 %v3237_v47  ;;  %v3238_v36 = vunpack.i.l.bf16 %v3237_v47  ;;  %3531 = vrot.lane.b32.xlu1 %v5066_v43, %s3894_s7  ;;  %2876 = vmatprep.mubr.msk.bf16.mxu0 %vm1911_vm12, %v1880_v23  ;;  %v3104_v12 = vunpack.i.h.bf16 %v4868_v41  ;;  %v3103_v51 = vunpack.i.l.bf16 %v4868_v41 }
 0x18d   : > { %3526 = vrot.lane.b32.xlu0 %v5059_v19, %s3894_s7  ;;  %v5939_v19 = vunpack.i.l.bf16 %v4784_v49  ;;  %v3099_v49 = vunpack.i.h.bf16 %v4860_v54  ;;  %v5185_v24 = vpack.i.bf16 %v5152_v25, %v5155_v56  ;;  %v3184_v54 = vunpack.i.h.bf16 %v5038_v33 }
 0x18e   : > { %v1850_v27 = vsel %vm1847_vm11, %v1817_v63, %v3238_v36  ;;  %v1851_v18 = vsel %vm1847_vm11, %v1818_v2, %v3239_v0  ;;  %v3252_v32 = vpop.permute.xlu1 %3251  ;;  %v3183_v7 = vunpack.i.l.bf16 %v5038_v33  ;;  %v3179_v3 = vunpack.i.h.bf16 %v5040_v4 }
 0x18f   : > { %v1881_v35 = vpack.c.bf16 %v1851_v18, %v1850_v27  ;;  %v5149_v60 = vpop.permute.xlu0 %3246  ;;  %v1623_v55 = vsel %vm1618_vm4, %v5883_v26, %v5939_v19  ;;  %v5179_v26 = vsel %vm538_vm0, %v585_v21, 0.0  ;;  %v3178_v6 = vunpack.i.l.bf16 %v5040_v4 }
 0x190   : > { %3541 = vrot.lane.b32.xlu1 %v5083_v30, %s3895_s18  ;;  %v1138_v41 = vrot.slane %v5152_v25, 1  ;;  %v1140_v29 = vrot.slane %v5179_v26, 1  ;;  %v1654_v17 = vsel %vm1650_vm5, %v1622_v50, %v3099_v49  ;;  %v1657_v23 = vsel %vm1650_vm5, %v1625_v58, %v3108_v61 }
 0x191   : > { %3536 = vrot.lane.b32.xlu0 %v4745_v10, %s3895_s18  ;;  %2877 = vmatmul.mubr.msk.bf16.vlgmr.msra.gmra.mrb[0].mxu0 %vm1911_vm12, %v1881_v35  ;;  %v1137_v10 = vrot.slane %v5155_v56, 1  ;;  %v3244_v33 = vunpack.i.h.bf16 %v5130_v45  ;;  %v3243_v48 = vunpack.i.l.bf16 %v5130_v45  ;;  %v1656_v4 = vsel %vm1650_vm5, %v1624_v44, %v3104_v12 }
 0x192   : > { %v3262_v62 = vpop.permute.xlu1 %3261  ;;  %v1655_v13 = vsel %vm1650_vm5, %v1623_v55, %v3103_v51  ;;  %v3254_v47 = vunpack.i.h.bf16 %v3252_v32  ;;  %v3253_v34 = vunpack.i.l.bf16 %v3252_v32  ;;  %v1689_v1 = vsel %vm1682_vm6, %v1656_v4, %v3183_v7  ;;  %v5942_v7 = vld [vmem:[#allocation65_spill] sm:$0xff] }
 0x193   : > { %v3257_v59 = vpop.permute.xlu0 %3256  ;;  %v1690_v16 = vsel %vm1682_vm6, %v1657_v23, %v3184_v54  ;;  %v3264_v0 = vunpack.i.h.bf16 %v3262_v62  ;;  %v3263_v36 = vunpack.i.l.bf16 %v3262_v62  ;;  %v1687_v2 = vsel %vm1682_vm6, %v1654_v17, %v3178_v6 }
 0x194   : > { %3551 = vrot.lane.b32.xlu1 %v5941_v57, %s3896_s9  ;;  %v1688_v45 = vsel %vm1682_vm6, %v1655_v13, %v3179_v3  ;;  %v1720_v18 = vsel %vm1715_vm7, %v1687_v2, %v3243_v48  ;;  %v3249_v14 = vunpack.i.h.bf16 %v5149_v60  ;;  %v3248_v44 = vunpack.i.l.bf16 %v5149_v60  ;;  %v5943_v2 = vld [vmem:[#allocation66_spill] sm:$0xff] }
 0x195   : > { %3546 = vrot.lane.b32.xlu0 %v4756_v37, %s3896_s9  ;;  %v1721_v32 = vsel %vm1715_vm7, %v1688_v45, %v3244_v33  ;;  %v1753_v35 = vsel %vm1748_vm8, %v1720_v18, %v3253_v34  ;;  %v3259_v55 = vunpack.i.h.bf16 %v3257_v59  ;;  %v3258_v15 = vunpack.i.l.bf16 %v3257_v59 }
 0x196   : > { %v3272_v21 = vpop.permute.xlu1 %3271  ;;  %v1754_v19 = vsel %vm1748_vm8, %v1721_v32, %v3254_v47  ;;  %v1786_v50 = vsel %vm1781_vm9, %v1753_v35, %v3263_v36  ;;  %v1723_v23 = vsel %vm1715_vm7, %v1690_v16, %v3249_v14  ;;  %v1722_v33 = vsel %vm1715_vm7, %v1689_v1, %v3248_v44  ;;  %v5944_v32 = vld [vmem:[#allocation20_spill] sm:$0xff] }
 0x197   : > { %v3267_v63 = vpop.permute.xlu0 %3266  ;;  %v3274_v27 = vunpack.i.h.bf16 %v3272_v21  ;;  %v3273_v37 = vunpack.i.l.bf16 %v3272_v21  ;;  %v1787_v49 = vsel %vm1781_vm9, %v1754_v19, %v3264_v0  ;;  %v1139_v13 = vsel %vm697_vm1, %v1137_v10, %v1138_v41  ;;  %v5945_v19 = vld [vmem:[#allocation22_spill] sm:$0xff] }
 0x198   : > { %3561 = vrot.lane.b32.xlu1 %v5171_v38, %s3897_s11  ;;  %v3269_v54 = vunpack.i.h.bf16 %v3267_v63  ;;  %v1755_v47 = vsel %vm1748_vm8, %v1722_v33, %v3258_v15  ;;  %v1756_v34 = vsel %vm1748_vm8, %v1723_v23, %v3259_v55  ;;  %v1141_v0 = vsel %vm697_vm1, %v1138_v41, %v1140_v29  ;;  %v5951_v23 = vld [vmem:[#allocation26_spill] sm:$0xff] }
 0x199   : > { %3556 = vrot.lane.b32.xlu0 %v5066_v43, %s3897_s11  ;;  %v1819_v62 = vsel %vm1814_vm10, %v1786_v50, %v3273_v37  ;;  %v1820_v60 = vsel %vm1814_vm10, %v1787_v49, %v3274_v27  ;;  %v3268_v43 = vunpack.i.l.bf16 %v3267_v63  ;;  %v1238_v36 = vrot.slane %v5155_v56, 2 }
 0x19a   : > { %v3282_v58 = vpop.permute.xlu1 %3281  ;;  %v1789_v16 = vsel %vm1781_vm9, %v1756_v34, %v3269_v54  ;;  %v1239_v56 = vrot.slane %v5152_v25, 2  ;;  %v1241_v41 = vrot.slane %v5179_v26, 2  ;;  %v3034_v18 = vunpack.i.h.bf16 %v4796_v40 }
 0x19b   : > { %v3284_v61 = vunpack.i.h.bf16 %v3282_v58  ;;  %v3283_v12 = vunpack.i.l.bf16 %v3282_v58  ;;  %v3277_v51 = vpop.permute.xlu0 %3276  ;;  %v3043_v14 = vunpack.i.l.bf16 %v5944_v32  ;;  %v3039_v55 = vunpack.i.h.bf16 %v5945_v19  ;;  %v5946_v58 = vld [vmem:[#allocation55_spill] sm:$0xff] }
 0x19c   : > { %3571 = vrot.lane.b32.xlu1 %v5942_v7, %s3898_s15  ;;  %v3279_v6 = vunpack.i.h.bf16 %v3277_v51  ;;  %v3278_v17 = vunpack.i.l.bf16 %v3277_v51  ;;  %v3038_v25 = vunpack.i.l.bf16 %v5945_v19  ;;  %v1240_v40 = vsel %vm868_vm2, %v1238_v36, %v1239_v56  ;;  %v5948_v51 = vld [vmem:[#allocation36_spill] sm:$0xff] }
 0x19d   : > { %v1852_v3 = vsel %vm1847_vm11, %v1819_v62, %v3283_v12  ;;  %v1853_v59 = vsel %vm1847_vm11, %v1820_v60, %v3284_v61  ;;  %3566 = vrot.lane.b32.xlu0 %v5083_v30, %s3898_s15  ;;  %v1788_v30 = vsel %vm1781_vm9, %v1755_v47, %v3268_v43  ;;  %v1242_v26 = vsel %vm868_vm2, %v1239_v56, %v1241_v41  ;;  %v5947_v61 = vld [vmem:[#allocation27_spill] sm:$0xff]  ;;  %v5949_v60 = vld [vmem:[#allocation53_spill] sm:$0xff] }
 0x19e   : > { %v1882_v48 = vpack.c.bf16 %v1853_v59, %v1852_v3  ;;  %v5230_v4 = vpop.permute.xlu1 %3291  ;;  %v1821_v10 = vsel %vm1814_vm10, %v1788_v30, %v3278_v17  ;;  %v1822_v45 = vsel %vm1814_vm10, %v1789_v16, %v3279_v6  ;;  %v3109_v15 = vunpack.i.h.bf16 %v4866_v11  ;;  %v5950_v3 = vld [vmem:[#allocation35_spill] sm:$0xff] }
 0x19f   : > { %v3287_v21 = vpop.permute.xlu0 %3286  ;;  %v3118_v50 = vunpack.i.l.bf16 %v5946_v58  ;;  %v1626_v12 = vsel %vm1618_vm4, %v5947_v61, %v3034_v18  ;;  %v1629_v62 = vsel %vm1618_vm4, %v5948_v51, %v3043_v14  ;;  %v3114_v54 = vunpack.i.h.bf16 %v5949_v60 }
 0x1a0   : > { %v3289_v63 = vunpack.i.h.bf16 %v3287_v21  ;;  %v3288_v1 = vunpack.i.l.bf16 %v3287_v21  ;;  %3581 = vrot.lane.b32.xlu1 %v5943_v2, %s3899_s17  ;;  %2880 = vmatprep.mubr.msk.bf16.mxu0 %vm1911_vm12, %v1882_v48  ;;  %v1628_v59 = vsel %vm1618_vm4, %v5950_v3, %v3039_v55  ;;  %v3189_v6 = vunpack.i.h.bf16 %v5047_v46 }
 0x1a1   : > { %3576 = vrot.lane.b32.xlu0 %v5941_v57, %s3899_s17  ;;  %v5255_v57 = vpack.i.bf16 %v1141_v0, %v1139_v13  ;;  %v3188_v11 = vunpack.i.l.bf16 %v5047_v46  ;;  %v5277_v17 = vpack.i.bf16 %v1242_v26, %v1240_v40  ;;  %v1627_v33 = vsel %vm1618_vm4, %v5951_v23, %v3038_v25 }
 0x1a2   : > { %v1854_v29 = vsel %vm1847_vm11, %v1821_v10, %v3288_v1  ;;  %v1855_v27 = vsel %vm1847_vm11, %v1822_v45, %v3289_v63  ;;  %v3302_v37 = vpop.permute.xlu1 %3301  ;;  %v3294_v48 = vunpack.i.h.bf16 %v5230_v4  ;;  %v3293_v13 = vunpack.i.l.bf16 %v5230_v4 }
 0x1a3   : > { %v1883_v44 = vpack.c.bf16 %v1855_v27, %v1854_v29  ;;  %v3297_v35 = vpop.permute.xlu0 %3296  ;;  %v1658_v47 = vsel %vm1650_vm5, %v1626_v12, %v3109_v15  ;;  %v1661_v34 = vsel %vm1650_vm5, %v1629_v62, %v3118_v50  ;;  %v1660_v0 = vsel %vm1650_vm5, %v1628_v59, %v3114_v54 }
 0x1a4   : > { %3591 = vrot.lane.b32.xlu1 %v5185_v24, %s3894_s7  ;;  %v3304_v36 = vunpack.i.h.bf16 %v3302_v37  ;;  %v3303_v30 = vunpack.i.l.bf16 %v3302_v37  ;;  %v1691_v63 = vsel %vm1682_vm6, %v1658_v47, %v3188_v11  ;;  %v3299_v4 = vunpack.i.h.bf16 %v3297_v35 }
 0x1a5   : > { %3586 = vrot.lane.b32.xlu0 %v5171_v38, %s3894_s7  ;;  %2881 = vmatmul.mubr.msk.bf16.gmra.mrb[4].mxu0 %vm1911_vm12, %v1883_v44  ;;  %v3113_v38 = vunpack.i.l.bf16 %v5949_v60  ;;  %v3298_v10 = vunpack.i.l.bf16 %v3297_v35  ;;  %v1693_v45 = vsel %vm1682_vm6, %v1660_v0, %v3293_v13  ;;  %s3749_s7 = scalar_lea.vmem %s5611_s30, 2048 }
 0x1a6   : > { %v3312_v49 = vpop.permute.xlu1 %3311  ;;  %v1726_v14 = vsel %vm1715_vm7, %v1693_v45, %v3303_v30  ;;  %p3750_p1 = scmp.ne.s32.totalorder %s5611_s30, %s3749_s7 }
 0x1a7   : > { %v3307_v43 = vpop.permute.xlu0 %3306  ;;  %v1659_v21 = vsel %vm1650_vm5, %v1627_v33, %v3113_v38  ;;  %v3314_v56 = vunpack.i.h.bf16 %v3312_v49  ;;  %v3313_v41 = vunpack.i.l.bf16 %v3312_v49  ;;  %v1724_v25 = vsel %vm1715_vm7, %v1691_v63, %v3298_v10 }
 0x1a8   : > { %3601 = vrot.lane.b32.xlu1 %v5255_v57, %s3895_s18  ;;  %v1692_v1 = vsel %vm1682_vm6, %v1659_v21, %v3189_v6  ;;  %v3309_v29 = vunpack.i.h.bf16 %v3307_v43  ;;  %v3308_v27 = vunpack.i.l.bf16 %v3307_v43  ;;  %p3751_p4 = pnand %p3750_p1, %p4087_p6 }
 0x1a9   : > { %3596 = vrot.lane.b32.xlu0 %v5942_v7, %s3895_s18  ;;  %v1694_v7 = vsel %vm1682_vm6, %v1661_v34, %v3294_v48  ;;  %v1725_v40 = vsel %vm1715_vm7, %v1692_v1, %v3299_v4  ;;  %v1759_v58 = vsel %vm1748_vm8, %v1726_v14, %v3313_v41  ;;  %v5953_v48 = vld [vmem:[#allocation19_spill] sm:$0xff]  ;;  %s3900_s18 = smov [#allocation10]  }
 0x1aa   : > { %v3322_v46 = vpop.permute.xlu1 %3321  ;;  %v1727_v44 = vsel %vm1715_vm7, %v1694_v7, %v3304_v36  ;;  %v1757_v12 = vsel %vm1748_vm8, %v1724_v25, %v3308_v27  ;;  %v1758_v51 = vsel %vm1748_vm8, %v1725_v40, %v3309_v29  ;;  %v5954_v1 = vld [vmem:[#allocation23_spill] sm:$0xff]  ;;  %p3752_p8 = pneg %p3751_p4 }
 0x1ab   : > { %v3317_v16 = vpop.permute.xlu0 %3316  ;;  %v3324_v37 = vunpack.i.h.bf16 %v3322_v46  ;;  %v3323_v18 = vunpack.i.l.bf16 %v3322_v46  ;;  %v1760_v50 = vsel %vm1748_vm8, %v1727_v44, %v3314_v56 }
 0x1ac   : > { %3611 = vrot.lane.b32.xlu1 %v5277_v17, %s3896_s9  ;;  %v3319_v35 = vunpack.i.h.bf16 %v3317_v16  ;;  %v3318_v19 = vunpack.i.l.bf16 %v3317_v16 }
 0x1ad   : > { %3606 = vrot.lane.b32.xlu0 %v5943_v2, %s3896_s9  ;;  %v5952_v2 = vmov 0.0   ;;  %v1792_v62 = vsel %vm1781_vm9, %v1759_v58, %v3323_v18  ;;  %v1793_v60 = vsel %vm1781_vm9, %v1760_v50, %v3324_v37  ;;  %s3753_s9 = sshll.u32 %s3900_s18, 4  ;;  %s3754_s9 = int_to_ptr.vmem [resolvable:$false] %s3753_s9 }
 0x1ae   : > { %v3332_v32 = vpop.permute.xlu1 %3331  ;;  %v1790_v38 = vsel %vm1781_vm9, %v1757_v12, %v3318_v19  ;;  %v1791_v43 = vsel %vm1781_vm9, %v1758_v51, %v3319_v35  ;;  %v5955_v19 = vld [vmem:[#allocation54_spill] sm:$0xff]  ;;  %p3756_p3 = scmp.lt.s32.totalorder %s5611_s30, %s3754_s9 }
 0x1af   : > { %v3327_v55 = vpop.permute.xlu0 %3326  ;;  %v3334_v26 = vunpack.i.h.bf16 %v3332_v32  ;;  %v3333_v15 = vunpack.i.l.bf16 %v3332_v32 }
 0x1b0   : > { %1399 = vrot.lane.b32.xlu1 %v5952_v2, %s3897_s11  ;;  %v3329_v49 = vunpack.i.h.bf16 %v3327_v55  ;;  %v3328_v61 = vunpack.i.l.bf16 %v3327_v55 }
 0x1b1   : > { %3616 = vrot.lane.b32.xlu0 %v5185_v24, %s3897_s11  ;;  %v1825_v11 = vsel %vm1814_vm10, %v1792_v62, %v3333_v15  ;;  %v1826_v24 = vsel %vm1814_vm10, %v1793_v60, %v3334_v26  ;;  %s3755_s11 = scalar_lea.vmem %s3754_s9, 4096 }
 0x1b2   : > { %v3342_v54 = vpop.permute.xlu1 %3341  ;;  %v1823_v13 = vsel %vm1814_vm10, %v1790_v38, %v3328_v61  ;;  %v1824_v47 = vsel %vm1814_vm10, %v1791_v43, %v3329_v49  ;;  %p3757_p7 = scmp.lt.s32.totalorder %s3755_s11, %s3749_s7 }
 0x1b3   : > { %v3344_v3 = vunpack.i.h.bf16 %v3342_v54  ;;  %v3343_v59 = vunpack.i.l.bf16 %v3342_v54  ;;  %v3337_v6 = vpop.permute.xlu0 %3336 }
 0x1b4   : > { %v3339_v23 = vunpack.i.h.bf16 %v3337_v6  ;;  %v3338_v33 = vunpack.i.l.bf16 %v3337_v6  ;;  %1492 = vrot.lane.b32.xlu1 %v5953_v48, %s3898_s15  ;;  %p3758_p10 = por %p3757_p7, %p3756_p3 }
 0x1b5   : > { %v1858_v34 = vsel %vm1847_vm11, %v1825_v11, %v3343_v59  ;;  %v1859_v46 = vsel %vm1847_vm11, %v1826_v24, %v3344_v3  ;;  %3621 = vrot.lane.b32.xlu0 %v5255_v57, %s3898_s15 }
 0x1b6   : > { %v1885_v21 = vpack.c.bf16 %v1859_v46, %v1858_v34  ;;  %v1856_v0 = vsel %vm1847_vm11, %v1823_v13, %v3338_v33  ;;  %v1857_v36 = vsel %vm1847_vm11, %v1824_v47, %v3339_v23  ;;  %v3352_v30 = vpop.permute.xlu1 %3351  ;;  %p3759_p13 = pnand %p3758_p10, %p3752_p8 }
 0x1b7   : > { %v1884_v16 = vpack.c.bf16 %v1857_v36, %v1856_v0  ;;  %v3347_v63 = vpop.permute.xlu0 %3346  ;;  %v3354_v45 = vunpack.i.h.bf16 %v3352_v30  ;;  %v3353_v56 = vunpack.i.l.bf16 %v3352_v30 }
 0x1b8   : > { %1585 = vrot.lane.b32.xlu1 %v5954_v1, %s3899_s17  ;;  %v3349_v41 = vunpack.i.h.bf16 %v3347_v63  ;;  %v3348_v29 = vunpack.i.l.bf16 %v3347_v63 }
 0x1b9   : > { %3626 = vrot.lane.b32.xlu0 %v5277_v17, %s3899_s17  ;;  %2884 = vmatprep.mubr.msk.bf16.mxu0 %vm1911_vm12, %v1884_v16  ;;  %v1698_v14 = vsel %vm1682_vm6, %v4916_v5, %v3354_v45  ;;  %v1697_v17 = vsel %vm1682_vm6, %v4925_v52, %v3353_v56 }
 0x1ba   : > { %2885 = vmatmul.mubr.msk.bf16.gmra.mrb[8].mxu0 %vm1911_vm12, %v1885_v21  ;;  %v3362_v4 = vpop.permute.xlu1 %3361  ;;  %v1695_v55 = vsel %vm1682_vm6, %v5955_v19, %v3348_v29  ;;  %v1696_v25 = vsel %vm1682_vm6, %v4922_v9, %v3349_v41 }
 0x1bb   : > { %v3357_v57 = vpop.permute.xlu0 %3356  ;;  %v3364_v37 = vunpack.i.h.bf16 %v3362_v4  ;;  %v3363_v18 = vunpack.i.l.bf16 %v3362_v4 }
 0x1bc   : > { %v3359_v44 = vunpack.i.h.bf16 %v3357_v57  ;;  %v3358_v35 = vunpack.i.l.bf16 %v3357_v57 }
 0x1bd   : > { %v1730_v5 = vsel %vm1715_vm7, %v1697_v17, %v3363_v18  ;;  %v1731_v61 = vsel %vm1715_vm7, %v1698_v14, %v3364_v37 }
 0x1be   : > { %v3372_v10 = vpop.permute.xlu1 %3371  ;;  %v1728_v62 = vsel %vm1715_vm7, %v1695_v55, %v3358_v35  ;;  %v1729_v60 = vsel %vm1715_vm7, %v1696_v25, %v3359_v44 }
 0x1bf   : > { %v3367_v7 = vpop.permute.xlu0 %3366  ;;  %v3374_v40 = vunpack.i.h.bf16 %v3372_v10  ;;  %v3373_v26 = vunpack.i.l.bf16 %v3372_v10 }
 0x1c0   : > { %v3369_v15 = vunpack.i.h.bf16 %v3367_v7  ;;  %v3368_v2 = vunpack.i.l.bf16 %v3367_v7 }
 0x1c1   : > { %v1763_v38 = vsel %vm1748_vm8, %v1730_v5, %v3373_v26  ;;  %v1764_v43 = vsel %vm1748_vm8, %v1731_v61, %v3374_v40 }
 0x1c2   : > { %v3382_v27 = vpop.permute.xlu1 %3381  ;;  %v1761_v6 = vsel %vm1748_vm8, %v1728_v62, %v3368_v2  ;;  %v1762_v11 = vsel %vm1748_vm8, %v1729_v60, %v3369_v15 }
 0x1c3   : > { %v3377_v32 = vpop.permute.xlu0 %3376  ;;  %v3384_v58 = vunpack.i.h.bf16 %v3382_v27  ;;  %v3383_v50 = vunpack.i.l.bf16 %v3382_v27 }
 0x1c4   : > { %v3379_v52 = vunpack.i.h.bf16 %v3377_v32  ;;  %v3378_v12 = vunpack.i.l.bf16 %v3377_v32 }
 0x1c5   : > { %v1796_v24 = vsel %vm1781_vm9, %v1763_v38, %v3383_v50  ;;  %v1797_v23 = vsel %vm1781_vm9, %v1764_v43, %v3384_v58 }
 0x1c6   : > { %v3392_v49 = vpop.permute.xlu1 %3391  ;;  %v1794_v48 = vsel %vm1781_vm9, %v1761_v6, %v3378_v12  ;;  %v1795_v13 = vsel %vm1781_vm9, %v1762_v11, %v3379_v52 }
 0x1c7   : > { %v3387_v51 = vpop.permute.xlu0 %3386  ;;  %v3394_v54 = vunpack.i.h.bf16 %v3392_v49  ;;  %v3393_v9 = vunpack.i.l.bf16 %v3392_v49 }
 0x1c8   : > { %v3389_v3 = vunpack.i.h.bf16 %v3387_v51  ;;  %v3388_v59 = vunpack.i.l.bf16 %v3387_v51 }
 0x1c9   : > { %v1829_v21 = vsel %vm1814_vm10, %v1796_v24, %v3393_v9  ;;  %v1830_v0 = vsel %vm1814_vm10, %v1797_v23, %v3394_v54 }
 0x1ca   : > { %v3402_v33 = vpop.permute.xlu1 %3401  ;;  %v1827_v16 = vsel %vm1814_vm10, %v1794_v48, %v3388_v59  ;;  %v1828_v63 = vsel %vm1814_vm10, %v1795_v13, %v3389_v3 }
 0x1cb   : > { %v3404_v47 = vunpack.i.h.bf16 %v3402_v33  ;;  %v3403_v34 = vunpack.i.l.bf16 %v3402_v33  ;;  %v3397_v46 = vpop.permute.xlu0 %3396 }
 0x1cc   : > { %v3399_v36 = vunpack.i.h.bf16 %v3397_v46  ;;  %v3398_v30 = vunpack.i.l.bf16 %v3397_v46 }
 0x1cd   : > { %v1862_v1 = vsel %vm1847_vm11, %v1829_v21, %v3403_v34  ;;  %v1863_v4 = vsel %vm1847_vm11, %v1830_v0, %v3404_v47 }
 0x1ce   : > { %v1887_v57 = vpack.c.bf16 %v1863_v4, %v1862_v1  ;;  %v1860_v10 = vsel %vm1847_vm11, %v1827_v16, %v3398_v30  ;;  %v1861_v7 = vsel %vm1847_vm11, %v1828_v63, %v3399_v36  ;;  %v3412_v45 = vpop.permute.xlu1 %3411 }
 0x1cf   : > { %v1886_v56 = vpack.c.bf16 %v1861_v7, %v1860_v10  ;;  %v3407_v41 = vpop.permute.xlu0 %3406  ;;  %v3414_v32 = vunpack.i.h.bf16 %v3412_v45  ;;  %v3413_v14 = vunpack.i.l.bf16 %v3412_v45 }
 0x1d0   : > { %v3409_v17 = vunpack.i.h.bf16 %v3407_v41  ;;  %v3408_v44 = vunpack.i.l.bf16 %v3407_v41 }
 0x1d1   : > { %2888 = vmatprep.mubr.msk.bf16.mxu0 %vm1911_vm12, %v1886_v56  ;;  %v1702_v40 = vsel %vm1682_vm6, %v4943_v28, %v3414_v32  ;;  %v1701_v26 = vsel %vm1682_vm6, %v4955_v53, %v3413_v14 }
 0x1d2   : > { %2889 = vmatmul.mubr.msk.bf16.gmra.mrb[12].mxu0 %vm1911_vm12, %v1887_v57  ;;  %v3422_v29 = vpop.permute.xlu1 %3421  ;;  %v1699_v58 = vsel %vm1682_vm6, %v4913_v22, %v3408_v44  ;;  %v1700_v50 = vsel %vm1682_vm6, %v4952_v31, %v3409_v17 }
 0x1d3   : > { %v3417_v27 = vpop.permute.xlu0 %3416  ;;  %v3424_v19 = vunpack.i.h.bf16 %v3422_v29  ;;  %v3423_v55 = vunpack.i.l.bf16 %v3422_v29 }
 0x1d4   : > { %v3419_v15 = vunpack.i.h.bf16 %v3417_v27  ;;  %v3418_v2 = vunpack.i.l.bf16 %v3417_v27 }
 0x1d5   : > { %v1734_v28 = vsel %vm1715_vm7, %v1701_v26, %v3423_v55  ;;  %v1735_v60 = vsel %vm1715_vm7, %v1702_v40, %v3424_v19 }
 0x1d6   : > { %v3432_v37 = vpop.permute.xlu1 %3431  ;;  %v1732_v38 = vsel %vm1715_vm7, %v1699_v58, %v3418_v2  ;;  %v1733_v22 = vsel %vm1715_vm7, %v1700_v50, %v3419_v15 }
 0x1d7   : > { %v3427_v18 = vpop.permute.xlu0 %3426  ;;  %v3434_v49 = vunpack.i.h.bf16 %v3432_v37  ;;  %v3433_v5 = vunpack.i.l.bf16 %v3432_v37 }
 0x1d8   : > { %v3429_v61 = vunpack.i.h.bf16 %v3427_v18  ;;  %v3428_v52 = vunpack.i.l.bf16 %v3427_v18 }
 0x1d9   : > { %v1767_v3 = vsel %vm1748_vm8, %v1734_v28, %v3433_v5  ;;  %v1768_v59 = vsel %vm1748_vm8, %v1735_v60, %v3434_v49 }
 0x1da   : > { %v3442_v35 = vpop.permute.xlu1 %3441  ;;  %v1765_v24 = vsel %vm1748_vm8, %v1732_v38, %v3428_v52  ;;  %v1766_v23 = vsel %vm1748_vm8, %v1733_v22, %v3429_v61 }
 0x1db   : > { %v3437_v25 = vpop.permute.xlu0 %3436  ;;  %v3444_v12 = vunpack.i.h.bf16 %v3442_v35  ;;  %v3443_v51 = vunpack.i.l.bf16 %v3442_v35 }
 0x1dc   : > { %v3439_v53 = vunpack.i.h.bf16 %v3437_v25  ;;  %v3438_v54 = vunpack.i.l.bf16 %v3437_v25 }
 0x1dd   : > { %v1800_v33 = vsel %vm1781_vm9, %v1767_v3, %v3443_v51  ;;  %v1801_v48 = vsel %vm1781_vm9, %v1768_v59, %v3444_v12 }
 0x1de   : > { %v3452_v62 = vpop.permute.xlu1 %3451  ;;  %v1798_v47 = vsel %vm1781_vm9, %v1765_v24, %v3438_v54  ;;  %v1799_v34 = vsel %vm1781_vm9, %v1766_v23, %v3439_v53 }
 0x1df   : > { %v3447_v9 = vpop.permute.xlu0 %3446  ;;  %v3454_v43 = vunpack.i.h.bf16 %v3452_v62  ;;  %v3453_v31 = vunpack.i.l.bf16 %v3452_v62 }
 0x1e0   : > { %v3449_v6 = vunpack.i.h.bf16 %v3447_v9  ;;  %v3448_v11 = vunpack.i.l.bf16 %v3447_v9 }
 0x1e1   : > { %v1833_v36 = vsel %vm1814_vm10, %v1800_v33, %v3453_v31  ;;  %v1834_v30 = vsel %vm1814_vm10, %v1801_v48, %v3454_v43 }
 0x1e2   : > { %v3462_v13 = vpop.permute.xlu1 %3461  ;;  %v1831_v57 = vsel %vm1814_vm10, %v1798_v47, %v3448_v11  ;;  %v1832_v10 = vsel %vm1814_vm10, %v1799_v34, %v3449_v6 }
 0x1e3   : > { %v3464_v46 = vunpack.i.h.bf16 %v3462_v13  ;;  %v3463_v21 = vunpack.i.l.bf16 %v3462_v13  ;;  %v3457_v0 = vpop.permute.xlu0 %3456 }
 0x1e4   : > { %v3459_v16 = vunpack.i.h.bf16 %v3457_v0  ;;  %v3458_v63 = vunpack.i.l.bf16 %v3457_v0 }
 0x1e5   : > { %v1866_v1 = vsel %vm1847_vm11, %v1833_v36, %v3463_v21  ;;  %v1867_v4 = vsel %vm1847_vm11, %v1834_v30, %v3464_v46 }
 0x1e6   : > { %v1889_v7 = vpack.c.bf16 %v1867_v4, %v1866_v1  ;;  %v3472_v45 = vpop.permute.xlu1 %3471  ;;  %v1864_v56 = vsel %vm1847_vm11, %v1831_v57, %v3458_v63  ;;  %v1865_v41 = vsel %vm1847_vm11, %v1832_v10, %v3459_v16 }
 0x1e7   : > { %v3467_v29 = vpop.permute.xlu0 %3466  ;;  %v1888_v27 = vpack.c.bf16 %v1865_v41, %v1864_v56  ;;  %v3474_v17 = vunpack.i.h.bf16 %v3472_v45  ;;  %v3473_v44 = vunpack.i.l.bf16 %v3472_v45 }
 0x1e8   : > { %v3469_v35 = vunpack.i.h.bf16 %v3467_v29  ;;  %v3468_v19 = vunpack.i.l.bf16 %v3467_v29 }
 0x1e9   : > { %2892 = vmatprep.mubr.msk.bf16.mxu1 %vm1911_vm12, %v1888_v27  ;;  %v1706_v15 = vsel %vm1682_vm6, %v4971_v39, %v3474_v17  ;;  %v1705_v2 = vsel %vm1682_vm6, %v4979_v20, %v3473_v44 }
 0x1ea   : > { %2893 = vmatmul.mubr.msk.bf16.vlgmr.msra.gmra.mrb[0].mxu1 %vm1911_vm12, %v1889_v7  ;;  %v3482_v37 = vpop.permute.xlu1 %3481  ;;  %v1703_v49 = vsel %vm1682_vm6, %v4940_v8, %v3468_v19  ;;  %v1704_v5 = vsel %vm1682_vm6, %v4976_v42, %v3469_v35 }
 0x1eb   : > { %v3477_v18 = vpop.permute.xlu0 %3476  ;;  %v3484_v25 = vunpack.i.h.bf16 %v3482_v37  ;;  %v3483_v40 = vunpack.i.l.bf16 %v3482_v37 }
 0x1ec   : > { %v3479_v58 = vunpack.i.h.bf16 %v3477_v18  ;;  %v3478_v50 = vunpack.i.l.bf16 %v3477_v18 }
 0x1ed   : > { %v1738_v39 = vsel %vm1715_vm7, %v1705_v2, %v3483_v40  ;;  %v1739_v53 = vsel %vm1715_vm7, %v1706_v15, %v3484_v25  ;;  %v5956_v40 = vld [vmem:[#allocation61_spill] sm:$0xff] }
 0x1ee   : > { %v3492_v32 = vpop.permute.xlu1 %3491  ;;  %v1736_v38 = vsel %vm1715_vm7, %v1703_v49, %v3478_v50  ;;  %v1737_v8 = vsel %vm1715_vm7, %v1704_v5, %v3479_v58  ;;  %v5957_v15 = vld [vmem:[#allocation29_spill] sm:$0xff]  ;;  %v5958_v49 = vld [vmem:[#allocation56_spill] sm:$0xff] }
 0x1ef   : > { %v3487_v14 = vpop.permute.xlu0 %3486  ;;  %v3494_v61 = vunpack.i.h.bf16 %v3492_v32  ;;  %v3493_v52 = vunpack.i.l.bf16 %v3492_v32 }
 0x1f0   : > { %v3489_v12 = vunpack.i.h.bf16 %v3487_v14  ;;  %v3488_v51 = vunpack.i.l.bf16 %v3487_v14 }
 0x1f1   : > { %v1771_v43 = vsel %vm1748_vm8, %v1738_v39, %v3493_v52  ;;  %v1772_v31 = vsel %vm1748_vm8, %v1739_v53, %v3494_v61  ;;  %v5959_v61 = vld [vmem:[#allocation59_spill] sm:$0xff] }
 0x1f2   : > { %v3502_v55 = vpop.permute.xlu1 %3501  ;;  %v1769_v6 = vsel %vm1748_vm8, %v1736_v38, %v3488_v51  ;;  %v1770_v11 = vsel %vm1748_vm8, %v1737_v8, %v3489_v12 }
 0x1f3   : > { %v3497_v26 = vpop.permute.xlu0 %3496  ;;  %v3504_v62 = vunpack.i.h.bf16 %v3502_v55  ;;  %v3503_v28 = vunpack.i.l.bf16 %v3502_v55 }
 0x1f4   : > { %v3499_v20 = vunpack.i.h.bf16 %v3497_v26  ;;  %v3498_v54 = vunpack.i.l.bf16 %v3497_v26 }
 0x1f5   : > { %v1804_v24 = vsel %vm1781_vm9, %v1771_v43, %v3503_v28  ;;  %v1805_v23 = vsel %vm1781_vm9, %v1772_v31, %v3504_v62 }
 0x1f6   : > { %v3512_v60 = vpop.permute.xlu1 %3511  ;;  %v1802_v48 = vsel %vm1781_vm9, %v1769_v6, %v3498_v54  ;;  %v1803_v13 = vsel %vm1781_vm9, %v1770_v11, %v3499_v20 }
 0x1f7   : > { %v3507_v9 = vpop.permute.xlu0 %3506  ;;  %v3514_v22 = vunpack.i.h.bf16 %v3512_v60  ;;  %v3513_v42 = vunpack.i.l.bf16 %v3512_v60 }
 0x1f8   : > { %v3509_v3 = vunpack.i.h.bf16 %v3507_v9  ;;  %v3508_v59 = vunpack.i.l.bf16 %v3507_v9 }
 0x1f9   : > { %v1837_v21 = vsel %vm1814_vm10, %v1804_v24, %v3513_v42  ;;  %v1838_v0 = vsel %vm1814_vm10, %v1805_v23, %v3514_v22 }
 0x1fa   : > { %v3522_v33 = vpop.permute.xlu1 %3521  ;;  %v1835_v16 = vsel %vm1814_vm10, %v1802_v48, %v3508_v59  ;;  %v1836_v63 = vsel %vm1814_vm10, %v1803_v13, %v3509_v3 }
 0x1fb   : > { %v3524_v47 = vunpack.i.h.bf16 %v3522_v33  ;;  %v3523_v34 = vunpack.i.l.bf16 %v3522_v33  ;;  %v3517_v46 = vpop.permute.xlu0 %3516 }
 0x1fc   : > { %v3519_v36 = vunpack.i.h.bf16 %v3517_v46  ;;  %v3518_v30 = vunpack.i.l.bf16 %v3517_v46 }
 0x1fd   : > { %v1870_v1 = vsel %vm1847_vm11, %v1837_v21, %v3523_v34  ;;  %v1871_v4 = vsel %vm1847_vm11, %v1838_v0, %v3524_v47 }
 0x1fe   : > { %v1891_v57 = vpack.c.bf16 %v1871_v4, %v1870_v1  ;;  %v1868_v10 = vsel %vm1847_vm11, %v1835_v16, %v3518_v30  ;;  %v1869_v7 = vsel %vm1847_vm11, %v1836_v63, %v3519_v36  ;;  %v3532_v45 = vpop.permute.xlu1 %3531 }
 0x1ff   : > { %v1890_v56 = vpack.c.bf16 %v1869_v7, %v1868_v10  ;;  %v3527_v41 = vpop.permute.xlu0 %3526  ;;  %v3534_v32 = vunpack.i.h.bf16 %v3532_v45  ;;  %v3533_v14 = vunpack.i.l.bf16 %v3532_v45 }
 0x200   : > { %v3529_v17 = vunpack.i.h.bf16 %v3527_v41  ;;  %v3528_v44 = vunpack.i.l.bf16 %v3527_v41 }
 0x201   : > { %2896 = vmatprep.mubr.msk.bf16.mxu1 %vm1911_vm12, %v1890_v56  ;;  %v1710_v26 = vsel %vm1682_vm6, %v5956_v40, %v3534_v32  ;;  %v1709_v2 = vsel %vm1682_vm6, %v5957_v15, %v3533_v14 }
 0x202   : > { %2897 = vmatmul.mubr.msk.bf16.gmra.mrb[4].mxu1 %vm1911_vm12, %v1891_v57  ;;  %v3542_v29 = vpop.permute.xlu1 %3541  ;;  %v1707_v5 = vsel %vm1682_vm6, %v5958_v49, %v3528_v44  ;;  %v1708_v52 = vsel %vm1682_vm6, %v5959_v61, %v3529_v17 }
 0x203   : > { %v3537_v27 = vpop.permute.xlu0 %3536  ;;  %v3544_v19 = vunpack.i.h.bf16 %v3542_v29  ;;  %v3543_v55 = vunpack.i.l.bf16 %v3542_v29 }
 0x204   : > { %v3539_v58 = vunpack.i.h.bf16 %v3537_v27  ;;  %v3538_v50 = vunpack.i.l.bf16 %v3537_v27 }
 0x205   : > { %v1742_v20 = vsel %vm1715_vm7, %v1709_v2, %v3543_v55  ;;  %v1743_v54 = vsel %vm1715_vm7, %v1710_v26, %v3544_v19  ;;  %v5960_v2 = vld [vmem:[#allocation28_spill] sm:$0xff] }
 0x206   : > { %v3552_v37 = vpop.permute.xlu1 %3551  ;;  %v1740_v22 = vsel %vm1715_vm7, %v1707_v5, %v3538_v50  ;;  %v1741_v42 = vsel %vm1715_vm7, %v1708_v52, %v3539_v58  ;;  %v5961_v50 = vld [vmem:[#allocation24_spill] sm:$0xff] }
 0x207   : > { %v3547_v18 = vpop.permute.xlu0 %3546  ;;  %v3554_v12 = vunpack.i.h.bf16 %v3552_v37  ;;  %v3553_v51 = vunpack.i.l.bf16 %v3552_v37 }
 0x208   : > { %v3549_v62 = vunpack.i.h.bf16 %v3547_v18  ;;  %v3548_v28 = vunpack.i.l.bf16 %v3547_v18 }
 0x209   : > { %v1775_v3 = vsel %vm1748_vm8, %v1742_v20, %v3553_v51  ;;  %v1776_v59 = vsel %vm1748_vm8, %v1743_v54, %v3554_v12 }
 0x20a   : > { %v3562_v35 = vpop.permute.xlu1 %3561  ;;  %v1773_v24 = vsel %vm1748_vm8, %v1740_v22, %v3548_v28  ;;  %v1774_v23 = vsel %vm1748_vm8, %v1741_v42, %v3549_v62 }
 0x20b   : > { %v3557_v25 = vpop.permute.xlu0 %3556  ;;  %v3564_v60 = vunpack.i.h.bf16 %v3562_v35  ;;  %v3563_v39 = vunpack.i.l.bf16 %v3562_v35 }
 0x20c   : > { %v3559_v9 = vunpack.i.h.bf16 %v3557_v25  ;;  %v3558_v38 = vunpack.i.l.bf16 %v3557_v25 }
 0x20d   : > { %v1808_v33 = vsel %vm1781_vm9, %v1775_v3, %v3563_v39  ;;  %v1809_v48 = vsel %vm1781_vm9, %v1776_v59, %v3564_v60 }
 0x20e   : > { %v3572_v53 = vpop.permute.xlu1 %3571  ;;  %v1806_v47 = vsel %vm1781_vm9, %v1773_v24, %v3558_v38  ;;  %v1807_v34 = vsel %vm1781_vm9, %v1774_v23, %v3559_v9 }
 0x20f   : > { %v3567_v8 = vpop.permute.xlu0 %3566  ;;  %v3574_v43 = vunpack.i.h.bf16 %v3572_v53  ;;  %v3573_v31 = vunpack.i.l.bf16 %v3572_v53  ;;  %v5962_v53 = vld [vmem:[#allocation21_spill] sm:$0xff] }
 0x210   : > { %v3569_v6 = vunpack.i.h.bf16 %v3567_v8  ;;  %v3568_v11 = vunpack.i.l.bf16 %v3567_v8  ;;  %v5963_v8 = vld [vmem:[#allocation33_spill] sm:$0xff] }
 0x211   : > { %v1841_v36 = vsel %vm1814_vm10, %v1808_v33, %v3573_v31  ;;  %v1842_v30 = vsel %vm1814_vm10, %v1809_v48, %v3574_v43 }
 0x212   : > { %v3582_v13 = vpop.permute.xlu1 %3581  ;;  %v1839_v1 = vsel %vm1814_vm10, %v1806_v47, %v3568_v11  ;;  %v1840_v4 = vsel %vm1814_vm10, %v1807_v34, %v3569_v6 }
 0x213   : > { %v3584_v46 = vunpack.i.h.bf16 %v3582_v13  ;;  %v3583_v21 = vunpack.i.l.bf16 %v3582_v13  ;;  %v3577_v0 = vpop.permute.xlu0 %3576 }
 0x214   : > { %v3579_v16 = vunpack.i.h.bf16 %v3577_v0  ;;  %v3578_v63 = vunpack.i.l.bf16 %v3577_v0 }
 0x215   : > { %v1874_v57 = vsel %vm1847_vm11, %v1841_v36, %v3583_v21  ;;  %v1875_v10 = vsel %vm1847_vm11, %v1842_v30, %v3584_v46 }
 0x216   : > { %v1893_v7 = vpack.c.bf16 %v1875_v10, %v1874_v57  ;;  %v1872_v45 = vsel %vm1847_vm11, %v1839_v1, %v3578_v63  ;;  %v1873_v56 = vsel %vm1847_vm11, %v1840_v4, %v3579_v16  ;;  %v3592_v41 = vpop.permute.xlu1 %3591 }
 0x217   : > { %v1892_v29 = vpack.c.bf16 %v1873_v56, %v1872_v45  ;;  %v3587_v27 = vpop.permute.xlu0 %3586  ;;  %v3594_v17 = vunpack.i.h.bf16 %v3592_v41  ;;  %v3593_v44 = vunpack.i.l.bf16 %v3592_v41 }
 0x218   : > { %v3588_v26 = vunpack.i.l.bf16 %v3587_v27  ;;  %v3589_v5 = vunpack.i.h.bf16 %v3587_v27 }
 0x219   : > { %2900 = vmatprep.mubr.msk.bf16.mxu1 %vm1911_vm12, %v1892_v29  ;;  %v1714_v58 = vsel %vm1682_vm6, %v5960_v2, %v3594_v17  ;;  %v1713_v49 = vsel %vm1682_vm6, %v5961_v50, %v3593_v44 }
 0x21a   : > { %2901 = vmatmul.mubr.msk.bf16.gmra.mrb[8].mxu1 %vm1911_vm12, %v1893_v7  ;;  %v3602_v37 = vpop.permute.xlu1 %3601  ;;  %v1711_v20 = vsel %vm1682_vm6, %v5962_v53, %v3588_v26  ;;  %v1712_v22 = vsel %vm1682_vm6, %v5963_v8, %v3589_v5 }
 0x21b   : > { %v3597_v18 = vpop.permute.xlu0 %3596  ;;  %v3604_v35 = vunpack.i.h.bf16 %v3602_v37  ;;  %v3603_v19 = vunpack.i.l.bf16 %v3602_v37 }
 0x21c   : > { %v3598_v61 = vunpack.i.l.bf16 %v3597_v18  ;;  %v3599_v51 = vunpack.i.h.bf16 %v3597_v18 }
 0x21d   : > { %v1746_v52 = vsel %vm1715_vm7, %v1713_v49, %v3603_v19  ;;  %v1747_v12 = vsel %vm1715_vm7, %v1714_v58, %v3604_v35 }
 0x21e   : > { %v3612_v32 = vpop.permute.xlu1 %3611  ;;  %v1744_v42 = vsel %vm1715_vm7, %v1711_v20, %v3598_v61  ;;  %v1745_v11 = vsel %vm1715_vm7, %v1712_v22, %v3599_v51 }
 0x21f   : > { %v3607_v14 = vpop.permute.xlu0 %3606  ;;  %v3614_v55 = vunpack.i.h.bf16 %v3612_v32  ;;  %v3613_v25 = vunpack.i.l.bf16 %v3612_v32 }
 0x220   : > { %v3608_v62 = vunpack.i.l.bf16 %v3607_v14  ;;  %v3609_v54 = vunpack.i.h.bf16 %v3607_v14 }
 0x221   : > { %v1779_v28 = vsel %vm1748_vm8, %v1746_v52, %v3613_v25  ;;  %v1780_v60 = vsel %vm1748_vm8, %v1747_v12, %v3614_v55 }
 0x222   : > { %v1400_v40 = vpop.permute.xlu1 %1399  ;;  %v1777_v24 = vsel %vm1748_vm8, %v1744_v42, %v3608_v62  ;;  %v1778_v13 = vsel %vm1748_vm8, %v1745_v11, %v3609_v54 }
 0x223   : > { %v3617_v15 = vpop.permute.xlu0 %3616  ;;  %v1812_v31 = vsel %vm1781_vm9, %v1779_v28, %v1400_v40  ;;  %v1813_v3 = vsel %vm1781_vm9, %v1780_v60, %v1400_v40 }
 0x224   : > { %v3618_v9 = vunpack.i.l.bf16 %v3617_v15  ;;  %v3619_v43 = vunpack.i.h.bf16 %v3617_v15 }
 0x226   : > { %v1493_v39 = vpop.permute.xlu1 %1492  ;;  %v1810_v47 = vsel %vm1781_vm9, %v1777_v24, %v3618_v9  ;;  %v1811_v0 = vsel %vm1781_vm9, %v1778_v13, %v3619_v43 }
 0x227   : > { %v3622_v38 = vpop.permute.xlu0 %3621  ;;  %v1845_v23 = vsel %vm1814_vm10, %v1812_v31, %v1493_v39  ;;  %v1846_v33 = vsel %vm1814_vm10, %v1813_v3, %v1493_v39 }
 0x228   : > { %v3624_v59 = vunpack.i.h.bf16 %v3622_v38  ;;  %v3623_v6 = vunpack.i.l.bf16 %v3622_v38 }
 0x22a   : > { %v1586_v48 = vpop.permute.xlu1 %1585  ;;  %v1843_v63 = vsel %vm1814_vm10, %v1810_v47, %v3623_v6  ;;  %v1844_v1 = vsel %vm1814_vm10, %v1811_v0, %v3624_v59 }
 0x22b   : > { %v1878_v34 = vsel %vm1847_vm11, %v1845_v23, %v1586_v48  ;;  %v1879_v46 = vsel %vm1847_vm11, %v1846_v33, %v1586_v48  ;;  %v3627_v21 = vpop.permute.xlu0 %3626 }
 0x22c   : > { %v1895_v36 = vpack.c.bf16 %v1879_v46, %v1878_v34  ;;  %v3629_v30 = vunpack.i.h.bf16 %v3627_v21  ;;  %v3628_v16 = vunpack.i.l.bf16 %v3627_v21 }
 0x22e   : > { %v1876_v4 = vsel %vm1847_vm11, %v1843_v63, %v3628_v16  ;;  %v1877_v57 = vsel %vm1847_vm11, %v1844_v1, %v3629_v30 }
 0x22f   : > { %v1894_v10 = vpack.c.bf16 %v1877_v57, %v1876_v4 }
 0x231   : > { %2904 = vmatprep.mubr.msk.bf16.mxu1 %vm1911_vm12, %v1894_v10 }
 0x232   : > { %2905 = vmatmul.mubr.msk.bf16.gmra.mrb[12].mxu1 %vm1911_vm12, %v1895_v36 }
 0x264   : > { %v2878_v7 = vpop.f32.mrb[0].mxu0 }
 0x265   : > { %v2741_v45 = vpack.c.bf16 %v2878_v7, %v2878_v7  ;;  %v1998_v56 = vpop.f32.mrb[1].mxu0  ;;  %v2360_v37 = vmul.f32 %v2878_v7, %v2878_v7  ;;  %v2290_v55 = vsel %vm2286_vm14, %v2878_v7, 0.0 }
 0x266   : > { %v2739_v41 = vpack.c.bf16 %v1998_v56, %v1998_v56  ;;  %v2358_v29 = vmul.f32 %v1998_v56, %v1998_v56  ;;  %v2879_v27 = vpop.f32.mrb[2].mxu0  ;;  %v2287_v14 = vsel %vm2286_vm14, %v1998_v56, 0.0 }
 0x267   : > { %2256 = vst.msk [vmem:[%s5483_s19 + $0x8] sm:$0xf] %vm2253_vm13, %v2741_v45  ;;  %v2742_v18 = vpack.c.bf16 %v2879_v27, %v2879_v27  ;;  %v2001_v32 = vpop.f32.mrb[3].mxu0  ;;  %v2361_v40 = vmul.f32 %v2879_v27, %v2879_v27  ;;  %v2393_v58 = vsel %vm2286_vm14, %v2360_v37, 0.0  ;;  %v2292_v50 = vsel %vm2286_vm14, %v2879_v27, 0.0 }
 0x268   : > { %2254 = vst.msk [vmem:[%s5483_s19] sm:$0xf] %vm2253_vm13, %v2739_v41  ;;  %v2740_v17 = vpack.c.bf16 %v2001_v32, %v2001_v32  ;;  %v2288_v44 = vsel %vm2286_vm14, %v2001_v32, 0.0  ;;  %v2359_v35 = vmul.f32 %v2001_v32, %v2001_v32  ;;  %v2390_v25 = vsel %vm2286_vm14, %v2358_v29, 0.0 }
 0x269   : > { %2257 = vst.msk [vmem:[%s5483_s19 + $0xc] sm:$0xf] %vm2253_vm13, %v2742_v18  ;;  %v2289_v19 = vadd.f32 %v2288_v44, %v2287_v14  ;;  %v2395_v61 = vsel %vm2286_vm14, %v2361_v40, 0.0 }
 0x26a   : > { %2255 = vst.msk [vmem:[%s5483_s19 + $0x4] sm:$0xf] %vm2253_vm13, %v2740_v17  ;;  %v2391_v26 = vsel %vm2286_vm14, %v2359_v35, 0.0 }
 0x26b   : > { %v2291_v15 = vadd.f32 %v2290_v55, %v2289_v19  ;;  %v2392_v2 = vadd.f32 %v2391_v26, %v2390_v25 }
 0x26d   : > { %v2394_v49 = vadd.f32 %v2393_v58, %v2392_v2  ;;  %v2293_v5 = vadd.f32 %v2292_v50, %v2291_v15 }
 0x26f   : > { %v2396_v52 = vadd.f32 %v2395_v61, %v2394_v49 }
 0x278   : > { %v2882_v12 = vpop.f32.mrb[4].mxu0 }
 0x279   : > { %v2745_v51 = vpack.c.bf16 %v2882_v12, %v2882_v12  ;;  %v2014_v62 = vpop.f32.mrb[5].mxu0  ;;  %v2364_v42 = vmul.f32 %v2882_v12, %v2882_v12  ;;  %v2298_v59 = vsel %vm2286_vm14, %v2882_v12, 0.0 }
 0x27a   : > { %v2743_v28 = vpack.c.bf16 %v2014_v62, %v2014_v62  ;;  %v2294_v60 = vsel %vm2286_vm14, %v2014_v62, 0.0  ;;  %v2362_v39 = vmul.f32 %v2014_v62, %v2014_v62  ;;  %v2883_v53 = vpop.f32.mrb[6].mxu0 }
 0x27b   : > { %2260 = vst.msk [vmem:[%s5483_s19 + $0x18] sm:$0xf] %vm2253_vm13, %v2745_v51  ;;  %v2295_v20 = vadd.f32 %v2294_v60, %v2293_v5  ;;  %v2746_v54 = vpack.c.bf16 %v2883_v53, %v2883_v53  ;;  %v2017_v9 = vpop.f32.mrb[7].mxu0  ;;  %v2365_v6 = vmul.f32 %v2883_v53, %v2883_v53  ;;  %v2300_v23 = vsel %vm2286_vm14, %v2883_v53, 0.0 }
 0x27c   : > { %2258 = vst.msk [vmem:[%s5483_s19 + $0x10] sm:$0xf] %vm2253_vm13, %v2743_v28  ;;  %v2397_v38 = vsel %vm2286_vm14, %v2362_v39, 0.0  ;;  %v2744_v8 = vpack.c.bf16 %v2017_v9, %v2017_v9  ;;  %v2296_v22 = vsel %vm2286_vm14, %v2017_v9, 0.0  ;;  %v2363_v3 = vmul.f32 %v2017_v9, %v2017_v9 }
 0x27d   : > { %v2398_v43 = vadd.f32 %v2397_v38, %v2396_v52  ;;  %2261 = vst.msk [vmem:[%s5483_s19 + $0x1c] sm:$0xf] %vm2253_vm13, %v2746_v54  ;;  %v2297_v31 = vadd.f32 %v2296_v22, %v2295_v20  ;;  %v2401_v48 = vsel %vm2286_vm14, %v2364_v42, 0.0  ;;  %v2403_v34 = vsel %vm2286_vm14, %v2365_v6, 0.0 }
 0x27e   : > { %2259 = vst.msk [vmem:[%s5483_s19 + $0x14] sm:$0xf] %vm2253_vm13, %v2744_v8  ;;  %v2399_v24 = vsel %vm2286_vm14, %v2363_v3, 0.0 }
 0x27f   : > { %v2299_v11 = vadd.f32 %v2298_v59, %v2297_v31  ;;  %v2400_v33 = vadd.f32 %v2399_v24, %v2398_v43 }
 0x281   : > { %v2301_v13 = vadd.f32 %v2300_v23, %v2299_v11  ;;  %v2402_v47 = vadd.f32 %v2401_v48, %v2400_v33 }
 0x283   : > { %v2404_v46 = vadd.f32 %v2403_v34, %v2402_v47 }
 0x28d   : > { %v2886_v21 = vpop.f32.mrb[8].mxu0 }
 0x28e   : > { %v2749_v0 = vpack.c.bf16 %v2886_v21, %v2886_v21  ;;  %v2030_v36 = vpop.f32.mrb[9].mxu0  ;;  %v2368_v41 = vmul.f32 %v2886_v21, %v2886_v21  ;;  %v2306_v18 = vsel %vm2286_vm14, %v2886_v21, 0.0 }
 0x28f   : > { %v2747_v30 = vpack.c.bf16 %v2030_v36, %v2030_v36  ;;  %v2302_v16 = vsel %vm2286_vm14, %v2030_v36, 0.0  ;;  %v2366_v63 = vmul.f32 %v2030_v36, %v2030_v36  ;;  %v2887_v1 = vpop.f32.mrb[10].mxu0 }
 0x290   : > { %2264 = vst.msk [vmem:[%s5483_s19 + $0x28] sm:$0xf] %vm2253_vm13, %v2749_v0  ;;  %v2303_v4 = vadd.f32 %v2302_v16, %v2301_v13  ;;  %v2750_v57 = vpack.c.bf16 %v2887_v1, %v2887_v1  ;;  %v2033_v10 = vpop.f32.mrb[11].mxu0  ;;  %v2369_v32 = vmul.f32 %v2887_v1, %v2887_v1  ;;  %v2308_v44 = vsel %vm2286_vm14, %v2887_v1, 0.0 }
 0x291   : > { %2262 = vst.msk [vmem:[%s5483_s19 + $0x20] sm:$0xf] %vm2253_vm13, %v2747_v30  ;;  %v2405_v7 = vsel %vm2286_vm14, %v2366_v63, 0.0  ;;  %v2748_v45 = vpack.c.bf16 %v2033_v10, %v2033_v10  ;;  %v2304_v56 = vsel %vm2286_vm14, %v2033_v10, 0.0  ;;  %v2367_v37 = vmul.f32 %v2033_v10, %v2033_v10 }
 0x292   : > { %v2406_v29 = vadd.f32 %v2405_v7, %v2404_v46  ;;  %2265 = vst.msk [vmem:[%s5483_s19 + $0x2c] sm:$0xf] %vm2253_vm13, %v2750_v57  ;;  %v2305_v27 = vadd.f32 %v2304_v56, %v2303_v4  ;;  %v2409_v19 = vsel %vm2286_vm14, %v2368_v41, 0.0  ;;  %v2411_v40 = vsel %vm2286_vm14, %v2369_v32, 0.0 }
 0x293   : > { %2263 = vst.msk [vmem:[%s5483_s19 + $0x24] sm:$0xf] %vm2253_vm13, %v2748_v45  ;;  %v2407_v17 = vsel %vm2286_vm14, %v2367_v37, 0.0 }
 0x294   : > { %v2307_v14 = vadd.f32 %v2306_v18, %v2305_v27  ;;  %v2408_v35 = vadd.f32 %v2407_v17, %v2406_v29 }
 0x296   : > { %v2309_v55 = vadd.f32 %v2308_v44, %v2307_v14  ;;  %v2410_v25 = vadd.f32 %v2409_v19, %v2408_v35 }
 0x298   : > { %v2412_v26 = vadd.f32 %v2411_v40, %v2410_v25 }
 0x2a5   : > { %v2890_v15 = vpop.f32.mrb[12].mxu0 }
 0x2a6   : > { %v2753_v2 = vpack.c.bf16 %v2890_v15, %v2890_v15  ;;  %v2046_v58 = vpop.f32.mrb[13].mxu0  ;;  %v2372_v39 = vmul.f32 %v2890_v15, %v2890_v15  ;;  %v2314_v9 = vsel %vm2286_vm14, %v2890_v15, 0.0 }
 0x2a7   : > { %v2751_v50 = vpack.c.bf16 %v2046_v58, %v2046_v58  ;;  %v2310_v49 = vsel %vm2286_vm14, %v2046_v58, 0.0  ;;  %v2370_v5 = vmul.f32 %v2046_v58, %v2046_v58  ;;  %v2891_v61 = vpop.f32.mrb[14].mxu0 }
 0x2a8   : > { %2268 = vst.msk [vmem:[%s5483_s19 + $0x38] sm:$0xf] %vm2253_vm13, %v2753_v2  ;;  %v2311_v52 = vadd.f32 %v2310_v49, %v2309_v55  ;;  %v2754_v12 = vpack.c.bf16 %v2891_v61, %v2891_v61  ;;  %v2049_v51 = vpop.f32.mrb[15].mxu0  ;;  %v2373_v38 = vmul.f32 %v2891_v61, %v2891_v61  ;;  %v2316_v42 = vsel %vm2286_vm14, %v2891_v61, 0.0 }
 0x2a9   : > { %2266 = vst.msk [vmem:[%s5483_s19 + $0x30] sm:$0xf] %vm2253_vm13, %v2751_v50  ;;  %v2413_v62 = vsel %vm2286_vm14, %v2370_v5, 0.0  ;;  %v2752_v28 = vpack.c.bf16 %v2049_v51, %v2049_v51  ;;  %v2312_v60 = vsel %vm2286_vm14, %v2049_v51, 0.0  ;;  %v2371_v54 = vmul.f32 %v2049_v51, %v2049_v51 }
 0x2aa   : > { %v2414_v53 = vadd.f32 %v2413_v62, %v2412_v26  ;;  %2269 = vst.msk [vmem:[%s5483_s19 + $0x3c] sm:$0xf] %vm2253_vm13, %v2754_v12  ;;  %v2313_v20 = vadd.f32 %v2312_v60, %v2311_v52  ;;  %v2417_v31 = vsel %vm2286_vm14, %v2372_v39, 0.0  ;;  %v2419_v6 = vsel %vm2286_vm14, %v2373_v38, 0.0 }
 0x2ab   : > { %2267 = vst.msk [vmem:[%s5483_s19 + $0x34] sm:$0xf] %vm2253_vm13, %v2752_v28  ;;  %v2415_v22 = vsel %vm2286_vm14, %v2371_v54, 0.0 }
 0x2ac   : > { %v2315_v8 = vadd.f32 %v2314_v9, %v2313_v20  ;;  %v2416_v43 = vadd.f32 %v2415_v22, %v2414_v53 }
 0x2ae   : > { %v2317_v3 = vadd.f32 %v2316_v42, %v2315_v8  ;;  %v2418_v59 = vadd.f32 %v2417_v31, %v2416_v43 }
 0x2b0   : > { %v2420_v11 = vadd.f32 %v2419_v6, %v2418_v59 }
 0x2bd   : > { %v2894_v24 = vpop.f32.mrb[0].mxu1 }
 0x2be   : > { %v2757_v23 = vpack.c.bf16 %v2894_v24, %v2894_v24  ;;  %v2062_v33 = vpop.f32.mrb[1].mxu1  ;;  %v2376_v63 = vmul.f32 %v2894_v24, %v2894_v24  ;;  %v2322_v10 = vsel %vm2286_vm14, %v2894_v24, 0.0 }
 0x2bf   : > { %v2755_v48 = vpack.c.bf16 %v2062_v33, %v2062_v33  ;;  %v2318_v13 = vsel %vm2286_vm14, %v2062_v33, 0.0  ;;  %v2374_v47 = vmul.f32 %v2062_v33, %v2062_v33  ;;  %v2895_v34 = vpop.f32.mrb[2].mxu1 }
 0x2c0   : > { %2272 = vst.msk [vmem:[%s5483_s19 + $0x48] sm:$0xf] %vm2253_vm13, %v2757_v23  ;;  %v2319_v46 = vadd.f32 %v2318_v13, %v2317_v3  ;;  %v2758_v21 = vpack.c.bf16 %v2895_v34, %v2895_v34  ;;  %v2065_v0 = vpop.f32.mrb[3].mxu1  ;;  %v2377_v7 = vmul.f32 %v2895_v34, %v2895_v34  ;;  %v2324_v41 = vsel %vm2286_vm14, %v2895_v34, 0.0 }
 0x2c1   : > { %2270 = vst.msk [vmem:[%s5483_s19 + $0x40] sm:$0xf] %vm2253_vm13, %v2755_v48  ;;  %v2421_v36 = vsel %vm2286_vm14, %v2374_v47, 0.0  ;;  %v2756_v30 = vpack.c.bf16 %v2065_v0, %v2065_v0  ;;  %v2320_v16 = vsel %vm2286_vm14, %v2065_v0, 0.0  ;;  %v2375_v57 = vmul.f32 %v2065_v0, %v2065_v0 }
 0x2c2   : > { %v2422_v1 = vadd.f32 %v2421_v36, %v2420_v11  ;;  %2273 = vst.msk [vmem:[%s5483_s19 + $0x4c] sm:$0xf] %vm2253_vm13, %v2758_v21  ;;  %v2321_v4 = vadd.f32 %v2320_v16, %v2319_v46  ;;  %v2425_v27 = vsel %vm2286_vm14, %v2376_v63, 0.0  ;;  %v2427_v32 = vsel %vm2286_vm14, %v2377_v7, 0.0 }
 0x2c3   : > { %2271 = vst.msk [vmem:[%s5483_s19 + $0x44] sm:$0xf] %vm2253_vm13, %v2756_v30  ;;  %v2423_v56 = vsel %vm2286_vm14, %v2375_v57, 0.0 }
 0x2c4   : > { %v2323_v45 = vadd.f32 %v2322_v10, %v2321_v4  ;;  %v2424_v29 = vadd.f32 %v2423_v56, %v2422_v1 }
 0x2c6   : > { %v2325_v37 = vadd.f32 %v2324_v41, %v2323_v45  ;;  %v2426_v18 = vadd.f32 %v2425_v27, %v2424_v29 }
 0x2c8   : > { %v2428_v14 = vadd.f32 %v2427_v32, %v2426_v18 }
 0x2d5   : > { %v2898_v17 = vpop.f32.mrb[4].mxu1 }
 0x2d6   : > { %v2761_v44 = vpack.c.bf16 %v2898_v17, %v2898_v17  ;;  %v2078_v35 = vpop.f32.mrb[5].mxu1  ;;  %v2380_v5 = vmul.f32 %v2898_v17, %v2898_v17  ;;  %v2330_v51 = vsel %vm2286_vm14, %v2898_v17, 0.0 }
 0x2d7   : > { %v2759_v19 = vpack.c.bf16 %v2078_v35, %v2078_v35  ;;  %v2326_v55 = vsel %vm2286_vm14, %v2078_v35, 0.0  ;;  %v2378_v25 = vmul.f32 %v2078_v35, %v2078_v35  ;;  %v2899_v40 = vpop.f32.mrb[6].mxu1 }
 0x2d8   : > { %2276 = vst.msk [vmem:[%s5483_s19 + $0x58] sm:$0xf] %vm2253_vm13, %v2761_v44  ;;  %v2327_v26 = vadd.f32 %v2326_v55, %v2325_v37  ;;  %v2762_v15 = vpack.c.bf16 %v2899_v40, %v2899_v40  ;;  %v2081_v2 = vpop.f32.mrb[7].mxu1  ;;  %v2381_v62 = vmul.f32 %v2899_v40, %v2899_v40  ;;  %v2332_v39 = vsel %vm2286_vm14, %v2899_v40, 0.0 }
 0x2d9   : > { %2274 = vst.msk [vmem:[%s5483_s19 + $0x50] sm:$0xf] %vm2253_vm13, %v2759_v19  ;;  %v2429_v58 = vsel %vm2286_vm14, %v2378_v25, 0.0  ;;  %v2760_v50 = vpack.c.bf16 %v2081_v2, %v2081_v2  ;;  %v2328_v49 = vsel %vm2286_vm14, %v2081_v2, 0.0  ;;  %v2379_v12 = vmul.f32 %v2081_v2, %v2081_v2 }
 0x2da   : > { %v2430_v61 = vadd.f32 %v2429_v58, %v2428_v14  ;;  %2277 = vst.msk [vmem:[%s5483_s19 + $0x5c] sm:$0xf] %vm2253_vm13, %v2762_v15  ;;  %v2329_v52 = vadd.f32 %v2328_v49, %v2327_v26  ;;  %v2433_v20 = vsel %vm2286_vm14, %v2380_v5, 0.0  ;;  %v2435_v38 = vsel %vm2286_vm14, %v2381_v62, 0.0 }
 0x2db   : > { %2275 = vst.msk [vmem:[%s5483_s19 + $0x54] sm:$0xf] %vm2253_vm13, %v2760_v50  ;;  %v2431_v60 = vsel %vm2286_vm14, %v2379_v12, 0.0 }
 0x2dc   : > { %v2331_v28 = vadd.f32 %v2330_v51, %v2329_v52  ;;  %v2432_v53 = vadd.f32 %v2431_v60, %v2430_v61 }
 0x2de   : > { %v2333_v54 = vadd.f32 %v2332_v39, %v2331_v28  ;;  %v2434_v9 = vadd.f32 %v2433_v20, %v2432_v53 }
 0x2e0   : > { %v2436_v8 = vadd.f32 %v2435_v38, %v2434_v9 }
 0x2ed   : > { %v2902_v22 = vpop.f32.mrb[8].mxu1 }
 0x2ee   : > { %v2765_v42 = vpack.c.bf16 %v2902_v22, %v2902_v22  ;;  %v2094_v43 = vpop.f32.mrb[9].mxu1  ;;  %v2384_v47 = vmul.f32 %v2902_v22, %v2902_v22  ;;  %v2338_v0 = vsel %vm2286_vm14, %v2902_v22, 0.0 }
 0x2ef   : > { %v2763_v31 = vpack.c.bf16 %v2094_v43, %v2094_v43  ;;  %v2334_v3 = vsel %vm2286_vm14, %v2094_v43, 0.0  ;;  %v2382_v59 = vmul.f32 %v2094_v43, %v2094_v43  ;;  %v2903_v6 = vpop.f32.mrb[10].mxu1 }
 0x2f0   : > { %2280 = vst.msk [vmem:[%s5483_s19 + $0x68] sm:$0xf] %vm2253_vm13, %v2765_v42  ;;  %v2335_v11 = vadd.f32 %v2334_v3, %v2333_v54  ;;  %v2766_v24 = vpack.c.bf16 %v2903_v6, %v2903_v6  ;;  %v2097_v23 = vpop.f32.mrb[11].mxu1  ;;  %v2385_v36 = vmul.f32 %v2903_v6, %v2903_v6  ;;  %v2340_v63 = vsel %vm2286_vm14, %v2903_v6, 0.0 }
 0x2f1   : > { %2278 = vst.msk [vmem:[%s5483_s19 + $0x60] sm:$0xf] %vm2253_vm13, %v2763_v31  ;;  %v2437_v33 = vsel %vm2286_vm14, %v2382_v59, 0.0  ;;  %v2764_v48 = vpack.c.bf16 %v2097_v23, %v2097_v23  ;;  %v2336_v13 = vsel %vm2286_vm14, %v2097_v23, 0.0  ;;  %v2383_v21 = vmul.f32 %v2097_v23, %v2097_v23 }
 0x2f2   : > { %v2438_v34 = vadd.f32 %v2437_v33, %v2436_v8  ;;  %2281 = vst.msk [vmem:[%s5483_s19 + $0x6c] sm:$0xf] %vm2253_vm13, %v2766_v24  ;;  %v2337_v46 = vadd.f32 %v2336_v13, %v2335_v11  ;;  %v2441_v4 = vsel %vm2286_vm14, %v2384_v47, 0.0  ;;  %v2443_v7 = vsel %vm2286_vm14, %v2385_v36, 0.0 }
 0x2f3   : > { %2279 = vst.msk [vmem:[%s5483_s19 + $0x64] sm:$0xf] %vm2253_vm13, %v2764_v48  ;;  %v2439_v16 = vsel %vm2286_vm14, %v2383_v21, 0.0 }
 0x2f4   : > { %v2339_v30 = vadd.f32 %v2338_v0, %v2337_v46  ;;  %v2440_v1 = vadd.f32 %v2439_v16, %v2438_v34 }
 0x2f6   : > { %v2341_v57 = vadd.f32 %v2340_v63, %v2339_v30  ;;  %v2442_v10 = vadd.f32 %v2441_v4, %v2440_v1 }
 0x2f8   : > { %v2444_v45 = vadd.f32 %v2443_v7, %v2442_v10 }
 0x305   : > { %v2906_v56 = vpop.f32.mrb[12].mxu1 }
 0x306   : > { %v2769_v41 = vpack.c.bf16 %v2906_v56, %v2906_v56  ;;  %v2110_v29 = vpop.f32.mrb[13].mxu1  ;;  %v2388_v25 = vmul.f32 %v2906_v56, %v2906_v56  ;;  %v2346_v2 = vsel %vm2286_vm14, %v2906_v56, 0.0 }
 0x307   : > { %v2767_v27 = vpack.c.bf16 %v2110_v29, %v2110_v29  ;;  %v2342_v37 = vsel %vm2286_vm14, %v2110_v29, 0.0  ;;  %v2386_v18 = vmul.f32 %v2110_v29, %v2110_v29  ;;  %v2907_v32 = vpop.f32.mrb[14].mxu1 }
 0x308   : > { %2284 = vst.msk [vmem:[%s5483_s19 + $0x78] sm:$0xf] %vm2253_vm13, %v2769_v41  ;;  %v2343_v14 = vadd.f32 %v2342_v37, %v2341_v57  ;;  %v2770_v17 = vpack.c.bf16 %v2907_v32, %v2907_v32  ;;  %v2113_v44 = vpop.f32.mrb[15].mxu1  ;;  %v2389_v58 = vmul.f32 %v2907_v32, %v2907_v32 }
 0x309   : > { %2282 = vst.msk [vmem:[%s5483_s19 + $0x70] sm:$0xf] %vm2253_vm13, %v2767_v27  ;;  %v2445_v35 = vsel %vm2286_vm14, %v2386_v18, 0.0  ;;  %v2768_v19 = vpack.c.bf16 %v2113_v44, %v2113_v44  ;;  %v2344_v55 = vsel %vm2286_vm14, %v2113_v44, 0.0  ;;  %v2387_v15 = vmul.f32 %v2113_v44, %v2113_v44 }
 0x30a   : > { %v2446_v40 = vadd.f32 %v2445_v35, %v2444_v45  ;;  %2285 = vst.msk [vmem:[%s5483_s19 + $0x7c] sm:$0xf] %vm2253_vm13, %v2770_v17  ;;  %v2345_v26 = vadd.f32 %v2344_v55, %v2343_v14 }
 0x30b   : > { %2283 = vst.msk [vmem:[%s5483_s19 + $0x74] sm:$0xf] %vm2253_vm13, %v2768_v19  ;;  %v2447_v49 = vsel %vm2286_vm14, %v2387_v15, 0.0 }
 0x30c   : > { %v2347_v50 = vadd.f32 %v2346_v2, %v2345_v26 }
 0x30d   : > { %3762 = shalt.err (!%p3759_p13)
}
 0x30e   : > { %s3763_s15 = scalar_lea.hbm %s5605_s14, 2048  ;;  %s3767_s12 = scalar_lea.hbm %s5741_s4, 4096 }
 0x30f   : > { %p3764_p0 = scmp.ne.s32.totalorder %s5605_s14, %s3763_s15  ;;  %p3768_p9 = scmp.lt.u32.totalorder %s5605_s14, %s5741_s4 }
 0x310   : > { %p3769_p12 = scmp.lt.u32.totalorder %s3767_s12, %s3763_s15  ;;  %p3771_p1 = scmp.lt.u32.totalorder %s3763_s15, %s5605_s14 }
 0x311   : > { %p3765_p5 = pnand %p3764_p0, %p4087_p6 }
 0x312   : > { %p3770_p2 = por %p3769_p12, %p3768_p9 }
 0x313   : > { %p3766_p11 = pneg %p3765_p5 }
 0x314   : > { %p3772_p4 = por %p3771_p1, %p3770_p2 }
 0x316   : > { %p3773_p8 = pnand %p3772_p4, %p3766_p11 }
 0x318   : > { %3776 = shalt.err (!%p3773_p8)
}
 0x319   : > { %s3901_s7 = smov 64   ;;  %v2348_v5 = vsel %vm2286_vm14, %v2907_v32, 0.0  ;;  %v2448_v61 = vadd.f32 %v2447_v49, %v2446_v40  ;;  %v2449_v52 = vsel %vm2286_vm14, %v2388_v25, 0.0  ;;  %v2451_v62 = vsel %vm2286_vm14, %v2389_v58, 0.0  ;;  %s325_s18 = scalar_lea.vmem [#allocation13], %s4138_s26 }
 0x31a   : > { %2930 = dma.vmem_to_hbm [thread:$0]  (%p4087_p6), %s5611_s30, 2048, %s5605_s14, %s2461_s29, %s3901_s7, %s3901_s7, %s3892_s27   ;;  %v2349_v12 = vadd.f32 %v2348_v5, %v2347_v50  ;;  %vm2356_vm15 = vcmask 8192  }
 0x31b   : > { %v2450_v51 = vadd.f32 %v2449_v52, %v2448_v61  ;;  %s2465_s27 = sand.u32 1, %s3960_s25   ;;  %s2734_s30 = sshll.u32 %s3960_s25, 4 }
 0x31c   : > { %v2350_v28 = vrot.slane %v2349_v12, 4  ;;  %s319_s14 = scalar_lea.vmem [#allocation11], %s4138_s26  ;;  %s2511_s9 = sshll.u32 %s325_s18, 4  ;;  %s5666_s9 = int_to_ptr.vmem [resolvable:$true] %s2511_s9 }
 0x31d   : > { %v2452_v60 = vadd.f32 %v2451_v62, %v2450_v51  ;;  %s2498_s29 = sshll.u32 %s319_s14, 4  ;;  %s5656_s17 = scalar_lea.hbm %s5742_s5, %s2734_s30  ;;  %s5658_s29 = int_to_ptr.vmem [resolvable:$true] %s2498_s29 }
 0x31e   : > { %v2351_v39 = vadd.f32 %v2350_v28, %v2349_v12  ;;  %s5664_s12 = scalar_lea.hbm %s5743_s6, %s2734_s30  ;;  %s5668_s20 = scalar_lea.sflag [#allocation12], %s2465_s27 }
 0x31f   : > { %v2453_v53 = vrot.slane %v2452_v60, 4  ;;  %s3777_s8 = scalar_lea.vmem %s5658_s29, 16  ;;  %s3902_s7 = smov [#allocation11]  }
 0x320   : > { %v2352_v20 = vrot.slane %v2351_v39, 2  ;;  %p3778_p3 = scmp.ne.s32.totalorder %s5658_s29, %s3777_s8  ;;  %s3781_s11 = sshll.u32 %s3902_s7, 4  ;;  %s3782_s11 = int_to_ptr.vmem [resolvable:$false] %s3781_s11 }
 0x321   : > { %v2454_v54 = vadd.f32 %v2453_v53, %v2452_v60  ;;  %s3783_s15 = scalar_lea.vmem %s3782_s11, 32  ;;  %p3784_p13 = scmp.lt.s32.totalorder %s5658_s29, %s3782_s11 }
 0x322   : > { %v2353_v9 = vadd.f32 %v2352_v20, %v2351_v39  ;;  %p3779_p7 = pnand %p3778_p3, %p4087_p6  ;;  %p3785_p0 = scmp.lt.s32.totalorder %s3783_s15, %s3777_s8 }
 0x323   : > { %v2455_v38 = vrot.slane %v2454_v54, 2 }
 0x324   : > { %v2354_v8 = vrot.slane %v2353_v9, 1  ;;  %p3780_p10 = pneg %p3779_p7  ;;  %p3786_p5 = por %p3785_p0, %p3784_p13 }
 0x325   : > { %v2456_v22 = vadd.f32 %v2455_v38, %v2454_v54 }
 0x326   : > { %v2355_v42 = vadd.f32 %v2354_v8, %v2353_v9  ;;  %p3787_p11 = pnand %p3786_p5, %p3780_p10 }
 0x327   : > { %v2457_v43 = vrot.slane %v2456_v22, 1 }
 0x328   : > { %2357 = vst.msk [vmem:[%s319_s14] sm:$0x1] %vm2356_vm15, %v2355_v42 }
 0x329   : > { %v2458_v31 = vadd.f32 %v2457_v43, %v2456_v22 }
 0x32a   : > { %3790 = shalt.err (!%p3787_p11)
}
 0x32b   : > { %s3791_s27 = scalar_lea.hbm %s5656_s17, 16  ;;  %s3795_s25 = scalar_lea.hbm %s5742_s5, 32 }
 0x32c   : > { %p3792_p9 = scmp.ne.s32.totalorder %s5656_s17, %s3791_s27  ;;  %p3796_p1 = scmp.lt.u32.totalorder %s5656_s17, %s5742_s5 }
 0x32d   : > { %p3797_p4 = scmp.lt.u32.totalorder %s3795_s25, %s3791_s27  ;;  %p3799_p3 = scmp.lt.u32.totalorder %s3791_s27, %s5656_s17 }
 0x32e   : > { %p3793_p12 = pnand %p3792_p9, %p4087_p6 }
 0x32f   : > { %p3798_p8 = por %p3797_p4, %p3796_p1 }
 0x330   : > { %p3794_p2 = pneg %p3793_p12 }
 0x331   : > { %p3800_p7 = por %p3799_p3, %p3798_p8 }
 0x333   : > { %p3801_p10 = pnand %p3800_p7, %p3794_p2 }
 0x335   : > { %3804 = shalt.err (!%p3801_p10)
}
 0x336   : > { %2931 = dma.vmem_to_hbm [thread:$0]  (%p4087_p6), %s5658_s29, 16, %s5656_s17, %s5668_s20   ;;  %2459 = vst.msk [vmem:[%s325_s18] sm:$0x1] %vm2356_vm15, %v2458_v31 }
 0x337   : > { %s3805_s8 = scalar_lea.vmem %s5666_s9, 16  ;;  %s3903_s11 = smov [#allocation13]  }
 0x338   : > { %p3806_p13 = scmp.ne.s32.totalorder %s5666_s9, %s3805_s8  ;;  %s3809_s15 = sshll.u32 %s3903_s11, 4  ;;  %s3810_s15 = int_to_ptr.vmem [resolvable:$false] %s3809_s15 }
 0x339   : > { %s3811_s27 = scalar_lea.vmem %s3810_s15, 32  ;;  %p3812_p11 = scmp.lt.s32.totalorder %s5666_s9, %s3810_s15 }
 0x33a   : > { %p3807_p0 = pnand %p3806_p13, %p4087_p6  ;;  %p3813_p9 = scmp.lt.s32.totalorder %s3811_s27, %s3805_s8 }
 0x33c   : > { %p3808_p5 = pneg %p3807_p0  ;;  %p3814_p12 = por %p3813_p9, %p3812_p11 }
 0x33e   : > { %p3815_p2 = pnand %p3814_p12, %p3808_p5 }
 0x340   : > { %3818 = shalt.err (!%p3815_p2)
}
 0x341   : > { %s3819_s26 = scalar_lea.hbm %s5664_s12, 16  ;;  %s3823_s17 = scalar_lea.hbm %s5743_s6, 32 }
 0x342   : > { %p3820_p1 = scmp.ne.s32.totalorder %s5664_s12, %s3819_s26  ;;  %p3824_p3 = scmp.lt.u32.totalorder %s5664_s12, %s5743_s6 }
 0x343   : > { %p3825_p7 = scmp.lt.u32.totalorder %s3823_s17, %s3819_s26  ;;  %p3827_p13 = scmp.lt.u32.totalorder %s3819_s26, %s5664_s12 }
 0x344   : > { %p3821_p4 = pnand %p3820_p1, %p4087_p6 }
 0x345   : > { %p3826_p10 = por %p3825_p7, %p3824_p3 }
 0x346   : > { %p3822_p8 = pneg %p3821_p4 }
 0x347   : > { %p3828_p0 = por %p3827_p13, %p3826_p10 }
 0x349   : > { %p3829_p5 = pnand %p3828_p0, %p3822_p8 }
 0x34b   : > { %3832 = shalt.err (!%p3829_p5)
}
 0x34c   : > { %2932 = dma.vmem_to_hbm [thread:$0]  (%p4087_p6), %s5666_s9, 16, %s5664_s12, %s5668_s20  }
 0x34d PF: > { %s2523_s25 = sand.u32 1, %s3871_s21   ;;  %p5964_p11 = scmp.ne.s32.totalorder %s5820_s28, 0 }
 0x34e   : > { %p5965_p9 = scmp.ge.s32.totalorder %s3883_s24, 2  ;;  %s2524_s19 = scalar_lea.sflag [#allocation4], %s2523_s25 }
 0x350   : > { %p2951_p12 = pnand %p5965_p9, %p5964_p11 }
 0x352   : > { %3862 = dma.done.wait (!%p2951_p12), %s2524_s19, 2048  }
 0x353   : > { %3864 = vsyncadd (!%p2951_p12), %s2524_s19, 4294965248  ;;  %s5966_s7 = sadd.s32 4294967294, %s3883_s24  }
 0x354   : > { %s2532_s8 = sand.u32 1, %s5966_s7  }
 0x355   : > { %s2533_s11 = scalar_lea.sflag [#allocation12], %s2532_s8 }
 0x356   : > { %3866 = dma.done.wait (!%p2951_p12), %s2533_s11, 32  }
 0x357   : > { %3868 = vsyncadd (!%p2951_p12), %s2533_s11, 4294967264  ;;  %p25_p6 = scmp.ge.s32.totalorder %s4073_s13, 4   ;;  %s5967_s21 = smov %s3875_s22 }
 0x358   : > { %s5968_s22 = smov %s3879_s23  ;;  %s5969_s23 = smov %s4083_s16 }
 0x359   : > { %s5970_s24 = smov %s4073_s13  ;;  %27 = sbr.rel (!%p25_p6) target bundleno = 9 (0x9), region = 125 }
 0x360   :  { %2545 = vsyncpa [#allocation3], 1 }
 0x361   :  { %2547 = vsyncpa [#allocation3 + $0x1], 1 }
 0x362   :  { %2548 = vsyncpa [#allocation6], 1 }
 0x363   :  { %2549 = vsyncpa [#allocation9], 1 }
 0x364   :  { %2550 = vsyncpa [#allocation4], 1 }
 0x365   :  { %2552 = vsyncpa [#allocation4 + $0x1], 1 }
 0x366   :  { %2553 = vsyncpa [#allocation12], 1 }
 0x367   :  { %2555 = vsyncpa [#allocation12 + $0x1], 1 }

</bundles_post_ra>
